<compile_context>
chip_gen: v5e
topology: v5e:2x2
jax: 0.10.0
libtpu: 0.0.40
codegen_flags: <defaults>
</compile_context>

<pallas_src>
import functools
import numpy as np
import jax
import jax.numpy as jnp
from jax import lax
from jax.experimental import pallas as pl
from jax.experimental.pallas import tpu as pltpu

EPS = float(jnp.finfo(jnp.float32).eps)  # matches torch.finfo(float32).eps


def memlstm_kernel(x_ref, wih_ref, whh_ref, b_ref, wp_ref, bp_ref,
                   gamma_ref, beta_ref, out_ref):
    # x_ref   : (2, B, S, H)   branch-stacked inputs (0 = h-path, 1 = c-path)
    # wih_ref : (2, 4, H, H)   per-gate, pre-transposed input weights
    # whh_ref : (2, 4, H, H)   per-gate, pre-transposed recurrent weights
    # b_ref   : (2, 4, 1, H)   per-gate bias (b_ih + b_hh)
    # wp_ref  : (2, H, H)      pre-transposed projection weights
    # bp_ref / gamma_ref / beta_ref : (2, 1, H)
    # out_ref : (2, B, S*H)    lane-dense output block
    NB, B, S, H = x_ref.shape
    f32 = jnp.float32

    # ---- hoisted per-gate input GEMMs (all timesteps, both branches) -------
    gx = []            # gx[br][g]  : (B, S, H)
    whh = []           # whh[br][g] : (H, H)  (kept resident across the loop)
    for br in range(NB):
        x2d = x_ref[br].reshape(B * S, H).astype(f32)    # tile-aligned reshape
        gx_br, whh_br = [], []
        for g in range(4):
            gg = jnp.dot(x2d, wih_ref[br, g],
                         preferred_element_type=f32) + b_ref[br, g]
            gx_br.append(gg.reshape(B, S, H))
            whh_br.append(whh_ref[br, g])
        gx.append(gx_br)
        whh.append(whh_br)

    # ---- serial recurrence: two independent branch chains interleaved ------
    # Only S-1 steps: the causal shift discards the result of step S-1.
    # Per-gate matmuls keep every gate lane-aligned (no cross-lane extracts
    # on the critical path); the MXU is otherwise idle so 8 tiny dots/step
    # are free.
    h_prev = [jnp.zeros((B, H), f32) for _ in range(NB)]
    c_prev = [jnp.zeros((B, H), f32) for _ in range(NB)]
    h_seq = [[] for _ in range(NB)]          # per-branch per-step hidden states
    for t in range(S - 1):                   # fully unrolled, static indices
        for br in range(NB):
            hp = h_prev[br]
            gi = gx[br][0][:, t, :] + jnp.dot(hp, whh[br][0],
                                              preferred_element_type=f32)
            gf = gx[br][1][:, t, :] + jnp.dot(hp, whh[br][1],
                                              preferred_element_type=f32)
            gg = gx[br][2][:, t, :] + jnp.dot(hp, whh[br][2],
                                              preferred_element_type=f32)
            go = gx[br][3][:, t, :] + jnp.dot(hp, whh[br][3],
                                              preferred_element_type=f32)
            i = jax.nn.sigmoid(gi)
            f = jax.nn.sigmoid(gf)
            g = jnp.tanh(gg)
            o = jax.nn.sigmoid(go)
            c = f * c_prev[br] + i * g
            h = o * jnp.tanh(c)
            c_prev[br] = c
            h_prev[br] = h
            h_seq[br].append(h)

    # ---- batched epilogue (off the critical path): proj + cLN + residual +
    # causal shift, only the first S-1 time rows.  The shift is lane-wise:
    # row t goes to lanes [(t+1)*H, (t+2)*H) of the lane-dense output. -------
    zero_row = jnp.zeros((B, H), out_ref.dtype)
    for br in range(NB):
        wp = wp_ref[br]
        bp = bp_ref[br]
        gamma = gamma_ref[br]
        beta = beta_ref[br]
        x_br = x_ref[br].astype(f32)          # re-read x for the residual
        out_ref[br, :, 0:H] = zero_row        # shifted-in zeros at t = 0
        for t in range(S - 1):
            y = jnp.dot(h_seq[br][t], wp, preferred_element_type=f32) + bp
            mean = jnp.mean(y, axis=-1, keepdims=True)
            var = jnp.mean((y - mean) ** 2, axis=-1, keepdims=True)
            yn = gamma * (y - mean) * lax.rsqrt(var + EPS) + beta   # cLN 'BTD'
            res = x_br[:, t, :] + yn                                # residual
            out_ref[br, :, (t + 1) * H:(t + 2) * H] = res.astype(out_ref.dtype)


@functools.partial(jax.jit, static_argnums=2)
def mem_lstm_forward(h, c, S, params):
    """h, c: (1, B*S, H) float32.  Returns (h_out, c_out), same shapes."""
    d, BS, H = h.shape
    assert d == 1, "unidirectional (bidirectional=False) only"
    assert S >= 1 and BS % S == 0, "B*S must be divisible by S"
    B = BS // S

    # (1, B*S, H) -> (B, S, H) is a pure reshape (no transpose); stack branches.
    x = jnp.stack([h[0].reshape(B, S, H), c[0].reshape(B, S, H)], axis=0)

    # Rough f32 working-set estimate: x, out, hoisted gx, per-step states,
    # weights + biases.  Must stay well under the explicit VMEM limit; for
    # larger shapes a B-tiling grid axis is required (see TODO at top).
    f32b = 4
    vmem_est = f32b * (
        2 * B * S * H                    # x
        + 2 * B * S * H                  # out
        + 2 * 4 * B * S * H              # hoisted per-gate gx
        + 2 * (S - 1) * B * H            # per-step hidden states
        + 2 * (4 * H * H + 4 * H * H + H * H)   # gate + proj weights
        + 2 * 7 * H)                     # biases, gamma, beta
    vmem_limit = 32 * 1024 * 1024
    assert vmem_est < vmem_limit // 2, (
        "working set too large for a single un-tiled invocation; "
        "add a B-tiling grid axis")

    out = pl.pallas_call(
        memlstm_kernel,
        out_shape=jax.ShapeDtypeStruct((2, B, S * H), h.dtype),
        compiler_params=pltpu.CompilerParams(vmem_limit_bytes=vmem_limit),
    )(x, params["wih_t"], params["whh_t"], params["b"], params["wproj_t"],
      params["bproj"], params["gamma"], params["beta"])

    # (B, S*H) -> (1, B*S, H) is the same memory order: a free reshape.
    h_out = out[0].reshape(1, B * S, H)
    c_out = out[1].reshape(1, B * S, H)
    return h_out, c_out


def init_params(key, H):
    """Deterministic synthetic init (PyTorch-LSTM-like uniform)."""
    k = 1.0 / np.sqrt(H)
    keys = jax.random.split(key, 12)

    def u(kk, shape):
        return jax.random.uniform(kk, shape, jnp.float32, -k, k)

    # Two branches (h-path, c-path), each with its own SingleLSTM + proj.
    wih = jnp.stack([u(keys[0], (4 * H, H)), u(keys[1], (4 * H, H))])   # (2,4H,H)
    whh = jnp.stack([u(keys[2], (4 * H, H)), u(keys[3], (4 * H, H))])
    bih = jnp.stack([u(keys[4], (4 * H,)), u(keys[5], (4 * H,))])       # (2,4H)
    bhh = jnp.stack([u(keys[6], (4 * H,)), u(keys[7], (4 * H,))])
    wproj = jnp.stack([u(keys[8], (H, H)), u(keys[9], (H, H))])
    bproj = jnp.stack([u(keys[10], (H,)), u(keys[11], (H,))])

    def split_gates_t(w):  # (2, 4H, H) -> (2, 4, H, H), per-gate transposed
        parts = [jnp.transpose(w[:, g * H:(g + 1) * H, :], (0, 2, 1))
                 for g in range(4)]
        return jnp.stack(parts, axis=1)

    b = bih + bhh                                                   # (2, 4H)
    b_split = jnp.stack([b[:, g * H:(g + 1) * H] for g in range(4)],
                        axis=1)[:, :, None, :]                      # (2,4,1,H)

    params = {
        "wih_t": split_gates_t(wih),                     # (2, 4, H, H)
        "whh_t": split_gates_t(whh),                     # (2, 4, H, H)
        "b": b_split,                                    # (2, 4, 1, H)
        "wproj_t": jnp.transpose(wproj, (0, 2, 1)),      # (2, H, H)
        "bproj": bproj[:, None, :],                      # (2, 1, H)
        "gamma": jnp.ones((2, 1, H), jnp.float32),       # cLN reset: ones
        "beta": jnp.zeros((2, 1, H), jnp.float32),       # cLN reset: zeros
    }
    raw = {"wih": wih, "whh": whh, "bih": bih, "bhh": bhh,
           "wproj": wproj, "bproj": bproj}
    return params, raw


def _ref_branch(x, wih, whh, bih, bhh, wp, bp):
    """Pure-JAX reference of one branch: shift(x + cLN(proj(LSTM(x))))."""
    B, S, H = x.shape

    def cell(carry, x_t):
        h_prev, c_prev = carry
        gates = x_t @ wih.T + bih + h_prev @ whh.T + bhh
        i, f, g, o = jnp.split(gates, 4, axis=-1)
        i, f, o = jax.nn.sigmoid(i), jax.nn.sigmoid(f), jax.nn.sigmoid(o)
        g = jnp.tanh(g)
        c_new = f * c_prev + i * g
        h_new = o * jnp.tanh(c_new)
        return (h_new, c_new), h_new

    h0 = jnp.zeros((B, H), jnp.float32)
    c0 = jnp.zeros((B, H), jnp.float32)
    _, hs = lax.scan(cell, (h0, c0), jnp.transpose(x, (1, 0, 2)))
    hs = jnp.transpose(hs, (1, 0, 2))                     # (B, S, H)
    y = hs @ wp.T + bp
    mean = y.mean(-1, keepdims=True)
    var = ((y - mean) ** 2).mean(-1, keepdims=True)
    yn = (y - mean) / jnp.sqrt(var + EPS)                 # gamma=1, beta=0
    out = x + yn
    return jnp.concatenate([jnp.zeros_like(out[:, :1]), out[:, :-1]], axis=1)


if __name__ == "__main__":
    B, S, H = 2, 8, 32
    d = 1  # unidirectional

    key = jax.random.PRNGKey(0)
    kh, kc, kp = jax.random.split(key, 3)
    h_in = jax.random.normal(kh, (d, B * S, H), jnp.float32)
    c_in = jax.random.normal(kc, (d, B * S, H), jnp.float32)

    params, raw = init_params(kp, H)

    h_out, c_out = mem_lstm_forward(h_in, c_in, S, params)
    jax.block_until_ready((h_out, c_out))

    # pure-JAX reference check
    ref_h = _ref_branch(h_in[0].reshape(B, S, H), raw["wih"][0], raw["whh"][0],
                        raw["bih"][0], raw["bhh"][0], raw["wproj"][0],
                        raw["bproj"][0]).reshape(1, B * S, H)
    ref_c = _ref_branch(c_in[0].reshape(B, S, H), raw["wih"][1], raw["whh"][1],
                        raw["bih"][1], raw["bhh"][1], raw["wproj"][1],
                        raw["bproj"][1]).reshape(1, B * S, H)

    np.testing.assert_allclose(np.asarray(h_out), np.asarray(ref_h),
                               rtol=1e-3, atol=1e-3)
    np.testing.assert_allclose(np.asarray(c_out), np.asarray(ref_c),
                               rtol=1e-3, atol=1e-3)
    print("KERNEL_OK")
</pallas_src>

<mosaic_0001>
module attributes {stable_mosaic.version = 11 : i64} {
  func.func @memlstm_kernel(%arg0: memref<2x2x8x32xf32, #tpu.memory_space<vmem>>, %arg1: memref<2x4x32x32xf32, #tpu.memory_space<vmem>>, %arg2: memref<2x4x32x32xf32, #tpu.memory_space<vmem>>, %arg3: memref<2x4x1x32xf32, #tpu.memory_space<vmem>>, %arg4: memref<2x32x32xf32, #tpu.memory_space<vmem>>, %arg5: memref<2x1x32xf32, #tpu.memory_space<vmem>>, %arg6: memref<2x1x32xf32, #tpu.memory_space<vmem>>, %arg7: memref<2x1x32xf32, #tpu.memory_space<vmem>>, %arg8: memref<2x2x256xf32, #tpu.memory_space<vmem>>) attributes {dimension_semantics = [], scalar_prefetch = 0 : i64, scratch_operands = 0 : i64, tpu.core_type = #tpu.core_type<tc>} {
    %c0 = arith.constant 0 : index
    %c0_0 = arith.constant 0 : index
    %c0_1 = arith.constant 0 : index
    %c0_2 = arith.constant 0 : index
    %0 = vector.load %arg0[%c0, %c0_0, %c0_1, %c0_2] : memref<2x2x8x32xf32, #tpu.memory_space<vmem>>, vector<1x2x8x32xf32>
    %1 = vector.shape_cast %0 : vector<1x2x8x32xf32> to vector<2x8x32xf32>
    %2 = vector.shape_cast %1 : vector<2x8x32xf32> to vector<16x32xf32>
    %c0_3 = arith.constant 0 : index
    %c0_4 = arith.constant 0 : index
    %c0_5 = arith.constant 0 : index
    %c0_6 = arith.constant 0 : index
    %3 = vector.load %arg1[%c0_3, %c0_4, %c0_5, %c0_6] : memref<2x4x32x32xf32, #tpu.memory_space<vmem>>, vector<1x1x32x32xf32>
    %4 = vector.shape_cast %3 : vector<1x1x32x32xf32> to vector<32x32xf32>
    %cst = arith.constant dense<0.000000e+00> : vector<16x32xf32>
    %5 = tpu.matmul %2, %4, %cst {dimension_numbers = #tpu.dot_dimension_numbers<[1], [0], [0], [1], [0, 0, 1, 1], [], []>} : vector<16x32xf32>, vector<32x32xf32>, vector<16x32xf32> -> vector<16x32xf32>
    %c0_7 = arith.constant 0 : index
    %c0_8 = arith.constant 0 : index
    %c0_9 = arith.constant 0 : index
    %c0_10 = arith.constant 0 : index
    %6 = vector.load %arg3[%c0_7, %c0_8, %c0_9, %c0_10] : memref<2x4x1x32xf32, #tpu.memory_space<vmem>>, vector<1x1x1x32xf32>
    %7 = vector.shape_cast %6 : vector<1x1x1x32xf32> to vector<1x32xf32>
    %8 = vector.broadcast %7 : vector<1x32xf32> to vector<16x32xf32>
    %9 = arith.addf %5, %8 : vector<16x32xf32>
    %10 = vector.shape_cast %9 : vector<16x32xf32> to vector<2x8x32xf32>
    %c0_11 = arith.constant 0 : index
    %c0_12 = arith.constant 0 : index
    %c0_13 = arith.constant 0 : index
    %c0_14 = arith.constant 0 : index
    %11 = vector.load %arg2[%c0_11, %c0_12, %c0_13, %c0_14] : memref<2x4x32x32xf32, #tpu.memory_space<vmem>>, vector<1x1x32x32xf32>
    %12 = vector.shape_cast %11 : vector<1x1x32x32xf32> to vector<32x32xf32>
    %c0_15 = arith.constant 0 : index
    %c1 = arith.constant 1 : index
    %c0_16 = arith.constant 0 : index
    %c0_17 = arith.constant 0 : index
    %13 = vector.load %arg1[%c0_15, %c1, %c0_16, %c0_17] : memref<2x4x32x32xf32, #tpu.memory_space<vmem>>, vector<1x1x32x32xf32>
    %14 = vector.shape_cast %13 : vector<1x1x32x32xf32> to vector<32x32xf32>
    %cst_18 = arith.constant dense<0.000000e+00> : vector<16x32xf32>
    %15 = tpu.matmul %2, %14, %cst_18 {dimension_numbers = #tpu.dot_dimension_numbers<[1], [0], [0], [1], [0, 0, 1, 1], [], []>} : vector<16x32xf32>, vector<32x32xf32>, vector<16x32xf32> -> vector<16x32xf32>
    %c0_19 = arith.constant 0 : index
    %c1_20 = arith.constant 1 : index
    %c0_21 = arith.constant 0 : index
    %c0_22 = arith.constant 0 : index
    %16 = vector.load %arg3[%c0_19, %c1_20, %c0_21, %c0_22] : memref<2x4x1x32xf32, #tpu.memory_space<vmem>>, vector<1x1x1x32xf32>
    %17 = vector.shape_cast %16 : vector<1x1x1x32xf32> to vector<1x32xf32>
    %18 = vector.broadcast %17 : vector<1x32xf32> to vector<16x32xf32>
    %19 = arith.addf %15, %18 : vector<16x32xf32>
    %20 = vector.shape_cast %19 : vector<16x32xf32> to vector<2x8x32xf32>
    %c0_23 = arith.constant 0 : index
    %c1_24 = arith.constant 1 : index
    %c0_25 = arith.constant 0 : index
    %c0_26 = arith.constant 0 : index
    %21 = vector.load %arg2[%c0_23, %c1_24, %c0_25, %c0_26] : memref<2x4x32x32xf32, #tpu.memory_space<vmem>>, vector<1x1x32x32xf32>
    %22 = vector.shape_cast %21 : vector<1x1x32x32xf32> to vector<32x32xf32>
    %c0_27 = arith.constant 0 : index
    %c2 = arith.constant 2 : index
    %c0_28 = arith.constant 0 : index
    %c0_29 = arith.constant 0 : index
    %23 = vector.load %arg1[%c0_27, %c2, %c0_28, %c0_29] : memref<2x4x32x32xf32, #tpu.memory_space<vmem>>, vector<1x1x32x32xf32>
    %24 = vector.shape_cast %23 : vector<1x1x32x32xf32> to vector<32x32xf32>
    %cst_30 = arith.constant dense<0.000000e+00> : vector<16x32xf32>
    %25 = tpu.matmul %2, %24, %cst_30 {dimension_numbers = #tpu.dot_dimension_numbers<[1], [0], [0], [1], [0, 0, 1, 1], [], []>} : vector<16x32xf32>, vector<32x32xf32>, vector<16x32xf32> -> vector<16x32xf32>
    %c0_31 = arith.constant 0 : index
    %c2_32 = arith.constant 2 : index
    %c0_33 = arith.constant 0 : index
    %c0_34 = arith.constant 0 : index
    %26 = vector.load %arg3[%c0_31, %c2_32, %c0_33, %c0_34] : memref<2x4x1x32xf32, #tpu.memory_space<vmem>>, vector<1x1x1x32xf32>
    %27 = vector.shape_cast %26 : vector<1x1x1x32xf32> to vector<1x32xf32>
    %28 = vector.broadcast %27 : vector<1x32xf32> to vector<16x32xf32>
    %29 = arith.addf %25, %28 : vector<16x32xf32>
    %30 = vector.shape_cast %29 : vector<16x32xf32> to vector<2x8x32xf32>
    %c0_35 = arith.constant 0 : index
    %c2_36 = arith.constant 2 : index
    %c0_37 = arith.constant 0 : index
    %c0_38 = arith.constant 0 : index
    %31 = vector.load %arg2[%c0_35, %c2_36, %c0_37, %c0_38] : memref<2x4x32x32xf32, #tpu.memory_space<vmem>>, vector<1x1x32x32xf32>
    %32 = vector.shape_cast %31 : vector<1x1x32x32xf32> to vector<32x32xf32>
    %c0_39 = arith.constant 0 : index
    %c3 = arith.constant 3 : index
    %c0_40 = arith.constant 0 : index
    %c0_41 = arith.constant 0 : index
    %33 = vector.load %arg1[%c0_39, %c3, %c0_40, %c0_41] : memref<2x4x32x32xf32, #tpu.memory_space<vmem>>, vector<1x1x32x32xf32>
    %34 = vector.shape_cast %33 : vector<1x1x32x32xf32> to vector<32x32xf32>
    %cst_42 = arith.constant dense<0.000000e+00> : vector<16x32xf32>
    %35 = tpu.matmul %2, %34, %cst_42 {dimension_numbers = #tpu.dot_dimension_numbers<[1], [0], [0], [1], [0, 0, 1, 1], [], []>} : vector<16x32xf32>, vector<32x32xf32>, vector<16x32xf32> -> vector<16x32xf32>
    %c0_43 = arith.constant 0 : index
    %c3_44 = arith.constant 3 : index
    %c0_45 = arith.constant 0 : index
    %c0_46 = arith.constant 0 : index
    %36 = vector.load %arg3[%c0_43, %c3_44, %c0_45, %c0_46] : memref<2x4x1x32xf32, #tpu.memory_space<vmem>>, vector<1x1x1x32xf32>
    %37 = vector.shape_cast %36 : vector<1x1x1x32xf32> to vector<1x32xf32>
    %38 = vector.broadcast %37 : vector<1x32xf32> to vector<16x32xf32>
    %39 = arith.addf %35, %38 : vector<16x32xf32>
    %40 = vector.shape_cast %39 : vector<16x32xf32> to vector<2x8x32xf32>
    %c0_47 = arith.constant 0 : index
    %c3_48 = arith.constant 3 : index
    %c0_49 = arith.constant 0 : index
    %c0_50 = arith.constant 0 : index
    %41 = vector.load %arg2[%c0_47, %c3_48, %c0_49, %c0_50] : memref<2x4x32x32xf32, #tpu.memory_space<vmem>>, vector<1x1x32x32xf32>
    %42 = vector.shape_cast %41 : vector<1x1x32x32xf32> to vector<32x32xf32>
    %c1_51 = arith.constant 1 : index
    %c0_52 = arith.constant 0 : index
    %c0_53 = arith.constant 0 : index
    %c0_54 = arith.constant 0 : index
    %43 = vector.load %arg0[%c1_51, %c0_52, %c0_53, %c0_54] : memref<2x2x8x32xf32, #tpu.memory_space<vmem>>, vector<1x2x8x32xf32>
    %44 = vector.shape_cast %43 : vector<1x2x8x32xf32> to vector<2x8x32xf32>
    %45 = vector.shape_cast %44 : vector<2x8x32xf32> to vector<16x32xf32>
    %c1_55 = arith.constant 1 : index
    %c0_56 = arith.constant 0 : index
    %c0_57 = arith.constant 0 : index
    %c0_58 = arith.constant 0 : index
    %46 = vector.load %arg1[%c1_55, %c0_56, %c0_57, %c0_58] : memref<2x4x32x32xf32, #tpu.memory_space<vmem>>, vector<1x1x32x32xf32>
    %47 = vector.shape_cast %46 : vector<1x1x32x32xf32> to vector<32x32xf32>
    %cst_59 = arith.constant dense<0.000000e+00> : vector<16x32xf32>
    %48 = tpu.matmul %45, %47, %cst_59 {dimension_numbers = #tpu.dot_dimension_numbers<[1], [0], [0], [1], [0, 0, 1, 1], [], []>} : vector<16x32xf32>, vector<32x32xf32>, vector<16x32xf32> -> vector<16x32xf32>
    %c1_60 = arith.constant 1 : index
    %c0_61 = arith.constant 0 : index
    %c0_62 = arith.constant 0 : index
    %c0_63 = arith.constant 0 : index
    %49 = vector.load %arg3[%c1_60, %c0_61, %c0_62, %c0_63] : memref<2x4x1x32xf32, #tpu.memory_space<vmem>>, vector<1x1x1x32xf32>
    %50 = vector.shape_cast %49 : vector<1x1x1x32xf32> to vector<1x32xf32>
    %51 = vector.broadcast %50 : vector<1x32xf32> to vector<16x32xf32>
    %52 = arith.addf %48, %51 : vector<16x32xf32>
    %53 = vector.shape_cast %52 : vector<16x32xf32> to vector<2x8x32xf32>
    %c1_64 = arith.constant 1 : index
    %c0_65 = arith.constant 0 : index
    %c0_66 = arith.constant 0 : index
    %c0_67 = arith.constant 0 : index
    %54 = vector.load %arg2[%c1_64, %c0_65, %c0_66, %c0_67] : memref<2x4x32x32xf32, #tpu.memory_space<vmem>>, vector<1x1x32x32xf32>
    %55 = vector.shape_cast %54 : vector<1x1x32x32xf32> to vector<32x32xf32>
    %c1_68 = arith.constant 1 : index
    %c1_69 = arith.constant 1 : index
    %c0_70 = arith.constant 0 : index
    %c0_71 = arith.constant 0 : index
    %56 = vector.load %arg1[%c1_68, %c1_69, %c0_70, %c0_71] : memref<2x4x32x32xf32, #tpu.memory_space<vmem>>, vector<1x1x32x32xf32>
    %57 = vector.shape_cast %56 : vector<1x1x32x32xf32> to vector<32x32xf32>
    %cst_72 = arith.constant dense<0.000000e+00> : vector<16x32xf32>
    %58 = tpu.matmul %45, %57, %cst_72 {dimension_numbers = #tpu.dot_dimension_numbers<[1], [0], [0], [1], [0, 0, 1, 1], [], []>} : vector<16x32xf32>, vector<32x32xf32>, vector<16x32xf32> -> vector<16x32xf32>
    %c1_73 = arith.constant 1 : index
    %c1_74 = arith.constant 1 : index
    %c0_75 = arith.constant 0 : index
    %c0_76 = arith.constant 0 : index
    %59 = vector.load %arg3[%c1_73, %c1_74, %c0_75, %c0_76] : memref<2x4x1x32xf32, #tpu.memory_space<vmem>>, vector<1x1x1x32xf32>
    %60 = vector.shape_cast %59 : vector<1x1x1x32xf32> to vector<1x32xf32>
    %61 = vector.broadcast %60 : vector<1x32xf32> to vector<16x32xf32>
    %62 = arith.addf %58, %61 : vector<16x32xf32>
    %63 = vector.shape_cast %62 : vector<16x32xf32> to vector<2x8x32xf32>
    %c1_77 = arith.constant 1 : index
    %c1_78 = arith.constant 1 : index
    %c0_79 = arith.constant 0 : index
    %c0_80 = arith.constant 0 : index
    %64 = vector.load %arg2[%c1_77, %c1_78, %c0_79, %c0_80] : memref<2x4x32x32xf32, #tpu.memory_space<vmem>>, vector<1x1x32x32xf32>
    %65 = vector.shape_cast %64 : vector<1x1x32x32xf32> to vector<32x32xf32>
    %c1_81 = arith.constant 1 : index
    %c2_82 = arith.constant 2 : index
    %c0_83 = arith.constant 0 : index
    %c0_84 = arith.constant 0 : index
    %66 = vector.load %arg1[%c1_81, %c2_82, %c0_83, %c0_84] : memref<2x4x32x32xf32, #tpu.memory_space<vmem>>, vector<1x1x32x32xf32>
    %67 = vector.shape_cast %66 : vector<1x1x32x32xf32> to vector<32x32xf32>
    %cst_85 = arith.constant dense<0.000000e+00> : vector<16x32xf32>
    %68 = tpu.matmul %45, %67, %cst_85 {dimension_numbers = #tpu.dot_dimension_numbers<[1], [0], [0], [1], [0, 0, 1, 1], [], []>} : vector<16x32xf32>, vector<32x32xf32>, vector<16x32xf32> -> vector<16x32xf32>
    %c1_86 = arith.constant 1 : index
    %c2_87 = arith.constant 2 : index
    %c0_88 = arith.constant 0 : index
    %c0_89 = arith.constant 0 : index
    %69 = vector.load %arg3[%c1_86, %c2_87, %c0_88, %c0_89] : memref<2x4x1x32xf32, #tpu.memory_space<vmem>>, vector<1x1x1x32xf32>
    %70 = vector.shape_cast %69 : vector<1x1x1x32xf32> to vector<1x32xf32>
    %71 = vector.broadcast %70 : vector<1x32xf32> to vector<16x32xf32>
    %72 = arith.addf %68, %71 : vector<16x32xf32>
    %73 = vector.shape_cast %72 : vector<16x32xf32> to vector<2x8x32xf32>
    %c1_90 = arith.constant 1 : index
    %c2_91 = arith.constant 2 : index
    %c0_92 = arith.constant 0 : index
    %c0_93 = arith.constant 0 : index
    %74 = vector.load %arg2[%c1_90, %c2_91, %c0_92, %c0_93] : memref<2x4x32x32xf32, #tpu.memory_space<vmem>>, vector<1x1x32x32xf32>
    %75 = vector.shape_cast %74 : vector<1x1x32x32xf32> to vector<32x32xf32>
    %c1_94 = arith.constant 1 : index
    %c3_95 = arith.constant 3 : index
    %c0_96 = arith.constant 0 : index
    %c0_97 = arith.constant 0 : index
    %76 = vector.load %arg1[%c1_94, %c3_95, %c0_96, %c0_97] : memref<2x4x32x32xf32, #tpu.memory_space<vmem>>, vector<1x1x32x32xf32>
    %77 = vector.shape_cast %76 : vector<1x1x32x32xf32> to vector<32x32xf32>
    %cst_98 = arith.constant dense<0.000000e+00> : vector<16x32xf32>
    %78 = tpu.matmul %45, %77, %cst_98 {dimension_numbers = #tpu.dot_dimension_numbers<[1], [0], [0], [1], [0, 0, 1, 1], [], []>} : vector<16x32xf32>, vector<32x32xf32>, vector<16x32xf32> -> vector<16x32xf32>
    %c1_99 = arith.constant 1 : index
    %c3_100 = arith.constant 3 : index
    %c0_101 = arith.constant 0 : index
    %c0_102 = arith.constant 0 : index
    %79 = vector.load %arg3[%c1_99, %c3_100, %c0_101, %c0_102] : memref<2x4x1x32xf32, #tpu.memory_space<vmem>>, vector<1x1x1x32xf32>
    %80 = vector.shape_cast %79 : vector<1x1x1x32xf32> to vector<1x32xf32>
    %81 = vector.broadcast %80 : vector<1x32xf32> to vector<16x32xf32>
    %82 = arith.addf %78, %81 : vector<16x32xf32>
    %83 = vector.shape_cast %82 : vector<16x32xf32> to vector<2x8x32xf32>
    %c1_103 = arith.constant 1 : index
    %c3_104 = arith.constant 3 : index
    %c0_105 = arith.constant 0 : index
    %c0_106 = arith.constant 0 : index
    %84 = vector.load %arg2[%c1_103, %c3_104, %c0_105, %c0_106] : memref<2x4x32x32xf32, #tpu.memory_space<vmem>>, vector<1x1x32x32xf32>
    %85 = vector.shape_cast %84 : vector<1x1x32x32xf32> to vector<32x32xf32>
    %cst_107 = arith.constant 0.000000e+00 : f32
    %86 = vector.broadcast %cst_107 : f32 to vector<2x32xf32>
    %cst_108 = arith.constant 0.000000e+00 : f32
    %87 = vector.broadcast %cst_108 : f32 to vector<2x32xf32>
    %cst_109 = arith.constant 0.000000e+00 : f32
    %88 = vector.broadcast %cst_109 : f32 to vector<2x32xf32>
    %cst_110 = arith.constant 0.000000e+00 : f32
    %89 = vector.broadcast %cst_110 : f32 to vector<2x32xf32>
    %90 = vector.extract_strided_slice %10 {offsets = [0, 0, 0], sizes = [2, 1, 32], strides = [1, 1, 1]} : vector<2x8x32xf32> to vector<2x1x32xf32>
    %91 = vector.shape_cast %90 : vector<2x1x32xf32> to vector<2x32xf32>
    %cst_111 = arith.constant dense<0.000000e+00> : vector<2x32xf32>
    %92 = tpu.matmul %86, %12, %cst_111 {dimension_numbers = #tpu.dot_dimension_numbers<[1], [0], [0], [1], [0, 0, 1, 1], [], []>} : vector<2x32xf32>, vector<32x32xf32>, vector<2x32xf32> -> vector<2x32xf32>
    %93 = arith.addf %91, %92 : vector<2x32xf32>
    %94 = vector.extract_strided_slice %20 {offsets = [0, 0, 0], sizes = [2, 1, 32], strides = [1, 1, 1]} : vector<2x8x32xf32> to vector<2x1x32xf32>
    %95 = vector.shape_cast %94 : vector<2x1x32xf32> to vector<2x32xf32>
    %cst_112 = arith.constant dense<0.000000e+00> : vector<2x32xf32>
    %96 = tpu.matmul %86, %22, %cst_112 {dimension_numbers = #tpu.dot_dimension_numbers<[1], [0], [0], [1], [0, 0, 1, 1], [], []>} : vector<2x32xf32>, vector<32x32xf32>, vector<2x32xf32> -> vector<2x32xf32>
    %97 = arith.addf %95, %96 : vector<2x32xf32>
    %98 = vector.extract_strided_slice %30 {offsets = [0, 0, 0], sizes = [2, 1, 32], strides = [1, 1, 1]} : vector<2x8x32xf32> to vector<2x1x32xf32>
    %99 = vector.shape_cast %98 : vector<2x1x32xf32> to vector<2x32xf32>
    %cst_113 = arith.constant dense<0.000000e+00> : vector<2x32xf32>
    %100 = tpu.matmul %86, %32, %cst_113 {dimension_numbers = #tpu.dot_dimension_numbers<[1], [0], [0], [1], [0, 0, 1, 1], [], []>} : vector<2x32xf32>, vector<32x32xf32>, vector<2x32xf32> -> vector<2x32xf32>
    %101 = arith.addf %99, %100 : vector<2x32xf32>
    %102 = vector.extract_strided_slice %40 {offsets = [0, 0, 0], sizes = [2, 1, 32], strides = [1, 1, 1]} : vector<2x8x32xf32> to vector<2x1x32xf32>
    %103 = vector.shape_cast %102 : vector<2x1x32xf32> to vector<2x32xf32>
    %cst_114 = arith.constant dense<0.000000e+00> : vector<2x32xf32>
    %104 = tpu.matmul %86, %42, %cst_114 {dimension_numbers = #tpu.dot_dimension_numbers<[1], [0], [0], [1], [0, 0, 1, 1], [], []>} : vector<2x32xf32>, vector<32x32xf32>, vector<2x32xf32> -> vector<2x32xf32>
    %105 = arith.addf %103, %104 : vector<2x32xf32>
    %106 = arith.negf %93 : vector<2x32xf32>
    %107 = math.exp %106 : vector<2x32xf32>
    %cst_115 = arith.constant 1.000000e+00 : f32
    %108 = vector.broadcast %cst_115 : f32 to vector<2x32xf32>
    %109 = arith.addf %108, %107 : vector<2x32xf32>
    %110 = arith.divf %108, %109 : vector<2x32xf32>
    %111 = arith.negf %97 : vector<2x32xf32>
    %112 = math.exp %111 : vector<2x32xf32>
    %cst_116 = arith.constant 1.000000e+00 : f32
    %113 = vector.broadcast %cst_116 : f32 to vector<2x32xf32>
    %114 = arith.addf %113, %112 : vector<2x32xf32>
    %115 = arith.divf %113, %114 : vector<2x32xf32>
    %116 = math.tanh %101 : vector<2x32xf32>
    %117 = arith.negf %105 : vector<2x32xf32>
    %118 = math.exp %117 : vector<2x32xf32>
    %cst_117 = arith.constant 1.000000e+00 : f32
    %119 = vector.broadcast %cst_117 : f32 to vector<2x32xf32>
    %120 = arith.addf %119, %118 : vector<2x32xf32>
    %121 = arith.divf %119, %120 : vector<2x32xf32>
    %122 = arith.mulf %115, %88 : vector<2x32xf32>
    %123 = arith.mulf %110, %116 : vector<2x32xf32>
    %124 = arith.addf %122, %123 : vector<2x32xf32>
    %125 = math.tanh %124 : vector<2x32xf32>
    %126 = arith.mulf %121, %125 : vector<2x32xf32>
    %127 = vector.extract_strided_slice %53 {offsets = [0, 0, 0], sizes = [2, 1, 32], strides = [1, 1, 1]} : vector<2x8x32xf32> to vector<2x1x32xf32>
    %128 = vector.shape_cast %127 : vector<2x1x32xf32> to vector<2x32xf32>
    %cst_118 = arith.constant dense<0.000000e+00> : vector<2x32xf32>
    %129 = tpu.matmul %87, %55, %cst_118 {dimension_numbers = #tpu.dot_dimension_numbers<[1], [0], [0], [1], [0, 0, 1, 1], [], []>} : vector<2x32xf32>, vector<32x32xf32>, vector<2x32xf32> -> vector<2x32xf32>
    %130 = arith.addf %128, %129 : vector<2x32xf32>
    %131 = vector.extract_strided_slice %63 {offsets = [0, 0, 0], sizes = [2, 1, 32], strides = [1, 1, 1]} : vector<2x8x32xf32> to vector<2x1x32xf32>
    %132 = vector.shape_cast %131 : vector<2x1x32xf32> to vector<2x32xf32>
    %cst_119 = arith.constant dense<0.000000e+00> : vector<2x32xf32>
    %133 = tpu.matmul %87, %65, %cst_119 {dimension_numbers = #tpu.dot_dimension_numbers<[1], [0], [0], [1], [0, 0, 1, 1], [], []>} : vector<2x32xf32>, vector<32x32xf32>, vector<2x32xf32> -> vector<2x32xf32>
    %134 = arith.addf %132, %133 : vector<2x32xf32>
    %135 = vector.extract_strided_slice %73 {offsets = [0, 0, 0], sizes = [2, 1, 32], strides = [1, 1, 1]} : vector<2x8x32xf32> to vector<2x1x32xf32>
    %136 = vector.shape_cast %135 : vector<2x1x32xf32> to vector<2x32xf32>
    %cst_120 = arith.constant dense<0.000000e+00> : vector<2x32xf32>
    %137 = tpu.matmul %87, %75, %cst_120 {dimension_numbers = #tpu.dot_dimension_numbers<[1], [0], [0], [1], [0, 0, 1, 1], [], []>} : vector<2x32xf32>, vector<32x32xf32>, vector<2x32xf32> -> vector<2x32xf32>
    %138 = arith.addf %136, %137 : vector<2x32xf32>
    %139 = vector.extract_strided_slice %83 {offsets = [0, 0, 0], sizes = [2, 1, 32], strides = [1, 1, 1]} : vector<2x8x32xf32> to vector<2x1x32xf32>
    %140 = vector.shape_cast %139 : vector<2x1x32xf32> to vector<2x32xf32>
    %cst_121 = arith.constant dense<0.000000e+00> : vector<2x32xf32>
    %141 = tpu.matmul %87, %85, %cst_121 {dimension_numbers = #tpu.dot_dimension_numbers<[1], [0], [0], [1], [0, 0, 1, 1], [], []>} : vector<2x32xf32>, vector<32x32xf32>, vector<2x32xf32> -> vector<2x32xf32>
    %142 = arith.addf %140, %141 : vector<2x32xf32>
    %143 = arith.negf %130 : vector<2x32xf32>
    %144 = math.exp %143 : vector<2x32xf32>
    %cst_122 = arith.constant 1.000000e+00 : f32
    %145 = vector.broadcast %cst_122 : f32 to vector<2x32xf32>
    %146 = arith.addf %145, %144 : vector<2x32xf32>
    %147 = arith.divf %145, %146 : vector<2x32xf32>
    %148 = arith.negf %134 : vector<2x32xf32>
    %149 = math.exp %148 : vector<2x32xf32>
    %cst_123 = arith.constant 1.000000e+00 : f32
    %150 = vector.broadcast %cst_123 : f32 to vector<2x32xf32>
    %151 = arith.addf %150, %149 : vector<2x32xf32>
    %152 = arith.divf %150, %151 : vector<2x32xf32>
    %153 = math.tanh %138 : vector<2x32xf32>
    %154 = arith.negf %142 : vector<2x32xf32>
    %155 = math.exp %154 : vector<2x32xf32>
    %cst_124 = arith.constant 1.000000e+00 : f32
    %156 = vector.broadcast %cst_124 : f32 to vector<2x32xf32>
    %157 = arith.addf %156, %155 : vector<2x32xf32>
    %158 = arith.divf %156, %157 : vector<2x32xf32>
    %159 = arith.mulf %152, %89 : vector<2x32xf32>
    %160 = arith.mulf %147, %153 : vector<2x32xf32>
    %161 = arith.addf %159, %160 : vector<2x32xf32>
    %162 = math.tanh %161 : vector<2x32xf32>
    %163 = arith.mulf %158, %162 : vector<2x32xf32>
    %164 = vector.extract_strided_slice %10 {offsets = [0, 1, 0], sizes = [2, 1, 32], strides = [1, 1, 1]} : vector<2x8x32xf32> to vector<2x1x32xf32>
    %165 = vector.shape_cast %164 : vector<2x1x32xf32> to vector<2x32xf32>
    %cst_125 = arith.constant dense<0.000000e+00> : vector<2x32xf32>
    %166 = tpu.matmul %126, %12, %cst_125 {dimension_numbers = #tpu.dot_dimension_numbers<[1], [0], [0], [1], [0, 0, 1, 1], [], []>} : vector<2x32xf32>, vector<32x32xf32>, vector<2x32xf32> -> vector<2x32xf32>
    %167 = arith.addf %165, %166 : vector<2x32xf32>
    %168 = vector.extract_strided_slice %20 {offsets = [0, 1, 0], sizes = [2, 1, 32], strides = [1, 1, 1]} : vector<2x8x32xf32> to vector<2x1x32xf32>
    %169 = vector.shape_cast %168 : vector<2x1x32xf32> to vector<2x32xf32>
    %cst_126 = arith.constant dense<0.000000e+00> : vector<2x32xf32>
    %170 = tpu.matmul %126, %22, %cst_126 {dimension_numbers = #tpu.dot_dimension_numbers<[1], [0], [0], [1], [0, 0, 1, 1], [], []>} : vector<2x32xf32>, vector<32x32xf32>, vector<2x32xf32> -> vector<2x32xf32>
    %171 = arith.addf %169, %170 : vector<2x32xf32>
    %172 = vector.extract_strided_slice %30 {offsets = [0, 1, 0], sizes = [2, 1, 32], strides = [1, 1, 1]} : vector<2x8x32xf32> to vector<2x1x32xf32>
    %173 = vector.shape_cast %172 : vector<2x1x32xf32> to vector<2x32xf32>
    %cst_127 = arith.constant dense<0.000000e+00> : vector<2x32xf32>
    %174 = tpu.matmul %126, %32, %cst_127 {dimension_numbers = #tpu.dot_dimension_numbers<[1], [0], [0], [1], [0, 0, 1, 1], [], []>} : vector<2x32xf32>, vector<32x32xf32>, vector<2x32xf32> -> vector<2x32xf32>
    %175 = arith.addf %173, %174 : vector<2x32xf32>
    %176 = vector.extract_strided_slice %40 {offsets = [0, 1, 0], sizes = [2, 1, 32], strides = [1, 1, 1]} : vector<2x8x32xf32> to vector<2x1x32xf32>
    %177 = vector.shape_cast %176 : vector<2x1x32xf32> to vector<2x32xf32>
    %cst_128 = arith.constant dense<0.000000e+00> : vector<2x32xf32>
    %178 = tpu.matmul %126, %42, %cst_128 {dimension_numbers = #tpu.dot_dimension_numbers<[1], [0], [0], [1], [0, 0, 1, 1], [], []>} : vector<2x32xf32>, vector<32x32xf32>, vector<2x32xf32> -> vector<2x32xf32>
    %179 = arith.addf %177, %178 : vector<2x32xf32>
    %180 = arith.negf %167 : vector<2x32xf32>
    %181 = math.exp %180 : vector<2x32xf32>
    %cst_129 = arith.constant 1.000000e+00 : f32
    %182 = vector.broadcast %cst_129 : f32 to vector<2x32xf32>
    %183 = arith.addf %182, %181 : vector<2x32xf32>
    %184 = arith.divf %182, %183 : vector<2x32xf32>
    %185 = arith.negf %171 : vector<2x32xf32>
    %186 = math.exp %185 : vector<2x32xf32>
    %cst_130 = arith.constant 1.000000e+00 : f32
    %187 = vector.broadcast %cst_130 : f32 to vector<2x32xf32>
    %188 = arith.addf %187, %186 : vector<2x32xf32>
    %189 = arith.divf %187, %188 : vector<2x32xf32>
    %190 = math.tanh %175 : vector<2x32xf32>
    %191 = arith.negf %179 : vector<2x32xf32>
    %192 = math.exp %191 : vector<2x32xf32>
    %cst_131 = arith.constant 1.000000e+00 : f32
    %193 = vector.broadcast %cst_131 : f32 to vector<2x32xf32>
    %194 = arith.addf %193, %192 : vector<2x32xf32>
    %195 = arith.divf %193, %194 : vector<2x32xf32>
    %196 = arith.mulf %189, %124 : vector<2x32xf32>
    %197 = arith.mulf %184, %190 : vector<2x32xf32>
    %198 = arith.addf %196, %197 : vector<2x32xf32>
    %199 = math.tanh %198 : vector<2x32xf32>
    %200 = arith.mulf %195, %199 : vector<2x32xf32>
    %201 = vector.extract_strided_slice %53 {offsets = [0, 1, 0], sizes = [2, 1, 32], strides = [1, 1, 1]} : vector<2x8x32xf32> to vector<2x1x32xf32>
    %202 = vector.shape_cast %201 : vector<2x1x32xf32> to vector<2x32xf32>
    %cst_132 = arith.constant dense<0.000000e+00> : vector<2x32xf32>
    %203 = tpu.matmul %163, %55, %cst_132 {dimension_numbers = #tpu.dot_dimension_numbers<[1], [0], [0], [1], [0, 0, 1, 1], [], []>} : vector<2x32xf32>, vector<32x32xf32>, vector<2x32xf32> -> vector<2x32xf32>
    %204 = arith.addf %202, %203 : vector<2x32xf32>
    %205 = vector.extract_strided_slice %63 {offsets = [0, 1, 0], sizes = [2, 1, 32], strides = [1, 1, 1]} : vector<2x8x32xf32> to vector<2x1x32xf32>
    %206 = vector.shape_cast %205 : vector<2x1x32xf32> to vector<2x32xf32>
    %cst_133 = arith.constant dense<0.000000e+00> : vector<2x32xf32>
    %207 = tpu.matmul %163, %65, %cst_133 {dimension_numbers = #tpu.dot_dimension_numbers<[1], [0], [0], [1], [0, 0, 1, 1], [], []>} : vector<2x32xf32>, vector<32x32xf32>, vector<2x32xf32> -> vector<2x32xf32>
    %208 = arith.addf %206, %207 : vector<2x32xf32>
    %209 = vector.extract_strided_slice %73 {offsets = [0, 1, 0], sizes = [2, 1, 32], strides = [1, 1, 1]} : vector<2x8x32xf32> to vector<2x1x32xf32>
    %210 = vector.shape_cast %209 : vector<2x1x32xf32> to vector<2x32xf32>
    %cst_134 = arith.constant dense<0.000000e+00> : vector<2x32xf32>
    %211 = tpu.matmul %163, %75, %cst_134 {dimension_numbers = #tpu.dot_dimension_numbers<[1], [0], [0], [1], [0, 0, 1, 1], [], []>} : vector<2x32xf32>, vector<32x32xf32>, vector<2x32xf32> -> vector<2x32xf32>
    %212 = arith.addf %210, %211 : vector<2x32xf32>
    %213 = vector.extract_strided_slice %83 {offsets = [0, 1, 0], sizes = [2, 1, 32], strides = [1, 1, 1]} : vector<2x8x32xf32> to vector<2x1x32xf32>
    %214 = vector.shape_cast %213 : vector<2x1x32xf32> to vector<2x32xf32>
    %cst_135 = arith.constant dense<0.000000e+00> : vector<2x32xf32>
    %215 = tpu.matmul %163, %85, %cst_135 {dimension_numbers = #tpu.dot_dimension_numbers<[1], [0], [0], [1], [0, 0, 1, 1], [], []>} : vector<2x32xf32>, vector<32x32xf32>, vector<2x32xf32> -> vector<2x32xf32>
    %216 = arith.addf %214, %215 : vector<2x32xf32>
    %217 = arith.negf %204 : vector<2x32xf32>
    %218 = math.exp %217 : vector<2x32xf32>
    %cst_136 = arith.constant 1.000000e+00 : f32
    %219 = vector.broadcast %cst_136 : f32 to vector<2x32xf32>
    %220 = arith.addf %219, %218 : vector<2x32xf32>
    %221 = arith.divf %219, %220 : vector<2x32xf32>
    %222 = arith.negf %208 : vector<2x32xf32>
    %223 = math.exp %222 : vector<2x32xf32>
    %cst_137 = arith.constant 1.000000e+00 : f32
    %224 = vector.broadcast %cst_137 : f32 to vector<2x32xf32>
    %225 = arith.addf %224, %223 : vector<2x32xf32>
    %226 = arith.divf %224, %225 : vector<2x32xf32>
    %227 = math.tanh %212 : vector<2x32xf32>
    %228 = arith.negf %216 : vector<2x32xf32>
    %229 = math.exp %228 : vector<2x32xf32>
    %cst_138 = arith.constant 1.000000e+00 : f32
    %230 = vector.broadcast %cst_138 : f32 to vector<2x32xf32>
    %231 = arith.addf %230, %229 : vector<2x32xf32>
    %232 = arith.divf %230, %231 : vector<2x32xf32>
    %233 = arith.mulf %226, %161 : vector<2x32xf32>
    %234 = arith.mulf %221, %227 : vector<2x32xf32>
    %235 = arith.addf %233, %234 : vector<2x32xf32>
    %236 = math.tanh %235 : vector<2x32xf32>
    %237 = arith.mulf %232, %236 : vector<2x32xf32>
    %238 = vector.extract_strided_slice %10 {offsets = [0, 2, 0], sizes = [2, 1, 32], strides = [1, 1, 1]} : vector<2x8x32xf32> to vector<2x1x32xf32>
    %239 = vector.shape_cast %238 : vector<2x1x32xf32> to vector<2x32xf32>
    %cst_139 = arith.constant dense<0.000000e+00> : vector<2x32xf32>
    %240 = tpu.matmul %200, %12, %cst_139 {dimension_numbers = #tpu.dot_dimension_numbers<[1], [0], [0], [1], [0, 0, 1, 1], [], []>} : vector<2x32xf32>, vector<32x32xf32>, vector<2x32xf32> -> vector<2x32xf32>
    %241 = arith.addf %239, %240 : vector<2x32xf32>
    %242 = vector.extract_strided_slice %20 {offsets = [0, 2, 0], sizes = [2, 1, 32], strides = [1, 1, 1]} : vector<2x8x32xf32> to vector<2x1x32xf32>
    %243 = vector.shape_cast %242 : vector<2x1x32xf32> to vector<2x32xf32>
    %cst_140 = arith.constant dense<0.000000e+00> : vector<2x32xf32>
    %244 = tpu.matmul %200, %22, %cst_140 {dimension_numbers = #tpu.dot_dimension_numbers<[1], [0], [0], [1], [0, 0, 1, 1], [], []>} : vector<2x32xf32>, vector<32x32xf32>, vector<2x32xf32> -> vector<2x32xf32>
    %245 = arith.addf %243, %244 : vector<2x32xf32>
    %246 = vector.extract_strided_slice %30 {offsets = [0, 2, 0], sizes = [2, 1, 32], strides = [1, 1, 1]} : vector<2x8x32xf32> to vector<2x1x32xf32>
    %247 = vector.shape_cast %246 : vector<2x1x32xf32> to vector<2x32xf32>
    %cst_141 = arith.constant dense<0.000000e+00> : vector<2x32xf32>
    %248 = tpu.matmul %200, %32, %cst_141 {dimension_numbers = #tpu.dot_dimension_numbers<[1], [0], [0], [1], [0, 0, 1, 1], [], []>} : vector<2x32xf32>, vector<32x32xf32>, vector<2x32xf32> -> vector<2x32xf32>
    %249 = arith.addf %247, %248 : vector<2x32xf32>
    %250 = vector.extract_strided_slice %40 {offsets = [0, 2, 0], sizes = [2, 1, 32], strides = [1, 1, 1]} : vector<2x8x32xf32> to vector<2x1x32xf32>
    %251 = vector.shape_cast %250 : vector<2x1x32xf32> to vector<2x32xf32>
    %cst_142 = arith.constant dense<0.000000e+00> : vector<2x32xf32>
    %252 = tpu.matmul %200, %42, %cst_142 {dimension_numbers = #tpu.dot_dimension_numbers<[1], [0], [0], [1], [0, 0, 1, 1], [], []>} : vector<2x32xf32>, vector<32x32xf32>, vector<2x32xf32> -> vector<2x32xf32>
    %253 = arith.addf %251, %252 : vector<2x32xf32>
    %254 = arith.negf %241 : vector<2x32xf32>
    %255 = math.exp %254 : vector<2x32xf32>
    %cst_143 = arith.constant 1.000000e+00 : f32
    %256 = vector.broadcast %cst_143 : f32 to vector<2x32xf32>
    %257 = arith.addf %256, %255 : vector<2x32xf32>
    %258 = arith.divf %256, %257 : vector<2x32xf32>
    %259 = arith.negf %245 : vector<2x32xf32>
    %260 = math.exp %259 : vector<2x32xf32>
    %cst_144 = arith.constant 1.000000e+00 : f32
    %261 = vector.broadcast %cst_144 : f32 to vector<2x32xf32>
    %262 = arith.addf %261, %260 : vector<2x32xf32>
    %263 = arith.divf %261, %262 : vector<2x32xf32>
    %264 = math.tanh %249 : vector<2x32xf32>
    %265 = arith.negf %253 : vector<2x32xf32>
    %266 = math.exp %265 : vector<2x32xf32>
    %cst_145 = arith.constant 1.000000e+00 : f32
    %267 = vector.broadcast %cst_145 : f32 to vector<2x32xf32>
    %268 = arith.addf %267, %266 : vector<2x32xf32>
    %269 = arith.divf %267, %268 : vector<2x32xf32>
    %270 = arith.mulf %263, %198 : vector<2x32xf32>
    %271 = arith.mulf %258, %264 : vector<2x32xf32>
    %272 = arith.addf %270, %271 : vector<2x32xf32>
    %273 = math.tanh %272 : vector<2x32xf32>
    %274 = arith.mulf %269, %273 : vector<2x32xf32>
    %275 = vector.extract_strided_slice %53 {offsets = [0, 2, 0], sizes = [2, 1, 32], strides = [1, 1, 1]} : vector<2x8x32xf32> to vector<2x1x32xf32>
    %276 = vector.shape_cast %275 : vector<2x1x32xf32> to vector<2x32xf32>
    %cst_146 = arith.constant dense<0.000000e+00> : vector<2x32xf32>
    %277 = tpu.matmul %237, %55, %cst_146 {dimension_numbers = #tpu.dot_dimension_numbers<[1], [0], [0], [1], [0, 0, 1, 1], [], []>} : vector<2x32xf32>, vector<32x32xf32>, vector<2x32xf32> -> vector<2x32xf32>
    %278 = arith.addf %276, %277 : vector<2x32xf32>
    %279 = vector.extract_strided_slice %63 {offsets = [0, 2, 0], sizes = [2, 1, 32], strides = [1, 1, 1]} : vector<2x8x32xf32> to vector<2x1x32xf32>
    %280 = vector.shape_cast %279 : vector<2x1x32xf32> to vector<2x32xf32>
    %cst_147 = arith.constant dense<0.000000e+00> : vector<2x32xf32>
    %281 = tpu.matmul %237, %65, %cst_147 {dimension_numbers = #tpu.dot_dimension_numbers<[1], [0], [0], [1], [0, 0, 1, 1], [], []>} : vector<2x32xf32>, vector<32x32xf32>, vector<2x32xf32> -> vector<2x32xf32>
    %282 = arith.addf %280, %281 : vector<2x32xf32>
    %283 = vector.extract_strided_slice %73 {offsets = [0, 2, 0], sizes = [2, 1, 32], strides = [1, 1, 1]} : vector<2x8x32xf32> to vector<2x1x32xf32>
    %284 = vector.shape_cast %283 : vector<2x1x32xf32> to vector<2x32xf32>
    %cst_148 = arith.constant dense<0.000000e+00> : vector<2x32xf32>
    %285 = tpu.matmul %237, %75, %cst_148 {dimension_numbers = #tpu.dot_dimension_numbers<[1], [0], [0], [1], [0, 0, 1, 1], [], []>} : vector<2x32xf32>, vector<32x32xf32>, vector<2x32xf32> -> vector<2x32xf32>
    %286 = arith.addf %284, %285 : vector<2x32xf32>
    %287 = vector.extract_strided_slice %83 {offsets = [0, 2, 0], sizes = [2, 1, 32], strides = [1, 1, 1]} : vector<2x8x32xf32> to vector<2x1x32xf32>
    %288 = vector.shape_cast %287 : vector<2x1x32xf32> to vector<2x32xf32>
    %cst_149 = arith.constant dense<0.000000e+00> : vector<2x32xf32>
    %289 = tpu.matmul %237, %85, %cst_149 {dimension_numbers = #tpu.dot_dimension_numbers<[1], [0], [0], [1], [0, 0, 1, 1], [], []>} : vector<2x32xf32>, vector<32x32xf32>, vector<2x32xf32> -> vector<2x32xf32>
    %290 = arith.addf %288, %289 : vector<2x32xf32>
    %291 = arith.negf %278 : vector<2x32xf32>
    %292 = math.exp %291 : vector<2x32xf32>
    %cst_150 = arith.constant 1.000000e+00 : f32
    %293 = vector.broadcast %cst_150 : f32 to vector<2x32xf32>
    %294 = arith.addf %293, %292 : vector<2x32xf32>
    %295 = arith.divf %293, %294 : vector<2x32xf32>
    %296 = arith.negf %282 : vector<2x32xf32>
    %297 = math.exp %296 : vector<2x32xf32>
    %cst_151 = arith.constant 1.000000e+00 : f32
    %298 = vector.broadcast %cst_151 : f32 to vector<2x32xf32>
    %299 = arith.addf %298, %297 : vector<2x32xf32>
    %300 = arith.divf %298, %299 : vector<2x32xf32>
    %301 = math.tanh %286 : vector<2x32xf32>
    %302 = arith.negf %290 : vector<2x32xf32>
    %303 = math.exp %302 : vector<2x32xf32>
    %cst_152 = arith.constant 1.000000e+00 : f32
    %304 = vector.broadcast %cst_152 : f32 to vector<2x32xf32>
    %305 = arith.addf %304, %303 : vector<2x32xf32>
    %306 = arith.divf %304, %305 : vector<2x32xf32>
    %307 = arith.mulf %300, %235 : vector<2x32xf32>
    %308 = arith.mulf %295, %301 : vector<2x32xf32>
    %309 = arith.addf %307, %308 : vector<2x32xf32>
    %310 = math.tanh %309 : vector<2x32xf32>
    %311 = arith.mulf %306, %310 : vector<2x32xf32>
    %312 = vector.extract_strided_slice %10 {offsets = [0, 3, 0], sizes = [2, 1, 32], strides = [1, 1, 1]} : vector<2x8x32xf32> to vector<2x1x32xf32>
    %313 = vector.shape_cast %312 : vector<2x1x32xf32> to vector<2x32xf32>
    %cst_153 = arith.constant dense<0.000000e+00> : vector<2x32xf32>
    %314 = tpu.matmul %274, %12, %cst_153 {dimension_numbers = #tpu.dot_dimension_numbers<[1], [0], [0], [1], [0, 0, 1, 1], [], []>} : vector<2x32xf32>, vector<32x32xf32>, vector<2x32xf32> -> vector<2x32xf32>
    %315 = arith.addf %313, %314 : vector<2x32xf32>
    %316 = vector.extract_strided_slice %20 {offsets = [0, 3, 0], sizes = [2, 1, 32], strides = [1, 1, 1]} : vector<2x8x32xf32> to vector<2x1x32xf32>
    %317 = vector.shape_cast %316 : vector<2x1x32xf32> to vector<2x32xf32>
    %cst_154 = arith.constant dense<0.000000e+00> : vector<2x32xf32>
    %318 = tpu.matmul %274, %22, %cst_154 {dimension_numbers = #tpu.dot_dimension_numbers<[1], [0], [0], [1], [0, 0, 1, 1], [], []>} : vector<2x32xf32>, vector<32x32xf32>, vector<2x32xf32> -> vector<2x32xf32>
    %319 = arith.addf %317, %318 : vector<2x32xf32>
    %320 = vector.extract_strided_slice %30 {offsets = [0, 3, 0], sizes = [2, 1, 32], strides = [1, 1, 1]} : vector<2x8x32xf32> to vector<2x1x32xf32>
    %321 = vector.shape_cast %320 : vector<2x1x32xf32> to vector<2x32xf32>
    %cst_155 = arith.constant dense<0.000000e+00> : vector<2x32xf32>
    %322 = tpu.matmul %274, %32, %cst_155 {dimension_numbers = #tpu.dot_dimension_numbers<[1], [0], [0], [1], [0, 0, 1, 1], [], []>} : vector<2x32xf32>, vector<32x32xf32>, vector<2x32xf32> -> vector<2x32xf32>
    %323 = arith.addf %321, %322 : vector<2x32xf32>
    %324 = vector.extract_strided_slice %40 {offsets = [0, 3, 0], sizes = [2, 1, 32], strides = [1, 1, 1]} : vector<2x8x32xf32> to vector<2x1x32xf32>
    %325 = vector.shape_cast %324 : vector<2x1x32xf32> to vector<2x32xf32>
    %cst_156 = arith.constant dense<0.000000e+00> : vector<2x32xf32>
    %326 = tpu.matmul %274, %42, %cst_156 {dimension_numbers = #tpu.dot_dimension_numbers<[1], [0], [0], [1], [0, 0, 1, 1], [], []>} : vector<2x32xf32>, vector<32x32xf32>, vector<2x32xf32> -> vector<2x32xf32>
    %327 = arith.addf %325, %326 : vector<2x32xf32>
    %328 = arith.negf %315 : vector<2x32xf32>
    %329 = math.exp %328 : vector<2x32xf32>
    %cst_157 = arith.constant 1.000000e+00 : f32
    %330 = vector.broadcast %cst_157 : f32 to vector<2x32xf32>
    %331 = arith.addf %330, %329 : vector<2x32xf32>
    %332 = arith.divf %330, %331 : vector<2x32xf32>
    %333 = arith.negf %319 : vector<2x32xf32>
    %334 = math.exp %333 : vector<2x32xf32>
    %cst_158 = arith.constant 1.000000e+00 : f32
    %335 = vector.broadcast %cst_158 : f32 to vector<2x32xf32>
    %336 = arith.addf %335, %334 : vector<2x32xf32>
    %337 = arith.divf %335, %336 : vector<2x32xf32>
    %338 = math.tanh %323 : vector<2x32xf32>
    %339 = arith.negf %327 : vector<2x32xf32>
    %340 = math.exp %339 : vector<2x32xf32>
    %cst_159 = arith.constant 1.000000e+00 : f32
    %341 = vector.broadcast %cst_159 : f32 to vector<2x32xf32>
    %342 = arith.addf %341, %340 : vector<2x32xf32>
    %343 = arith.divf %341, %342 : vector<2x32xf32>
    %344 = arith.mulf %337, %272 : vector<2x32xf32>
    %345 = arith.mulf %332, %338 : vector<2x32xf32>
    %346 = arith.addf %344, %345 : vector<2x32xf32>
    %347 = math.tanh %346 : vector<2x32xf32>
    %348 = arith.mulf %343, %347 : vector<2x32xf32>
    %349 = vector.extract_strided_slice %53 {offsets = [0, 3, 0], sizes = [2, 1, 32], strides = [1, 1, 1]} : vector<2x8x32xf32> to vector<2x1x32xf32>
    %350 = vector.shape_cast %349 : vector<2x1x32xf32> to vector<2x32xf32>
    %cst_160 = arith.constant dense<0.000000e+00> : vector<2x32xf32>
    %351 = tpu.matmul %311, %55, %cst_160 {dimension_numbers = #tpu.dot_dimension_numbers<[1], [0], [0], [1], [0, 0, 1, 1], [], []>} : vector<2x32xf32>, vector<32x32xf32>, vector<2x32xf32> -> vector<2x32xf32>
    %352 = arith.addf %350, %351 : vector<2x32xf32>
    %353 = vector.extract_strided_slice %63 {offsets = [0, 3, 0], sizes = [2, 1, 32], strides = [1, 1, 1]} : vector<2x8x32xf32> to vector<2x1x32xf32>
    %354 = vector.shape_cast %353 : vector<2x1x32xf32> to vector<2x32xf32>
    %cst_161 = arith.constant dense<0.000000e+00> : vector<2x32xf32>
    %355 = tpu.matmul %311, %65, %cst_161 {dimension_numbers = #tpu.dot_dimension_numbers<[1], [0], [0], [1], [0, 0, 1, 1], [], []>} : vector<2x32xf32>, vector<32x32xf32>, vector<2x32xf32> -> vector<2x32xf32>
    %356 = arith.addf %354, %355 : vector<2x32xf32>
    %357 = vector.extract_strided_slice %73 {offsets = [0, 3, 0], sizes = [2, 1, 32], strides = [1, 1, 1]} : vector<2x8x32xf32> to vector<2x1x32xf32>
    %358 = vector.shape_cast %357 : vector<2x1x32xf32> to vector<2x32xf32>
    %cst_162 = arith.constant dense<0.000000e+00> : vector<2x32xf32>
    %359 = tpu.matmul %311, %75, %cst_162 {dimension_numbers = #tpu.dot_dimension_numbers<[1], [0], [0], [1], [0, 0, 1, 1], [], []>} : vector<2x32xf32>, vector<32x32xf32>, vector<2x32xf32> -> vector<2x32xf32>
    %360 = arith.addf %358, %359 : vector<2x32xf32>
    %361 = vector.extract_strided_slice %83 {offsets = [0, 3, 0], sizes = [2, 1, 32], strides = [1, 1, 1]} : vector<2x8x32xf32> to vector<2x1x32xf32>
    %362 = vector.shape_cast %361 : vector<2x1x32xf32> to vector<2x32xf32>
    %cst_163 = arith.constant dense<0.000000e+00> : vector<2x32xf32>
    %363 = tpu.matmul %311, %85, %cst_163 {dimension_numbers = #tpu.dot_dimension_numbers<[1], [0], [0], [1], [0, 0, 1, 1], [], []>} : vector<2x32xf32>, vector<32x32xf32>, vector<2x32xf32> -> vector<2x32xf32>
    %364 = arith.addf %362, %363 : vector<2x32xf32>
    %365 = arith.negf %352 : vector<2x32xf32>
    %366 = math.exp %365 : vector<2x32xf32>
    %cst_164 = arith.constant 1.000000e+00 : f32
    %367 = vector.broadcast %cst_164 : f32 to vector<2x32xf32>
    %368 = arith.addf %367, %366 : vector<2x32xf32>
    %369 = arith.divf %367, %368 : vector<2x32xf32>
    %370 = arith.negf %356 : vector<2x32xf32>
    %371 = math.exp %370 : vector<2x32xf32>
    %cst_165 = arith.constant 1.000000e+00 : f32
    %372 = vector.broadcast %cst_165 : f32 to vector<2x32xf32>
    %373 = arith.addf %372, %371 : vector<2x32xf32>
    %374 = arith.divf %372, %373 : vector<2x32xf32>
    %375 = math.tanh %360 : vector<2x32xf32>
    %376 = arith.negf %364 : vector<2x32xf32>
    %377 = math.exp %376 : vector<2x32xf32>
    %cst_166 = arith.constant 1.000000e+00 : f32
    %378 = vector.broadcast %cst_166 : f32 to vector<2x32xf32>
    %379 = arith.addf %378, %377 : vector<2x32xf32>
    %380 = arith.divf %378, %379 : vector<2x32xf32>
    %381 = arith.mulf %374, %309 : vector<2x32xf32>
    %382 = arith.mulf %369, %375 : vector<2x32xf32>
    %383 = arith.addf %381, %382 : vector<2x32xf32>
    %384 = math.tanh %383 : vector<2x32xf32>
    %385 = arith.mulf %380, %384 : vector<2x32xf32>
    %386 = vector.extract_strided_slice %10 {offsets = [0, 4, 0], sizes = [2, 1, 32], strides = [1, 1, 1]} : vector<2x8x32xf32> to vector<2x1x32xf32>
    %387 = vector.shape_cast %386 : vector<2x1x32xf32> to vector<2x32xf32>
    %cst_167 = arith.constant dense<0.000000e+00> : vector<2x32xf32>
    %388 = tpu.matmul %348, %12, %cst_167 {dimension_numbers = #tpu.dot_dimension_numbers<[1], [0], [0], [1], [0, 0, 1, 1], [], []>} : vector<2x32xf32>, vector<32x32xf32>, vector<2x32xf32> -> vector<2x32xf32>
    %389 = arith.addf %387, %388 : vector<2x32xf32>
    %390 = vector.extract_strided_slice %20 {offsets = [0, 4, 0], sizes = [2, 1, 32], strides = [1, 1, 1]} : vector<2x8x32xf32> to vector<2x1x32xf32>
    %391 = vector.shape_cast %390 : vector<2x1x32xf32> to vector<2x32xf32>
    %cst_168 = arith.constant dense<0.000000e+00> : vector<2x32xf32>
    %392 = tpu.matmul %348, %22, %cst_168 {dimension_numbers = #tpu.dot_dimension_numbers<[1], [0], [0], [1], [0, 0, 1, 1], [], []>} : vector<2x32xf32>, vector<32x32xf32>, vector<2x32xf32> -> vector<2x32xf32>
    %393 = arith.addf %391, %392 : vector<2x32xf32>
    %394 = vector.extract_strided_slice %30 {offsets = [0, 4, 0], sizes = [2, 1, 32], strides = [1, 1, 1]} : vector<2x8x32xf32> to vector<2x1x32xf32>
    %395 = vector.shape_cast %394 : vector<2x1x32xf32> to vector<2x32xf32>
    %cst_169 = arith.constant dense<0.000000e+00> : vector<2x32xf32>
    %396 = tpu.matmul %348, %32, %cst_169 {dimension_numbers = #tpu.dot_dimension_numbers<[1], [0], [0], [1], [0, 0, 1, 1], [], []>} : vector<2x32xf32>, vector<32x32xf32>, vector<2x32xf32> -> vector<2x32xf32>
    %397 = arith.addf %395, %396 : vector<2x32xf32>
    %398 = vector.extract_strided_slice %40 {offsets = [0, 4, 0], sizes = [2, 1, 32], strides = [1, 1, 1]} : vector<2x8x32xf32> to vector<2x1x32xf32>
    %399 = vector.shape_cast %398 : vector<2x1x32xf32> to vector<2x32xf32>
    %cst_170 = arith.constant dense<0.000000e+00> : vector<2x32xf32>
    %400 = tpu.matmul %348, %42, %cst_170 {dimension_numbers = #tpu.dot_dimension_numbers<[1], [0], [0], [1], [0, 0, 1, 1], [], []>} : vector<2x32xf32>, vector<32x32xf32>, vector<2x32xf32> -> vector<2x32xf32>
    %401 = arith.addf %399, %400 : vector<2x32xf32>
    %402 = arith.negf %389 : vector<2x32xf32>
    %403 = math.exp %402 : vector<2x32xf32>
    %cst_171 = arith.constant 1.000000e+00 : f32
    %404 = vector.broadcast %cst_171 : f32 to vector<2x32xf32>
    %405 = arith.addf %404, %403 : vector<2x32xf32>
    %406 = arith.divf %404, %405 : vector<2x32xf32>
    %407 = arith.negf %393 : vector<2x32xf32>
    %408 = math.exp %407 : vector<2x32xf32>
    %cst_172 = arith.constant 1.000000e+00 : f32
    %409 = vector.broadcast %cst_172 : f32 to vector<2x32xf32>
    %410 = arith.addf %409, %408 : vector<2x32xf32>
    %411 = arith.divf %409, %410 : vector<2x32xf32>
    %412 = math.tanh %397 : vector<2x32xf32>
    %413 = arith.negf %401 : vector<2x32xf32>
    %414 = math.exp %413 : vector<2x32xf32>
    %cst_173 = arith.constant 1.000000e+00 : f32
    %415 = vector.broadcast %cst_173 : f32 to vector<2x32xf32>
    %416 = arith.addf %415, %414 : vector<2x32xf32>
    %417 = arith.divf %415, %416 : vector<2x32xf32>
    %418 = arith.mulf %411, %346 : vector<2x32xf32>
    %419 = arith.mulf %406, %412 : vector<2x32xf32>
    %420 = arith.addf %418, %419 : vector<2x32xf32>
    %421 = math.tanh %420 : vector<2x32xf32>
    %422 = arith.mulf %417, %421 : vector<2x32xf32>
    %423 = vector.extract_strided_slice %53 {offsets = [0, 4, 0], sizes = [2, 1, 32], strides = [1, 1, 1]} : vector<2x8x32xf32> to vector<2x1x32xf32>
    %424 = vector.shape_cast %423 : vector<2x1x32xf32> to vector<2x32xf32>
    %cst_174 = arith.constant dense<0.000000e+00> : vector<2x32xf32>
    %425 = tpu.matmul %385, %55, %cst_174 {dimension_numbers = #tpu.dot_dimension_numbers<[1], [0], [0], [1], [0, 0, 1, 1], [], []>} : vector<2x32xf32>, vector<32x32xf32>, vector<2x32xf32> -> vector<2x32xf32>
    %426 = arith.addf %424, %425 : vector<2x32xf32>
    %427 = vector.extract_strided_slice %63 {offsets = [0, 4, 0], sizes = [2, 1, 32], strides = [1, 1, 1]} : vector<2x8x32xf32> to vector<2x1x32xf32>
    %428 = vector.shape_cast %427 : vector<2x1x32xf32> to vector<2x32xf32>
    %cst_175 = arith.constant dense<0.000000e+00> : vector<2x32xf32>
    %429 = tpu.matmul %385, %65, %cst_175 {dimension_numbers = #tpu.dot_dimension_numbers<[1], [0], [0], [1], [0, 0, 1, 1], [], []>} : vector<2x32xf32>, vector<32x32xf32>, vector<2x32xf32> -> vector<2x32xf32>
    %430 = arith.addf %428, %429 : vector<2x32xf32>
    %431 = vector.extract_strided_slice %73 {offsets = [0, 4, 0], sizes = [2, 1, 32], strides = [1, 1, 1]} : vector<2x8x32xf32> to vector<2x1x32xf32>
    %432 = vector.shape_cast %431 : vector<2x1x32xf32> to vector<2x32xf32>
    %cst_176 = arith.constant dense<0.000000e+00> : vector<2x32xf32>
    %433 = tpu.matmul %385, %75, %cst_176 {dimension_numbers = #tpu.dot_dimension_numbers<[1], [0], [0], [1], [0, 0, 1, 1], [], []>} : vector<2x32xf32>, vector<32x32xf32>, vector<2x32xf32> -> vector<2x32xf32>
    %434 = arith.addf %432, %433 : vector<2x32xf32>
    %435 = vector.extract_strided_slice %83 {offsets = [0, 4, 0], sizes = [2, 1, 32], strides = [1, 1, 1]} : vector<2x8x32xf32> to vector<2x1x32xf32>
    %436 = vector.shape_cast %435 : vector<2x1x32xf32> to vector<2x32xf32>
    %cst_177 = arith.constant dense<0.000000e+00> : vector<2x32xf32>
    %437 = tpu.matmul %385, %85, %cst_177 {dimension_numbers = #tpu.dot_dimension_numbers<[1], [0], [0], [1], [0, 0, 1, 1], [], []>} : vector<2x32xf32>, vector<32x32xf32>, vector<2x32xf32> -> vector<2x32xf32>
    %438 = arith.addf %436, %437 : vector<2x32xf32>
    %439 = arith.negf %426 : vector<2x32xf32>
    %440 = math.exp %439 : vector<2x32xf32>
    %cst_178 = arith.constant 1.000000e+00 : f32
    %441 = vector.broadcast %cst_178 : f32 to vector<2x32xf32>
    %442 = arith.addf %441, %440 : vector<2x32xf32>
    %443 = arith.divf %441, %442 : vector<2x32xf32>
    %444 = arith.negf %430 : vector<2x32xf32>
    %445 = math.exp %444 : vector<2x32xf32>
    %cst_179 = arith.constant 1.000000e+00 : f32
    %446 = vector.broadcast %cst_179 : f32 to vector<2x32xf32>
    %447 = arith.addf %446, %445 : vector<2x32xf32>
    %448 = arith.divf %446, %447 : vector<2x32xf32>
    %449 = math.tanh %434 : vector<2x32xf32>
    %450 = arith.negf %438 : vector<2x32xf32>
    %451 = math.exp %450 : vector<2x32xf32>
    %cst_180 = arith.constant 1.000000e+00 : f32
    %452 = vector.broadcast %cst_180 : f32 to vector<2x32xf32>
    %453 = arith.addf %452, %451 : vector<2x32xf32>
    %454 = arith.divf %452, %453 : vector<2x32xf32>
    %455 = arith.mulf %448, %383 : vector<2x32xf32>
    %456 = arith.mulf %443, %449 : vector<2x32xf32>
    %457 = arith.addf %455, %456 : vector<2x32xf32>
    %458 = math.tanh %457 : vector<2x32xf32>
    %459 = arith.mulf %454, %458 : vector<2x32xf32>
    %460 = vector.extract_strided_slice %10 {offsets = [0, 5, 0], sizes = [2, 1, 32], strides = [1, 1, 1]} : vector<2x8x32xf32> to vector<2x1x32xf32>
    %461 = vector.shape_cast %460 : vector<2x1x32xf32> to vector<2x32xf32>
    %cst_181 = arith.constant dense<0.000000e+00> : vector<2x32xf32>
    %462 = tpu.matmul %422, %12, %cst_181 {dimension_numbers = #tpu.dot_dimension_numbers<[1], [0], [0], [1], [0, 0, 1, 1], [], []>} : vector<2x32xf32>, vector<32x32xf32>, vector<2x32xf32> -> vector<2x32xf32>
    %463 = arith.addf %461, %462 : vector<2x32xf32>
    %464 = vector.extract_strided_slice %20 {offsets = [0, 5, 0], sizes = [2, 1, 32], strides = [1, 1, 1]} : vector<2x8x32xf32> to vector<2x1x32xf32>
    %465 = vector.shape_cast %464 : vector<2x1x32xf32> to vector<2x32xf32>
    %cst_182 = arith.constant dense<0.000000e+00> : vector<2x32xf32>
    %466 = tpu.matmul %422, %22, %cst_182 {dimension_numbers = #tpu.dot_dimension_numbers<[1], [0], [0], [1], [0, 0, 1, 1], [], []>} : vector<2x32xf32>, vector<32x32xf32>, vector<2x32xf32> -> vector<2x32xf32>
    %467 = arith.addf %465, %466 : vector<2x32xf32>
    %468 = vector.extract_strided_slice %30 {offsets = [0, 5, 0], sizes = [2, 1, 32], strides = [1, 1, 1]} : vector<2x8x32xf32> to vector<2x1x32xf32>
    %469 = vector.shape_cast %468 : vector<2x1x32xf32> to vector<2x32xf32>
    %cst_183 = arith.constant dense<0.000000e+00> : vector<2x32xf32>
    %470 = tpu.matmul %422, %32, %cst_183 {dimension_numbers = #tpu.dot_dimension_numbers<[1], [0], [0], [1], [0, 0, 1, 1], [], []>} : vector<2x32xf32>, vector<32x32xf32>, vector<2x32xf32> -> vector<2x32xf32>
    %471 = arith.addf %469, %470 : vector<2x32xf32>
    %472 = vector.extract_strided_slice %40 {offsets = [0, 5, 0], sizes = [2, 1, 32], strides = [1, 1, 1]} : vector<2x8x32xf32> to vector<2x1x32xf32>
    %473 = vector.shape_cast %472 : vector<2x1x32xf32> to vector<2x32xf32>
    %cst_184 = arith.constant dense<0.000000e+00> : vector<2x32xf32>
    %474 = tpu.matmul %422, %42, %cst_184 {dimension_numbers = #tpu.dot_dimension_numbers<[1], [0], [0], [1], [0, 0, 1, 1], [], []>} : vector<2x32xf32>, vector<32x32xf32>, vector<2x32xf32> -> vector<2x32xf32>
    %475 = arith.addf %473, %474 : vector<2x32xf32>
    %476 = arith.negf %463 : vector<2x32xf32>
    %477 = math.exp %476 : vector<2x32xf32>
    %cst_185 = arith.constant 1.000000e+00 : f32
    %478 = vector.broadcast %cst_185 : f32 to vector<2x32xf32>
    %479 = arith.addf %478, %477 : vector<2x32xf32>
    %480 = arith.divf %478, %479 : vector<2x32xf32>
    %481 = arith.negf %467 : vector<2x32xf32>
    %482 = math.exp %481 : vector<2x32xf32>
    %cst_186 = arith.constant 1.000000e+00 : f32
    %483 = vector.broadcast %cst_186 : f32 to vector<2x32xf32>
    %484 = arith.addf %483, %482 : vector<2x32xf32>
    %485 = arith.divf %483, %484 : vector<2x32xf32>
    %486 = math.tanh %471 : vector<2x32xf32>
    %487 = arith.negf %475 : vector<2x32xf32>
    %488 = math.exp %487 : vector<2x32xf32>
    %cst_187 = arith.constant 1.000000e+00 : f32
    %489 = vector.broadcast %cst_187 : f32 to vector<2x32xf32>
    %490 = arith.addf %489, %488 : vector<2x32xf32>
    %491 = arith.divf %489, %490 : vector<2x32xf32>
    %492 = arith.mulf %485, %420 : vector<2x32xf32>
    %493 = arith.mulf %480, %486 : vector<2x32xf32>
    %494 = arith.addf %492, %493 : vector<2x32xf32>
    %495 = math.tanh %494 : vector<2x32xf32>
    %496 = arith.mulf %491, %495 : vector<2x32xf32>
    %497 = vector.extract_strided_slice %53 {offsets = [0, 5, 0], sizes = [2, 1, 32], strides = [1, 1, 1]} : vector<2x8x32xf32> to vector<2x1x32xf32>
    %498 = vector.shape_cast %497 : vector<2x1x32xf32> to vector<2x32xf32>
    %cst_188 = arith.constant dense<0.000000e+00> : vector<2x32xf32>
    %499 = tpu.matmul %459, %55, %cst_188 {dimension_numbers = #tpu.dot_dimension_numbers<[1], [0], [0], [1], [0, 0, 1, 1], [], []>} : vector<2x32xf32>, vector<32x32xf32>, vector<2x32xf32> -> vector<2x32xf32>
    %500 = arith.addf %498, %499 : vector<2x32xf32>
    %501 = vector.extract_strided_slice %63 {offsets = [0, 5, 0], sizes = [2, 1, 32], strides = [1, 1, 1]} : vector<2x8x32xf32> to vector<2x1x32xf32>
    %502 = vector.shape_cast %501 : vector<2x1x32xf32> to vector<2x32xf32>
    %cst_189 = arith.constant dense<0.000000e+00> : vector<2x32xf32>
    %503 = tpu.matmul %459, %65, %cst_189 {dimension_numbers = #tpu.dot_dimension_numbers<[1], [0], [0], [1], [0, 0, 1, 1], [], []>} : vector<2x32xf32>, vector<32x32xf32>, vector<2x32xf32> -> vector<2x32xf32>
    %504 = arith.addf %502, %503 : vector<2x32xf32>
    %505 = vector.extract_strided_slice %73 {offsets = [0, 5, 0], sizes = [2, 1, 32], strides = [1, 1, 1]} : vector<2x8x32xf32> to vector<2x1x32xf32>
    %506 = vector.shape_cast %505 : vector<2x1x32xf32> to vector<2x32xf32>
    %cst_190 = arith.constant dense<0.000000e+00> : vector<2x32xf32>
    %507 = tpu.matmul %459, %75, %cst_190 {dimension_numbers = #tpu.dot_dimension_numbers<[1], [0], [0], [1], [0, 0, 1, 1], [], []>} : vector<2x32xf32>, vector<32x32xf32>, vector<2x32xf32> -> vector<2x32xf32>
    %508 = arith.addf %506, %507 : vector<2x32xf32>
    %509 = vector.extract_strided_slice %83 {offsets = [0, 5, 0], sizes = [2, 1, 32], strides = [1, 1, 1]} : vector<2x8x32xf32> to vector<2x1x32xf32>
    %510 = vector.shape_cast %509 : vector<2x1x32xf32> to vector<2x32xf32>
    %cst_191 = arith.constant dense<0.000000e+00> : vector<2x32xf32>
    %511 = tpu.matmul %459, %85, %cst_191 {dimension_numbers = #tpu.dot_dimension_numbers<[1], [0], [0], [1], [0, 0, 1, 1], [], []>} : vector<2x32xf32>, vector<32x32xf32>, vector<2x32xf32> -> vector<2x32xf32>
    %512 = arith.addf %510, %511 : vector<2x32xf32>
    %513 = arith.negf %500 : vector<2x32xf32>
    %514 = math.exp %513 : vector<2x32xf32>
    %cst_192 = arith.constant 1.000000e+00 : f32
    %515 = vector.broadcast %cst_192 : f32 to vector<2x32xf32>
    %516 = arith.addf %515, %514 : vector<2x32xf32>
    %517 = arith.divf %515, %516 : vector<2x32xf32>
    %518 = arith.negf %504 : vector<2x32xf32>
    %519 = math.exp %518 : vector<2x32xf32>
    %cst_193 = arith.constant 1.000000e+00 : f32
    %520 = vector.broadcast %cst_193 : f32 to vector<2x32xf32>
    %521 = arith.addf %520, %519 : vector<2x32xf32>
    %522 = arith.divf %520, %521 : vector<2x32xf32>
    %523 = math.tanh %508 : vector<2x32xf32>
    %524 = arith.negf %512 : vector<2x32xf32>
    %525 = math.exp %524 : vector<2x32xf32>
    %cst_194 = arith.constant 1.000000e+00 : f32
    %526 = vector.broadcast %cst_194 : f32 to vector<2x32xf32>
    %527 = arith.addf %526, %525 : vector<2x32xf32>
    %528 = arith.divf %526, %527 : vector<2x32xf32>
    %529 = arith.mulf %522, %457 : vector<2x32xf32>
    %530 = arith.mulf %517, %523 : vector<2x32xf32>
    %531 = arith.addf %529, %530 : vector<2x32xf32>
    %532 = math.tanh %531 : vector<2x32xf32>
    %533 = arith.mulf %528, %532 : vector<2x32xf32>
    %534 = vector.extract_strided_slice %10 {offsets = [0, 6, 0], sizes = [2, 1, 32], strides = [1, 1, 1]} : vector<2x8x32xf32> to vector<2x1x32xf32>
    %535 = vector.shape_cast %534 : vector<2x1x32xf32> to vector<2x32xf32>
    %cst_195 = arith.constant dense<0.000000e+00> : vector<2x32xf32>
    %536 = tpu.matmul %496, %12, %cst_195 {dimension_numbers = #tpu.dot_dimension_numbers<[1], [0], [0], [1], [0, 0, 1, 1], [], []>} : vector<2x32xf32>, vector<32x32xf32>, vector<2x32xf32> -> vector<2x32xf32>
    %537 = arith.addf %535, %536 : vector<2x32xf32>
    %538 = vector.extract_strided_slice %20 {offsets = [0, 6, 0], sizes = [2, 1, 32], strides = [1, 1, 1]} : vector<2x8x32xf32> to vector<2x1x32xf32>
    %539 = vector.shape_cast %538 : vector<2x1x32xf32> to vector<2x32xf32>
    %cst_196 = arith.constant dense<0.000000e+00> : vector<2x32xf32>
    %540 = tpu.matmul %496, %22, %cst_196 {dimension_numbers = #tpu.dot_dimension_numbers<[1], [0], [0], [1], [0, 0, 1, 1], [], []>} : vector<2x32xf32>, vector<32x32xf32>, vector<2x32xf32> -> vector<2x32xf32>
    %541 = arith.addf %539, %540 : vector<2x32xf32>
    %542 = vector.extract_strided_slice %30 {offsets = [0, 6, 0], sizes = [2, 1, 32], strides = [1, 1, 1]} : vector<2x8x32xf32> to vector<2x1x32xf32>
    %543 = vector.shape_cast %542 : vector<2x1x32xf32> to vector<2x32xf32>
    %cst_197 = arith.constant dense<0.000000e+00> : vector<2x32xf32>
    %544 = tpu.matmul %496, %32, %cst_197 {dimension_numbers = #tpu.dot_dimension_numbers<[1], [0], [0], [1], [0, 0, 1, 1], [], []>} : vector<2x32xf32>, vector<32x32xf32>, vector<2x32xf32> -> vector<2x32xf32>
    %545 = arith.addf %543, %544 : vector<2x32xf32>
    %546 = vector.extract_strided_slice %40 {offsets = [0, 6, 0], sizes = [2, 1, 32], strides = [1, 1, 1]} : vector<2x8x32xf32> to vector<2x1x32xf32>
    %547 = vector.shape_cast %546 : vector<2x1x32xf32> to vector<2x32xf32>
    %cst_198 = arith.constant dense<0.000000e+00> : vector<2x32xf32>
    %548 = tpu.matmul %496, %42, %cst_198 {dimension_numbers = #tpu.dot_dimension_numbers<[1], [0], [0], [1], [0, 0, 1, 1], [], []>} : vector<2x32xf32>, vector<32x32xf32>, vector<2x32xf32> -> vector<2x32xf32>
    %549 = arith.addf %547, %548 : vector<2x32xf32>
    %550 = arith.negf %537 : vector<2x32xf32>
    %551 = math.exp %550 : vector<2x32xf32>
    %cst_199 = arith.constant 1.000000e+00 : f32
    %552 = vector.broadcast %cst_199 : f32 to vector<2x32xf32>
    %553 = arith.addf %552, %551 : vector<2x32xf32>
    %554 = arith.divf %552, %553 : vector<2x32xf32>
    %555 = arith.negf %541 : vector<2x32xf32>
    %556 = math.exp %555 : vector<2x32xf32>
    %cst_200 = arith.constant 1.000000e+00 : f32
    %557 = vector.broadcast %cst_200 : f32 to vector<2x32xf32>
    %558 = arith.addf %557, %556 : vector<2x32xf32>
    %559 = arith.divf %557, %558 : vector<2x32xf32>
    %560 = math.tanh %545 : vector<2x32xf32>
    %561 = arith.negf %549 : vector<2x32xf32>
    %562 = math.exp %561 : vector<2x32xf32>
    %cst_201 = arith.constant 1.000000e+00 : f32
    %563 = vector.broadcast %cst_201 : f32 to vector<2x32xf32>
    %564 = arith.addf %563, %562 : vector<2x32xf32>
    %565 = arith.divf %563, %564 : vector<2x32xf32>
    %566 = arith.mulf %559, %494 : vector<2x32xf32>
    %567 = arith.mulf %554, %560 : vector<2x32xf32>
    %568 = arith.addf %566, %567 : vector<2x32xf32>
    %569 = math.tanh %568 : vector<2x32xf32>
    %570 = arith.mulf %565, %569 : vector<2x32xf32>
    %571 = vector.extract_strided_slice %53 {offsets = [0, 6, 0], sizes = [2, 1, 32], strides = [1, 1, 1]} : vector<2x8x32xf32> to vector<2x1x32xf32>
    %572 = vector.shape_cast %571 : vector<2x1x32xf32> to vector<2x32xf32>
    %cst_202 = arith.constant dense<0.000000e+00> : vector<2x32xf32>
    %573 = tpu.matmul %533, %55, %cst_202 {dimension_numbers = #tpu.dot_dimension_numbers<[1], [0], [0], [1], [0, 0, 1, 1], [], []>} : vector<2x32xf32>, vector<32x32xf32>, vector<2x32xf32> -> vector<2x32xf32>
    %574 = arith.addf %572, %573 : vector<2x32xf32>
    %575 = vector.extract_strided_slice %63 {offsets = [0, 6, 0], sizes = [2, 1, 32], strides = [1, 1, 1]} : vector<2x8x32xf32> to vector<2x1x32xf32>
    %576 = vector.shape_cast %575 : vector<2x1x32xf32> to vector<2x32xf32>
    %cst_203 = arith.constant dense<0.000000e+00> : vector<2x32xf32>
    %577 = tpu.matmul %533, %65, %cst_203 {dimension_numbers = #tpu.dot_dimension_numbers<[1], [0], [0], [1], [0, 0, 1, 1], [], []>} : vector<2x32xf32>, vector<32x32xf32>, vector<2x32xf32> -> vector<2x32xf32>
    %578 = arith.addf %576, %577 : vector<2x32xf32>
    %579 = vector.extract_strided_slice %73 {offsets = [0, 6, 0], sizes = [2, 1, 32], strides = [1, 1, 1]} : vector<2x8x32xf32> to vector<2x1x32xf32>
    %580 = vector.shape_cast %579 : vector<2x1x32xf32> to vector<2x32xf32>
    %cst_204 = arith.constant dense<0.000000e+00> : vector<2x32xf32>
    %581 = tpu.matmul %533, %75, %cst_204 {dimension_numbers = #tpu.dot_dimension_numbers<[1], [0], [0], [1], [0, 0, 1, 1], [], []>} : vector<2x32xf32>, vector<32x32xf32>, vector<2x32xf32> -> vector<2x32xf32>
    %582 = arith.addf %580, %581 : vector<2x32xf32>
    %583 = vector.extract_strided_slice %83 {offsets = [0, 6, 0], sizes = [2, 1, 32], strides = [1, 1, 1]} : vector<2x8x32xf32> to vector<2x1x32xf32>
    %584 = vector.shape_cast %583 : vector<2x1x32xf32> to vector<2x32xf32>
    %cst_205 = arith.constant dense<0.000000e+00> : vector<2x32xf32>
    %585 = tpu.matmul %533, %85, %cst_205 {dimension_numbers = #tpu.dot_dimension_numbers<[1], [0], [0], [1], [0, 0, 1, 1], [], []>} : vector<2x32xf32>, vector<32x32xf32>, vector<2x32xf32> -> vector<2x32xf32>
    %586 = arith.addf %584, %585 : vector<2x32xf32>
    %587 = arith.negf %574 : vector<2x32xf32>
    %588 = math.exp %587 : vector<2x32xf32>
    %cst_206 = arith.constant 1.000000e+00 : f32
    %589 = vector.broadcast %cst_206 : f32 to vector<2x32xf32>
    %590 = arith.addf %589, %588 : vector<2x32xf32>
    %591 = arith.divf %589, %590 : vector<2x32xf32>
    %592 = arith.negf %578 : vector<2x32xf32>
    %593 = math.exp %592 : vector<2x32xf32>
    %cst_207 = arith.constant 1.000000e+00 : f32
    %594 = vector.broadcast %cst_207 : f32 to vector<2x32xf32>
    %595 = arith.addf %594, %593 : vector<2x32xf32>
    %596 = arith.divf %594, %595 : vector<2x32xf32>
    %597 = math.tanh %582 : vector<2x32xf32>
    %598 = arith.negf %586 : vector<2x32xf32>
    %599 = math.exp %598 : vector<2x32xf32>
    %cst_208 = arith.constant 1.000000e+00 : f32
    %600 = vector.broadcast %cst_208 : f32 to vector<2x32xf32>
    %601 = arith.addf %600, %599 : vector<2x32xf32>
    %602 = arith.divf %600, %601 : vector<2x32xf32>
    %603 = arith.mulf %596, %531 : vector<2x32xf32>
    %604 = arith.mulf %591, %597 : vector<2x32xf32>
    %605 = arith.addf %603, %604 : vector<2x32xf32>
    %606 = math.tanh %605 : vector<2x32xf32>
    %607 = arith.mulf %602, %606 : vector<2x32xf32>
    %cst_209 = arith.constant 0.000000e+00 : f32
    %608 = vector.broadcast %cst_209 : f32 to vector<2x32xf32>
    %c0_210 = arith.constant 0 : index
    %c0_211 = arith.constant 0 : index
    %c0_212 = arith.constant 0 : index
    %609 = vector.load %arg4[%c0_210, %c0_211, %c0_212] : memref<2x32x32xf32, #tpu.memory_space<vmem>>, vector<1x32x32xf32>
    %610 = vector.shape_cast %609 : vector<1x32x32xf32> to vector<32x32xf32>
    %c0_213 = arith.constant 0 : index
    %c0_214 = arith.constant 0 : index
    %c0_215 = arith.constant 0 : index
    %611 = vector.load %arg5[%c0_213, %c0_214, %c0_215] : memref<2x1x32xf32, #tpu.memory_space<vmem>>, vector<1x1x32xf32>
    %612 = vector.shape_cast %611 : vector<1x1x32xf32> to vector<1x32xf32>
    %c0_216 = arith.constant 0 : index
    %c0_217 = arith.constant 0 : index
    %c0_218 = arith.constant 0 : index
    %613 = vector.load %arg6[%c0_216, %c0_217, %c0_218] : memref<2x1x32xf32, #tpu.memory_space<vmem>>, vector<1x1x32xf32>
    %614 = vector.shape_cast %613 : vector<1x1x32xf32> to vector<1x32xf32>
    %c0_219 = arith.constant 0 : index
    %c0_220 = arith.constant 0 : index
    %c0_221 = arith.constant 0 : index
    %615 = vector.load %arg7[%c0_219, %c0_220, %c0_221] : memref<2x1x32xf32, #tpu.memory_space<vmem>>, vector<1x1x32xf32>
    %616 = vector.shape_cast %615 : vector<1x1x32xf32> to vector<1x32xf32>
    %c0_222 = arith.constant 0 : index
    %c0_223 = arith.constant 0 : index
    %c0_224 = arith.constant 0 : index
    %c0_225 = arith.constant 0 : index
    %617 = vector.load %arg0[%c0_222, %c0_223, %c0_224, %c0_225] : memref<2x2x8x32xf32, #tpu.memory_space<vmem>>, vector<1x2x8x32xf32>
    %618 = vector.shape_cast %617 : vector<1x2x8x32xf32> to vector<2x8x32xf32>
    %c0_226 = arith.constant 0 : index
    %c0_227 = arith.constant 0 : index
    %c0_228 = arith.constant 0 : index
    %619 = vector.load %arg8[%c0_226, %c0_227, %c0_228] : memref<2x2x256xf32, #tpu.memory_space<vmem>>, vector<1x2x32xf32>
    %620 = vector.shape_cast %619 : vector<1x2x32xf32> to vector<2x32xf32>
    %621 = vector.shape_cast %608 : vector<2x32xf32> to vector<1x2x32xf32>
    tpu.vector_store %arg8[%c0_226, %c0_227, %c0_228], %621 {strides = array<i32>} : memref<2x2x256xf32, #tpu.memory_space<vmem>>, vector<1x2x32xf32>,
    %cst_229 = arith.constant dense<0.000000e+00> : vector<2x32xf32>
    %622 = tpu.matmul %126, %610, %cst_229 {dimension_numbers = #tpu.dot_dimension_numbers<[1], [0], [0], [1], [0, 0, 1, 1], [], []>} : vector<2x32xf32>, vector<32x32xf32>, vector<2x32xf32> -> vector<2x32xf32>
    %623 = vector.broadcast %612 : vector<1x32xf32> to vector<2x32xf32>
    %624 = arith.addf %622, %623 : vector<2x32xf32>
    %cst_230 = arith.constant dense<0.000000e+00> : vector<2xf32>
    %625 = vector.multi_reduction <add>, %624, %cst_230 [1] : vector<2x32xf32> to vector<2xf32>
    %626 = vector.shape_cast %625 : vector<2xf32> to vector<2x1xf32>
    %cst_231 = arith.constant 3.200000e+01 : f32
    %627 = vector.broadcast %cst_231 : f32 to vector<2x1xf32>
    %628 = arith.divf %626, %627 : vector<2x1xf32>
    %629 = vector.broadcast %628 : vector<2x1xf32> to vector<2x32xf32>
    %630 = arith.subf %624, %629 : vector<2x32xf32>
    %631 = arith.mulf %630, %630 : vector<2x32xf32>
    %cst_232 = arith.constant dense<0.000000e+00> : vector<2xf32>
    %632 = vector.multi_reduction <add>, %631, %cst_232 [1] : vector<2x32xf32> to vector<2xf32>
    %633 = vector.shape_cast %632 : vector<2xf32> to vector<2x1xf32>
    %cst_233 = arith.constant 3.200000e+01 : f32
    %634 = vector.broadcast %cst_233 : f32 to vector<2x1xf32>
    %635 = arith.divf %633, %634 : vector<2x1xf32>
    %636 = vector.broadcast %628 : vector<2x1xf32> to vector<2x32xf32>
    %637 = arith.subf %624, %636 : vector<2x32xf32>
    %638 = vector.broadcast %614 : vector<1x32xf32> to vector<2x32xf32>
    %639 = arith.mulf %638, %637 : vector<2x32xf32>
    %cst_234 = arith.constant 1.1920929E-7 : f32
    %640 = vector.broadcast %cst_234 : f32 to vector<2x1xf32>
    %641 = arith.addf %635, %640 : vector<2x1xf32>
    %642 = math.rsqrt %641 : vector<2x1xf32>
    %643 = vector.broadcast %642 : vector<2x1xf32> to vector<2x32xf32>
    %644 = arith.mulf %639, %643 : vector<2x32xf32>
    %645 = vector.broadcast %616 : vector<1x32xf32> to vector<2x32xf32>
    %646 = arith.addf %644, %645 : vector<2x32xf32>
    %647 = vector.extract_strided_slice %618 {offsets = [0, 0, 0], sizes = [2, 1, 32], strides = [1, 1, 1]} : vector<2x8x32xf32> to vector<2x1x32xf32>
    %648 = vector.shape_cast %647 : vector<2x1x32xf32> to vector<2x32xf32>
    %649 = arith.addf %648, %646 : vector<2x32xf32>
    %c0_235 = arith.constant 0 : index
    %c0_236 = arith.constant 0 : index
    %c32 = arith.constant 32 : index
    %650 = vector.load %arg8[%c0_235, %c0_236, %c32] : memref<2x2x256xf32, #tpu.memory_space<vmem>>, vector<1x2x32xf32>
    %651 = vector.shape_cast %650 : vector<1x2x32xf32> to vector<2x32xf32>
    %652 = vector.shape_cast %649 : vector<2x32xf32> to vector<1x2x32xf32>
    tpu.vector_store %arg8[%c0_235, %c0_236, %c32], %652 {strides = array<i32>} : memref<2x2x256xf32, #tpu.memory_space<vmem>>, vector<1x2x32xf32>,
    %cst_237 = arith.constant dense<0.000000e+00> : vector<2x32xf32>
    %653 = tpu.matmul %200, %610, %cst_237 {dimension_numbers = #tpu.dot_dimension_numbers<[1], [0], [0], [1], [0, 0, 1, 1], [], []>} : vector<2x32xf32>, vector<32x32xf32>, vector<2x32xf32> -> vector<2x32xf32>
    %654 = vector.broadcast %612 : vector<1x32xf32> to vector<2x32xf32>
    %655 = arith.addf %653, %654 : vector<2x32xf32>
    %cst_238 = arith.constant dense<0.000000e+00> : vector<2xf32>
    %656 = vector.multi_reduction <add>, %655, %cst_238 [1] : vector<2x32xf32> to vector<2xf32>
    %657 = vector.shape_cast %656 : vector<2xf32> to vector<2x1xf32>
    %cst_239 = arith.constant 3.200000e+01 : f32
    %658 = vector.broadcast %cst_239 : f32 to vector<2x1xf32>
    %659 = arith.divf %657, %658 : vector<2x1xf32>
    %660 = vector.broadcast %659 : vector<2x1xf32> to vector<2x32xf32>
    %661 = arith.subf %655, %660 : vector<2x32xf32>
    %662 = arith.mulf %661, %661 : vector<2x32xf32>
    %cst_240 = arith.constant dense<0.000000e+00> : vector<2xf32>
    %663 = vector.multi_reduction <add>, %662, %cst_240 [1] : vector<2x32xf32> to vector<2xf32>
    %664 = vector.shape_cast %663 : vector<2xf32> to vector<2x1xf32>
    %cst_241 = arith.constant 3.200000e+01 : f32
    %665 = vector.broadcast %cst_241 : f32 to vector<2x1xf32>
    %666 = arith.divf %664, %665 : vector<2x1xf32>
    %667 = vector.broadcast %659 : vector<2x1xf32> to vector<2x32xf32>
    %668 = arith.subf %655, %667 : vector<2x32xf32>
    %669 = vector.broadcast %614 : vector<1x32xf32> to vector<2x32xf32>
    %670 = arith.mulf %669, %668 : vector<2x32xf32>
    %cst_242 = arith.constant 1.1920929E-7 : f32
    %671 = vector.broadcast %cst_242 : f32 to vector<2x1xf32>
    %672 = arith.addf %666, %671 : vector<2x1xf32>
    %673 = math.rsqrt %672 : vector<2x1xf32>
    %674 = vector.broadcast %673 : vector<2x1xf32> to vector<2x32xf32>
    %675 = arith.mulf %670, %674 : vector<2x32xf32>
    %676 = vector.broadcast %616 : vector<1x32xf32> to vector<2x32xf32>
    %677 = arith.addf %675, %676 : vector<2x32xf32>
    %678 = vector.extract_strided_slice %618 {offsets = [0, 1, 0], sizes = [2, 1, 32], strides = [1, 1, 1]} : vector<2x8x32xf32> to vector<2x1x32xf32>
    %679 = vector.shape_cast %678 : vector<2x1x32xf32> to vector<2x32xf32>
    %680 = arith.addf %679, %677 : vector<2x32xf32>
    %c0_243 = arith.constant 0 : index
    %c0_244 = arith.constant 0 : index
    %c64 = arith.constant 64 : index
    %681 = vector.load %arg8[%c0_243, %c0_244, %c64] : memref<2x2x256xf32, #tpu.memory_space<vmem>>, vector<1x2x32xf32>
    %682 = vector.shape_cast %681 : vector<1x2x32xf32> to vector<2x32xf32>
    %683 = vector.shape_cast %680 : vector<2x32xf32> to vector<1x2x32xf32>
    tpu.vector_store %arg8[%c0_243, %c0_244, %c64], %683 {strides = array<i32>} : memref<2x2x256xf32, #tpu.memory_space<vmem>>, vector<1x2x32xf32>,
    %cst_245 = arith.constant dense<0.000000e+00> : vector<2x32xf32>
    %684 = tpu.matmul %274, %610, %cst_245 {dimension_numbers = #tpu.dot_dimension_numbers<[1], [0], [0], [1], [0, 0, 1, 1], [], []>} : vector<2x32xf32>, vector<32x32xf32>, vector<2x32xf32> -> vector<2x32xf32>
    %685 = vector.broadcast %612 : vector<1x32xf32> to vector<2x32xf32>
    %686 = arith.addf %684, %685 : vector<2x32xf32>
    %cst_246 = arith.constant dense<0.000000e+00> : vector<2xf32>
    %687 = vector.multi_reduction <add>, %686, %cst_246 [1] : vector<2x32xf32> to vector<2xf32>
    %688 = vector.shape_cast %687 : vector<2xf32> to vector<2x1xf32>
    %cst_247 = arith.constant 3.200000e+01 : f32
    %689 = vector.broadcast %cst_247 : f32 to vector<2x1xf32>
    %690 = arith.divf %688, %689 : vector<2x1xf32>
    %691 = vector.broadcast %690 : vector<2x1xf32> to vector<2x32xf32>
    %692 = arith.subf %686, %691 : vector<2x32xf32>
    %693 = arith.mulf %692, %692 : vector<2x32xf32>
    %cst_248 = arith.constant dense<0.000000e+00> : vector<2xf32>
    %694 = vector.multi_reduction <add>, %693, %cst_248 [1] : vector<2x32xf32> to vector<2xf32>
    %695 = vector.shape_cast %694 : vector<2xf32> to vector<2x1xf32>
    %cst_249 = arith.constant 3.200000e+01 : f32
    %696 = vector.broadcast %cst_249 : f32 to vector<2x1xf32>
    %697 = arith.divf %695, %696 : vector<2x1xf32>
    %698 = vector.broadcast %690 : vector<2x1xf32> to vector<2x32xf32>
    %699 = arith.subf %686, %698 : vector<2x32xf32>
    %700 = vector.broadcast %614 : vector<1x32xf32> to vector<2x32xf32>
    %701 = arith.mulf %700, %699 : vector<2x32xf32>
    %cst_250 = arith.constant 1.1920929E-7 : f32
    %702 = vector.broadcast %cst_250 : f32 to vector<2x1xf32>
    %703 = arith.addf %697, %702 : vector<2x1xf32>
    %704 = math.rsqrt %703 : vector<2x1xf32>
    %705 = vector.broadcast %704 : vector<2x1xf32> to vector<2x32xf32>
    %706 = arith.mulf %701, %705 : vector<2x32xf32>
    %707 = vector.broadcast %616 : vector<1x32xf32> to vector<2x32xf32>
    %708 = arith.addf %706, %707 : vector<2x32xf32>
    %709 = vector.extract_strided_slice %618 {offsets = [0, 2, 0], sizes = [2, 1, 32], strides = [1, 1, 1]} : vector<2x8x32xf32> to vector<2x1x32xf32>
    %710 = vector.shape_cast %709 : vector<2x1x32xf32> to vector<2x32xf32>
    %711 = arith.addf %710, %708 : vector<2x32xf32>
    %c0_251 = arith.constant 0 : index
    %c0_252 = arith.constant 0 : index
    %c96 = arith.constant 96 : index
    %712 = vector.load %arg8[%c0_251, %c0_252, %c96] : memref<2x2x256xf32, #tpu.memory_space<vmem>>, vector<1x2x32xf32>
    %713 = vector.shape_cast %712 : vector<1x2x32xf32> to vector<2x32xf32>
    %714 = vector.shape_cast %711 : vector<2x32xf32> to vector<1x2x32xf32>
    tpu.vector_store %arg8[%c0_251, %c0_252, %c96], %714 {strides = array<i32>} : memref<2x2x256xf32, #tpu.memory_space<vmem>>, vector<1x2x32xf32>,
    %cst_253 = arith.constant dense<0.000000e+00> : vector<2x32xf32>
    %715 = tpu.matmul %348, %610, %cst_253 {dimension_numbers = #tpu.dot_dimension_numbers<[1], [0], [0], [1], [0, 0, 1, 1], [], []>} : vector<2x32xf32>, vector<32x32xf32>, vector<2x32xf32> -> vector<2x32xf32>
    %716 = vector.broadcast %612 : vector<1x32xf32> to vector<2x32xf32>
    %717 = arith.addf %715, %716 : vector<2x32xf32>
    %cst_254 = arith.constant dense<0.000000e+00> : vector<2xf32>
    %718 = vector.multi_reduction <add>, %717, %cst_254 [1] : vector<2x32xf32> to vector<2xf32>
    %719 = vector.shape_cast %718 : vector<2xf32> to vector<2x1xf32>
    %cst_255 = arith.constant 3.200000e+01 : f32
    %720 = vector.broadcast %cst_255 : f32 to vector<2x1xf32>
    %721 = arith.divf %719, %720 : vector<2x1xf32>
    %722 = vector.broadcast %721 : vector<2x1xf32> to vector<2x32xf32>
    %723 = arith.subf %717, %722 : vector<2x32xf32>
    %724 = arith.mulf %723, %723 : vector<2x32xf32>
    %cst_256 = arith.constant dense<0.000000e+00> : vector<2xf32>
    %725 = vector.multi_reduction <add>, %724, %cst_256 [1] : vector<2x32xf32> to vector<2xf32>
    %726 = vector.shape_cast %725 : vector<2xf32> to vector<2x1xf32>
    %cst_257 = arith.constant 3.200000e+01 : f32
    %727 = vector.broadcast %cst_257 : f32 to vector<2x1xf32>
    %728 = arith.divf %726, %727 : vector<2x1xf32>
    %729 = vector.broadcast %721 : vector<2x1xf32> to vector<2x32xf32>
    %730 = arith.subf %717, %729 : vector<2x32xf32>
    %731 = vector.broadcast %614 : vector<1x32xf32> to vector<2x32xf32>
    %732 = arith.mulf %731, %730 : vector<2x32xf32>
    %cst_258 = arith.constant 1.1920929E-7 : f32
    %733 = vector.broadcast %cst_258 : f32 to vector<2x1xf32>
    %734 = arith.addf %728, %733 : vector<2x1xf32>
    %735 = math.rsqrt %734 : vector<2x1xf32>
    %736 = vector.broadcast %735 : vector<2x1xf32> to vector<2x32xf32>
    %737 = arith.mulf %732, %736 : vector<2x32xf32>
    %738 = vector.broadcast %616 : vector<1x32xf32> to vector<2x32xf32>
    %739 = arith.addf %737, %738 : vector<2x32xf32>
    %740 = vector.extract_strided_slice %618 {offsets = [0, 3, 0], sizes = [2, 1, 32], strides = [1, 1, 1]} : vector<2x8x32xf32> to vector<2x1x32xf32>
    %741 = vector.shape_cast %740 : vector<2x1x32xf32> to vector<2x32xf32>
    %742 = arith.addf %741, %739 : vector<2x32xf32>
    %c0_259 = arith.constant 0 : index
    %c0_260 = arith.constant 0 : index
    %c128 = arith.constant 128 : index
    %743 = vector.load %arg8[%c0_259, %c0_260, %c128] : memref<2x2x256xf32, #tpu.memory_space<vmem>>, vector<1x2x32xf32>
    %744 = vector.shape_cast %743 : vector<1x2x32xf32> to vector<2x32xf32>
    %745 = vector.shape_cast %742 : vector<2x32xf32> to vector<1x2x32xf32>
    tpu.vector_store %arg8[%c0_259, %c0_260, %c128], %745 {strides = array<i32>} : memref<2x2x256xf32, #tpu.memory_space<vmem>>, vector<1x2x32xf32>,
    %cst_261 = arith.constant dense<0.000000e+00> : vector<2x32xf32>
    %746 = tpu.matmul %422, %610, %cst_261 {dimension_numbers = #tpu.dot_dimension_numbers<[1], [0], [0], [1], [0, 0, 1, 1], [], []>} : vector<2x32xf32>, vector<32x32xf32>, vector<2x32xf32> -> vector<2x32xf32>
    %747 = vector.broadcast %612 : vector<1x32xf32> to vector<2x32xf32>
    %748 = arith.addf %746, %747 : vector<2x32xf32>
    %cst_262 = arith.constant dense<0.000000e+00> : vector<2xf32>
    %749 = vector.multi_reduction <add>, %748, %cst_262 [1] : vector<2x32xf32> to vector<2xf32>
    %750 = vector.shape_cast %749 : vector<2xf32> to vector<2x1xf32>
    %cst_263 = arith.constant 3.200000e+01 : f32
    %751 = vector.broadcast %cst_263 : f32 to vector<2x1xf32>
    %752 = arith.divf %750, %751 : vector<2x1xf32>
    %753 = vector.broadcast %752 : vector<2x1xf32> to vector<2x32xf32>
    %754 = arith.subf %748, %753 : vector<2x32xf32>
    %755 = arith.mulf %754, %754 : vector<2x32xf32>
    %cst_264 = arith.constant dense<0.000000e+00> : vector<2xf32>
    %756 = vector.multi_reduction <add>, %755, %cst_264 [1] : vector<2x32xf32> to vector<2xf32>
    %757 = vector.shape_cast %756 : vector<2xf32> to vector<2x1xf32>
    %cst_265 = arith.constant 3.200000e+01 : f32
    %758 = vector.broadcast %cst_265 : f32 to vector<2x1xf32>
    %759 = arith.divf %757, %758 : vector<2x1xf32>
    %760 = vector.broadcast %752 : vector<2x1xf32> to vector<2x32xf32>
    %761 = arith.subf %748, %760 : vector<2x32xf32>
    %762 = vector.broadcast %614 : vector<1x32xf32> to vector<2x32xf32>
    %763 = arith.mulf %762, %761 : vector<2x32xf32>
    %cst_266 = arith.constant 1.1920929E-7 : f32
    %764 = vector.broadcast %cst_266 : f32 to vector<2x1xf32>
    %765 = arith.addf %759, %764 : vector<2x1xf32>
    %766 = math.rsqrt %765 : vector<2x1xf32>
    %767 = vector.broadcast %766 : vector<2x1xf32> to vector<2x32xf32>
    %768 = arith.mulf %763, %767 : vector<2x32xf32>
    %769 = vector.broadcast %616 : vector<1x32xf32> to vector<2x32xf32>
    %770 = arith.addf %768, %769 : vector<2x32xf32>
    %771 = vector.extract_strided_slice %618 {offsets = [0, 4, 0], sizes = [2, 1, 32], strides = [1, 1, 1]} : vector<2x8x32xf32> to vector<2x1x32xf32>
    %772 = vector.shape_cast %771 : vector<2x1x32xf32> to vector<2x32xf32>
    %773 = arith.addf %772, %770 : vector<2x32xf32>
    %c0_267 = arith.constant 0 : index
    %c0_268 = arith.constant 0 : index
    %c160 = arith.constant 160 : index
    %774 = vector.load %arg8[%c0_267, %c0_268, %c160] : memref<2x2x256xf32, #tpu.memory_space<vmem>>, vector<1x2x32xf32>
    %775 = vector.shape_cast %774 : vector<1x2x32xf32> to vector<2x32xf32>
    %776 = vector.shape_cast %773 : vector<2x32xf32> to vector<1x2x32xf32>
    tpu.vector_store %arg8[%c0_267, %c0_268, %c160], %776 {strides = array<i32>} : memref<2x2x256xf32, #tpu.memory_space<vmem>>, vector<1x2x32xf32>,
    %cst_269 = arith.constant dense<0.000000e+00> : vector<2x32xf32>
    %777 = tpu.matmul %496, %610, %cst_269 {dimension_numbers = #tpu.dot_dimension_numbers<[1], [0], [0], [1], [0, 0, 1, 1], [], []>} : vector<2x32xf32>, vector<32x32xf32>, vector<2x32xf32> -> vector<2x32xf32>
    %778 = vector.broadcast %612 : vector<1x32xf32> to vector<2x32xf32>
    %779 = arith.addf %777, %778 : vector<2x32xf32>
    %cst_270 = arith.constant dense<0.000000e+00> : vector<2xf32>
    %780 = vector.multi_reduction <add>, %779, %cst_270 [1] : vector<2x32xf32> to vector<2xf32>
    %781 = vector.shape_cast %780 : vector<2xf32> to vector<2x1xf32>
    %cst_271 = arith.constant 3.200000e+01 : f32
    %782 = vector.broadcast %cst_271 : f32 to vector<2x1xf32>
    %783 = arith.divf %781, %782 : vector<2x1xf32>
    %784 = vector.broadcast %783 : vector<2x1xf32> to vector<2x32xf32>
    %785 = arith.subf %779, %784 : vector<2x32xf32>
    %786 = arith.mulf %785, %785 : vector<2x32xf32>
    %cst_272 = arith.constant dense<0.000000e+00> : vector<2xf32>
    %787 = vector.multi_reduction <add>, %786, %cst_272 [1] : vector<2x32xf32> to vector<2xf32>
    %788 = vector.shape_cast %787 : vector<2xf32> to vector<2x1xf32>
    %cst_273 = arith.constant 3.200000e+01 : f32
    %789 = vector.broadcast %cst_273 : f32 to vector<2x1xf32>
    %790 = arith.divf %788, %789 : vector<2x1xf32>
    %791 = vector.broadcast %783 : vector<2x1xf32> to vector<2x32xf32>
    %792 = arith.subf %779, %791 : vector<2x32xf32>
    %793 = vector.broadcast %614 : vector<1x32xf32> to vector<2x32xf32>
    %794 = arith.mulf %793, %792 : vector<2x32xf32>
    %cst_274 = arith.constant 1.1920929E-7 : f32
    %795 = vector.broadcast %cst_274 : f32 to vector<2x1xf32>
    %796 = arith.addf %790, %795 : vector<2x1xf32>
    %797 = math.rsqrt %796 : vector<2x1xf32>
    %798 = vector.broadcast %797 : vector<2x1xf32> to vector<2x32xf32>
    %799 = arith.mulf %794, %798 : vector<2x32xf32>
    %800 = vector.broadcast %616 : vector<1x32xf32> to vector<2x32xf32>
    %801 = arith.addf %799, %800 : vector<2x32xf32>
    %802 = vector.extract_strided_slice %618 {offsets = [0, 5, 0], sizes = [2, 1, 32], strides = [1, 1, 1]} : vector<2x8x32xf32> to vector<2x1x32xf32>
    %803 = vector.shape_cast %802 : vector<2x1x32xf32> to vector<2x32xf32>
    %804 = arith.addf %803, %801 : vector<2x32xf32>
    %c0_275 = arith.constant 0 : index
    %c0_276 = arith.constant 0 : index
    %c192 = arith.constant 192 : index
    %805 = vector.load %arg8[%c0_275, %c0_276, %c192] : memref<2x2x256xf32, #tpu.memory_space<vmem>>, vector<1x2x32xf32>
    %806 = vector.shape_cast %805 : vector<1x2x32xf32> to vector<2x32xf32>
    %807 = vector.shape_cast %804 : vector<2x32xf32> to vector<1x2x32xf32>
    tpu.vector_store %arg8[%c0_275, %c0_276, %c192], %807 {strides = array<i32>} : memref<2x2x256xf32, #tpu.memory_space<vmem>>, vector<1x2x32xf32>,
    %cst_277 = arith.constant dense<0.000000e+00> : vector<2x32xf32>
    %808 = tpu.matmul %570, %610, %cst_277 {dimension_numbers = #tpu.dot_dimension_numbers<[1], [0], [0], [1], [0, 0, 1, 1], [], []>} : vector<2x32xf32>, vector<32x32xf32>, vector<2x32xf32> -> vector<2x32xf32>
    %809 = vector.broadcast %612 : vector<1x32xf32> to vector<2x32xf32>
    %810 = arith.addf %808, %809 : vector<2x32xf32>
    %cst_278 = arith.constant dense<0.000000e+00> : vector<2xf32>
    %811 = vector.multi_reduction <add>, %810, %cst_278 [1] : vector<2x32xf32> to vector<2xf32>
    %812 = vector.shape_cast %811 : vector<2xf32> to vector<2x1xf32>
    %cst_279 = arith.constant 3.200000e+01 : f32
    %813 = vector.broadcast %cst_279 : f32 to vector<2x1xf32>
    %814 = arith.divf %812, %813 : vector<2x1xf32>
    %815 = vector.broadcast %814 : vector<2x1xf32> to vector<2x32xf32>
    %816 = arith.subf %810, %815 : vector<2x32xf32>
    %817 = arith.mulf %816, %816 : vector<2x32xf32>
    %cst_280 = arith.constant dense<0.000000e+00> : vector<2xf32>
    %818 = vector.multi_reduction <add>, %817, %cst_280 [1] : vector<2x32xf32> to vector<2xf32>
    %819 = vector.shape_cast %818 : vector<2xf32> to vector<2x1xf32>
    %cst_281 = arith.constant 3.200000e+01 : f32
    %820 = vector.broadcast %cst_281 : f32 to vector<2x1xf32>
    %821 = arith.divf %819, %820 : vector<2x1xf32>
    %822 = vector.broadcast %814 : vector<2x1xf32> to vector<2x32xf32>
    %823 = arith.subf %810, %822 : vector<2x32xf32>
    %824 = vector.broadcast %614 : vector<1x32xf32> to vector<2x32xf32>
    %825 = arith.mulf %824, %823 : vector<2x32xf32>
    %cst_282 = arith.constant 1.1920929E-7 : f32
    %826 = vector.broadcast %cst_282 : f32 to vector<2x1xf32>
    %827 = arith.addf %821, %826 : vector<2x1xf32>
    %828 = math.rsqrt %827 : vector<2x1xf32>
    %829 = vector.broadcast %828 : vector<2x1xf32> to vector<2x32xf32>
    %830 = arith.mulf %825, %829 : vector<2x32xf32>
    %831 = vector.broadcast %616 : vector<1x32xf32> to vector<2x32xf32>
    %832 = arith.addf %830, %831 : vector<2x32xf32>
    %833 = vector.extract_strided_slice %618 {offsets = [0, 6, 0], sizes = [2, 1, 32], strides = [1, 1, 1]} : vector<2x8x32xf32> to vector<2x1x32xf32>
    %834 = vector.shape_cast %833 : vector<2x1x32xf32> to vector<2x32xf32>
    %835 = arith.addf %834, %832 : vector<2x32xf32>
    %c0_283 = arith.constant 0 : index
    %c0_284 = arith.constant 0 : index
    %c224 = arith.constant 224 : index
    %836 = vector.load %arg8[%c0_283, %c0_284, %c224] : memref<2x2x256xf32, #tpu.memory_space<vmem>>, vector<1x2x32xf32>
    %837 = vector.shape_cast %836 : vector<1x2x32xf32> to vector<2x32xf32>
    %838 = vector.shape_cast %835 : vector<2x32xf32> to vector<1x2x32xf32>
    tpu.vector_store %arg8[%c0_283, %c0_284, %c224], %838 {strides = array<i32>} : memref<2x2x256xf32, #tpu.memory_space<vmem>>, vector<1x2x32xf32>,
    %c1_285 = arith.constant 1 : index
    %c0_286 = arith.constant 0 : index
    %c0_287 = arith.constant 0 : index
    %839 = vector.load %arg4[%c1_285, %c0_286, %c0_287] : memref<2x32x32xf32, #tpu.memory_space<vmem>>, vector<1x32x32xf32>
    %840 = vector.shape_cast %839 : vector<1x32x32xf32> to vector<32x32xf32>
    %c1_288 = arith.constant 1 : index
    %c0_289 = arith.constant 0 : index
    %c0_290 = arith.constant 0 : index
    %841 = vector.load %arg5[%c1_288, %c0_289, %c0_290] : memref<2x1x32xf32, #tpu.memory_space<vmem>>, vector<1x1x32xf32>
    %842 = vector.shape_cast %841 : vector<1x1x32xf32> to vector<1x32xf32>
    %c1_291 = arith.constant 1 : index
    %c0_292 = arith.constant 0 : index
    %c0_293 = arith.constant 0 : index
    %843 = vector.load %arg6[%c1_291, %c0_292, %c0_293] : memref<2x1x32xf32, #tpu.memory_space<vmem>>, vector<1x1x32xf32>
    %844 = vector.shape_cast %843 : vector<1x1x32xf32> to vector<1x32xf32>
    %c1_294 = arith.constant 1 : index
    %c0_295 = arith.constant 0 : index
    %c0_296 = arith.constant 0 : index
    %845 = vector.load %arg7[%c1_294, %c0_295, %c0_296] : memref<2x1x32xf32, #tpu.memory_space<vmem>>, vector<1x1x32xf32>
    %846 = vector.shape_cast %845 : vector<1x1x32xf32> to vector<1x32xf32>
    %c1_297 = arith.constant 1 : index
    %c0_298 = arith.constant 0 : index
    %c0_299 = arith.constant 0 : index
    %c0_300 = arith.constant 0 : index
    %847 = vector.load %arg0[%c1_297, %c0_298, %c0_299, %c0_300] : memref<2x2x8x32xf32, #tpu.memory_space<vmem>>, vector<1x2x8x32xf32>
    %848 = vector.shape_cast %847 : vector<1x2x8x32xf32> to vector<2x8x32xf32>
    %c1_301 = arith.constant 1 : index
    %c0_302 = arith.constant 0 : index
    %c0_303 = arith.constant 0 : index
    %849 = vector.load %arg8[%c1_301, %c0_302, %c0_303] : memref<2x2x256xf32, #tpu.memory_space<vmem>>, vector<1x2x32xf32>
    %850 = vector.shape_cast %849 : vector<1x2x32xf32> to vector<2x32xf32>
    %851 = vector.shape_cast %608 : vector<2x32xf32> to vector<1x2x32xf32>
    tpu.vector_store %arg8[%c1_301, %c0_302, %c0_303], %851 {strides = array<i32>} : memref<2x2x256xf32, #tpu.memory_space<vmem>>, vector<1x2x32xf32>,
    %cst_304 = arith.constant dense<0.000000e+00> : vector<2x32xf32>
    %852 = tpu.matmul %163, %840, %cst_304 {dimension_numbers = #tpu.dot_dimension_numbers<[1], [0], [0], [1], [0, 0, 1, 1], [], []>} : vector<2x32xf32>, vector<32x32xf32>, vector<2x32xf32> -> vector<2x32xf32>
    %853 = vector.broadcast %842 : vector<1x32xf32> to vector<2x32xf32>
    %854 = arith.addf %852, %853 : vector<2x32xf32>
    %cst_305 = arith.constant dense<0.000000e+00> : vector<2xf32>
    %855 = vector.multi_reduction <add>, %854, %cst_305 [1] : vector<2x32xf32> to vector<2xf32>
    %856 = vector.shape_cast %855 : vector<2xf32> to vector<2x1xf32>
    %cst_306 = arith.constant 3.200000e+01 : f32
    %857 = vector.broadcast %cst_306 : f32 to vector<2x1xf32>
    %858 = arith.divf %856, %857 : vector<2x1xf32>
    %859 = vector.broadcast %858 : vector<2x1xf32> to vector<2x32xf32>
    %860 = arith.subf %854, %859 : vector<2x32xf32>
    %861 = arith.mulf %860, %860 : vector<2x32xf32>
    %cst_307 = arith.constant dense<0.000000e+00> : vector<2xf32>
    %862 = vector.multi_reduction <add>, %861, %cst_307 [1] : vector<2x32xf32> to vector<2xf32>
    %863 = vector.shape_cast %862 : vector<2xf32> to vector<2x1xf32>
    %cst_308 = arith.constant 3.200000e+01 : f32
    %864 = vector.broadcast %cst_308 : f32 to vector<2x1xf32>
    %865 = arith.divf %863, %864 : vector<2x1xf32>
    %866 = vector.broadcast %858 : vector<2x1xf32> to vector<2x32xf32>
    %867 = arith.subf %854, %866 : vector<2x32xf32>
    %868 = vector.broadcast %844 : vector<1x32xf32> to vector<2x32xf32>
    %869 = arith.mulf %868, %867 : vector<2x32xf32>
    %cst_309 = arith.constant 1.1920929E-7 : f32
    %870 = vector.broadcast %cst_309 : f32 to vector<2x1xf32>
    %871 = arith.addf %865, %870 : vector<2x1xf32>
    %872 = math.rsqrt %871 : vector<2x1xf32>
    %873 = vector.broadcast %872 : vector<2x1xf32> to vector<2x32xf32>
    %874 = arith.mulf %869, %873 : vector<2x32xf32>
    %875 = vector.broadcast %846 : vector<1x32xf32> to vector<2x32xf32>
    %876 = arith.addf %874, %875 : vector<2x32xf32>
    %877 = vector.extract_strided_slice %848 {offsets = [0, 0, 0], sizes = [2, 1, 32], strides = [1, 1, 1]} : vector<2x8x32xf32> to vector<2x1x32xf32>
    %878 = vector.shape_cast %877 : vector<2x1x32xf32> to vector<2x32xf32>
    %879 = arith.addf %878, %876 : vector<2x32xf32>
    %c1_310 = arith.constant 1 : index
    %c0_311 = arith.constant 0 : index
    %c32_312 = arith.constant 32 : index
    %880 = vector.load %arg8[%c1_310, %c0_311, %c32_312] : memref<2x2x256xf32, #tpu.memory_space<vmem>>, vector<1x2x32xf32>
    %881 = vector.shape_cast %880 : vector<1x2x32xf32> to vector<2x32xf32>
    %882 = vector.shape_cast %879 : vector<2x32xf32> to vector<1x2x32xf32>
    tpu.vector_store %arg8[%c1_310, %c0_311, %c32_312], %882 {strides = array<i32>} : memref<2x2x256xf32, #tpu.memory_space<vmem>>, vector<1x2x32xf32>,
    %cst_313 = arith.constant dense<0.000000e+00> : vector<2x32xf32>
    %883 = tpu.matmul %237, %840, %cst_313 {dimension_numbers = #tpu.dot_dimension_numbers<[1], [0], [0], [1], [0, 0, 1, 1], [], []>} : vector<2x32xf32>, vector<32x32xf32>, vector<2x32xf32> -> vector<2x32xf32>
    %884 = vector.broadcast %842 : vector<1x32xf32> to vector<2x32xf32>
    %885 = arith.addf %883, %884 : vector<2x32xf32>
    %cst_314 = arith.constant dense<0.000000e+00> : vector<2xf32>
    %886 = vector.multi_reduction <add>, %885, %cst_314 [1] : vector<2x32xf32> to vector<2xf32>
    %887 = vector.shape_cast %886 : vector<2xf32> to vector<2x1xf32>
    %cst_315 = arith.constant 3.200000e+01 : f32
    %888 = vector.broadcast %cst_315 : f32 to vector<2x1xf32>
    %889 = arith.divf %887, %888 : vector<2x1xf32>
    %890 = vector.broadcast %889 : vector<2x1xf32> to vector<2x32xf32>
    %891 = arith.subf %885, %890 : vector<2x32xf32>
    %892 = arith.mulf %891, %891 : vector<2x32xf32>
    %cst_316 = arith.constant dense<0.000000e+00> : vector<2xf32>
    %893 = vector.multi_reduction <add>, %892, %cst_316 [1] : vector<2x32xf32> to vector<2xf32>
    %894 = vector.shape_cast %893 : vector<2xf32> to vector<2x1xf32>
    %cst_317 = arith.constant 3.200000e+01 : f32
    %895 = vector.broadcast %cst_317 : f32 to vector<2x1xf32>
    %896 = arith.divf %894, %895 : vector<2x1xf32>
    %897 = vector.broadcast %889 : vector<2x1xf32> to vector<2x32xf32>
    %898 = arith.subf %885, %897 : vector<2x32xf32>
    %899 = vector.broadcast %844 : vector<1x32xf32> to vector<2x32xf32>
    %900 = arith.mulf %899, %898 : vector<2x32xf32>
    %cst_318 = arith.constant 1.1920929E-7 : f32
    %901 = vector.broadcast %cst_318 : f32 to vector<2x1xf32>
    %902 = arith.addf %896, %901 : vector<2x1xf32>
    %903 = math.rsqrt %902 : vector<2x1xf32>
    %904 = vector.broadcast %903 : vector<2x1xf32> to vector<2x32xf32>
    %905 = arith.mulf %900, %904 : vector<2x32xf32>
    %906 = vector.broadcast %846 : vector<1x32xf32> to vector<2x32xf32>
    %907 = arith.addf %905, %906 : vector<2x32xf32>
    %908 = vector.extract_strided_slice %848 {offsets = [0, 1, 0], sizes = [2, 1, 32], strides = [1, 1, 1]} : vector<2x8x32xf32> to vector<2x1x32xf32>
    %909 = vector.shape_cast %908 : vector<2x1x32xf32> to vector<2x32xf32>
    %910 = arith.addf %909, %907 : vector<2x32xf32>
    %c1_319 = arith.constant 1 : index
    %c0_320 = arith.constant 0 : index
    %c64_321 = arith.constant 64 : index
    %911 = vector.load %arg8[%c1_319, %c0_320, %c64_321] : memref<2x2x256xf32, #tpu.memory_space<vmem>>, vector<1x2x32xf32>
    %912 = vector.shape_cast %911 : vector<1x2x32xf32> to vector<2x32xf32>
    %913 = vector.shape_cast %910 : vector<2x32xf32> to vector<1x2x32xf32>
    tpu.vector_store %arg8[%c1_319, %c0_320, %c64_321], %913 {strides = array<i32>} : memref<2x2x256xf32, #tpu.memory_space<vmem>>, vector<1x2x32xf32>,
    %cst_322 = arith.constant dense<0.000000e+00> : vector<2x32xf32>
    %914 = tpu.matmul %311, %840, %cst_322 {dimension_numbers = #tpu.dot_dimension_numbers<[1], [0], [0], [1], [0, 0, 1, 1], [], []>} : vector<2x32xf32>, vector<32x32xf32>, vector<2x32xf32> -> vector<2x32xf32>
    %915 = vector.broadcast %842 : vector<1x32xf32> to vector<2x32xf32>
    %916 = arith.addf %914, %915 : vector<2x32xf32>
    %cst_323 = arith.constant dense<0.000000e+00> : vector<2xf32>
    %917 = vector.multi_reduction <add>, %916, %cst_323 [1] : vector<2x32xf32> to vector<2xf32>
    %918 = vector.shape_cast %917 : vector<2xf32> to vector<2x1xf32>
    %cst_324 = arith.constant 3.200000e+01 : f32
    %919 = vector.broadcast %cst_324 : f32 to vector<2x1xf32>
    %920 = arith.divf %918, %919 : vector<2x1xf32>
    %921 = vector.broadcast %920 : vector<2x1xf32> to vector<2x32xf32>
    %922 = arith.subf %916, %921 : vector<2x32xf32>
    %923 = arith.mulf %922, %922 : vector<2x32xf32>
    %cst_325 = arith.constant dense<0.000000e+00> : vector<2xf32>
    %924 = vector.multi_reduction <add>, %923, %cst_325 [1] : vector<2x32xf32> to vector<2xf32>
    %925 = vector.shape_cast %924 : vector<2xf32> to vector<2x1xf32>
    %cst_326 = arith.constant 3.200000e+01 : f32
    %926 = vector.broadcast %cst_326 : f32 to vector<2x1xf32>
    %927 = arith.divf %925, %926 : vector<2x1xf32>
    %928 = vector.broadcast %920 : vector<2x1xf32> to vector<2x32xf32>
    %929 = arith.subf %916, %928 : vector<2x32xf32>
    %930 = vector.broadcast %844 : vector<1x32xf32> to vector<2x32xf32>
    %931 = arith.mulf %930, %929 : vector<2x32xf32>
    %cst_327 = arith.constant 1.1920929E-7 : f32
    %932 = vector.broadcast %cst_327 : f32 to vector<2x1xf32>
    %933 = arith.addf %927, %932 : vector<2x1xf32>
    %934 = math.rsqrt %933 : vector<2x1xf32>
    %935 = vector.broadcast %934 : vector<2x1xf32> to vector<2x32xf32>
    %936 = arith.mulf %931, %935 : vector<2x32xf32>
    %937 = vector.broadcast %846 : vector<1x32xf32> to vector<2x32xf32>
    %938 = arith.addf %936, %937 : vector<2x32xf32>
    %939 = vector.extract_strided_slice %848 {offsets = [0, 2, 0], sizes = [2, 1, 32], strides = [1, 1, 1]} : vector<2x8x32xf32> to vector<2x1x32xf32>
    %940 = vector.shape_cast %939 : vector<2x1x32xf32> to vector<2x32xf32>
    %941 = arith.addf %940, %938 : vector<2x32xf32>
    %c1_328 = arith.constant 1 : index
    %c0_329 = arith.constant 0 : index
    %c96_330 = arith.constant 96 : index
    %942 = vector.load %arg8[%c1_328, %c0_329, %c96_330] : memref<2x2x256xf32, #tpu.memory_space<vmem>>, vector<1x2x32xf32>
    %943 = vector.shape_cast %942 : vector<1x2x32xf32> to vector<2x32xf32>
    %944 = vector.shape_cast %941 : vector<2x32xf32> to vector<1x2x32xf32>
    tpu.vector_store %arg8[%c1_328, %c0_329, %c96_330], %944 {strides = array<i32>} : memref<2x2x256xf32, #tpu.memory_space<vmem>>, vector<1x2x32xf32>,
    %cst_331 = arith.constant dense<0.000000e+00> : vector<2x32xf32>
    %945 = tpu.matmul %385, %840, %cst_331 {dimension_numbers = #tpu.dot_dimension_numbers<[1], [0], [0], [1], [0, 0, 1, 1], [], []>} : vector<2x32xf32>, vector<32x32xf32>, vector<2x32xf32> -> vector<2x32xf32>
    %946 = vector.broadcast %842 : vector<1x32xf32> to vector<2x32xf32>
    %947 = arith.addf %945, %946 : vector<2x32xf32>
    %cst_332 = arith.constant dense<0.000000e+00> : vector<2xf32>
    %948 = vector.multi_reduction <add>, %947, %cst_332 [1] : vector<2x32xf32> to vector<2xf32>
    %949 = vector.shape_cast %948 : vector<2xf32> to vector<2x1xf32>
    %cst_333 = arith.constant 3.200000e+01 : f32
    %950 = vector.broadcast %cst_333 : f32 to vector<2x1xf32>
    %951 = arith.divf %949, %950 : vector<2x1xf32>
    %952 = vector.broadcast %951 : vector<2x1xf32> to vector<2x32xf32>
    %953 = arith.subf %947, %952 : vector<2x32xf32>
    %954 = arith.mulf %953, %953 : vector<2x32xf32>
    %cst_334 = arith.constant dense<0.000000e+00> : vector<2xf32>
    %955 = vector.multi_reduction <add>, %954, %cst_334 [1] : vector<2x32xf32> to vector<2xf32>
    %956 = vector.shape_cast %955 : vector<2xf32> to vector<2x1xf32>
    %cst_335 = arith.constant 3.200000e+01 : f32
    %957 = vector.broadcast %cst_335 : f32 to vector<2x1xf32>
    %958 = arith.divf %956, %957 : vector<2x1xf32>
    %959 = vector.broadcast %951 : vector<2x1xf32> to vector<2x32xf32>
    %960 = arith.subf %947, %959 : vector<2x32xf32>
    %961 = vector.broadcast %844 : vector<1x32xf32> to vector<2x32xf32>
    %962 = arith.mulf %961, %960 : vector<2x32xf32>
    %cst_336 = arith.constant 1.1920929E-7 : f32
    %963 = vector.broadcast %cst_336 : f32 to vector<2x1xf32>
    %964 = arith.addf %958, %963 : vector<2x1xf32>
    %965 = math.rsqrt %964 : vector<2x1xf32>
    %966 = vector.broadcast %965 : vector<2x1xf32> to vector<2x32xf32>
    %967 = arith.mulf %962, %966 : vector<2x32xf32>
    %968 = vector.broadcast %846 : vector<1x32xf32> to vector<2x32xf32>
    %969 = arith.addf %967, %968 : vector<2x32xf32>
    %970 = vector.extract_strided_slice %848 {offsets = [0, 3, 0], sizes = [2, 1, 32], strides = [1, 1, 1]} : vector<2x8x32xf32> to vector<2x1x32xf32>
    %971 = vector.shape_cast %970 : vector<2x1x32xf32> to vector<2x32xf32>
    %972 = arith.addf %971, %969 : vector<2x32xf32>
    %c1_337 = arith.constant 1 : index
    %c0_338 = arith.constant 0 : index
    %c128_339 = arith.constant 128 : index
    %973 = vector.load %arg8[%c1_337, %c0_338, %c128_339] : memref<2x2x256xf32, #tpu.memory_space<vmem>>, vector<1x2x32xf32>
    %974 = vector.shape_cast %973 : vector<1x2x32xf32> to vector<2x32xf32>
    %975 = vector.shape_cast %972 : vector<2x32xf32> to vector<1x2x32xf32>
    tpu.vector_store %arg8[%c1_337, %c0_338, %c128_339], %975 {strides = array<i32>} : memref<2x2x256xf32, #tpu.memory_space<vmem>>, vector<1x2x32xf32>,
    %cst_340 = arith.constant dense<0.000000e+00> : vector<2x32xf32>
    %976 = tpu.matmul %459, %840, %cst_340 {dimension_numbers = #tpu.dot_dimension_numbers<[1], [0], [0], [1], [0, 0, 1, 1], [], []>} : vector<2x32xf32>, vector<32x32xf32>, vector<2x32xf32> -> vector<2x32xf32>
    %977 = vector.broadcast %842 : vector<1x32xf32> to vector<2x32xf32>
    %978 = arith.addf %976, %977 : vector<2x32xf32>
    %cst_341 = arith.constant dense<0.000000e+00> : vector<2xf32>
    %979 = vector.multi_reduction <add>, %978, %cst_341 [1] : vector<2x32xf32> to vector<2xf32>
    %980 = vector.shape_cast %979 : vector<2xf32> to vector<2x1xf32>
    %cst_342 = arith.constant 3.200000e+01 : f32
    %981 = vector.broadcast %cst_342 : f32 to vector<2x1xf32>
    %982 = arith.divf %980, %981 : vector<2x1xf32>
    %983 = vector.broadcast %982 : vector<2x1xf32> to vector<2x32xf32>
    %984 = arith.subf %978, %983 : vector<2x32xf32>
    %985 = arith.mulf %984, %984 : vector<2x32xf32>
    %cst_343 = arith.constant dense<0.000000e+00> : vector<2xf32>
    %986 = vector.multi_reduction <add>, %985, %cst_343 [1] : vector<2x32xf32> to vector<2xf32>
    %987 = vector.shape_cast %986 : vector<2xf32> to vector<2x1xf32>
    %cst_344 = arith.constant 3.200000e+01 : f32
    %988 = vector.broadcast %cst_344 : f32 to vector<2x1xf32>
    %989 = arith.divf %987, %988 : vector<2x1xf32>
    %990 = vector.broadcast %982 : vector<2x1xf32> to vector<2x32xf32>
    %991 = arith.subf %978, %990 : vector<2x32xf32>
    %992 = vector.broadcast %844 : vector<1x32xf32> to vector<2x32xf32>
    %993 = arith.mulf %992, %991 : vector<2x32xf32>
    %cst_345 = arith.constant 1.1920929E-7 : f32
    %994 = vector.broadcast %cst_345 : f32 to vector<2x1xf32>
    %995 = arith.addf %989, %994 : vector<2x1xf32>
    %996 = math.rsqrt %995 : vector<2x1xf32>
    %997 = vector.broadcast %996 : vector<2x1xf32> to vector<2x32xf32>
    %998 = arith.mulf %993, %997 : vector<2x32xf32>
    %999 = vector.broadcast %846 : vector<1x32xf32> to vector<2x32xf32>
    %1000 = arith.addf %998, %999 : vector<2x32xf32>
    %1001 = vector.extract_strided_slice %848 {offsets = [0, 4, 0], sizes = [2, 1, 32], strides = [1, 1, 1]} : vector<2x8x32xf32> to vector<2x1x32xf32>
    %1002 = vector.shape_cast %1001 : vector<2x1x32xf32> to vector<2x32xf32>
    %1003 = arith.addf %1002, %1000 : vector<2x32xf32>
    %c1_346 = arith.constant 1 : index
    %c0_347 = arith.constant 0 : index
    %c160_348 = arith.constant 160 : index
    %1004 = vector.load %arg8[%c1_346, %c0_347, %c160_348] : memref<2x2x256xf32, #tpu.memory_space<vmem>>, vector<1x2x32xf32>
    %1005 = vector.shape_cast %1004 : vector<1x2x32xf32> to vector<2x32xf32>
    %1006 = vector.shape_cast %1003 : vector<2x32xf32> to vector<1x2x32xf32>
    tpu.vector_store %arg8[%c1_346, %c0_347, %c160_348], %1006 {strides = array<i32>} : memref<2x2x256xf32, #tpu.memory_space<vmem>>, vector<1x2x32xf32>,
    %cst_349 = arith.constant dense<0.000000e+00> : vector<2x32xf32>
    %1007 = tpu.matmul %533, %840, %cst_349 {dimension_numbers = #tpu.dot_dimension_numbers<[1], [0], [0], [1], [0, 0, 1, 1], [], []>} : vector<2x32xf32>, vector<32x32xf32>, vector<2x32xf32> -> vector<2x32xf32>
    %1008 = vector.broadcast %842 : vector<1x32xf32> to vector<2x32xf32>
    %1009 = arith.addf %1007, %1008 : vector<2x32xf32>
    %cst_350 = arith.constant dense<0.000000e+00> : vector<2xf32>
    %1010 = vector.multi_reduction <add>, %1009, %cst_350 [1] : vector<2x32xf32> to vector<2xf32>
    %1011 = vector.shape_cast %1010 : vector<2xf32> to vector<2x1xf32>
    %cst_351 = arith.constant 3.200000e+01 : f32
    %1012 = vector.broadcast %cst_351 : f32 to vector<2x1xf32>
    %1013 = arith.divf %1011, %1012 : vector<2x1xf32>
    %1014 = vector.broadcast %1013 : vector<2x1xf32> to vector<2x32xf32>
    %1015 = arith.subf %1009, %1014 : vector<2x32xf32>
    %1016 = arith.mulf %1015, %1015 : vector<2x32xf32>
    %cst_352 = arith.constant dense<0.000000e+00> : vector<2xf32>
    %1017 = vector.multi_reduction <add>, %1016, %cst_352 [1] : vector<2x32xf32> to vector<2xf32>
    %1018 = vector.shape_cast %1017 : vector<2xf32> to vector<2x1xf32>
    %cst_353 = arith.constant 3.200000e+01 : f32
    %1019 = vector.broadcast %cst_353 : f32 to vector<2x1xf32>
    %1020 = arith.divf %1018, %1019 : vector<2x1xf32>
    %1021 = vector.broadcast %1013 : vector<2x1xf32> to vector<2x32xf32>
    %1022 = arith.subf %1009, %1021 : vector<2x32xf32>
    %1023 = vector.broadcast %844 : vector<1x32xf32> to vector<2x32xf32>
    %1024 = arith.mulf %1023, %1022 : vector<2x32xf32>
    %cst_354 = arith.constant 1.1920929E-7 : f32
    %1025 = vector.broadcast %cst_354 : f32 to vector<2x1xf32>
    %1026 = arith.addf %1020, %1025 : vector<2x1xf32>
    %1027 = math.rsqrt %1026 : vector<2x1xf32>
    %1028 = vector.broadcast %1027 : vector<2x1xf32> to vector<2x32xf32>
    %1029 = arith.mulf %1024, %1028 : vector<2x32xf32>
    %1030 = vector.broadcast %846 : vector<1x32xf32> to vector<2x32xf32>
    %1031 = arith.addf %1029, %1030 : vector<2x32xf32>
    %1032 = vector.extract_strided_slice %848 {offsets = [0, 5, 0], sizes = [2, 1, 32], strides = [1, 1, 1]} : vector<2x8x32xf32> to vector<2x1x32xf32>
    %1033 = vector.shape_cast %1032 : vector<2x1x32xf32> to vector<2x32xf32>
    %1034 = arith.addf %1033, %1031 : vector<2x32xf32>
    %c1_355 = arith.constant 1 : index
    %c0_356 = arith.constant 0 : index
    %c192_357 = arith.constant 192 : index
    %1035 = vector.load %arg8[%c1_355, %c0_356, %c192_357] : memref<2x2x256xf32, #tpu.memory_space<vmem>>, vector<1x2x32xf32>
    %1036 = vector.shape_cast %1035 : vector<1x2x32xf32> to vector<2x32xf32>
    %1037 = vector.shape_cast %1034 : vector<2x32xf32> to vector<1x2x32xf32>
    tpu.vector_store %arg8[%c1_355, %c0_356, %c192_357], %1037 {strides = array<i32>} : memref<2x2x256xf32, #tpu.memory_space<vmem>>, vector<1x2x32xf32>,
    %cst_358 = arith.constant dense<0.000000e+00> : vector<2x32xf32>
    %1038 = tpu.matmul %607, %840, %cst_358 {dimension_numbers = #tpu.dot_dimension_numbers<[1], [0], [0], [1], [0, 0, 1, 1], [], []>} : vector<2x32xf32>, vector<32x32xf32>, vector<2x32xf32> -> vector<2x32xf32>
    %1039 = vector.broadcast %842 : vector<1x32xf32> to vector<2x32xf32>
    %1040 = arith.addf %1038, %1039 : vector<2x32xf32>
    %cst_359 = arith.constant dense<0.000000e+00> : vector<2xf32>
    %1041 = vector.multi_reduction <add>, %1040, %cst_359 [1] : vector<2x32xf32> to vector<2xf32>
    %1042 = vector.shape_cast %1041 : vector<2xf32> to vector<2x1xf32>
    %cst_360 = arith.constant 3.200000e+01 : f32
    %1043 = vector.broadcast %cst_360 : f32 to vector<2x1xf32>
    %1044 = arith.divf %1042, %1043 : vector<2x1xf32>
    %1045 = vector.broadcast %1044 : vector<2x1xf32> to vector<2x32xf32>
    %1046 = arith.subf %1040, %1045 : vector<2x32xf32>
    %1047 = arith.mulf %1046, %1046 : vector<2x32xf32>
    %cst_361 = arith.constant dense<0.000000e+00> : vector<2xf32>
    %1048 = vector.multi_reduction <add>, %1047, %cst_361 [1] : vector<2x32xf32> to vector<2xf32>
    %1049 = vector.shape_cast %1048 : vector<2xf32> to vector<2x1xf32>
    %cst_362 = arith.constant 3.200000e+01 : f32
    %1050 = vector.broadcast %cst_362 : f32 to vector<2x1xf32>
    %1051 = arith.divf %1049, %1050 : vector<2x1xf32>
    %1052 = vector.broadcast %1044 : vector<2x1xf32> to vector<2x32xf32>
    %1053 = arith.subf %1040, %1052 : vector<2x32xf32>
    %1054 = vector.broadcast %844 : vector<1x32xf32> to vector<2x32xf32>
    %1055 = arith.mulf %1054, %1053 : vector<2x32xf32>
    %cst_363 = arith.constant 1.1920929E-7 : f32
    %1056 = vector.broadcast %cst_363 : f32 to vector<2x1xf32>
    %1057 = arith.addf %1051, %1056 : vector<2x1xf32>
    %1058 = math.rsqrt %1057 : vector<2x1xf32>
    %1059 = vector.broadcast %1058 : vector<2x1xf32> to vector<2x32xf32>
    %1060 = arith.mulf %1055, %1059 : vector<2x32xf32>
    %1061 = vector.broadcast %846 : vector<1x32xf32> to vector<2x32xf32>
    %1062 = arith.addf %1060, %1061 : vector<2x32xf32>
    %1063 = vector.extract_strided_slice %848 {offsets = [0, 6, 0], sizes = [2, 1, 32], strides = [1, 1, 1]} : vector<2x8x32xf32> to vector<2x1x32xf32>
    %1064 = vector.shape_cast %1063 : vector<2x1x32xf32> to vector<2x32xf32>
    %1065 = arith.addf %1064, %1062 : vector<2x32xf32>
    %c1_364 = arith.constant 1 : index
    %c0_365 = arith.constant 0 : index
    %c224_366 = arith.constant 224 : index
    %1066 = vector.load %arg8[%c1_364, %c0_365, %c224_366] : memref<2x2x256xf32, #tpu.memory_space<vmem>>, vector<1x2x32xf32>
    %1067 = vector.shape_cast %1066 : vector<1x2x32xf32> to vector<2x32xf32>
    %1068 = vector.shape_cast %1065 : vector<2x32xf32> to vector<1x2x32xf32>
    tpu.vector_store %arg8[%c1_364, %c0_365, %c224_366], %1068 {strides = array<i32>} : memref<2x2x256xf32, #tpu.memory_space<vmem>>, vector<1x2x32xf32>,
    return
  }
}

</mosaic_0001>

<bundles_post_ra>
// kernel: squeeze.7
= control target key start
LH: loop header
LB: loop body
LE: loop exit
PB: predicated region body
PF: predicated region fallthrough
CT: control target
= control target key end

     0   :  { %s108_s0 = inlined_call_operand.vmem [shape: f32[1,2,256], index: 0, kind: input, shape index: {}]   ;;  %s109_s1 = inlined_call_operand.hbm [shape: f32[1,16,32], index: 1, kind: output, shape index: {}]  }
   0x1   :  { %v49_v0 = vld [vmem:[%s108_s0 + $0x2] sm:$0x3]  ;;  %v9_v1 = vld [vmem:[%s108_s0] sm:$0x3] }
   0x2   :  { %8 = vst [vmem:[#allocation2 + $0x8] sm:$0x3] %v49_v0 }
   0x3   :  { %2 = vsyncpa [#allocation1], 0  ;;  %10 = vst [vmem:[#allocation2] sm:$0x3] %v9_v1  ;;  %vm12_vm0 = vcmask 261120   ;;  %s80_s0 = smov 96  }
   0x4   :  { %s81_s10 = smov 32   ;;  %s82_s11 = smov 64  }
   0x5   :  { %s83_s12 = smov [#allocation0]   ;;  %s42_s1 = sshll.u32 %s109_s1, 4  ;;  %s43_s1 = int_to_ptr.hbm [resolvable:$true] %s42_s1 }
   0x6   :  { %s40_s13 = sshll.u32 %s83_s12, 4  ;;  %s41_s13 = int_to_ptr.vmem [resolvable:$true] %s40_s13 }
   0x9   :  { %v15_v4 = vld [vmem:[#allocation2 + $0x8] sm:$0x3]  }
   0xa   :  { %v19_v2 = vld.sshfl [vmem:[#allocation2] sm:$0xff pattern:$0x99999180]   ;;  %18 = vst.msk [vmem:[#allocation0 + $0x4] ss:$8 sm:$0x3] %vm12_vm0, %v15_v4  }
   0xb   :  { %v11_v3 = vld [vmem:[#allocation2] sm:$0x3]   ;;  %20 = vrot.lane.b32.xlu0 %v19_v2, %s80_s0  ;;  %32 = vrot.lane.b32.xlu1 %v19_v2, %s81_s10 }
   0xc   :  { %13 = vst.msk [vmem:[#allocation0] ss:$8 sm:$0x3] %vm12_vm0, %v11_v3  }
  0x13   :  { %26 = vrot.lane.b32.xlu0 %v19_v2, %s82_s11 }
  0x7d   :  { %v21_v5 = vpop.permute.xlu0 %20   ;;  %v33_v6 = vpop.permute.xlu1 %32  }
  0x7e   :  { %24 = vst.msk [vmem:[#allocation0 + $0x1] ss:$4 sm:$0xf] %vm12_vm0, %v21_v5  }
  0x7f   :  { %36 = vst.msk [vmem:[#allocation0 + $0x3] ss:$4 sm:$0xf] %vm12_vm0, %v33_v6  }
  0x85   :  { %v27_v7 = vpop.permute.xlu0 %26  }
  0x86   :  { %30 = vst.msk [vmem:[#allocation0 + $0x2] ss:$4 sm:$0xf] %vm12_vm0, %v27_v7  }
  0x87   :  { %45 = dma.vmem_to_hbm [thread:$0]  %s41_s13, 256, %s43_s1, [#allocation1]  }
  0x88   :  { %78 = dma.done.wait [#allocation1], 256  }
  0x89   :  { %79 = vsyncadd [#allocation1], 4294967040 }
  0x8a   :  { %48 = vsyncpa [#allocation1], 1 }

// kernel: mem_lstm_forward.1
= control target key start
LH: loop header
LB: loop body
LE: loop exit
PB: predicated region body
PF: predicated region fallthrough
CT: control target
= control target key end

     0   :  { %13 = vsyncpa [#allocation3], 0  ;;  %s8977_s0 = inlined_call_operand.vmem [shape: f32[2,2,8,32], index: 0, kind: input, shape index: {}]   ;;  %s8978_s1 = inlined_call_operand.hbm [shape: f32[2,4,32,32], index: 1, kind: input, shape index: {}]   ;;  %s8979_s2 = inlined_call_operand.hbm [shape: f32[2,4,32,32], index: 2, kind: input, shape index: {}]   ;;  %s8980_s3 = inlined_call_operand.vmem [shape: f32[2,4,1,32], index: 3, kind: input, shape index: {}]   ;;  %s8981_s4 = inlined_call_operand.vmem [shape: f32[2,32,32], index: 4, kind: input, shape index: {}]   ;;  %s8982_s5 = inlined_call_operand.hbm [shape: f32[2,1,32], index: 5, kind: input, shape index: {}]   ;;  %s8983_s6 = inlined_call_operand.hbm [shape: f32[2,1,32], index: 6, kind: input, shape index: {}]   ;;  %s8984_s7 = inlined_call_operand.hbm [shape: f32[2,1,32], index: 7, kind: input, shape index: {}]   ;;  %s8985_s8 = inlined_call_operand.vmem [shape: f32[2,2,256], index: 8, kind: output, shape index: {}]  }
   0x1   :  { %14 = vsyncpa [#allocation5], 0 }
   0x2   :  { %15 = vsyncpa [#allocation8], 0  ;;  %s35_s29 = sshll.u32 %s8979_s2, 4  ;;  %s5751_s30 = smov [#allocation4]   ;;  %s36_s29 = int_to_ptr.hbm [resolvable:$true] %s35_s29 }
   0x3   :  { %s37_s9 = sshll.u32 %s5751_s30, 4  ;;  %s5752_s10 = smov 128   ;;  %s38_s9 = int_to_ptr.vmem [resolvable:$true] %s37_s9 }
   0x4   :  { %s5753_s11 = smov 8   ;;  %s65_s14 = sshll.u32 %s8983_s6, 4  ;;  %s66_s14 = int_to_ptr.hbm [resolvable:$true] %s65_s14 }
   0x5   :  { %43 = dma.hbm_to_vmem [thread:$0]  %s36_s29, 4096, %s38_s9, [#allocation5], %s5752_s10, %s5752_s10, %s5753_s11  }
   0x6   :  { %s5754_s15 = smov [#allocation7]   ;;  %s22_s19 = sshll.u32 %s8978_s1, 4  ;;  %s23_s19 = int_to_ptr.hbm [resolvable:$true] %s22_s19 }
   0x7   :  { %s67_s16 = sshll.u32 %s5754_s15, 4  ;;  %s5755_s2 = smov 16   ;;  %s68_s16 = int_to_ptr.vmem [resolvable:$true] %s67_s16 }
   0x8   :  { %s5756_s20 = smov 1   ;;  %s52_s23 = sshll.u32 %s8982_s5, 4  ;;  %s53_s23 = int_to_ptr.hbm [resolvable:$true] %s52_s23 }
   0x9   :  { %73 = dma.hbm_to_vmem [thread:$0]  %s66_s14, 32, %s68_s16, [#allocation8], %s5755_s2, %s5755_s2, %s5756_s20  }
   0xa   :  { %s5757_s24 = smov [#allocation2]   ;;  %s5758_s6 = smov [#allocation6]  }
   0xb   :  { %s24_s25 = sshll.u32 %s5757_s24, 4  ;;  %s54_s26 = sshll.u32 %s5758_s6, 4  ;;  %s25_s25 = int_to_ptr.vmem [resolvable:$true] %s24_s25  ;;  %s55_s26 = int_to_ptr.vmem [resolvable:$true] %s54_s26 }
   0xc   :  { %30 = dma.hbm_to_vmem [thread:$0]  %s23_s19, 4096, %s25_s25, [#allocation3], %s5752_s10, %s5752_s10, %s5753_s11  }
   0xd   :  { %s78_s1 = sshll.u32 %s8984_s7, 4  ;;  %s5759_s29 = smov [#allocation9]   ;;  %s79_s1 = int_to_ptr.hbm [resolvable:$true] %s78_s1 }
   0xe   :  { %60 = dma.hbm_to_vmem [thread:$0]  %s53_s23, 32, %s55_s26, [#allocation5], %s5755_s2, %s5755_s2, %s5756_s20  }
   0xf   :  { %s80_s30 = sshll.u32 %s5759_s29, 4  ;;  %s81_s30 = int_to_ptr.vmem [resolvable:$true] %s80_s30 }
  0x10   :  { %86 = dma.hbm_to_vmem [thread:$0]  %s79_s1, 32, %s81_s30, [#allocation8], %s5755_s2, %s5755_s2, %s5756_s20  }
  0x11   :  { %5745 = dma.done.wait [#allocation3], 4096  }
  0x12   :  { %5746 = vsyncadd [#allocation3], 4294963200 }
  0x13   :  { %5747 = dma.done.wait [#allocation5], 4128  }
  0x14   :  { %5748 = vsyncadd [#allocation5], 4294963168 }
  0x15   :  { %5749 = dma.done.wait [#allocation8], 64  }
  0x16   :  { %5750 = vsyncadd [#allocation8], 4294967232  ;;  %v112_v0 = vld [vmem:[#allocation2 + $0x18] sm:$0xff]  ;;  %v111_v4 = vld [vmem:[#allocation2 + $0x10] sm:$0xff]  ;;  %vm117_vm0 = vcmask 261120   ;;  %s5762_s25 = smov 64  }
  0x17   :  { %v155_v1 = vld [vmem:[#allocation2 + $0x38] sm:$0xff]  ;;  %136 = vmatpush.msra.mxu0 %v112_v0  ;;  %v154_v5 = vld [vmem:[#allocation2 + $0x30] sm:$0xff]  ;;  %v110_v8 = vld [vmem:[#allocation2 + $0x8] sm:$0xff]  ;;  %s5763_s6 = smov 32   ;;  %s5764_s26 = smov 96  }
  0x18   :  { %v193_v2 = vld [vmem:[#allocation2 + $0x58] sm:$0xff]  ;;  %173 = vmatpush.msra.mxu1 %v155_v1  ;;  %v192_v6 = vld [vmem:[#allocation2 + $0x50] sm:$0xff]  ;;  %v153_v9 = vld [vmem:[#allocation2 + $0x28] sm:$0xff] }
  0x19   :  { %v231_v3 = vld [vmem:[#allocation2 + $0x78] sm:$0xff]  ;;  %211 = vmatpush.msra.mxu2 %v193_v2  ;;  %v230_v7 = vld [vmem:[#allocation2 + $0x70] sm:$0xff]  ;;  %137 = vmatpush.msra.mxu0 %v111_v4  ;;  %v191_v10 = vld [vmem:[#allocation2 + $0x48] sm:$0xff]  ;;  %v8986_v4 = vmov 0.0  }
  0x1a   :  { %249 = vmatpush.msra.mxu3 %v231_v3  ;;  %174 = vmatpush.msra.mxu1 %v154_v5  ;;  %v229_v11 = vld [vmem:[#allocation2 + $0x68] sm:$0xff]  ;;  %v109_v12 = vld [vmem:[#allocation2] sm:$0xff]  ;;  %v107_v16 = vld [vmem:[%s8977_s0] sm:$0xff] }
  0x1b   :  { %212 = vmatpush.msra.mxu2 %v192_v6  ;;  %v152_v13 = vld [vmem:[#allocation2 + $0x20] sm:$0xff]  ;;  %138 = vmatpush.msra.mxu0 %v110_v8  ;;  %v272_v17 = vld [vmem:[#allocation2 + $0x98] sm:$0xff]  ;;  %v271_v21 = vld [vmem:[#allocation2 + $0x90] sm:$0xff] }
  0x1c   :  { %250 = vmatpush.msra.mxu3 %v230_v7  ;;  %175 = vmatpush.msra.mxu1 %v153_v9  ;;  %v190_v14 = vld [vmem:[#allocation2 + $0x40] sm:$0xff]  ;;  %v316_v18 = vld [vmem:[#allocation2 + $0xb8] sm:$0xff]  ;;  %v315_v22 = vld [vmem:[#allocation2 + $0xb0] sm:$0xff] }
  0x1d   :  { %v228_v15 = vld [vmem:[#allocation2 + $0x60] sm:$0xff]  ;;  %213 = vmatpush.msra.mxu2 %v191_v10  ;;  %139 = vmatpush.msra.mxu0 %v109_v12  ;;  %v392_v19 = vld [vmem:[#allocation2 + $0xf8] sm:$0xff]  ;;  %v391_v23 = vld [vmem:[#allocation2 + $0xf0] sm:$0xff] }
  0x1e   :  { %251 = vmatpush.msra.mxu3 %v229_v11  ;;  %176 = vmatpush.msra.mxu1 %v152_v13  ;;  %v354_v20 = vld [vmem:[#allocation2 + $0xd8] sm:$0xff]  ;;  %v353_v24 = vld [vmem:[#allocation2 + $0xd0] sm:$0xff]  ;;  %v270_v25 = vld [vmem:[#allocation2 + $0x88] sm:$0xff] }
  0x1f   :  { %214 = vmatpush.msra.mxu2 %v190_v14  ;;  %4868 = vmatmul.msk.f32.vlgmr.msra.gmra.mxu0 %vm117_vm0, %v107_v16  ;;  %v314_v26 = vld [vmem:[#allocation2 + $0xa8] sm:$0xff]  ;;  %v108_v29 = vld [vmem:[%s8977_s0 + $0x8] sm:$0xff]  ;;  %v5839_v34 = vld [vmem:[#allocation4 + $0x18] sm:$0xff] }
  0x20   :  { %252 = vmatpush.msra.mxu3 %v228_v15  ;;  %4871 = vmatmul.msk.f32.vlgmr.msra.gmra.mxu1 %vm117_vm0, %v107_v16  ;;  %v352_v27 = vld [vmem:[#allocation2 + $0xc8] sm:$0xff]  ;;  %v269_v30 = vld [vmem:[#allocation2 + $0x80] sm:$0xff]  ;;  %v5841_v35 = vld [vmem:[#allocation4 + $0x38] sm:$0xff] }
  0x21   :  { %4874 = vmatmul.msk.f32.vlgmr.msra.gmra.mxu2 %vm117_vm0, %v107_v16  ;;  %4877 = vmatmul.msk.f32.vlgmr.msra.gmra.mxu3 %vm117_vm0, %v107_v16  ;;  %v390_v28 = vld [vmem:[#allocation2 + $0xe8] sm:$0xff]  ;;  %v313_v31 = vld [vmem:[#allocation2 + $0xa0] sm:$0xff]  ;;  %v5843_v36 = vld [vmem:[#allocation4 + $0x78] sm:$0xff] }
  0x22   :  { %296 = vmatpush.msrb.mxu0 %v272_v17  ;;  %334 = vmatpush.msrb.mxu1 %v316_v18  ;;  %v351_v32 = vld [vmem:[#allocation2 + $0xc0] sm:$0xff]  ;;  %v5845_v37 = vld [vmem:[#allocation4 + $0x58] sm:$0xff]  ;;  %v5847_v38 = vld [vmem:[#allocation4 + $0x10] sm:$0xff] }
  0x23   :  { %410 = vmatpush.msrb.mxu3 %v392_v19  ;;  %372 = vmatpush.msrb.mxu2 %v354_v20  ;;  %v389_v33 = vld [vmem:[#allocation2 + $0xe0] sm:$0xff]  ;;  %v5849_v39 = vld [vmem:[#allocation4 + $0x30] sm:$0xff]  ;;  %v4879_v40 = vld [vmem:[%s8977_s0 + $0x10] sm:$0xff] }
  0x24   :  { %297 = vmatpush.msrb.mxu0 %v271_v21  ;;  %335 = vmatpush.msrb.mxu1 %v315_v22  ;;  %v5856_v41 = vld [vmem:[#allocation4 + $0x70] sm:$0xff]  ;;  %v5861_v43 = vld [vmem:[#allocation4 + $0x8] sm:$0xff]  ;;  %v5874_v47 = vld [vmem:[#allocation4] sm:$0xff] }
  0x25   :  { %411 = vmatpush.msrb.mxu3 %v391_v23  ;;  %373 = vmatpush.msrb.mxu2 %v353_v24  ;;  %v5858_v42 = vld [vmem:[#allocation4 + $0x50] sm:$0xff]  ;;  %v5863_v44 = vld [vmem:[#allocation4 + $0x28] sm:$0xff]  ;;  %v5876_v48 = vld [vmem:[#allocation4 + $0x20] sm:$0xff] }
  0x26   :  { %298 = vmatpush.msrb.mxu0 %v270_v25  ;;  %336 = vmatpush.msrb.mxu1 %v314_v26  ;;  %v5868_v45 = vld [vmem:[#allocation4 + $0x48] sm:$0xff]  ;;  %v5880_v49 = vld [vmem:[#allocation4 + $0x40] sm:$0xff]  ;;  %v5890_v51 = vld [vmem:[#allocation4 + $0x98] sm:$0xff] }
  0x27   :  { %374 = vmatpush.msrb.mxu2 %v352_v27  ;;  %412 = vmatpush.msrb.mxu3 %v390_v28  ;;  %v5870_v46 = vld [vmem:[#allocation4 + $0x68] sm:$0xff]  ;;  %v5886_v50 = vld [vmem:[#allocation4 + $0x60] sm:$0xff]  ;;  %v5892_v52 = vld [vmem:[#allocation4 + $0xb8] sm:$0xff] }
  0x28   :  { %4869 = vmatmul.msk.f32.gmra.mxu0 %vm117_vm0, %v108_v29  ;;  %4872 = vmatmul.msk.f32.gmra.mxu1 %vm117_vm0, %v108_v29  ;;  %v5896_v53 = vld [vmem:[#allocation4 + $0xd8] sm:$0xff]  ;;  %v4880_v55 = vld [vmem:[%s8977_s0 + $0x18] sm:$0xff]  ;;  %v5921_v60 = vld [vmem:[#allocation4 + $0x88] sm:$0xff] }
  0x29   :  { %4875 = vmatmul.msk.f32.gmra.mxu2 %vm117_vm0, %v108_v29  ;;  %4878 = vmatmul.msk.f32.gmra.mxu3 %vm117_vm0, %v108_v29  ;;  %v5898_v54 = vld [vmem:[#allocation4 + $0xf8] sm:$0xff]  ;;  %v5909_v56 = vld [vmem:[#allocation4 + $0x90] sm:$0xff]  ;;  %9092 = vst [vmem:[#allocation15_spill] sm:$0xff] %v5921_v60  ;;  %v5923_v61 = vld [vmem:[#allocation4 + $0xa8] sm:$0xff] }
  0x2a   :  { %299 = vmatpush.msrb.mxu0 %v269_v30  ;;  %337 = vmatpush.msrb.mxu1 %v313_v31  ;;  %v5911_v57 = vld [vmem:[#allocation4 + $0xb0] sm:$0xff]  ;;  %9093 = vst [vmem:[#allocation16_spill] sm:$0xff] %v5923_v61  ;;  %v5927_v62 = vld [vmem:[#allocation4 + $0xc8] sm:$0xff]  ;;  %v5933_v0 = vld [vmem:[#allocation4 + $0x80] sm:$0xff] }
  0x2b   :  { %375 = vmatpush.msrb.mxu2 %v351_v32  ;;  %413 = vmatpush.msrb.mxu3 %v389_v33  ;;  %v5915_v58 = vld [vmem:[#allocation4 + $0xd0] sm:$0xff]  ;;  %9094 = vst [vmem:[#allocation17_spill] sm:$0xff] %v5927_v62  ;;  %v5929_v63 = vld [vmem:[#allocation4 + $0xe8] sm:$0xff]  ;;  %v5935_v1 = vld [vmem:[#allocation4 + $0xa0] sm:$0xff] }
  0x2c   :  { %441 = vmatpush.msra.mxu0 %v5839_v34  ;;  %467 = vmatpush.msra.mxu1 %v5841_v35  ;;  %9090 = vst [vmem:[#allocation13_spill] sm:$0xff] %v5915_v58  ;;  %v5917_v59 = vld [vmem:[#allocation4 + $0xf0] sm:$0xff]  ;;  %v5939_v2 = vld [vmem:[#allocation4 + $0xc0] sm:$0xff]  ;;  %v5067_v19 = vld [vmem:[%s8980_s3] ss:$0 sm:$0xff] }
  0x2d   :  { %519 = vmatpush.msra.mxu3 %v5843_v36  ;;  %493 = vmatpush.msra.mxu2 %v5845_v37  ;;  %9091 = vst [vmem:[#allocation14_spill] sm:$0xff] %v5917_v59  ;;  %v5941_v3 = vld [vmem:[#allocation4 + $0xe0] sm:$0xff]  ;;  %v5068_v20 = vld [vmem:[%s8980_s3 + $0x1] ss:$0 sm:$0xff]  ;;  %v5069_v33 = vld [vmem:[%s8980_s3 + $0x2] ss:$0 sm:$0xff] }
  0x2e   :  { %442 = vmatpush.msra.mxu0 %v5847_v38  ;;  %468 = vmatpush.msra.mxu1 %v5849_v39  ;;  %9095 = vst [vmem:[#allocation18_spill] sm:$0xff] %v5929_v63 }
  0x2f   :  { %520 = vmatpush.msra.mxu3 %v5856_v41  ;;  %494 = vmatpush.msra.mxu2 %v5858_v42  ;;  %9096 = vst [vmem:[#allocation19_spill] sm:$0xff] %v5933_v0 }
  0x30   :  { %4882 = vmatmul.msk.f32.vlgmr.msrb.gmra.mxu0 %vm117_vm0, %v4879_v40  ;;  %4885 = vmatmul.msk.f32.vlgmr.msrb.gmra.mxu1 %vm117_vm0, %v4879_v40  ;;  %9097 = vst [vmem:[#allocation20_spill] sm:$0xff] %v5935_v1 }
  0x31   :  { %4888 = vmatmul.msk.f32.vlgmr.msrb.gmra.mxu2 %vm117_vm0, %v4879_v40  ;;  %4891 = vmatmul.msk.f32.vlgmr.msrb.gmra.mxu3 %vm117_vm0, %v4879_v40  ;;  %9098 = vst [vmem:[#allocation21_spill] sm:$0xff] %v5939_v2  ;;  %v5070_v40 = vld [vmem:[%s8980_s3 + $0x3] ss:$0 sm:$0xff] }
  0x32   :  { %443 = vmatpush.msra.mxu0 %v5861_v43  ;;  %469 = vmatpush.msra.mxu1 %v5863_v44  ;;  %9099 = vst [vmem:[#allocation22_spill] sm:$0xff] %v5941_v3 }
  0x33   :  { %495 = vmatpush.msra.mxu2 %v5868_v45  ;;  %521 = vmatpush.msra.mxu3 %v5870_v46 }
  0x34   :  { %444 = vmatpush.msra.mxu0 %v5874_v47  ;;  %470 = vmatpush.msra.mxu1 %v5876_v48 }
  0x35   :  { %496 = vmatpush.msra.mxu2 %v5880_v49  ;;  %522 = vmatpush.msra.mxu3 %v5886_v50 }
  0x36   :  { %671 = vmatpush.msrb.mxu0 %v5890_v51  ;;  %697 = vmatpush.msrb.mxu1 %v5892_v52 }
  0x37   :  { %723 = vmatpush.msrb.mxu2 %v5896_v53  ;;  %749 = vmatpush.msrb.mxu3 %v5898_v54 }
  0x38   :  { %4883 = vmatmul.msk.f32.gmra.mxu0 %vm117_vm0, %v4880_v55  ;;  %4886 = vmatmul.msk.f32.gmra.mxu1 %vm117_vm0, %v4880_v55 }
  0x39   :  { %4889 = vmatmul.msk.f32.gmra.mxu2 %vm117_vm0, %v4880_v55  ;;  %4892 = vmatmul.msk.f32.gmra.mxu3 %vm117_vm0, %v4880_v55 }
  0x3a   :  { %672 = vmatpush.msrb.mxu0 %v5909_v56  ;;  %698 = vmatpush.msrb.mxu1 %v5911_v57 }
  0x3b   :  { %724 = vmatpush.msrb.mxu2 %v5915_v58  ;;  %750 = vmatpush.msrb.mxu3 %v5917_v59 }
  0x3c   :  { %673 = vmatpush.msrb.mxu0 %v5921_v60  ;;  %699 = vmatpush.msrb.mxu1 %v5923_v61 }
  0x3d   :  { %725 = vmatpush.msrb.mxu2 %v5927_v62  ;;  %751 = vmatpush.msrb.mxu3 %v5929_v63 }
  0x3e   :  { %674 = vmatpush.msrb.mxu0 %v5933_v0  ;;  %700 = vmatpush.msrb.mxu1 %v5935_v1 }
  0x3f   :  { %726 = vmatpush.msrb.mxu2 %v5939_v2  ;;  %752 = vmatpush.msrb.mxu3 %v5941_v3 }
  0x40   :  { %445 = vmatmul.f32.vlgmr.msra.gmra.mxu0 %v8986_v4  ;;  %471 = vmatmul.f32.vlgmr.msra.gmra.mxu1 %v8986_v4 }
  0x41   :  { %497 = vmatmul.f32.vlgmr.msra.gmra.mxu2 %v8986_v4  ;;  %523 = vmatmul.f32.vlgmr.msra.gmra.mxu3 %v8986_v4 }
  0x42   :  { %908 = vmatpush.msra.mxu0 %v5839_v34  ;;  %934 = vmatpush.msra.mxu1 %v5841_v35 }
  0x43   :  { %960 = vmatpush.msra.mxu2 %v5845_v37  ;;  %986 = vmatpush.msra.mxu3 %v5843_v36 }
  0x44   :  { %909 = vmatpush.msra.mxu0 %v5847_v38  ;;  %935 = vmatpush.msra.mxu1 %v5849_v39 }
  0x45   :  { %961 = vmatpush.msra.mxu2 %v5858_v42  ;;  %987 = vmatpush.msra.mxu3 %v5856_v41 }
  0x46   :  { %910 = vmatpush.msra.mxu0 %v5861_v43  ;;  %936 = vmatpush.msra.mxu1 %v5863_v44 }
  0x47   :  { %962 = vmatpush.msra.mxu2 %v5868_v45  ;;  %988 = vmatpush.msra.mxu3 %v5870_v46 }
  0x48   :  { %675 = vmatmul.f32.vlgmr.msrb.gmra.mxu0 %v8986_v4  ;;  %701 = vmatmul.f32.vlgmr.msrb.gmra.mxu1 %v8986_v4 }
  0x49   :  { %727 = vmatmul.f32.vlgmr.msrb.gmra.mxu2 %v8986_v4  ;;  %753 = vmatmul.f32.vlgmr.msrb.gmra.mxu3 %v8986_v4 }
  0x4a   :  { %911 = vmatpush.msra.mxu0 %v5874_v47  ;;  %937 = vmatpush.msra.mxu1 %v5876_v48 }
  0x4b   :  { %963 = vmatpush.msra.mxu2 %v5880_v49  ;;  %989 = vmatpush.msra.mxu3 %v5886_v50 }
  0x4c   :  { %1150 = vmatpush.msrb.mxu0 %v5890_v51  ;;  %1176 = vmatpush.msrb.mxu1 %v5892_v52 }
  0x4d   :  { %1202 = vmatpush.msrb.mxu2 %v5896_v53  ;;  %1228 = vmatpush.msrb.mxu3 %v5898_v54 }
  0x4e   :  { %1151 = vmatpush.msrb.mxu0 %v5909_v56  ;;  %1177 = vmatpush.msrb.mxu1 %v5911_v57 }
  0x4f   :  { %1203 = vmatpush.msrb.mxu2 %v5915_v58  ;;  %1229 = vmatpush.msrb.mxu3 %v5917_v59 }
  0x50   :  { %1152 = vmatpush.msrb.mxu0 %v5921_v60  ;;  %1178 = vmatpush.msrb.mxu1 %v5923_v61 }
  0x51   :  { %1204 = vmatpush.msrb.mxu2 %v5927_v62  ;;  %1230 = vmatpush.msrb.mxu3 %v5929_v63 }
  0x52   :  { %1153 = vmatpush.msrb.mxu0 %v5933_v0  ;;  %1179 = vmatpush.msrb.mxu1 %v5935_v1 }
  0x53   :  { %1205 = vmatpush.msrb.mxu2 %v5939_v2  ;;  %1231 = vmatpush.msrb.mxu3 %v5941_v3 }
  0x9c   :  { %v141_v5 = vpop.f32.mrf.mxu0 }
  0x9d   :  { %v178_v6 = vpop.f32.mrf.mxu1  ;;  %v5997_v21 = vadd.f32 %v5067_v19, %v141_v5 }
  0x9e   :  { %v5999_v22 = vadd.f32 %v5068_v20, %v178_v6 }
  0x9f   :  { %9100 = vst [vmem:[#allocation23_spill] sm:$0xff] %v5997_v21 }
  0xa0   :  { %9101 = vst [vmem:[#allocation24_spill] sm:$0xff] %v5999_v22 }
  0xa4   :  { %v216_v7 = vpop.f32.mrf.mxu2  ;;  %v254_v8 = vpop.f32.mrf.mxu3 }
  0xa5   :  { %v144_v9 = vpop.f32.mrf.mxu0  ;;  %v181_v10 = vpop.f32.mrf.mxu1  ;;  %v6025_v4 = vadd.f32 %v5070_v40, %v254_v8 }
  0xa6   :  { %v6003_v25 = vadd.f32 %v5067_v19, %v144_v9  ;;  %v6005_v26 = vadd.f32 %v5068_v20, %v181_v10  ;;  %v6017_v20 = vadd.f32 %v5069_v33, %v216_v7 }
  0xa7   :  { %9105 = vst [vmem:[#allocation28_spill] sm:$0xff] %v6025_v4 }
  0xa8   :  { %9102 = vst [vmem:[#allocation25_spill] sm:$0xff] %v6003_v25 }
  0xa9   :  { %9103 = vst [vmem:[#allocation26_spill] sm:$0xff] %v6005_v26 }
  0xaa   :  { %9104 = vst [vmem:[#allocation27_spill] sm:$0xff] %v6017_v20 }
  0xac   :  { %v219_v11 = vpop.f32.mrf.mxu2  ;;  %v257_v12 = vpop.f32.mrf.mxu3 }
  0xad   :  { %v301_v13 = vpop.f32.mrf.mxu0  ;;  %v339_v14 = vpop.f32.mrf.mxu1 }
  0xb4   :  { %v377_v15 = vpop.f32.mrf.mxu2  ;;  %v5989_v16 = vpop.f32.mrf.mxu3 }
  0xb5   :  { %v304_v17 = vpop.f32.mrf.mxu0  ;;  %v342_v18 = vpop.f32.mrf.mxu1 }
  0xbc   :  { %v380_v23 = vpop.f32.mrf.mxu2  ;;  %v6001_v24 = vpop.f32.mrf.mxu3 }
  0xbd   :  { %v446_v27 = vpop.f32.mrf.mxu0  ;;  %v472_v28 = vpop.f32.mrf.mxu1 }
  0xbe   :  { %v450_v29 = vrot.slane %v446_v27, 1  ;;  %v453_v30 = vadd.f32 %v446_v27, %v5997_v21  ;;  %v476_v31 = vrot.slane %v472_v28, 1  ;;  %v479_v32 = vadd.f32 %v472_v28, %v5999_v22  ;;  %v5071_v27 = vld [vmem:[%s8980_s3 + $0x4] ss:$0 sm:$0xff]  ;;  %v5072_v28 = vld [vmem:[%s8980_s3 + $0x5] ss:$0 sm:$0xff] }
  0xbf   :  { %v5073_v22 = vld [vmem:[%s8980_s3 + $0x6] ss:$0 sm:$0xff]  ;;  %v6038_v21 = vadd.f32 %v5072_v28, %v339_v14 }
  0xc0   :  { %v454_v55 = vadd.f32 %v450_v29, %v6003_v25  ;;  %v4893_v5 = vmul.f32 -1.442695, %v453_v30  ;;  %v480_v6 = vadd.f32 %v476_v31, %v6005_v26  ;;  %v4895_v9 = vmul.f32 -1.442695, %v479_v32 }
  0xc1   :  { %9109 = vst [vmem:[#allocation32_spill] sm:$0xff] %v6038_v21  ;;  %v6040_v25 = vadd.f32 %v5071_v27, %v304_v17 }
  0xc2   :  { %5081 = vpow2.f32 %v4893_v5  ;;  %v4894_v10 = vmul.f32 -1.442695, %v454_v55  ;;  %v4896_v19 = vmul.f32 -1.442695, %v480_v6  ;;  %v6028_v5 = vadd.f32 %v5069_v33, %v219_v11 }
  0xc3   :  { %5083 = vpow2.f32 %v4895_v9  ;;  %v6030_v6 = vadd.f32 %v5070_v40, %v257_v12  ;;  %9110 = vst [vmem:[#allocation33_spill] sm:$0xff] %v6040_v25  ;;  %v6042_v11 = vadd.f32 %v5072_v28, %v342_v18 }
  0xc4   :  { %5085 = vpow2.f32 %v4894_v10  ;;  %v498_v29 = vpop.f32.mrf.mxu2  ;;  %v524_v30 = vpop.f32.mrf.mxu3  ;;  %9106 = vst [vmem:[#allocation29_spill] sm:$0xff] %v6028_v5  ;;  %v6036_v10 = vadd.f32 %v5071_v27, %v301_v13 }
  0xc5   :  { %5087 = vpow2.f32 %v4896_v19  ;;  %v505_v31 = vadd.f32 %v498_v29, %v6017_v20  ;;  %v528_v32 = vrot.slane %v524_v30, 1  ;;  %v676_v7 = vpop.f32.mrf.mxu0  ;;  %v702_v55 = vpop.f32.mrf.mxu1  ;;  %9107 = vst [vmem:[#allocation30_spill] sm:$0xff] %v6030_v6  ;;  %v502_v9 = vrot.slane %v498_v29, 1 }
  0xc6   :  { %v531_v8 = vadd.f32 %v524_v30, %v6025_v4  ;;  %9108 = vst [vmem:[#allocation31_spill] sm:$0xff] %v6036_v10  ;;  %v680_v19 = vrot.slane %v676_v7, 1  ;;  %v706_v20 = vrot.slane %v702_v55, 1  ;;  %v683_v29 = vadd.f32 %v676_v7, %v6036_v10 }
  0xc7   :  { %9111 = vst [vmem:[#allocation34_spill] sm:$0xff] %v6042_v11  ;;  %v532_v12 = vadd.f32 %v528_v32, %v6030_v6  ;;  %5089 = vtanh.f32 %v505_v31  ;;  %v709_v13 = vadd.f32 %v702_v55, %v6038_v21  ;;  %v6049_v30 = vadd.f32 %v5073_v22, %v377_v15 }
  0xc8   :  { %v5082_v26 = vpop.eup %5081  ;;  %v4897_v33 = vmul.f32 -1.442695, %v531_v8  ;;  %v506_v17 = vadd.f32 %v502_v9, %v6028_v5  ;;  %v710_v28 = vadd.f32 %v706_v20, %v6042_v11  ;;  %v6059_v31 = vadd.f32 %v5073_v22, %v380_v23 }
  0xc9   :  { %v5084_v40 = vpop.eup %5083  ;;  %v6045_v3 = vadd.f32 1.0, %v5082_v26  ;;  %v684_v26 = vadd.f32 %v680_v19, %v6040_v25  ;;  %v4898_v15 = vmul.f32 -1.442695, %v532_v12  ;;  %v4899_v55 = vmul.f32 -1.442695, %v683_v29 }
  0xca   :  { %v5086_v14 = vpop.eup %5085  ;;  %v6051_v4 = vadd.f32 1.0, %v5084_v40  ;;  %5091 = vpow2.f32 %v4897_v33  ;;  %9112 = vst [vmem:[#allocation35_spill] sm:$0xff] %v6059_v31  ;;  %v4901_v9 = vmul.f32 -1.442695, %v709_v13  ;;  %v4902_v33 = vmul.f32 -1.442695, %v710_v28 }
  0xcb   :  { %v5088_v18 = vpop.eup %5087  ;;  %v6054_v27 = vadd.f32 1.0, %v5086_v14  ;;  %5093 = vrcp.f32 %v6045_v3  ;;  %v550_v19 = vand.u32 2147483647, %v6045_v3  ;;  %v552_v22 = vand.u32 2147483648, %v6045_v3 }
  0xcc   :  { %v6061_v32 = vadd.f32 1.0, %v5088_v18  ;;  %5095 = vrcp.f32 %v6051_v4  ;;  %v590_v7 = vand.u32 2147483648, %v6051_v4  ;;  %v4900_v12 = vmul.f32 -1.442695, %v684_v26  ;;  %v728_v14 = vpop.f32.mrf.mxu2  ;;  %v754_v1 = vpop.f32.mrf.mxu3 }
  0xcd   :  { %5097 = vrcp.f32 %v6054_v27  ;;  %v6070_v23 = vpop.eup %5089  ;;  %v567_v20 = vand.u32 2147483648, %v6054_v27  ;;  %vm546_vm1 = vweird.f32 %v6045_v3  ;;  %v565_v29 = vand.u32 2147483647, %v6054_v27 }
  0xce   :  { %5099 = vrcp.f32 %v6061_v32  ;;  %v605_v8 = vand.u32 2147483648, %v6061_v32  ;;  %v588_v13 = vand.u32 2147483647, %v6051_v4  ;;  %vm584_vm2 = vweird.f32 %v6051_v4 }
  0xcf   :  { %5101 = vtanh.f32 %v506_v17  ;;  %v591_v11 = vor.u32 1.1754944e-38, %v590_v7  ;;  %v603_v21 = vand.u32 2147483647, %v6061_v32  ;;  %vm6083_vm3 = vcmp.eq.f32.partialorder %v550_v19, 8.507059e+37 }
  0xd0   :  { %v5092_v40 = vpop.eup %5091  ;;  %5103 = vpow2.f32 %v4898_v15  ;;  %v6081_v28 = vor.u32 1.1754944e-38, %v605_v8  ;;  %v553_v6 = vor.u32 1.1754944e-38, %v552_v22  ;;  %vm561_vm4 = vweird.f32 %v6054_v27 }
  0xd1   :  { %v5094_v18 = vpop.eup %5093  ;;  %v6078_v10 = vadd.f32 1.0, %v5092_v40  ;;  %5105 = vpow2.f32 %v4899_v55  ;;  %vm599_vm5 = vweird.f32 %v6061_v32  ;;  %v568_v40 = vor.u32 1.1754944e-38, %v567_v20 }
  0xd2   :  { %v5096_v17 = vpop.eup %5095  ;;  %v542_v26 = vmul.f32 %v5094_v18, %v6045_v3  ;;  %v732_v5 = vrot.slane %v728_v14, 1  ;;  %vm6092_vm6 = vcmp.eq.f32.partialorder %v565_v29, 8.507059e+37  ;;  %vm6096_vm7 = vcmp.eq.f32.partialorder %v588_v13, 8.507059e+37 }
  0xd3   :  { %v5098_v15 = vpop.eup %5097  ;;  %v580_v7 = vmul.f32 %v5096_v17, %v6051_v4  ;;  %5107 = vrcp.f32 %v6078_v10  ;;  %vm547_vm8 = vweird.f32 %v5094_v18  ;;  %vm6101_vm9 = vcmp.eq.f32.partialorder %v603_v21, 8.507059e+37 }
  0xd4   :  { %v5100_v2 = vpop.eup %5099  ;;  %v543_v8 = vsub.f32 1.0, %v542_v26  ;;  %v557_v19 = vmul.f32 %v5098_v15, %v6054_v27  ;;  %5109 = vpow2.f32 %v4900_v12  ;;  %vm585_vm10 = vweird.f32 %v5096_v17  ;;  %vm548_vm13 = vmor %vm546_vm1, %vm547_vm8  ;;  %v5074_v27 = vld [vmem:[%s8980_s3 + $0x7] ss:$0 sm:$0xff] }
  0xd5   :  { %v5102_v55 = vpop.eup %5101  ;;  %v581_v0 = vsub.f32 1.0, %v580_v7  ;;  %v595_v20 = vmul.f32 %v5100_v2, %v6061_v32  ;;  %5111 = vpow2.f32 %v4901_v9  ;;  %vm562_vm11 = vweird.f32 %v5098_v15  ;;  %vm586_vm14 = vmor %vm584_vm2, %vm585_vm10 }
  0xd6   :  { %v5104_v26 = vpop.eup %5103  ;;  %v558_v62 = vsub.f32 1.0, %v557_v19  ;;  %v544_v29 = vmul.f32 %v5094_v18, %v543_v8  ;;  %5113 = vpow2.f32 %v4902_v33  ;;  %vm600_vm12 = vweird.f32 %v5100_v2  ;;  %vm563_vm15 = vmor %vm561_vm4, %vm562_vm11 }
  0xd7   :  { %v582_v61 = vmul.f32 %v5096_v17, %v581_v0  ;;  %v596_v13 = vsub.f32 1.0, %v595_v20  ;;  %v6105_v60 = vadd.f32 1.0, %v5104_v26  ;;  %v5106_v12 = vpop.eup %5105  ;;  %v736_v20 = vadd.f32 %v732_v5, %v6059_v31  ;;  %vm601_vm1 = vmor %vm599_vm5, %vm600_vm12 }
  0xd8   :  { %v545_v59 = vadd.f32 %v5094_v18, %v544_v29  ;;  %v559_v7 = vmul.f32 %v5098_v15, %v558_v62  ;;  %v6113_v0 = vadd.f32 1.0, %v5106_v12  ;;  %v735_v62 = vadd.f32 %v728_v14, %v6049_v30 }
  0xd9   :  { %v6107_v58 = vpop.eup %5107  ;;  %v597_v21 = vmul.f32 %v5100_v2, %v596_v13  ;;  %v583_v8 = vadd.f32 %v5096_v17, %v582_v61  ;;  %5115 = vrcp.f32 %v6105_v60 }
  0xda   :  { %v5110_v9 = vpop.eup %5109  ;;  %v549_v19 = vsel %vm548_vm13, %v5094_v18, %v545_v59  ;;  %v560_v33 = vadd.f32 %v5098_v15, %v559_v7  ;;  %v620_v5 = vmul.f32 %v6107_v58, %v6078_v10  ;;  %5117 = vrcp.f32 %v6113_v0 }
  0xdb   :  { %v554_v3 = vsel %vm6083_vm3, %v553_v6, %v549_v19  ;;  %v587_v61 = vsel %vm586_vm14, %v5096_v17, %v583_v8  ;;  %v598_v26 = vadd.f32 %v5100_v2, %v597_v21  ;;  %v6125_v29 = vadd.f32 1.0, %v5110_v9  ;;  %v5112_v59 = vpop.eup %5111 }
  0xdc   :  { %v564_v18 = vsel %vm563_vm15, %v5098_v15, %v560_v33  ;;  %v592_v4 = vsel %vm6096_vm7, %v591_v11, %v587_v61  ;;  %v651_v25 = vmul.f32 %v6070_v23, %v554_v3  ;;  %v5114_v6 = vpop.eup %5113  ;;  %v6147_v13 = vadd.f32 1.0, %v5112_v59 }
  0xdd   :  { %v569_v14 = vsel %vm6092_vm6, %v568_v40, %v564_v18  ;;  %v602_v17 = vsel %vm601_vm1, %v5100_v2, %v598_v26  ;;  %v649_v15 = vmul.f32 0.0, %v592_v4  ;;  %5119 = vrcp.f32 %v6125_v29 }
  0xde   :  { %v607_v11 = vsel %vm6101_vm9, %v6081_v28, %v602_v17  ;;  %v652_v32 = vmul.f32 %v5102_v55, %v569_v14  ;;  %v621_v12 = vsub.f32 1.0, %v620_v5  ;;  %v6149_v7 = vadd.f32 1.0, %v5114_v6 }
  0xdf   :  { %v6145_v23 = vpop.eup %5115  ;;  %v650_v22 = vmul.f32 0.0, %v607_v11  ;;  %5121 = vtanh.f32 %v735_v62  ;;  %v6152_v2 = vadd.f32 %v5074_v27, %v5989_v16  ;;  %v6154_v40 = vadd.f32 %v651_v25, %v649_v15 }
  0xe0   :  { %v6158_v63 = vmul.f32 %v6145_v23, %v6105_v60  ;;  %5123 = vtanh.f32 %v736_v20  ;;  %v782_v55 = vand.u32 2147483648, %v6113_v0  ;;  %v6164_v21 = vpop.eup %5117  ;;  %v820_v8 = vand.u32 2147483648, %v6147_v13 }
  0xe1   :  { %9121 = vst [vmem:[#allocation36_spill] sm:$0xff] %v6152_v2  ;;  %v6160_v28 = vadd.f32 %v652_v32, %v650_v22  ;;  %5125 = vrcp.f32 %v6147_v13  ;;  %v780_v16 = vand.u32 2147483647, %v6113_v0  ;;  %v758_v9 = vrot.slane %v754_v1, 1 }
  0xe2   :  { %v761_v19 = vadd.f32 %v754_v1, %v6152_v2  ;;  %v6172_v62 = vadd.f32 %v5074_v27, %v6001_v24  ;;  %v622_v20 = vmul.f32 %v6107_v58, %v621_v12  ;;  %v772_v3 = vmul.f32 %v6164_v21, %v6113_v0 }
  0xe3   :  { %v6169_v33 = vpop.eup %5119  ;;  %5127 = vrcp.f32 %v6149_v7  ;;  %v636_v61 = vsub.f32 1.0, %v6158_v63  ;;  %vm776_vm2 = vweird.f32 %v6113_v0  ;;  %v835_v18 = vand.u32 2147483648, %v6149_v7 }
  0xe4   :  { %5129 = vtanh.f32 %v6154_v40  ;;  %v787_v26 = vmul.f32 %v6169_v33, %v6125_v29  ;;  %v773_v24 = vsub.f32 1.0, %v772_v3  ;;  %v783_v4 = vor.u32 1.1754944e-38, %v782_v55 }
  0xe5   :  { %v6183_v59 = vpop.eup %5121  ;;  %5131 = vtanh.f32 %v6160_v28  ;;  %vm814_vm3 = vweird.f32 %v6147_v13  ;;  %v6190_v6 = vor.u32 1.1754944e-38, %v820_v8  ;;  %vm6192_vm4 = vcmp.eq.f32.partialorder %v780_v16, 8.507059e+37 }
  0xe6   :  { %v6187_v25 = vpop.eup %5123  ;;  %v788_v5 = vsub.f32 1.0, %v787_v26  ;;  %v762_v14 = vadd.f32 %v758_v9, %v6172_v62  ;;  %v4903_v17 = vmul.f32 -1.442695, %v761_v19  ;;  %v774_v11 = vmul.f32 %v6164_v21, %v773_v24 }
  0xe7   :  { %v5126_v15 = vpop.eup %5125  ;;  %vm777_vm5 = vweird.f32 %v6164_v21  ;;  %v795_v32 = vand.u32 2147483647, %v6125_v29  ;;  %v797_v22 = vand.u32 2147483648, %v6125_v29  ;;  %vm829_vm6 = vweird.f32 %v6149_v7 }
  0xe8   :  { %v810_v12 = vmul.f32 %v5126_v15, %v6147_v13  ;;  %v789_v1 = vmul.f32 %v6169_v33, %v788_v5  ;;  %vm792_vm7 = vweird.f32 %v6169_v33  ;;  %v818_v63 = vand.u32 2147483647, %v6147_v13  ;;  %vm6216_vm8 = vmor %vm776_vm2, %vm777_vm5 }
  0xe9   :  { %v5128_v55 = vpop.eup %5127  ;;  %v775_v8 = vadd.f32 %v6164_v21, %v774_v11  ;;  %v833_v16 = vand.u32 2147483647, %v6149_v7  ;;  %5133 = vpow2.f32 %v4903_v17  ;;  %v4904_v9 = vmul.f32 -1.442695, %v762_v14 }
  0xea   :  { %v6208_v19 = vpop.eup %5129  ;;  %v811_v3 = vsub.f32 1.0, %v810_v12  ;;  %v825_v26 = vmul.f32 %v5128_v55, %v6149_v7  ;;  %v836_v24 = vor.u32 1.1754944e-38, %v835_v18  ;;  %v790_v2 = vadd.f32 %v6169_v33, %v789_v1  ;;  %v9152_v7 = vld [vmem:[#allocation25_spill] sm:$0xff] }
  0xeb   :  { %v5132_v5 = vpop.eup %5131  ;;  %vm791_vm9 = vweird.f32 %v6125_v29  ;;  %vm6221_vm10 = vcmp.eq.f32.partialorder %v795_v32, 8.507059e+37  ;;  %v798_v17 = vor.u32 1.1754944e-38, %v797_v22  ;;  %5135 = vpow2.f32 %v4904_v9 }
  0xec   :  { %v812_v18 = vmul.f32 %v5126_v15, %v811_v3  ;;  %v826_v11 = vsub.f32 1.0, %v825_v26  ;;  %v779_v12 = vsel %vm6216_vm8, %v6164_v21, %v775_v8  ;;  %vm6230_vm11 = vmor %vm791_vm9, %vm792_vm7  ;;  %vm815_vm12 = vweird.f32 %v5126_v15 }
  0xed   :  { %v794_v29 = vsel %vm6230_vm11, %v6169_v33, %v790_v2  ;;  %vm6237_vm13 = vcmp.eq.f32.partialorder %v818_v63, 8.507059e+37  ;;  %vm6241_vm14 = vcmp.eq.f32.partialorder %v833_v16, 8.507059e+37  ;;  %v623_v31 = vadd.f32 %v6107_v58, %v622_v20  ;;  %vm6251_vm2 = vmor %vm814_vm3, %vm815_vm12 }
  0xee   :  { %v827_v21 = vmul.f32 %v5128_v55, %v826_v11  ;;  %v813_v1 = vadd.f32 %v5126_v15, %v812_v18  ;;  %vm830_vm15 = vweird.f32 %v5128_v55  ;;  %vm624_vm1 = vweird.f32 %v6078_v10 }
  0xef   :  { %v5134_v8 = vpop.eup %5133  ;;  %v784_v9 = vsel %vm6192_vm4, %v783_v4, %v779_v12  ;;  %vm625_vm5 = vweird.f32 %v6107_v58  ;;  %v637_v33 = vmul.f32 %v6145_v23, %v636_v61  ;;  %vm640_vm7 = vweird.f32 %v6145_v23  ;;  %vm831_vm3 = vmor %vm829_vm6, %vm830_vm15 }
  0xf0   :  { %v799_v20 = vsel %vm6221_vm10, %v798_v17, %v794_v29  ;;  %v817_v63 = vsel %vm6251_vm2, %v5126_v15, %v813_v1  ;;  %v828_v27 = vadd.f32 %v5128_v55, %v827_v21  ;;  %v6262_v4 = vadd.f32 1.0, %v5134_v8  ;;  %vm626_vm6 = vmor %vm624_vm1, %vm625_vm5 }
  0xf1   :  { %v5136_v13 = vpop.eup %5135  ;;  %v638_v16 = vadd.f32 %v6145_v23, %v637_v33  ;;  %vm639_vm4 = vweird.f32 %v6105_v60  ;;  %v643_v61 = vand.u32 2147483647, %v6105_v60  ;;  %v645_v3 = vand.u32 2147483648, %v6105_v60 }
  0xf2   :  { %v832_v26 = vsel %vm831_vm3, %v5128_v55, %v828_v27  ;;  %v6270_v14 = vadd.f32 1.0, %v5136_v13  ;;  %5137 = vrcp.f32 %v6262_v4  ;;  %v630_v15 = vand.u32 2147483648, %v6078_v10  ;;  %vm6276_vm8 = vmor %vm639_vm4, %vm640_vm7 }
  0xf3   :  { %v822_v17 = vsel %vm6237_vm13, %v6190_v6, %v817_v63  ;;  %v837_v60 = vsel %vm6241_vm14, %v836_v24, %v832_v26  ;;  %v628_v55 = vand.u32 2147483647, %v6078_v10  ;;  %v642_v18 = vsel %vm6276_vm8, %v6145_v23, %v638_v16 }
  0xf4   :  { %v880_v11 = vmul.f32 0.0, %v837_v60  ;;  %v882_v12 = vmul.f32 %v6187_v25, %v799_v20  ;;  %5139 = vrcp.f32 %v6270_v14  ;;  %v646_v6 = vor.u32 1.1754944e-38, %v645_v3 }
  0xf5   :  { %v627_v0 = vsel %vm626_vm6, %v6107_v58, %v623_v31  ;;  %vm644_vm9 = vcmp.eq.f32.partialorder %v643_v61, 8.507059e+37  ;;  %v879_v24 = vmul.f32 0.0, %v822_v17  ;;  %v881_v29 = vmul.f32 %v6183_v59, %v784_v9 }
  0xf6   :  { %v631_v32 = vor.u32 1.1754944e-38, %v630_v15  ;;  %v647_v22 = vsel %vm644_vm9, %v646_v6, %v642_v18  ;;  %vm629_vm10 = vcmp.eq.f32.partialorder %v628_v55, 8.507059e+37  ;;  %v6297_v25 = vadd.f32 %v882_v12, %v880_v11  ;;  %v9153_v55 = vld [vmem:[#allocation26_spill] sm:$0xff]  ;;  %v9154_v11 = vld [vmem:[#allocation23_spill] sm:$0xff] }
  0xf7   :  { %v658_v23 = vmul.f32 %v5132_v5, %v647_v22  ;;  %vm892_vm11 = vcmask 1041409   ;;  %v6301_v58 = vadd.f32 %v881_v29, %v879_v24  ;;  %v875_v20 = vand.u32 2147483648, %v6270_v14 }
  0xf8   :  { %v5138_v21 = vpop.eup %5137  ;;  %v632_v1 = vsel %vm629_vm10, %v631_v32, %v627_v0  ;;  %5141 = vtanh.f32 %v6297_v25  ;;  %v873_v13 = vand.u32 2147483647, %v6270_v14  ;;  %vm854_vm14 = vweird.f32 %v6262_v4  ;;  %v9155_v0 = vld [vmem:[#allocation24_spill] sm:$0xff] }
  0xf9   :  { %v850_v8 = vmul.f32 %v5138_v21, %v6262_v4  ;;  %v657_v10 = vmul.f32 %v6208_v19, %v632_v1  ;;  %v891_v2 = vrot.slane %v658_v23, 7  ;;  %5143 = vtanh.f32 %v6301_v58  ;;  %v9156_v1 = vld [vmem:[#allocation29_spill] sm:$0xff] }
  0xfa   :  { %v5140_v33 = vpop.eup %5139  ;;  %vm855_vm12 = vweird.f32 %v5138_v21  ;;  %v860_v16 = vand.u32 2147483648, %v6262_v4  ;;  %vm869_vm1 = vweird.f32 %v6270_v14  ;;  %vm874_vm5 = vcmp.eq.f32.partialorder %v873_v13, 8.507059e+37 }
  0xfb   :  { %v851_v31 = vsub.f32 1.0, %v850_v8  ;;  %v865_v59 = vmul.f32 %v5140_v33, %v6270_v14  ;;  %v6305_v9 = vsel %vm892_vm11, %v891_v2, %v657_v10  ;;  %vm870_vm13 = vweird.f32 %v5140_v33  ;;  %vm6327_vm15 = vmor %vm854_vm14, %vm855_vm12  ;;  %v9157_v2 = vld [vmem:[#allocation30_spill] sm:$0xff] }
  0xfc   :  { %9138 = vst [vmem:[#allocation37_spill] sm:$0xff] %v6305_v9  ;;  %4905 = vmatmul.msk.f32.vlgmr.msra.gmra.mxu0 %vm117_vm0, %v6305_v9  ;;  %4906 = vmatmul.msk.f32.vlgmr.msra.gmra.mxu1 %vm117_vm0, %v6305_v9  ;;  %vm871_vm2 = vmor %vm869_vm1, %vm870_vm13 }
  0xfd   :  { %v852_v5 = vmul.f32 %v5138_v21, %v851_v31  ;;  %v866_v19 = vsub.f32 1.0, %v865_v59  ;;  %4907 = vmatmul.msk.f32.vlgmr.msra.gmra.mxu2 %vm117_vm0, %v6305_v9  ;;  %4908 = vmatmul.msk.f32.vlgmr.msra.gmra.mxu3 %vm117_vm0, %v6305_v9 }
  0xfe   :  { %1392 = vmatpush.msra.mxu0 %v5839_v34  ;;  %1419 = vmatpush.msra.mxu1 %v5841_v35  ;;  %v858_v35 = vand.u32 2147483647, %v6262_v4  ;;  %v861_v4 = vor.u32 1.1754944e-38, %v860_v16 }
  0xff   :  { %v853_v63 = vadd.f32 %v5138_v21, %v852_v5  ;;  %v867_v27 = vmul.f32 %v5140_v33, %v866_v19  ;;  %1446 = vmatpush.msra.mxu2 %v5845_v37  ;;  %1473 = vmatpush.msra.mxu3 %v5843_v36  ;;  %v5142_v36 = vpop.eup %5141  ;;  %v876_v37 = vor.u32 1.1754944e-38, %v875_v20  ;;  %v9158_v5 = vld [vmem:[#allocation28_spill] sm:$0xff] }
 0x100   :  { %1393 = vmatpush.msra.mxu0 %v5847_v38  ;;  %1420 = vmatpush.msra.mxu1 %v5849_v39  ;;  %vm859_vm7 = vcmp.eq.f32.partialorder %v858_v35, 8.507059e+37 }
 0x101   :  { %v868_v61 = vadd.f32 %v5140_v33, %v867_v27  ;;  %1447 = vmatpush.msra.mxu2 %v5858_v42  ;;  %1474 = vmatpush.msra.mxu3 %v5856_v41  ;;  %v857_v38 = vsel %vm6327_vm15, %v5138_v21, %v853_v63  ;;  %v5144_v42 = vpop.eup %5143 }
 0x102   :  { %1394 = vmatpush.msra.mxu0 %v5861_v43  ;;  %1421 = vmatpush.msra.mxu1 %v5863_v44  ;;  %v862_v44 = vsel %vm859_vm7, %v861_v4, %v857_v38 }
 0x103   :  { %v872_v39 = vsel %vm871_vm2, %v5140_v33, %v868_v61  ;;  %1448 = vmatpush.msra.mxu2 %v5868_v45  ;;  %1475 = vmatpush.msra.mxu3 %v5870_v46  ;;  %v887_v3 = vmul.f32 %v5144_v42, %v862_v44  ;;  %v9142_v46 = vld [vmem:[#allocation13_spill] sm:$0xff]  ;;  %v9159_v61 = vld [vmem:[#allocation27_spill] sm:$0xff] }
 0x104   :  { %v877_v41 = vsel %vm874_vm5, %v876_v37, %v872_v39  ;;  %1395 = vmatpush.msra.mxu0 %v5874_v47  ;;  %1422 = vmatpush.msra.mxu1 %v5876_v48  ;;  %v9143_v47 = vld [vmem:[#allocation14_spill] sm:$0xff]  ;;  %v9144_v48 = vld [vmem:[#allocation15_spill] sm:$0xff] }
 0x105   :  { %v888_v43 = vmul.f32 %v5142_v36, %v877_v41  ;;  %1449 = vmatpush.msra.mxu2 %v5880_v49  ;;  %1476 = vmatpush.msra.mxu3 %v5886_v50  ;;  %v9145_v49 = vld [vmem:[#allocation16_spill] sm:$0xff]  ;;  %v9146_v50 = vld [vmem:[#allocation17_spill] sm:$0xff] }
 0x107   :  { %v1134_v26 = vrot.slane %v888_v43, 7  ;;  %v1119_v43 = vrot.slane %v6160_v28, 7 }
 0x109   :  { %v6347_v45 = vsel %vm892_vm11, %v1134_v26, %v887_v3 }
 0x10a   :  { %9141 = vst [vmem:[#allocation38_spill] sm:$0xff] %v6347_v45  ;;  %4915 = vmatmul.msk.f32.vlgmr.msrb.gmra.mxu0 %vm117_vm0, %v6347_v45  ;;  %4916 = vmatmul.msk.f32.vlgmr.msrb.gmra.mxu1 %vm117_vm0, %v6347_v45 }
 0x10b   :  { %4917 = vmatmul.msk.f32.vlgmr.msrb.gmra.mxu2 %vm117_vm0, %v6347_v45  ;;  %4918 = vmatmul.msk.f32.vlgmr.msrb.gmra.mxu3 %vm117_vm0, %v6347_v45 }
 0x10c   :  { %1638 = vmatpush.msrb.mxu0 %v5890_v51  ;;  %1665 = vmatpush.msrb.mxu1 %v5892_v52  ;;  %v9147_v51 = vld [vmem:[#allocation18_spill] sm:$0xff]  ;;  %v9148_v52 = vld [vmem:[#allocation19_spill] sm:$0xff] }
 0x10d   :  { %1692 = vmatpush.msrb.mxu2 %v5896_v53  ;;  %1719 = vmatpush.msrb.mxu3 %v5898_v54  ;;  %v9149_v53 = vld [vmem:[#allocation20_spill] sm:$0xff]  ;;  %v9150_v54 = vld [vmem:[#allocation21_spill] sm:$0xff] }
 0x10e   :  { %1639 = vmatpush.msrb.mxu0 %v5909_v56  ;;  %1666 = vmatpush.msrb.mxu1 %v5911_v57  ;;  %v9151_v56 = vld [vmem:[#allocation22_spill] sm:$0xff] }
 0x10f   :  { %1693 = vmatpush.msrb.mxu2 %v9142_v46  ;;  %1720 = vmatpush.msrb.mxu3 %v9143_v47 }
 0x110   :  { %1640 = vmatpush.msrb.mxu0 %v9144_v48  ;;  %1667 = vmatpush.msrb.mxu1 %v9145_v49 }
 0x111   :  { %1694 = vmatpush.msrb.mxu2 %v9146_v50  ;;  %1721 = vmatpush.msrb.mxu3 %v9147_v51  ;;  %v9160_v51 = vld [vmem:[#allocation33_spill] sm:$0xff] }
 0x112   :  { %1641 = vmatpush.msrb.mxu0 %v9148_v52  ;;  %1668 = vmatpush.msrb.mxu1 %v9149_v53 }
 0x113   :  { %1695 = vmatpush.msrb.mxu2 %v9150_v54  ;;  %1722 = vmatpush.msrb.mxu3 %v9151_v56 }
 0x179   :  { %v913_v57 = vpop.f32.mrf.mxu0  ;;  %v939_v14 = vpop.f32.mrf.mxu1 }
 0x17a   :  { %v917_v15 = vrot.slane %v913_v57, 7  ;;  %v921_v17 = vadd.f32 %v913_v57, %v9152_v7  ;;  %v943_v60 = vrot.slane %v939_v14, 7  ;;  %v947_v18 = vadd.f32 %v939_v14, %v9153_v55 }
 0x17c   :  { %v920_v12 = vadd.f32 %v917_v15, %v9154_v11  ;;  %v4910_v6 = vmul.f32 -1.442695, %v921_v17  ;;  %v946_v24 = vadd.f32 %v943_v60, %v9155_v0  ;;  %v4912_v29 = vmul.f32 -1.442695, %v947_v18  ;;  %v9161_v18 = vld [vmem:[#allocation31_spill] sm:$0xff] }
 0x17e   :  { %v4909_v32 = vmul.f32 -1.442695, %v920_v12  ;;  %5145 = vpow2.f32 %v4910_v6  ;;  %v4911_v22 = vmul.f32 -1.442695, %v946_v24 }
 0x17f   :  { %5147 = vpow2.f32 %v4912_v29 }
 0x180   :  { %5149 = vpow2.f32 %v4909_v32  ;;  %v965_v23 = vpop.f32.mrf.mxu2  ;;  %v991_v21 = vpop.f32.mrf.mxu3 }
 0x181   :  { %5151 = vpow2.f32 %v4911_v22  ;;  %v973_v8 = vadd.f32 %v965_v23, %v9156_v1  ;;  %v995_v10 = vrot.slane %v991_v21, 7  ;;  %v999_v33 = vadd.f32 %v991_v21, %v9157_v2 }
 0x182   :  { %v969_v31 = vrot.slane %v965_v23, 7 }
 0x183   :  { %v998_v19 = vadd.f32 %v995_v10, %v9158_v5  ;;  %v4914_v20 = vmul.f32 -1.442695, %v999_v33  ;;  %5153 = vtanh.f32 %v973_v8 }
 0x184   :  { %v5146_v59 = vpop.eup %5145  ;;  %v972_v36 = vadd.f32 %v969_v31, %v9159_v61 }
 0x185   :  { %v5148_v63 = vpop.eup %5147  ;;  %v6380_v27 = vadd.f32 1.0, %v5146_v59  ;;  %5155 = vpow2.f32 %v4914_v20  ;;  %v4913_v38 = vmul.f32 -1.442695, %v998_v19  ;;  %v1360_v59 = vrot.slane %v6301_v58, 7 }
 0x186   :  { %v5150_v13 = vpop.eup %5149  ;;  %v6382_v16 = vadd.f32 1.0, %v5148_v63 }
 0x187   :  { %v5152_v34 = vpop.eup %5151  ;;  %v6384_v35 = vadd.f32 1.0, %v5150_v13  ;;  %5157 = vrcp.f32 %v6380_v27  ;;  %v1155_v4 = vpop.f32.mrf.mxu0  ;;  %vm1028_vm3 = vweird.f32 %v6380_v27  ;;  %v1032_v46 = vand.u32 2147483647, %v6380_v27 }
 0x188   :  { %v6388_v37 = vadd.f32 1.0, %v5152_v34  ;;  %5159 = vrcp.f32 %v6382_v16  ;;  %v1072_v39 = vand.u32 2147483648, %v6382_v16  ;;  %vm1066_vm4 = vweird.f32 %v6382_v16  ;;  %v1181_v6 = vpop.f32.mrf.mxu1 }
 0x189   :  { %5161 = vrcp.f32 %v6384_v35  ;;  %v1019_v42 = vand.u32 2147483648, %v6384_v35  ;;  %v6395_v41 = vpop.eup %5153  ;;  %v1017_v26 = vand.u32 2147483647, %v6384_v35  ;;  %v1159_v50 = vrot.slane %v1155_v4, 7 }
 0x18a   :  { %5163 = vrcp.f32 %v6388_v37  ;;  %v1057_v3 = vand.u32 2147483648, %v6388_v37  ;;  %v1073_v48 = vor.u32 1.1754944e-38, %v1072_v39  ;;  %v1163_v52 = vadd.f32 %v1155_v4, %v9160_v51 }
 0x18b   :  { %5165 = vtanh.f32 %v972_v36  ;;  %v5156_v44 = vpop.eup %5155  ;;  %vm1013_vm8 = vweird.f32 %v6384_v35  ;;  %v6408_v56 = vor.u32 1.1754944e-38, %v1019_v42  ;;  %v1034_v57 = vand.u32 2147483648, %v6380_v27 }
 0x18c   :  { %5167 = vpow2.f32 %v4913_v38  ;;  %v6403_v49 = vadd.f32 1.0, %v5156_v44  ;;  %v1055_v14 = vand.u32 2147483647, %v6388_v37  ;;  %vm1051_vm6 = vweird.f32 %v6388_v37 }
 0x18d   :  { %v5158_v47 = vpop.eup %5157  ;;  %v1070_v60 = vand.u32 2147483647, %v6382_v16  ;;  %v1162_v12 = vadd.f32 %v1159_v50, %v9161_v18  ;;  %v4920_v22 = vmul.f32 -1.442695, %v1163_v52  ;;  %vm6424_vm12 = vcmp.eq.f32.partialorder %v1017_v26, 8.507059e+37  ;;  %v9164_v52 = vld [vmem:[#allocation32_spill] sm:$0xff] }
 0x18e   :  { %v5160_v53 = vpop.eup %5159  ;;  %v1024_v54 = vmul.f32 %v5158_v47, %v6380_v27  ;;  %vm1029_vm9 = vweird.f32 %v5158_v47  ;;  %5169 = vrcp.f32 %v6403_v49  ;;  %v1185_v20 = vrot.slane %v1181_v6, 7 }
 0x18f   :  { %v6412_v15 = vpop.eup %5161  ;;  %v1062_v17 = vmul.f32 %v5160_v53, %v6382_v16  ;;  %vm1067_vm10 = vweird.f32 %v5160_v53  ;;  %v4919_v10 = vmul.f32 -1.442695, %v1162_v12  ;;  %5171 = vpow2.f32 %v4920_v22  ;;  %vm1030_vm15 = vmor %vm1028_vm3, %vm1029_vm9 }
 0x190   :  { %v5164_v24 = vpop.eup %5163  ;;  %v1009_v29 = vmul.f32 %v6412_v15, %v6384_v35  ;;  %v1025_v32 = vsub.f32 1.0, %v1024_v54  ;;  %vm1014_vm13 = vweird.f32 %v6412_v15  ;;  %v1035_v39 = vor.u32 1.1754944e-38, %v1034_v57  ;;  %vm1068_vm1 = vmor %vm1066_vm4, %vm1067_vm10 }
 0x191   :  { %v6421_v23 = vpop.eup %5165  ;;  %v1047_v21 = vmul.f32 %v5164_v24, %v6388_v37  ;;  %v1063_v8 = vsub.f32 1.0, %v1062_v17  ;;  %5173 = vpow2.f32 %v4919_v10  ;;  %vm1052_vm14 = vweird.f32 %v5164_v24  ;;  %vm6445_vm5 = vmor %vm1013_vm8, %vm1014_vm13 }
 0x192   :  { %v5168_v33 = vpop.eup %5167  ;;  %v1010_v31 = vsub.f32 1.0, %v1009_v29  ;;  %v1026_v19 = vmul.f32 %v5158_v47, %v1025_v32  ;;  %vm1033_vm2 = vcmp.eq.f32.partialorder %v1032_v46, 8.507059e+37  ;;  %v1188_v54 = vadd.f32 %v1185_v20, %v9164_v52  ;;  %vm6452_vm3 = vmor %vm1051_vm6, %vm1052_vm14  ;;  %v9169_v32 = vld [vmem:[#allocation34_spill] sm:$0xff] }
 0x193   :  { %v1048_v63 = vsub.f32 1.0, %v1047_v21  ;;  %v1064_v13 = vmul.f32 %v5160_v53, %v1063_v8  ;;  %v6428_v34 = vadd.f32 1.0, %v5168_v33  ;;  %vm1071_vm7 = vcmp.eq.f32.partialorder %v1070_v60, 8.507059e+37 }
 0x194   :  { %v1011_v36 = vmul.f32 %v6412_v15, %v1010_v31  ;;  %v1027_v38 = vadd.f32 %v5158_v47, %v1026_v19  ;;  %v6436_v44 = vpop.eup %5169  ;;  %v1058_v46 = vor.u32 1.1754944e-38, %v1057_v3  ;;  %v1189_v22 = vadd.f32 %v1181_v6, %v9169_v32  ;;  %v1233_v19 = vpop.f32.mrf.mxu3 }
 0x195   :  { %v1049_v42 = vmul.f32 %v5164_v24, %v1048_v63  ;;  %v1065_v4 = vadd.f32 %v5160_v53, %v1064_v13  ;;  %5175 = vrcp.f32 %v6428_v34  ;;  %v5172_v29 = vpop.eup %5171  ;;  %vm1056_vm4 = vcmp.eq.f32.partialorder %v1055_v14, 8.507059e+37 }
 0x196   :  { %v1012_v26 = vadd.f32 %v6412_v15, %v1011_v36  ;;  %v1031_v50 = vsel %vm1030_vm15, %v5158_v47, %v1027_v38  ;;  %v1102_v21 = vmul.f32 %v6436_v44, %v6403_v49  ;;  %v6466_v8 = vadd.f32 1.0, %v5172_v29 }
 0x197   :  { %v1036_v57 = vsel %vm1033_vm2, %v1035_v39, %v1031_v50  ;;  %v1050_v17 = vadd.f32 %v5164_v24, %v1049_v42  ;;  %v1069_v12 = vsel %vm1068_vm1, %v5160_v53, %v1065_v4  ;;  %v5174_v53 = vpop.eup %5173  ;;  %v1118_v33 = vrot.slane %v6154_v40, 7 }
 0x198   :  { %v1016_v35 = vsel %vm6445_vm5, %v6412_v15, %v1012_v26  ;;  %v1074_v47 = vsel %vm1071_vm7, %v1073_v48, %v1069_v12  ;;  %v1125_v3 = vmul.f32 %v6395_v41, %v1036_v57  ;;  %v6471_v10 = vadd.f32 1.0, %v5174_v53  ;;  %v1207_v15 = vpop.f32.mrf.mxu2 }
 0x199   :  { %v1054_v60 = vsel %vm6452_vm3, %v5164_v24, %v1050_v17  ;;  %v1123_v37 = vmul.f32 %v1119_v43, %v1074_v47  ;;  %v4921_v48 = vmul.f32 -1.442695, %v1188_v54  ;;  %v1021_v14 = vsel %vm6424_vm12, %v6408_v56, %v1016_v35  ;;  %v9170_v54 = vld [vmem:[#allocation35_spill] sm:$0xff]  ;;  %v9171_v17 = vld [vmem:[#allocation36_spill] sm:$0xff] }
 0x19a   :  { %v1059_v24 = vsel %vm1056_vm4, %v1058_v46, %v1054_v60  ;;  %5177 = vrcp.f32 %v6466_v8  ;;  %v4922_v41 = vmul.f32 -1.442695, %v1189_v22  ;;  %v1103_v43 = vsub.f32 1.0, %v1102_v21 }
 0x19b   :  { %v6473_v6 = vpop.eup %5175  ;;  %5179 = vrcp.f32 %v6471_v10  ;;  %v1211_v31 = vrot.slane %v1207_v15, 7  ;;  %v1122_v20 = vmul.f32 %v1118_v33, %v1059_v24  ;;  %v1124_v63 = vmul.f32 %v6421_v23, %v1021_v14 }
 0x19c   :  { %v1087_v28 = vmul.f32 %v6473_v6, %v6428_v34  ;;  %v6484_v13 = vadd.f32 %v1125_v3, %v1123_v37  ;;  %5181 = vpow2.f32 %v4921_v48  ;;  %v1237_v40 = vrot.slane %v1233_v19, 7 }
 0x19d   :  { %5183 = vpow2.f32 %v4922_v41  ;;  %v6490_v38 = vmul.f32 %v6436_v44, %v1103_v43  ;;  %v1214_v39 = vadd.f32 %v1211_v31, %v6049_v30  ;;  %v1361_v42 = vrot.slane %v6297_v25, 7 }
 0x19e   :  { %v1088_v56 = vsub.f32 1.0, %v1087_v28  ;;  %v1241_v4 = vadd.f32 %v1233_v19, %v6172_v62  ;;  %v6497_v26 = vadd.f32 %v1124_v63, %v1122_v20  ;;  %5185 = vtanh.f32 %v6484_v13 }
 0x19f   :  { %v1215_v27 = vadd.f32 %v1207_v15, %v9170_v54  ;;  %v1240_v12 = vadd.f32 %v1237_v40, %v9171_v17  ;;  %v1259_v47 = vand.u32 2147483647, %v6471_v10  ;;  %v1261_v22 = vand.u32 2147483648, %v6471_v10 }
 0x1a0   :  { %v6487_v36 = vpop.eup %5177  ;;  %v4924_v29 = vmul.f32 -1.442695, %v1241_v4  ;;  %v1089_v16 = vmul.f32 %v6473_v6, %v1088_v56  ;;  %vm1270_vm8 = vweird.f32 %v6466_v8  ;;  %vm1255_vm6 = vweird.f32 %v6471_v10 }
 0x1a1   :  { %v6495_v23 = vpop.eup %5179  ;;  %v1266_v50 = vmul.f32 %v6487_v36, %v6466_v8  ;;  %v4923_v21 = vmul.f32 -1.442695, %v1240_v12  ;;  %v1274_v48 = vand.u32 2147483647, %v6466_v8  ;;  %v1276_v15 = vand.u32 2147483648, %v6466_v8 }
 0x1a2   :  { %v1251_v57 = vmul.f32 %v6495_v23, %v6471_v10  ;;  %v5182_v46 = vpop.eup %5181  ;;  %5187 = vpow2.f32 %v4924_v29  ;;  %v1090_v24 = vadd.f32 %v6473_v6, %v1089_v16  ;;  %vm1092_vm9 = vweird.f32 %v6473_v6 }
 0x1a3   :  { %v1267_v35 = vsub.f32 1.0, %v1266_v50  ;;  %v6510_v60 = vadd.f32 1.0, %v5182_v46  ;;  %v5184_v37 = vpop.eup %5183  ;;  %5189 = vtanh.f32 %v6497_v26  ;;  %vm1271_vm10 = vweird.f32 %v6487_v36 }
 0x1a4   :  { %v1252_v53 = vsub.f32 1.0, %v1251_v57  ;;  %v6517_v14 = vadd.f32 1.0, %v5184_v37  ;;  %v6522_v33 = vpop.eup %5185  ;;  %v1097_v41 = vand.u32 2147483648, %v6428_v34  ;;  %vm1091_vm12 = vweird.f32 %v6428_v34  ;;  %vm6556_vm5 = vmor %vm1270_vm8, %vm1271_vm10 }
 0x1a5   :  { %v1268_v3 = vmul.f32 %v6487_v36, %v1267_v35  ;;  %5191 = vrcp.f32 %v6510_v60  ;;  %v1095_v31 = vand.u32 2147483647, %v6428_v34  ;;  %vm6531_vm13 = vcmp.eq.f32.partialorder %v1259_v47, 8.507059e+37  ;;  %vm6541_vm15 = vmor %vm1091_vm12, %vm1092_vm9 }
 0x1a6   :  { %v1253_v28 = vmul.f32 %v6495_v23, %v1252_v53  ;;  %5193 = vpow2.f32 %v4923_v21  ;;  %v1262_v20 = vor.u32 1.1754944e-38, %v1261_v22  ;;  %vm6535_vm14 = vcmp.eq.f32.partialorder %v1274_v48, 8.507059e+37 }
 0x1a7   :  { %5195 = vrcp.f32 %v6517_v14  ;;  %v1269_v43 = vadd.f32 %v6487_v36, %v1268_v3  ;;  %v1277_v56 = vor.u32 1.1754944e-38, %v1276_v15  ;;  %v1299_v34 = vand.u32 2147483648, %v6510_v60 }
 0x1a8   :  { %5197 = vtanh.f32 %v1214_v39  ;;  %v5188_v4 = vpop.eup %5187  ;;  %vm1256_vm1 = vweird.f32 %v6495_v23  ;;  %v1094_v50 = vsel %vm6541_vm15, %v6473_v6, %v1090_v24  ;;  %vm1293_vm2 = vweird.f32 %v6510_v60 }
 0x1a9   :  { %5199 = vtanh.f32 %v1215_v27  ;;  %v5190_v57 = vpop.eup %5189  ;;  %v1254_v39 = vadd.f32 %v6495_v23, %v1253_v28  ;;  %v1297_v29 = vand.u32 2147483647, %v6510_v60  ;;  %v6561_v27 = vadd.f32 1.0, %v5188_v4  ;;  %vm6576_vm4 = vmor %vm1255_vm6, %vm1256_vm1 }
 0x1aa   :  { %v1098_v16 = vor.u32 1.1754944e-38, %v1097_v41  ;;  %v1314_v6 = vand.u32 2147483648, %v6517_v14  ;;  %v1273_v35 = vsel %vm6556_vm5, %v6487_v36, %v1269_v43  ;;  %vm1096_vm7 = vcmp.eq.f32.partialorder %v1095_v31, 8.507059e+37 }
 0x1ab   :  { %v5192_v46 = vpop.eup %5191  ;;  %v1105_v8 = vadd.f32 %v6436_v44, %v6490_v38  ;;  %5201 = vrcp.f32 %v6561_v27  ;;  %vm1106_vm3 = vweird.f32 %v6403_v49  ;;  %vm1107_vm8 = vweird.f32 %v6436_v44 }
 0x1ac   :  { %v5194_v47 = vpop.eup %5193  ;;  %v1289_v22 = vmul.f32 %v5192_v46, %v6510_v60  ;;  %v1099_v53 = vsel %vm1096_vm7, %v1098_v16, %v1094_v50  ;;  %v1110_v38 = vand.u32 2147483647, %v6403_v49  ;;  %v1112_v3 = vand.u32 2147483648, %v6403_v49  ;;  %vm1108_vm6 = vmor %vm1106_vm3, %vm1107_vm8 }
 0x1ad   :  { %v5196_v21 = vpop.eup %5195  ;;  %v6580_v36 = vadd.f32 1.0, %v5194_v47  ;;  %v1258_v10 = vsel %vm6576_vm4, %v6495_v23, %v1254_v39  ;;  %v1130_v28 = vmul.f32 %v5190_v57, %v1099_v53  ;;  %vm1294_vm9 = vweird.f32 %v5192_v46 }
 0x1ae   :  { %v5198_v48 = vpop.eup %5197  ;;  %v1290_v15 = vsub.f32 1.0, %v1289_v22  ;;  %v1304_v24 = vmul.f32 %v5196_v21, %v6517_v14  ;;  %v1109_v43 = vsel %vm1108_vm6, %v6436_v44, %v1105_v8  ;;  %v1113_v31 = vor.u32 1.1754944e-38, %v1112_v3  ;;  %vm1295_vm15 = vmor %vm1293_vm2, %vm1294_vm9 }
 0x1af   :  { %v5200_v41 = vpop.eup %5199  ;;  %5203 = vrcp.f32 %v6580_v36  ;;  %vm1111_vm10 = vcmp.eq.f32.partialorder %v1110_v38, 8.507059e+37  ;;  %v1376_v49 = vrot.slane %v1130_v28, 1  ;;  %v1263_v50 = vsel %vm6531_vm13, %v1262_v20, %v1258_v10  ;;  %v6623_v38 = vld [vmem:[#allocation4 + $0x18] sm:$0xff]  ;;  %v6640_v10 = vld [vmem:[#allocation4 + $0x10] sm:$0xff] }
 0x1b0   :  { %v1291_v40 = vmul.f32 %v5192_v46, %v1290_v15  ;;  %v1305_v4 = vsub.f32 1.0, %v1304_v24  ;;  %v1278_v12 = vsel %vm6535_vm14, %v1277_v56, %v1273_v35  ;;  %v1312_v23 = vand.u32 2147483647, %v6517_v14  ;;  %v6636_v15 = vld [vmem:[#allocation4 + $0x78] sm:$0xff]  ;;  %v6643_v28 = vld [vmem:[#allocation4 + $0x30] sm:$0xff] }
 0x1b1   :  { %v1114_v57 = vsel %vm1111_vm10, %v1113_v31, %v1109_v43  ;;  %v6596_v39 = vpop.eup %5201  ;;  %vm1309_vm12 = vweird.f32 %v5196_v21  ;;  %v1300_v8 = vor.u32 1.1754944e-38, %v1299_v34  ;;  %vm1308_vm13 = vweird.f32 %v6517_v14  ;;  %v6654_v43 = vld [vmem:[#allocation4 + $0x70] sm:$0xff] }
 0x1b2   :  { %v1306_v16 = vmul.f32 %v5196_v21, %v1305_v4  ;;  %v1292_v47 = vadd.f32 %v5192_v46, %v1291_v40  ;;  %v1131_v44 = vmul.f32 %v6522_v33, %v1114_v57  ;;  %vm1298_vm1 = vcmp.eq.f32.partialorder %v1297_v29, 8.507059e+37  ;;  %vm1310_vm14 = vmor %vm1308_vm13, %vm1309_vm12  ;;  %v6660_v4 = vld [vmem:[#allocation4 + $0x8] sm:$0xff] }
 0x1b3   :  { %v1344_v19 = vmul.f32 %v6596_v39, %v6561_v27  ;;  %v1366_v56 = vmul.f32 %v5198_v48, %v1263_v50  ;;  %v1315_v33 = vor.u32 1.1754944e-38, %v1314_v6  ;;  %v1367_v60 = vmul.f32 %v5200_v41, %v1278_v12  ;;  %v6633_v48 = vld [vmem:[#allocation4 + $0x58] sm:$0xff]  ;;  %v6651_v41 = vld [vmem:[#allocation4 + $0x50] sm:$0xff]  ;;  %v6673_v57 = vld [vmem:[#allocation4 + $0x68] sm:$0xff] }
 0x1b4   :  { %v1296_v20 = vsel %vm1295_vm15, %v5192_v46, %v1292_v47  ;;  %v1307_v63 = vadd.f32 %v5196_v21, %v1306_v16  ;;  %v6606_v35 = vsel %vm892_vm11, %v1131_v44, %v1376_v49  ;;  %vm1313_vm2 = vcmp.eq.f32.partialorder %v1312_v23, 8.507059e+37  ;;  %v6663_v49 = vld [vmem:[#allocation4 + $0x28] sm:$0xff]  ;;  %v6684_v47 = vld [vmem:[#allocation4] sm:$0xff] }
 0x1b5   :  { %9182 = vst [vmem:[#allocation13_spill] sm:$0xff] %v6606_v35  ;;  %v6608_v22 = vpop.eup %5203  ;;  %v1301_v53 = vsel %vm1298_vm1, %v1300_v8, %v1296_v20  ;;  %v1345_v37 = vsub.f32 1.0, %v1344_v19  ;;  %4925 = vmatmul.msk.f32.vlgmr.msra.gmra.mxu0 %vm117_vm0, %v6606_v35  ;;  %4926 = vmatmul.msk.f32.vlgmr.msra.gmra.mxu1 %vm117_vm0, %v6606_v35  ;;  %v1339_v24 = vand.u32 2147483648, %v6580_v36  ;;  %v1337_v31 = vand.u32 2147483647, %v6580_v36  ;;  %v6670_v23 = vld [vmem:[#allocation4 + $0x48] sm:$0xff] }
 0x1b6   :  { %v1311_v14 = vsel %vm1310_vm14, %v5196_v21, %v1307_v63  ;;  %v1364_v34 = vmul.f32 %v1360_v59, %v1301_v53  ;;  %v1329_v29 = vmul.f32 %v6608_v22, %v6580_v36  ;;  %4927 = vmatmul.msk.f32.vlgmr.msra.gmra.mxu2 %vm117_vm0, %v6606_v35  ;;  %4928 = vmatmul.msk.f32.vlgmr.msra.gmra.mxu3 %vm117_vm0, %v6606_v35  ;;  %v6626_v21 = vld [vmem:[#allocation4 + $0x38] sm:$0xff]  ;;  %vm1334_vm5 = vweird.f32 %v6608_v22  ;;  %v6687_v44 = vld [vmem:[#allocation4 + $0x20] sm:$0xff]  ;;  %v6746_v16 = vld [vmem:[#allocation4 + $0xe8] sm:$0xff] }
 0x1b7   :  { %v1316_v46 = vsel %vm1313_vm2, %v1315_v33, %v1311_v14  ;;  %v1346_v6 = vmul.f32 %v6596_v39, %v1345_v37  ;;  %1885 = vmatpush.msra.mxu0 %v6623_v38  ;;  %1912 = vmatpush.msra.mxu1 %v6626_v21  ;;  %vm1349_vm7 = vweird.f32 %v6596_v39  ;;  %vm1333_vm3 = vweird.f32 %v6580_v36  ;;  %9185 = vst [vmem:[#allocation14_spill] sm:$0xff] %v6684_v47  ;;  %v6695_v20 = vld [vmem:[#allocation4 + $0x40] sm:$0xff] }
 0x1b8   :  { %v1365_v58 = vmul.f32 %v1361_v42, %v1316_v46  ;;  %v6631_v59 = vadd.f32 %v1366_v56, %v1364_v34  ;;  %v1330_v3 = vsub.f32 1.0, %v1329_v29  ;;  %1939 = vmatpush.msra.mxu2 %v6633_v48  ;;  %1966 = vmatpush.msra.mxu3 %v6636_v15  ;;  %v1354_v12 = vand.u32 2147483648, %v6561_v27  ;;  %vm6678_vm4 = vmor %vm1333_vm3, %vm1334_vm5  ;;  %9186 = vst [vmem:[#allocation15_spill] sm:$0xff] %v6687_v44  ;;  %v6716_v46 = vld [vmem:[#allocation4 + $0xb8] sm:$0xff] }
 0x1b9   :  { %1886 = vmatpush.msra.mxu0 %v6640_v10  ;;  %1913 = vmatpush.msra.mxu1 %v6643_v28  ;;  %v1347_v40 = vadd.f32 %v6596_v39, %v1346_v6  ;;  %vm1348_vm8 = vweird.f32 %v6561_v27  ;;  %v1352_v36 = vand.u32 2147483647, %v6561_v27  ;;  %v1340_v19 = vor.u32 1.1754944e-38, %v1339_v24  ;;  %9187 = vst [vmem:[#allocation16_spill] sm:$0xff] %v6695_v20  ;;  %v6698_v27 = vld [vmem:[#allocation4 + $0x60] sm:$0xff]  ;;  %v6719_v6 = vld [vmem:[#allocation4 + $0xd8] sm:$0xff] }
 0x1ba   :  { %v6646_v25 = vadd.f32 %v1367_v60, %v1365_v58  ;;  %5205 = vtanh.f32 %v6631_v59  ;;  %v1331_v42 = vmul.f32 %v6608_v22, %v1330_v3  ;;  %1940 = vmatpush.msra.mxu2 %v6651_v41  ;;  %1967 = vmatpush.msra.mxu3 %v6654_v43  ;;  %vm1350_vm6 = vmor %vm1348_vm8, %vm1349_vm7  ;;  %9188 = vst [vmem:[#allocation17_spill] sm:$0xff] %v6698_v27  ;;  %vm1338_vm9 = vcmp.eq.f32.partialorder %v1337_v31, 8.507059e+37  ;;  %v6722_v58 = vld [vmem:[#allocation4 + $0xf8] sm:$0xff]  ;;  %v6725_v3 = vld [vmem:[#allocation4 + $0x90] sm:$0xff] }
 0x1bb   :  { %1887 = vmatpush.msra.mxu0 %v6660_v4  ;;  %1914 = vmatpush.msra.mxu1 %v6663_v49  ;;  %v1351_v63 = vsel %vm1350_vm6, %v6596_v39, %v1347_v40  ;;  %v1355_v53 = vor.u32 1.1754944e-38, %v1354_v12  ;;  %vm1353_vm10 = vcmp.eq.f32.partialorder %v1352_v36, 8.507059e+37  ;;  %v6713_v39 = vld [vmem:[#allocation4 + $0x98] sm:$0xff]  ;;  %9191 = vst [vmem:[#allocation20_spill] sm:$0xff] %v6716_v46  ;;  %v6728_v24 = vld [vmem:[#allocation4 + $0xb0] sm:$0xff]  ;;  %v6737_v40 = vld [vmem:[#allocation4 + $0x88] sm:$0xff] }
 0x1bc   :  { %5207 = vtanh.f32 %v6646_v25  ;;  %v1332_v50 = vadd.f32 %v6608_v22, %v1331_v42  ;;  %1941 = vmatpush.msra.mxu2 %v6670_v23  ;;  %1968 = vmatpush.msra.mxu3 %v6673_v57  ;;  %9190 = vst [vmem:[#allocation19_spill] sm:$0xff] %v6713_v39  ;;  %v6731_v42 = vld [vmem:[#allocation4 + $0xd0] sm:$0xff]  ;;  %v6743_v12 = vld [vmem:[#allocation4 + $0xc8] sm:$0xff]  ;;  %v6749_v36 = vld [vmem:[#allocation4 + $0x80] sm:$0xff] }
 0x1bd   :  { %1888 = vmatpush.msra.mxu0 %v6684_v47  ;;  %1915 = vmatpush.msra.mxu1 %v6687_v44  ;;  %v1356_v37 = vsel %vm1353_vm10, %v1355_v53, %v1351_v63  ;;  %9192 = vst [vmem:[#allocation21_spill] sm:$0xff] %v6719_v6  ;;  %v6734_v31 = vld [vmem:[#allocation4 + $0xf0] sm:$0xff]  ;;  %v6758_v63 = vld [vmem:[#allocation4 + $0xe0] sm:$0xff] }
 0x1be   :  { %v1336_v8 = vsel %vm6678_vm4, %v6608_v22, %v1332_v50  ;;  %1942 = vmatpush.msra.mxu2 %v6695_v20  ;;  %1969 = vmatpush.msra.mxu3 %v6698_v27  ;;  %9193 = vst [vmem:[#allocation22_spill] sm:$0xff] %v6722_v58  ;;  %v6740_v50 = vld [vmem:[#allocation4 + $0xa8] sm:$0xff] }
 0x1bf   :  { %v1341_v33 = vsel %vm1338_vm9, %v1340_v19, %v1336_v8  ;;  %9194 = vst [vmem:[#allocation33_spill] sm:$0xff] %v6725_v3  ;;  %v6752_v8 = vld [vmem:[#allocation4 + $0xa0] sm:$0xff] }
 0x1c0   :  { %v5206_v56 = vpop.eup %5205  ;;  %9195 = vst [vmem:[#allocation31_spill] sm:$0xff] %v6728_v24  ;;  %v6755_v19 = vld [vmem:[#allocation4 + $0xc0] sm:$0xff] }
 0x1c1   :  { %v1372_v22 = vmul.f32 %v5206_v56, %v1341_v33  ;;  %9196 = vst [vmem:[#allocation32_spill] sm:$0xff] %v6731_v42 }
 0x1c2   :  { %v5208_v60 = vpop.eup %5207  ;;  %9197 = vst [vmem:[#allocation34_spill] sm:$0xff] %v6734_v31 }
 0x1c3   :  { %v1373_v14 = vmul.f32 %v5208_v60, %v1356_v37  ;;  %v1622_v34 = vrot.slane %v1372_v22, 1  ;;  %9198 = vst [vmem:[#allocation35_spill] sm:$0xff] %v6737_v40 }
 0x1c4   :  { %9199 = vst [vmem:[#allocation36_spill] sm:$0xff] %v6740_v50 }
 0x1c5   :  { %v6703_v29 = vsel %vm892_vm11, %v1373_v14, %v1622_v34  ;;  %9200 = vst [vmem:[#allocation39_spill] sm:$0xff] %v6743_v12 }
 0x1c6   :  { %9189 = vst [vmem:[#allocation18_spill] sm:$0xff] %v6703_v29  ;;  %4935 = vmatmul.msk.f32.vlgmr.msrb.gmra.mxu0 %vm117_vm0, %v6703_v29  ;;  %4936 = vmatmul.msk.f32.vlgmr.msrb.gmra.mxu1 %vm117_vm0, %v6703_v29 }
 0x1c7   :  { %4937 = vmatmul.msk.f32.vlgmr.msrb.gmra.mxu2 %vm117_vm0, %v6703_v29  ;;  %4938 = vmatmul.msk.f32.vlgmr.msrb.gmra.mxu3 %vm117_vm0, %v6703_v29  ;;  %9201 = vst [vmem:[#allocation40_spill] sm:$0xff] %v6746_v16 }
 0x1c8   :  { %2132 = vmatpush.msrb.mxu0 %v6713_v39  ;;  %2159 = vmatpush.msrb.mxu1 %v6716_v46  ;;  %9202 = vst [vmem:[#allocation41_spill] sm:$0xff] %v6749_v36 }
 0x1c9   :  { %2186 = vmatpush.msrb.mxu2 %v6719_v6  ;;  %2213 = vmatpush.msrb.mxu3 %v6722_v58  ;;  %9203 = vst [vmem:[#allocation42_spill] sm:$0xff] %v6752_v8 }
 0x1ca   :  { %2133 = vmatpush.msrb.mxu0 %v6725_v3  ;;  %2160 = vmatpush.msrb.mxu1 %v6728_v24  ;;  %9204 = vst [vmem:[#allocation43_spill] sm:$0xff] %v6755_v19 }
 0x1cb   :  { %2187 = vmatpush.msrb.mxu2 %v6731_v42  ;;  %2214 = vmatpush.msrb.mxu3 %v6734_v31  ;;  %9205 = vst [vmem:[#allocation44_spill] sm:$0xff] %v6758_v63 }
 0x1cc   :  { %2134 = vmatpush.msrb.mxu0 %v6737_v40  ;;  %2161 = vmatpush.msrb.mxu1 %v6740_v50 }
 0x1cd   :  { %2188 = vmatpush.msrb.mxu2 %v6743_v12  ;;  %2215 = vmatpush.msrb.mxu3 %v6746_v16 }
 0x1ce   :  { %2135 = vmatpush.msrb.mxu0 %v6749_v36  ;;  %2162 = vmatpush.msrb.mxu1 %v6752_v8 }
 0x1cf   :  { %2189 = vmatpush.msrb.mxu2 %v6755_v19  ;;  %2216 = vmatpush.msrb.mxu3 %v6758_v63 }
 0x232   :  { %v1397_v56 = vpop.f32.mrf.mxu0  ;;  %v1424_v33 = vpop.f32.mrf.mxu1 }
 0x233   :  { %v1401_v53 = vrot.slane %v1397_v56, 6  ;;  %v1402_v22 = vrot.slane %v1397_v56, 7  ;;  %v1428_v60 = vrot.slane %v1424_v33, 6  ;;  %v1429_v37 = vrot.slane %v1424_v33, 7 }
 0x235   :  { %v1405_v14 = vadd.f32 %v1401_v53, %v9154_v11  ;;  %v1406_v34 = vadd.f32 %v1402_v22, %v9152_v7  ;;  %v1432_v29 = vadd.f32 %v1428_v60, %v9155_v0  ;;  %v1433_v45 = vadd.f32 %v1429_v37, %v9153_v55 }
 0x237   :  { %v4929_v35 = vmul.f32 -1.442695, %v1405_v14  ;;  %v4930_v9 = vmul.f32 -1.442695, %v1406_v34  ;;  %v4931_v19 = vmul.f32 -1.442695, %v1432_v29 }
 0x238   :  { %v4932_v8 = vmul.f32 -1.442695, %v1433_v45 }
 0x239   :  { %5209 = vpow2.f32 %v4929_v35  ;;  %v1451_v63 = vpop.f32.mrf.mxu2  ;;  %v1478_v36 = vpop.f32.mrf.mxu3 }
 0x23a   :  { %5211 = vpow2.f32 %v4930_v9  ;;  %v1455_v16 = vrot.slane %v1451_v63, 6  ;;  %v1482_v56 = vrot.slane %v1478_v36, 6  ;;  %v1483_v33 = vrot.slane %v1478_v36, 7 }
 0x23b   :  { %5213 = vpow2.f32 %v4931_v19  ;;  %v1456_v37 = vrot.slane %v1451_v63, 7 }
 0x23c   :  { %5215 = vpow2.f32 %v4932_v8  ;;  %v1459_v53 = vadd.f32 %v1455_v16, %v9159_v61  ;;  %v1486_v22 = vadd.f32 %v1482_v56, %v9158_v5  ;;  %v1487_v60 = vadd.f32 %v1483_v33, %v9157_v2 }
 0x23d   :  { %v1460_v8 = vadd.f32 %v1456_v37, %v9156_v1 }
 0x23e   :  { %v4933_v14 = vmul.f32 -1.442695, %v1486_v22  ;;  %5217 = vtanh.f32 %v1459_v53  ;;  %v4934_v45 = vmul.f32 -1.442695, %v1487_v60 }
 0x23f   :  { %v5210_v34 = vpop.eup %5209 }
 0x240   :  { %v5212_v35 = vpop.eup %5211  ;;  %v6768_v29 = vadd.f32 1.0, %v5210_v34  ;;  %5219 = vpow2.f32 %v4933_v14 }
 0x241   :  { %v5214_v9 = vpop.eup %5213  ;;  %v6770_v55 = vadd.f32 1.0, %v5212_v35  ;;  %5221 = vpow2.f32 %v4934_v45 }
 0x242   :  { %v5216_v36 = vpop.eup %5215  ;;  %5223 = vrcp.f32 %v6768_v29  ;;  %v6773_v16 = vadd.f32 1.0, %v5214_v9  ;;  %v1507_v63 = vand.u32 2147483648, %v6768_v29  ;;  %v1505_v60 = vand.u32 2147483647, %v6768_v29 }
 0x243   :  { %5225 = vrcp.f32 %v6770_v55  ;;  %v6777_v19 = vadd.f32 1.0, %v5216_v36  ;;  %v1643_v33 = vpop.f32.mrf.mxu0  ;;  %v1520_v45 = vand.u32 2147483647, %v6770_v55  ;;  %vm1501_vm12 = vweird.f32 %v6768_v29  ;;  %v1670_v12 = vpop.f32.mrf.mxu1 }
 0x244   :  { %5227 = vrcp.f32 %v6773_v16  ;;  %v1545_v56 = vand.u32 2147483648, %v6773_v16  ;;  %v6782_v53 = vpop.eup %5217  ;;  %v1508_v9 = vor.u32 1.1754944e-38, %v1507_v63  ;;  %v1647_v1 = vrot.slane %v1643_v33, 6 }
 0x245   :  { %5229 = vrcp.f32 %v6777_v19  ;;  %v1560_v22 = vand.u32 2147483648, %v6777_v19  ;;  %vm1516_vm15 = vweird.f32 %v6770_v55  ;;  %v1522_v61 = vand.u32 2147483648, %v6770_v55 }
 0x246   :  { %v5220_v37 = vpop.eup %5219  ;;  %5231 = vtanh.f32 %v1460_v8  ;;  %v6793_v5 = vor.u32 1.1754944e-38, %v1545_v56  ;;  %v1543_v14 = vand.u32 2147483647, %v6773_v16  ;;  %vm1539_vm13 = vweird.f32 %v6773_v16 }
 0x247   :  { %v5222_v35 = vpop.eup %5221  ;;  %v6791_v36 = vadd.f32 1.0, %v5220_v37  ;;  %v6802_v63 = vor.u32 1.1754944e-38, %v1560_v22  ;;  %vm6804_vm14 = vcmp.eq.f32.partialorder %v1505_v60, 8.507059e+37  ;;  %v1558_v56 = vand.u32 2147483647, %v6777_v19 }
 0x248   :  { %v5224_v2 = vpop.eup %5223  ;;  %v6798_v34 = vadd.f32 1.0, %v5222_v35  ;;  %vm1554_vm2 = vweird.f32 %v6777_v19  ;;  %vm6811_vm7 = vcmp.eq.f32.partialorder %v1520_v45, 8.507059e+37  ;;  %v1648_v22 = vrot.slane %v1643_v33, 7 }
 0x249   :  { %v5226_v0 = vpop.eup %5225  ;;  %v1497_v8 = vmul.f32 %v5224_v2, %v6768_v29  ;;  %vm1502_vm1 = vweird.f32 %v5224_v2  ;;  %5233 = vrcp.f32 %v6791_v36  ;;  %v1651_v31 = vadd.f32 %v1647_v1, %v9161_v18 }
 0x24a   :  { %v5228_v7 = vpop.eup %5227  ;;  %v1512_v11 = vmul.f32 %v5226_v0, %v6770_v55  ;;  %vm1517_vm5 = vweird.f32 %v5226_v0  ;;  %5235 = vrcp.f32 %v6798_v34  ;;  %v1652_v3 = vadd.f32 %v1648_v22, %v9160_v51  ;;  %vm1503_vm8 = vmor %vm1501_vm12, %vm1502_vm1 }
 0x24b   :  { %v5230_v60 = vpop.eup %5229  ;;  %v1498_v50 = vsub.f32 1.0, %v1497_v8  ;;  %v1535_v40 = vmul.f32 %v5228_v7, %v6773_v16  ;;  %vm1540_vm3 = vweird.f32 %v5228_v7  ;;  %v4939_v46 = vmul.f32 -1.442695, %v1651_v31  ;;  %vm1518_vm6 = vmor %vm1516_vm15, %vm1517_vm5 }
 0x24c   :  { %v5232_v42 = vpop.eup %5231  ;;  %v1513_v24 = vsub.f32 1.0, %v1512_v11  ;;  %v1550_v45 = vmul.f32 %v5230_v60, %v6777_v19  ;;  %v1674_v33 = vrot.slane %v1670_v12, 6  ;;  %v4940_v8 = vmul.f32 -1.442695, %v1652_v3  ;;  %vm1541_vm9 = vmor %vm1539_vm13, %vm1540_vm3 }
 0x24d   :  { %v1536_v58 = vsub.f32 1.0, %v1535_v40  ;;  %v1499_v6 = vmul.f32 %v5224_v2, %v1498_v50  ;;  %v1675_v20 = vrot.slane %v1670_v12, 7  ;;  %vm1555_vm4 = vweird.f32 %v5230_v60 }
 0x24e   :  { %v1551_v39 = vsub.f32 1.0, %v1550_v45  ;;  %v1514_v27 = vmul.f32 %v5226_v0, %v1513_v24  ;;  %5237 = vpow2.f32 %v4939_v46  ;;  %v1678_v31 = vadd.f32 %v1674_v33, %v9164_v52  ;;  %vm1556_vm12 = vmor %vm1554_vm2, %vm1555_vm4  ;;  %v1724_v45 = vpop.f32.mrf.mxu3 }
 0x24f   :  { %v1537_v44 = vmul.f32 %v5228_v7, %v1536_v58  ;;  %v1500_v47 = vadd.f32 %v5224_v2, %v1499_v6  ;;  %v6821_v1 = vpop.eup %5233  ;;  %5239 = vpow2.f32 %v4940_v8  ;;  %v1523_v6 = vor.u32 1.1754944e-38, %v1522_v61 }
 0x250   :  { %v1552_v11 = vmul.f32 %v5230_v60, %v1551_v39  ;;  %v1515_v22 = vadd.f32 %v5226_v0, %v1514_v27  ;;  %v6827_v40 = vpop.eup %5235  ;;  %v1679_v58 = vadd.f32 %v1675_v20, %v9169_v32  ;;  %vm1544_vm10 = vcmp.eq.f32.partialorder %v1543_v14, 8.507059e+37 }
 0x251   :  { %v1504_v24 = vsel %vm1503_vm8, %v5224_v2, %v1500_v47  ;;  %v1538_v46 = vadd.f32 %v5228_v7, %v1537_v44  ;;  %vm1559_vm15 = vcmp.eq.f32.partialorder %v1558_v56, 8.507059e+37  ;;  %v1575_v61 = vmul.f32 %v6821_v1, %v6791_v36  ;;  %v1697_v47 = vpop.f32.mrf.mxu2 }
 0x252   :  { %v1509_v27 = vsel %vm6804_vm14, %v1508_v9, %v1504_v24  ;;  %v1519_v39 = vsel %vm1518_vm6, %v5226_v0, %v1515_v22  ;;  %v1553_v3 = vadd.f32 %v5230_v60, %v1552_v11  ;;  %v4941_v50 = vmul.f32 -1.442695, %v1678_v31 }
 0x253   :  { %v1524_v55 = vsel %vm6811_vm7, %v1523_v6, %v1519_v39  ;;  %v1542_v2 = vsel %vm1541_vm9, %v5228_v7, %v1538_v46  ;;  %v1612_v0 = vmul.f32 %v6782_v53, %v1509_v27  ;;  %v9210_v16 = vrot.slane %v6497_v26, 7 }
 0x254   :  { %v1547_v44 = vsel %vm1544_vm10, %v6793_v5, %v1542_v2  ;;  %v1557_v20 = vsel %vm1556_vm12, %v5230_v60, %v1553_v3  ;;  %v5238_v12 = vpop.eup %5237  ;;  %v1613_v14 = vmul.f32 %v5232_v42, %v1524_v55  ;;  %v4942_v9 = vmul.f32 -1.442695, %v1679_v58 }
 0x255   :  { %v1562_v29 = vsel %vm1559_vm15, %v6802_v63, %v1557_v20  ;;  %v1610_v19 = vmul.f32 %v9210_v16, %v1547_v44  ;;  %v5240_v7 = vpop.eup %5239  ;;  %v9211_v37 = vrot.slane %v6484_v13, 7  ;;  %v6852_v35 = vadd.f32 1.0, %v5238_v12 }
 0x256   :  { %5241 = vpow2.f32 %v4941_v50  ;;  %v1701_v5 = vrot.slane %v1697_v47, 6  ;;  %v6856_v53 = vmul.f32 %v6827_v40, %v6798_v34  ;;  %v6858_v60 = vadd.f32 1.0, %v5240_v7 }
 0x257   :  { %v1611_v56 = vmul.f32 %v9211_v37, %v1562_v29  ;;  %5243 = vpow2.f32 %v4942_v9  ;;  %v1702_v63 = vrot.slane %v1697_v47, 7  ;;  %v6860_v26 = vadd.f32 %v1612_v0, %v1610_v19 }
 0x258   :  { %5245 = vrcp.f32 %v6852_v35  ;;  %v1576_v8 = vsub.f32 1.0, %v1575_v61  ;;  %v1705_v11 = vadd.f32 %v1701_v5, %v6049_v30  ;;  %v1753_v22 = vand.u32 2147483648, %v6852_v35 }
 0x259   :  { %v6864_v13 = vadd.f32 %v1613_v14, %v1611_v56  ;;  %v1591_v31 = vsub.f32 1.0, %v6856_v53  ;;  %5247 = vrcp.f32 %v6858_v60  ;;  %v1706_v24 = vadd.f32 %v1702_v63, %v9170_v54 }
 0x25a   :  { %v1751_v6 = vand.u32 2147483647, %v6852_v35  ;;  %5249 = vtanh.f32 %v6860_v26  ;;  %v1768_v58 = vand.u32 2147483648, %v6858_v60  ;;  %v1728_v27 = vrot.slane %v1724_v45, 6 }
 0x25b   :  { %v1729_v39 = vrot.slane %v1724_v45, 7  ;;  %5251 = vtanh.f32 %v6864_v13  ;;  %vm1747_vm13 = vweird.f32 %v6852_v35  ;;  %v1766_v2 = vand.u32 2147483647, %v6858_v60 }
 0x25c   :  { %v5242_v46 = vpop.eup %5241  ;;  %v1754_v44 = vor.u32 1.1754944e-38, %v1753_v22  ;;  %5253 = vtanh.f32 %v1705_v11  ;;  %v1732_v20 = vadd.f32 %v1728_v27, %v9171_v17  ;;  %vm6886_vm1 = vcmp.eq.f32.partialorder %v1751_v6, 8.507059e+37 }
 0x25d   :  { %v5244_v3 = vpop.eup %5243  ;;  %v6876_v55 = vadd.f32 1.0, %v5242_v46  ;;  %v1733_v29 = vadd.f32 %v1729_v39, %v6172_v62  ;;  %vm1762_vm14 = vweird.f32 %v6858_v60  ;;  %v6894_v19 = vor.u32 1.1754944e-38, %v1768_v58 }
 0x25e   :  { %v5246_v61 = vpop.eup %5245  ;;  %v6880_v47 = vadd.f32 1.0, %v5244_v3  ;;  %v1577_v14 = vmul.f32 %v6821_v1, %v1576_v8  ;;  %vm1579_vm5 = vweird.f32 %v6791_v36  ;;  %v4943_v45 = vmul.f32 -1.442695, %v1732_v20 }
 0x25f   :  { %v1743_v0 = vmul.f32 %v5246_v61, %v6852_v35  ;;  %5255 = vrcp.f32 %v6876_v55  ;;  %v1791_v50 = vand.u32 2147483648, %v6876_v55  ;;  %v6897_v9 = vpop.eup %5247  ;;  %vm1748_vm2 = vweird.f32 %v5246_v61 }
 0x260   :  { %5257 = vrcp.f32 %v6880_v47  ;;  %v1806_v16 = vand.u32 2147483648, %v6880_v47  ;;  %v6900_v37 = vpop.eup %5249  ;;  %v1758_v56 = vmul.f32 %v6897_v9, %v6858_v60  ;;  %v1789_v63 = vand.u32 2147483647, %v6876_v55  ;;  %vm6923_vm6 = vmor %vm1747_vm13, %vm1748_vm2 }
 0x261   :  { %v1744_v7 = vsub.f32 1.0, %v1743_v0  ;;  %5259 = vtanh.f32 %v1706_v24  ;;  %v6904_v5 = vor.u32 1.1754944e-38, %v1791_v50  ;;  %v6907_v11 = vpop.eup %5251  ;;  %vm1785_vm7 = vweird.f32 %v6876_v55 }
 0x262   :  { %v6910_v8 = vor.u32 1.1754944e-38, %v1806_v16  ;;  %vm6912_vm3 = vcmp.eq.f32.partialorder %v1766_v2, 8.507059e+37  ;;  %v1804_v6 = vand.u32 2147483647, %v6880_v47  ;;  %v4944_v46 = vmul.f32 -1.442695, %v1733_v29  ;;  %v5254_v58 = vpop.eup %5253 }
 0x263   :  { %v1745_v22 = vmul.f32 %v5246_v61, %v1744_v7  ;;  %v1759_v27 = vsub.f32 1.0, %v1758_v56  ;;  %5261 = vpow2.f32 %v4943_v45  ;;  %v1578_v39 = vadd.f32 %v6821_v1, %v1577_v14 }
 0x264   :  { %vm1580_vm4 = vweird.f32 %v6821_v1  ;;  %vm1800_vm8 = vweird.f32 %v6880_v47  ;;  %5263 = vpow2.f32 %v4944_v46  ;;  %v1583_v0 = vand.u32 2147483647, %v6791_v36 }
 0x265   :  { %v5256_v3 = vpop.eup %5255  ;;  %v1746_v20 = vadd.f32 %v5246_v61, %v1745_v22  ;;  %v1585_v50 = vand.u32 2147483648, %v6791_v36  ;;  %v1760_v14 = vmul.f32 %v6897_v9, %v1759_v27  ;;  %vm1763_vm9 = vweird.f32 %v6897_v9  ;;  %vm6938_vm12 = vmor %vm1579_vm5, %vm1580_vm4 }
 0x266   :  { %v5258_v29 = vpop.eup %5257  ;;  %v1781_v16 = vmul.f32 %v5256_v3, %v6876_v55  ;;  %vm6932_vm10 = vcmp.eq.f32.partialorder %v1789_v63, 8.507059e+37  ;;  %vm1786_vm15 = vweird.f32 %v5256_v3  ;;  %vm6945_vm13 = vcmp.eq.f32.partialorder %v1804_v6, 8.507059e+37  ;;  %vm6957_vm5 = vmor %vm1762_vm14, %vm1763_vm9 }
 0x267   :  { %v5260_v56 = vpop.eup %5259  ;;  %v1796_v45 = vmul.f32 %v5258_v29, %v6880_v47  ;;  %v1750_v22 = vsel %vm6923_vm6, %v5246_v61, %v1746_v20  ;;  %v1582_v63 = vsel %vm6938_vm12, %v6821_v1, %v1578_v39  ;;  %vm1801_vm2 = vweird.f32 %v5258_v29  ;;  %vm6979_vm6 = vmor %vm1785_vm7, %vm1786_vm15 }
 0x268   :  { %v1782_v36 = vsub.f32 1.0, %v1781_v16  ;;  %v1755_v27 = vsel %vm6886_vm1, %v1754_v44, %v1750_v22  ;;  %v1761_v33 = vadd.f32 %v6897_v9, %v1760_v14  ;;  %vm6961_vm4 = vcmp.eq.f32.partialorder %v1583_v0, 8.507059e+37  ;;  %vm1802_vm7 = vmor %vm1800_vm8, %vm1801_vm2 }
 0x269   :  { %v1797_v42 = vsub.f32 1.0, %v1796_v45  ;;  %v1586_v20 = vor.u32 1.1754944e-38, %v1585_v50  ;;  %v1592_v1 = vmul.f32 %v6827_v40, %v1591_v31  ;;  %v5262_v12 = vpop.eup %5261  ;;  %v1858_v60 = vmul.f32 %v5254_v58, %v1755_v27 }
 0x26a   :  { %v1783_v44 = vmul.f32 %v5256_v3, %v1782_v36  ;;  %v1765_v39 = vsel %vm6957_vm5, %v6897_v9, %v1761_v33  ;;  %vm1595_vm1 = vweird.f32 %v6827_v40  ;;  %v5264_v2 = vpop.eup %5263  ;;  %v6972_v0 = vadd.f32 1.0, %v5262_v12 }
 0x26b   :  { %v1798_v16 = vmul.f32 %v5258_v29, %v1797_v42  ;;  %v1593_v14 = vadd.f32 %v6827_v40, %v1592_v1  ;;  %vm1594_vm14 = vweird.f32 %v6798_v34  ;;  %v1770_v33 = vsel %vm6912_vm3, %v6894_v19, %v1765_v39 }
 0x26c   :  { %v1784_v31 = vadd.f32 %v5256_v3, %v1783_v44  ;;  %v6986_v9 = vadd.f32 1.0, %v5264_v2  ;;  %v1598_v42 = vand.u32 2147483647, %v6798_v34  ;;  %5265 = vrcp.f32 %v6972_v0  ;;  %vm6992_vm9 = vmor %vm1594_vm14, %vm1595_vm1 }
 0x26d   :  { %v1799_v58 = vadd.f32 %v5258_v29, %v1798_v16  ;;  %v1587_v50 = vsel %vm6961_vm4, %v1586_v20, %v1582_v63  ;;  %v1600_v35 = vand.u32 2147483648, %v6798_v34  ;;  %v1597_v24 = vsel %vm6992_vm9, %v6827_v40, %v1593_v14 }
 0x26e   :  { %v1788_v19 = vsel %vm6979_vm6, %v5256_v3, %v1784_v31  ;;  %5267 = vrcp.f32 %v6986_v9  ;;  %v1618_v45 = vmul.f32 %v6900_v37, %v1587_v50  ;;  %v1859_v63 = vmul.f32 %v5260_v56, %v1770_v33  ;;  %v9238_v50 = vld [vmem:[#allocation17_spill] sm:$0xff] }
 0x26f   :  { %v1793_v22 = vsel %vm6932_vm10, %v6904_v5, %v1788_v19  ;;  %v1803_v34 = vsel %vm1802_vm7, %v5258_v29, %v1799_v58  ;;  %v1601_v36 = vor.u32 1.1754944e-38, %v1600_v35  ;;  %v9232_v3 = vrot.slane %v6631_v59, 7  ;;  %v9236_v58 = vld [vmem:[#allocation15_spill] sm:$0xff]  ;;  %v9243_v35 = vld [vmem:[#allocation22_spill] sm:$0xff]  ;;  %v9244_v19 = vld [vmem:[#allocation33_spill] sm:$0xff] }
 0x270   :  { %v1808_v47 = vsel %vm6945_vm13, %v6910_v8, %v1803_v34  ;;  %vm1599_vm3 = vcmp.eq.f32.partialorder %v1598_v42, 8.507059e+37  ;;  %v9233_v61 = vrot.slane %v6646_v25, 7  ;;  %v1868_v5 = vrot.slane %v1618_v45, 2  ;;  %v9246_v45 = vld [vmem:[#allocation32_spill] sm:$0xff]  ;;  %v9248_v34 = vld [vmem:[#allocation35_spill] sm:$0xff] }
 0x271   :  { %v1856_v27 = vmul.f32 %v9232_v3, %v1793_v22  ;;  %v1602_v6 = vsel %vm1599_vm3, %v1601_v36, %v1597_v24  ;;  %v1829_v39 = vand.u32 2147483647, %v6972_v0  ;;  %v1844_v16 = vand.u32 2147483647, %v6986_v9  ;;  %v9245_v24 = vld [vmem:[#allocation31_spill] sm:$0xff]  ;;  %v9247_v22 = vld [vmem:[#allocation34_spill] sm:$0xff] }
 0x272   :  { %v1857_v40 = vmul.f32 %v9233_v61, %v1808_v47  ;;  %v1619_v7 = vmul.f32 %v6907_v11, %v1602_v6  ;;  %v5266_v29 = vpop.eup %5265  ;;  %v1831_v11 = vand.u32 2147483648, %v6972_v0  ;;  %vm1825_vm12 = vweird.f32 %v6972_v0  ;;  %v9250_v36 = vld [vmem:[#allocation39_spill] sm:$0xff]  ;;  %v9251_v47 = vld [vmem:[#allocation40_spill] sm:$0xff]  ;;  %v9252_v3 = vld [vmem:[#allocation41_spill] sm:$0xff] }
 0x273   :  { %v7017_v37 = vadd.f32 %v1858_v60, %v1856_v27  ;;  %v1821_v46 = vmul.f32 %v5266_v29, %v6972_v0  ;;  %vm1826_vm8 = vweird.f32 %v5266_v29  ;;  %v1846_v60 = vand.u32 2147483648, %v6986_v9  ;;  %v9253_v27 = vld [vmem:[#allocation42_spill] sm:$0xff]  ;;  %v9254_v61 = vld [vmem:[#allocation43_spill] sm:$0xff] }
 0x274   :  { %v7020_v56 = vadd.f32 %v1859_v63, %v1857_v40  ;;  %v5268_v20 = vpop.eup %5267  ;;  %v1869_v8 = vrot.slane %v1619_v7, 1  ;;  %vm1827_vm15 = vmor %vm1825_vm12, %vm1826_vm8  ;;  %v1832_v33 = vor.u32 1.1754944e-38, %v1831_v11  ;;  %vm1840_vm13 = vweird.f32 %v6986_v9  ;;  %v9249_v63 = vld [vmem:[#allocation36_spill] sm:$0xff] }
 0x275   :  { %5269 = vtanh.f32 %v7017_v37  ;;  %v1836_v59 = vmul.f32 %v5268_v20, %v6986_v9  ;;  %v1822_v25 = vsub.f32 1.0, %v1821_v46  ;;  %vm1841_vm10 = vweird.f32 %v5268_v20  ;;  %v9235_v9 = vld [vmem:[#allocation14_spill] sm:$0xff]  ;;  %v9255_v40 = vld [vmem:[#allocation44_spill] sm:$0xff] }
 0x276   :  { %5271 = vtanh.f32 %v7020_v56  ;;  %v7027_v1 = vsel %vm892_vm11, %v1869_v8, %v1868_v5  ;;  %vm1830_vm2 = vcmp.eq.f32.partialorder %v1829_v39, 8.507059e+37  ;;  %vm1842_vm5 = vmor %vm1840_vm13, %vm1841_vm10  ;;  %vm1845_vm4 = vcmp.eq.f32.partialorder %v1844_v16, 8.507059e+37  ;;  %v9256_v8 = vld [vmem:[#allocation23_spill] sm:$0xff]  ;;  %v9258_v11 = vld [vmem:[#allocation24_spill] sm:$0xff] }
 0x277   :  { %9234 = vst [vmem:[#allocation45_spill] sm:$0xff] %v7027_v1  ;;  %v1837_v12 = vsub.f32 1.0, %v1836_v59  ;;  %4945 = vmatmul.msk.f32.vlgmr.msra.gmra.mxu0 %vm117_vm0, %v7027_v1  ;;  %4946 = vmatmul.msk.f32.vlgmr.msra.gmra.mxu1 %vm117_vm0, %v7027_v1  ;;  %v1823_v44 = vmul.f32 %v5266_v29, %v1822_v25  ;;  %v9257_v25 = vld [vmem:[#allocation25_spill] sm:$0xff]  ;;  %v9259_v39 = vld [vmem:[#allocation26_spill] sm:$0xff] }
 0x278   :  { %4947 = vmatmul.msk.f32.vlgmr.msra.gmra.mxu2 %vm117_vm0, %v7027_v1  ;;  %4948 = vmatmul.msk.f32.vlgmr.msra.gmra.mxu3 %vm117_vm0, %v7027_v1 }
 0x279   :  { %v1838_v2 = vmul.f32 %v5268_v20, %v1837_v12  ;;  %2379 = vmatpush.msra.mxu0 %v6623_v38  ;;  %2406 = vmatpush.msra.mxu1 %v6626_v21  ;;  %v1824_v14 = vadd.f32 %v5266_v29, %v1823_v44  ;;  %v1847_v21 = vor.u32 1.1754944e-38, %v1846_v60 }
 0x27a   :  { %2433 = vmatpush.msra.mxu2 %v6633_v48  ;;  %2460 = vmatpush.msra.mxu3 %v6636_v15 }
 0x27b   :  { %v5270_v53 = vpop.eup %5269  ;;  %v1839_v31 = vadd.f32 %v5268_v20, %v1838_v2  ;;  %2380 = vmatpush.msra.mxu0 %v6640_v10  ;;  %2407 = vmatpush.msra.mxu1 %v6643_v28  ;;  %v1828_v42 = vsel %vm1827_vm15, %v5266_v29, %v1824_v14 }
 0x27c   :  { %v5272_v38 = vpop.eup %5271  ;;  %2434 = vmatpush.msra.mxu2 %v6651_v41  ;;  %2461 = vmatpush.msra.mxu3 %v6654_v43  ;;  %v1833_v48 = vsel %vm1830_vm2, %v1832_v33, %v1828_v42  ;;  %v9237_v43 = vld [vmem:[#allocation16_spill] sm:$0xff] }
 0x27d   :  { %v1843_v15 = vsel %vm1842_vm5, %v5268_v20, %v1839_v31  ;;  %2381 = vmatpush.msra.mxu0 %v6660_v4  ;;  %2408 = vmatpush.msra.mxu1 %v6663_v49  ;;  %v1864_v0 = vmul.f32 %v5270_v53, %v1833_v48  ;;  %v9240_v49 = vld [vmem:[#allocation19_spill] sm:$0xff] }
 0x27e   :  { %v1848_v10 = vsel %vm1845_vm4, %v1847_v21, %v1843_v15  ;;  %2435 = vmatpush.msra.mxu2 %v6670_v23  ;;  %2462 = vmatpush.msra.mxu3 %v6673_v57  ;;  %v9241_v23 = vld [vmem:[#allocation20_spill] sm:$0xff]  ;;  %v9242_v57 = vld [vmem:[#allocation21_spill] sm:$0xff]  ;;  %v9260_v48 = vld [vmem:[#allocation27_spill] sm:$0xff] }
 0x27f   :  { %v1865_v28 = vmul.f32 %v5272_v38, %v1848_v10  ;;  %2382 = vmatpush.msra.mxu0 %v9235_v9  ;;  %2409 = vmatpush.msra.mxu1 %v9236_v58  ;;  %v2115_v41 = vrot.slane %v1864_v0, 2  ;;  %v9261_v10 = vld [vmem:[#allocation28_spill] sm:$0xff] }
 0x280   :  { %2436 = vmatpush.msra.mxu2 %v9237_v43  ;;  %2463 = vmatpush.msra.mxu3 %v9238_v50 }
 0x281   :  { %v2116_v55 = vrot.slane %v1865_v28, 1  ;;  %v9262_v28 = vld [vmem:[#allocation30_spill] sm:$0xff] }
 0x283   :  { %v7061_v4 = vsel %vm892_vm11, %v2116_v55, %v2115_v41 }
 0x284   :  { %9239 = vst [vmem:[#allocation14_spill] sm:$0xff] %v7061_v4  ;;  %4955 = vmatmul.msk.f32.vlgmr.msrb.gmra.mxu0 %vm117_vm0, %v7061_v4  ;;  %4956 = vmatmul.msk.f32.vlgmr.msrb.gmra.mxu1 %vm117_vm0, %v7061_v4 }
 0x285   :  { %4957 = vmatmul.msk.f32.vlgmr.msrb.gmra.mxu2 %vm117_vm0, %v7061_v4  ;;  %4958 = vmatmul.msk.f32.vlgmr.msrb.gmra.mxu3 %vm117_vm0, %v7061_v4 }
 0x286   :  { %2626 = vmatpush.msrb.mxu0 %v9240_v49  ;;  %2653 = vmatpush.msrb.mxu1 %v9241_v23 }
 0x287   :  { %2680 = vmatpush.msrb.mxu2 %v9242_v57  ;;  %2707 = vmatpush.msrb.mxu3 %v9243_v35 }
 0x288   :  { %2627 = vmatpush.msrb.mxu0 %v9244_v19  ;;  %2654 = vmatpush.msrb.mxu1 %v9245_v24 }
 0x289   :  { %2681 = vmatpush.msrb.mxu2 %v9246_v45  ;;  %2708 = vmatpush.msrb.mxu3 %v9247_v22  ;;  %v9263_v45 = vld [vmem:[#allocation29_spill] sm:$0xff] }
 0x28a   :  { %2628 = vmatpush.msrb.mxu0 %v9248_v34  ;;  %2655 = vmatpush.msrb.mxu1 %v9249_v63 }
 0x28b   :  { %2682 = vmatpush.msrb.mxu2 %v9250_v36  ;;  %2709 = vmatpush.msrb.mxu3 %v9251_v47  ;;  %v2099_v47 = vrot.slane %v6860_v26, 7 }
 0x28c   :  { %2629 = vmatpush.msrb.mxu0 %v9252_v3  ;;  %2656 = vmatpush.msrb.mxu1 %v9253_v27 }
 0x28d   :  { %2683 = vmatpush.msrb.mxu2 %v9254_v61  ;;  %2710 = vmatpush.msrb.mxu3 %v9255_v40  ;;  %v2100_v40 = vrot.slane %v6864_v13, 7  ;;  %v2346_v13 = vrot.slane %v7017_v37, 7 }
 0x2f4   :  { %v1890_v6 = vpop.f32.mrf.mxu0  ;;  %v1917_v7 = vpop.f32.mrf.mxu1 }
 0x2f5   :  { %v1894_v5 = vrot.slane %v1890_v6, 5  ;;  %v1895_v29 = vrot.slane %v1890_v6, 6  ;;  %v1921_v20 = vrot.slane %v1917_v7, 5  ;;  %v1922_v46 = vrot.slane %v1917_v7, 6 }
 0x2f7   :  { %v1898_v59 = vadd.f32 %v1894_v5, %v9256_v8  ;;  %v1899_v12 = vadd.f32 %v1895_v29, %v9257_v25  ;;  %v1925_v44 = vadd.f32 %v1921_v20, %v9258_v11  ;;  %v1926_v60 = vadd.f32 %v1922_v46, %v9259_v39 }
 0x2f9   :  { %v4949_v2 = vmul.f32 -1.442695, %v1898_v59  ;;  %v4950_v16 = vmul.f32 -1.442695, %v1899_v12  ;;  %v4951_v14 = vmul.f32 -1.442695, %v1925_v44 }
 0x2fa   :  { %v4952_v53 = vmul.f32 -1.442695, %v1926_v60 }
 0x2fb   :  { %5273 = vpow2.f32 %v4949_v2  ;;  %v1944_v33 = vpop.f32.mrf.mxu2  ;;  %v1971_v31 = vpop.f32.mrf.mxu3 }
 0x2fc   :  { %5275 = vpow2.f32 %v4950_v16  ;;  %v1948_v38 = vrot.slane %v1944_v33, 5  ;;  %v1975_v42 = vrot.slane %v1971_v31, 5  ;;  %v1976_v21 = vrot.slane %v1971_v31, 6 }
 0x2fd   :  { %5277 = vpow2.f32 %v4951_v14  ;;  %v1949_v58 = vrot.slane %v1944_v33, 6 }
 0x2fe   :  { %5279 = vpow2.f32 %v4952_v53  ;;  %v1952_v15 = vadd.f32 %v1948_v38, %v9260_v48  ;;  %v1979_v0 = vadd.f32 %v1975_v42, %v9261_v10  ;;  %v1980_v9 = vadd.f32 %v1976_v21, %v9262_v28 }
 0x2ff   :  { %v1953_v22 = vadd.f32 %v1949_v58, %v9263_v45 }
 0x300   :  { %v4953_v41 = vmul.f32 -1.442695, %v1979_v0  ;;  %5281 = vtanh.f32 %v1952_v15  ;;  %v4954_v50 = vmul.f32 -1.442695, %v1980_v9 }
 0x301   :  { %v5274_v43 = vpop.eup %5273  ;;  %v2137_v23 = vpop.f32.mrf.mxu0 }
 0x302   :  { %v5276_v55 = vpop.eup %5275  ;;  %v7094_v49 = vadd.f32 1.0, %v5274_v43  ;;  %5283 = vpow2.f32 %v4953_v41  ;;  %v2141_v63 = vrot.slane %v2137_v23, 5  ;;  %v2164_v36 = vpop.f32.mrf.mxu1  ;;  %v2142_v20 = vrot.slane %v2137_v23, 6 }
 0x303   :  { %v5278_v57 = vpop.eup %5277  ;;  %v7096_v35 = vadd.f32 1.0, %v5276_v55  ;;  %5285 = vpow2.f32 %v4954_v50  ;;  %v2168_v46 = vrot.slane %v2164_v36, 5  ;;  %v2169_v60 = vrot.slane %v2164_v36, 6 }
 0x304   :  { %v5280_v19 = vpop.eup %5279  ;;  %5287 = vrcp.f32 %v7094_v49  ;;  %v7099_v24 = vadd.f32 1.0, %v5278_v57  ;;  %v2000_v27 = vand.u32 2147483648, %v7094_v49  ;;  %v1998_v7 = vand.u32 2147483647, %v7094_v49 }
 0x305   :  { %5289 = vrcp.f32 %v7096_v35  ;;  %v7103_v34 = vadd.f32 1.0, %v5280_v19  ;;  %v2013_v29 = vand.u32 2147483647, %v7096_v35  ;;  %vm1994_vm1 = vweird.f32 %v7094_v49 }
 0x306   :  { %5291 = vrcp.f32 %v7099_v24  ;;  %v2038_v3 = vand.u32 2147483648, %v7099_v24  ;;  %v7109_v61 = vpop.eup %5281  ;;  %v2145_v44 = vadd.f32 %v2141_v63, %v9161_v18  ;;  %v2001_v14 = vor.u32 1.1754944e-38, %v2000_v27 }
 0x307   :  { %5293 = vrcp.f32 %v7103_v34  ;;  %v2053_v6 = vand.u32 2147483648, %v7103_v34  ;;  %vm2009_vm14 = vweird.f32 %v7096_v35  ;;  %v2015_v53 = vand.u32 2147483648, %v7096_v35 }
 0x308   :  { %v5284_v5 = vpop.eup %5283  ;;  %5295 = vtanh.f32 %v1953_v22  ;;  %v7120_v16 = vor.u32 1.1754944e-38, %v2038_v3  ;;  %vm2032_vm6 = vweird.f32 %v7099_v24  ;;  %vm7130_vm9 = vcmp.eq.f32.partialorder %v1998_v7, 8.507059e+37 }
 0x309   :  { %v5286_v59 = vpop.eup %5285  ;;  %v7117_v12 = vadd.f32 1.0, %v5284_v5  ;;  %v7128_v42 = vor.u32 1.1754944e-38, %v2053_v6  ;;  %v2036_v15 = vand.u32 2147483647, %v7099_v24  ;;  %v2051_v0 = vand.u32 2147483647, %v7103_v34 }
 0x30a   :  { %v5288_v2 = vpop.eup %5287  ;;  %v7124_v33 = vadd.f32 1.0, %v5286_v59  ;;  %vm2047_vm7 = vweird.f32 %v7103_v34  ;;  %vm7138_vm8 = vcmp.eq.f32.partialorder %v2013_v29, 8.507059e+37  ;;  %v2146_v43 = vadd.f32 %v2142_v20, %v9160_v51 }
 0x30b   :  { %v5290_v31 = vpop.eup %5289  ;;  %v1990_v38 = vmul.f32 %v5288_v2, %v7094_v49  ;;  %vm1995_vm3 = vweird.f32 %v5288_v2  ;;  %5297 = vrcp.f32 %v7117_v12  ;;  %v4959_v57 = vmul.f32 -1.442695, %v2145_v44 }
 0x30c   :  { %v5292_v9 = vpop.eup %5291  ;;  %v2005_v58 = vmul.f32 %v5290_v31, %v7096_v35  ;;  %vm2010_vm10 = vweird.f32 %v5290_v31  ;;  %5299 = vrcp.f32 %v7124_v33  ;;  %v4960_v36 = vmul.f32 -1.442695, %v2146_v43  ;;  %vm1996_vm13 = vmor %vm1994_vm1, %vm1995_vm3 }
 0x30d   :  { %v5294_v50 = vpop.eup %5293  ;;  %v1991_v55 = vsub.f32 1.0, %v1990_v38  ;;  %v2028_v23 = vmul.f32 %v5292_v9, %v7099_v24  ;;  %5301 = vpow2.f32 %v4959_v57  ;;  %v2172_v6 = vadd.f32 %v2168_v46, %v9164_v52  ;;  %vm2011_vm2 = vmor %vm2009_vm14, %vm2010_vm10 }
 0x30e   :  { %v5296_v19 = vpop.eup %5295  ;;  %v2006_v22 = vsub.f32 1.0, %v2005_v58  ;;  %v2043_v63 = vmul.f32 %v5294_v50, %v7103_v34  ;;  %5303 = vpow2.f32 %v4960_v36  ;;  %v2173_v29 = vadd.f32 %v2169_v60, %v9169_v32 }
 0x30f   :  { %v2029_v3 = vsub.f32 1.0, %v2028_v23  ;;  %v1992_v27 = vmul.f32 %v5288_v2, %v1991_v55  ;;  %vm2033_vm12 = vweird.f32 %v5292_v9  ;;  %v4961_v44 = vmul.f32 -1.442695, %v2172_v6 }
 0x310   :  { %v2044_v7 = vsub.f32 1.0, %v2043_v63  ;;  %v2007_v5 = vmul.f32 %v5290_v31, %v2006_v22  ;;  %vm2048_vm15 = vweird.f32 %v5294_v50  ;;  %v2016_v55 = vor.u32 1.1754944e-38, %v2015_v53  ;;  %vm2034_vm5 = vmor %vm2032_vm6, %vm2033_vm12 }
 0x311   :  { %v2030_v20 = vmul.f32 %v5292_v9, %v2029_v3  ;;  %v1993_v59 = vadd.f32 %v5288_v2, %v1992_v27  ;;  %v7149_v38 = vpop.eup %5297  ;;  %5305 = vpow2.f32 %v4961_v44  ;;  %v4962_v23 = vmul.f32 -1.442695, %v2173_v29  ;;  %vm2049_vm1 = vmor %vm2047_vm7, %vm2048_vm15 }
 0x312   :  { %v2045_v58 = vmul.f32 %v5294_v50, %v2044_v7  ;;  %v2008_v43 = vadd.f32 %v5290_v31, %v2007_v5  ;;  %v7157_v57 = vpop.eup %5299  ;;  %vm2037_vm4 = vcmp.eq.f32.partialorder %v2036_v15, 8.507059e+37  ;;  %vm2052_vm14 = vcmp.eq.f32.partialorder %v2051_v0, 8.507059e+37  ;;  %v2191_v15 = vpop.f32.mrf.mxu2 }
 0x313   :  { %v1997_v46 = vsel %vm1996_vm13, %v5288_v2, %v1993_v59  ;;  %v2031_v60 = vadd.f32 %v5292_v9, %v2030_v20  ;;  %v5302_v2 = vpop.eup %5301  ;;  %5307 = vpow2.f32 %v4962_v23  ;;  %v2195_v26 = vrot.slane %v2191_v15, 5 }
 0x314   :  { %v2002_v49 = vsel %vm7130_vm9, %v2001_v14, %v1997_v46  ;;  %v2012_v22 = vsel %vm2011_vm2, %v5290_v31, %v2008_v43  ;;  %v2046_v53 = vadd.f32 %v5294_v50, %v2045_v58  ;;  %v5304_v24 = vpop.eup %5303  ;;  %v7171_v31 = vadd.f32 1.0, %v5302_v2 }
 0x315   :  { %v2017_v35 = vsel %vm7138_vm8, %v2016_v55, %v2012_v22  ;;  %v2035_v63 = vsel %vm2034_vm5, %v5292_v9, %v2031_v60  ;;  %v2105_v36 = vmul.f32 %v7109_v61, %v2002_v49  ;;  %v7176_v6 = vadd.f32 1.0, %v5304_v24  ;;  %v2218_v22 = vpop.f32.mrf.mxu3 }
 0x316   :  { %v2040_v3 = vsel %vm2037_vm4, %v7120_v16, %v2035_v63  ;;  %v2050_v21 = vsel %vm2049_vm1, %v5294_v50, %v2046_v53  ;;  %v2106_v14 = vmul.f32 %v5296_v19, %v2017_v35  ;;  %v2068_v61 = vmul.f32 %v7149_v38, %v7117_v12 }
 0x317   :  { %v2055_v27 = vsel %vm2052_vm14, %v7128_v42, %v2050_v21  ;;  %v2103_v34 = vmul.f32 %v2099_v47, %v2040_v3  ;;  %v7184_v16 = vmul.f32 %v7157_v57, %v7124_v33  ;;  %5309 = vrcp.f32 %v7171_v31  ;;  %v5306_v9 = vpop.eup %5305 }
 0x318   :  { %v2104_v0 = vmul.f32 %v2100_v40, %v2055_v27  ;;  %5311 = vrcp.f32 %v7176_v6  ;;  %v7190_v42 = vadd.f32 1.0, %v5306_v9  ;;  %v2196_v41 = vrot.slane %v2191_v15, 6 }
 0x319   :  { %v7188_v47 = vadd.f32 %v2105_v36, %v2103_v34  ;;  %v2347_v50 = vrot.slane %v7020_v56, 7  ;;  %v2069_v19 = vsub.f32 1.0, %v2068_v61  ;;  %v2084_v7 = vsub.f32 1.0, %v7184_v16  ;;  %v5308_v29 = vpop.eup %5307 }
 0x31a   :  { %v7193_v40 = vadd.f32 %v2106_v14, %v2104_v0  ;;  %v2247_v5 = vand.u32 2147483648, %v7171_v31  ;;  %5313 = vrcp.f32 %v7190_v42  ;;  %v2285_v20 = vand.u32 2147483648, %v7190_v42 }
 0x31b   :  { %v2199_v59 = vadd.f32 %v2195_v26, %v6049_v30  ;;  %v2245_v44 = vand.u32 2147483647, %v7171_v31  ;;  %5315 = vtanh.f32 %v7188_v47  ;;  %v7205_v43 = vadd.f32 1.0, %v5308_v29 }
 0x31c   :  { %v2200_v55 = vadd.f32 %v2196_v41, %v9170_v54  ;;  %vm2241_vm6 = vweird.f32 %v7171_v31  ;;  %5317 = vtanh.f32 %v7193_v40  ;;  %v2260_v23 = vand.u32 2147483647, %v7176_v6 }
 0x31d   :  { %v7202_v58 = vpop.eup %5309  ;;  %v2262_v49 = vand.u32 2147483648, %v7176_v6  ;;  %5319 = vrcp.f32 %v7205_v43  ;;  %v2248_v2 = vor.u32 1.1754944e-38, %v2247_v5  ;;  %vm2256_vm9 = vweird.f32 %v7176_v6 }
 0x31e   :  { %v7209_v46 = vpop.eup %5311  ;;  %v2237_v60 = vmul.f32 %v7202_v58, %v7171_v31  ;;  %vm2279_vm7 = vweird.f32 %v7190_v42  ;;  %v7221_v63 = vor.u32 1.1754944e-38, %v2285_v20  ;;  %v2300_v36 = vand.u32 2147483648, %v7205_v43 }
 0x31f   :  { %v2252_v53 = vmul.f32 %v7209_v46, %v7176_v6  ;;  %vm7224_vm3 = vcmp.eq.f32.partialorder %v2245_v44, 8.507059e+37  ;;  %v2283_v3 = vand.u32 2147483647, %v7190_v42  ;;  %vm2242_vm8 = vweird.f32 %v7202_v58 }
 0x320   :  { %v2238_v35 = vsub.f32 1.0, %v2237_v60  ;;  %5321 = vtanh.f32 %v2199_v59  ;;  %v2222_v14 = vrot.slane %v2218_v22, 5  ;;  %v5314_v15 = vpop.eup %5313  ;;  %vm2257_vm10 = vweird.f32 %v7209_v46  ;;  %vm7256_vm2 = vmor %vm2241_vm6, %vm2242_vm8 }
 0x321   :  { %v2253_v21 = vsub.f32 1.0, %v2252_v53  ;;  %vm7232_vm12 = vcmp.eq.f32.partialorder %v2260_v23, 8.507059e+37  ;;  %v2263_v0 = vor.u32 1.1754944e-38, %v2262_v49  ;;  %v2223_v61 = vrot.slane %v2218_v22, 6  ;;  %v7236_v9 = vpop.eup %5315  ;;  %vm7269_vm4 = vmor %vm2256_vm9, %vm2257_vm10 }
 0x322   :  { %v2239_v27 = vmul.f32 %v7202_v58, %v2238_v35  ;;  %v2275_v26 = vmul.f32 %v5314_v15, %v7190_v42  ;;  %vm2294_vm15 = vweird.f32 %v7205_v43  ;;  %v2226_v5 = vadd.f32 %v2222_v14, %v9171_v17  ;;  %v7243_v20 = vpop.eup %5317 }
 0x323   :  { %v2254_v41 = vmul.f32 %v7209_v46, %v2253_v21  ;;  %v2070_v29 = vmul.f32 %v7149_v38, %v2069_v19  ;;  %v2301_v59 = vor.u32 1.1754944e-38, %v2300_v36  ;;  %vm7246_vm13 = vcmp.eq.f32.partialorder %v2283_v3, 8.507059e+37  ;;  %v5320_v22 = vpop.eup %5319 }
 0x324   :  { %v2240_v44 = vadd.f32 %v7202_v58, %v2239_v27  ;;  %v2298_v23 = vand.u32 2147483647, %v7205_v43  ;;  %v2227_v49 = vadd.f32 %v2223_v61, %v6172_v62  ;;  %v2276_v53 = vsub.f32 1.0, %v2275_v26 }
 0x325   :  { %v2255_v35 = vadd.f32 %v7209_v46, %v2254_v41  ;;  %5323 = vtanh.f32 %v2200_v55  ;;  %v4963_v36 = vmul.f32 -1.442695, %v2226_v5  ;;  %vm2280_vm5 = vweird.f32 %v5314_v15 }
 0x326   :  { %v2290_v3 = vmul.f32 %v5320_v22, %v7205_v43  ;;  %v2244_v21 = vsel %vm7256_vm2, %v7202_v58, %v2240_v44  ;;  %v4964_v14 = vmul.f32 -1.442695, %v2227_v49  ;;  %v5322_v27 = vpop.eup %5321  ;;  %v2277_v61 = vmul.f32 %v5314_v15, %v2276_v53  ;;  %vm7284_vm6 = vmor %vm2279_vm7, %vm2280_vm5 }
 0x327   :  { %5325 = vpow2.f32 %v4963_v36  ;;  %v2071_v55 = vadd.f32 %v7149_v38, %v2070_v29  ;;  %vm2073_vm1 = vweird.f32 %v7149_v38  ;;  %v2259_v58 = vsel %vm7269_vm4, %v7209_v46, %v2255_v35 }
 0x328   :  { %v2291_v26 = vsub.f32 1.0, %v2290_v3  ;;  %vm7278_vm14 = vcmp.eq.f32.partialorder %v2298_v23, 8.507059e+37  ;;  %5327 = vpow2.f32 %v4964_v14  ;;  %vm2295_vm9 = vweird.f32 %v5320_v22 }
 0x329   :  { %v2249_v5 = vsel %vm7224_vm3, %v2248_v2, %v2244_v21  ;;  %v2278_v29 = vadd.f32 %v5314_v15, %v2277_v61  ;;  %vm2072_vm8 = vweird.f32 %v7117_v12  ;;  %v2076_v23 = vand.u32 2147483647, %v7117_v12  ;;  %vm7310_vm3 = vmor %vm2294_vm15, %vm2295_vm9 }
 0x32a   :  { %v2292_v44 = vmul.f32 %v5320_v22, %v2291_v26  ;;  %vm7291_vm10 = vmor %vm2072_vm8, %vm2073_vm1  ;;  %v2078_v42 = vand.u32 2147483648, %v7117_v12  ;;  %v2085_v49 = vmul.f32 %v7157_v57, %v2084_v7  ;;  %v2264_v2 = vsel %vm7232_vm12, %v2263_v0, %v2259_v58 }
 0x32b   :  { %v5324_v53 = vpop.eup %5323  ;;  %v2282_v24 = vsel %vm7284_vm6, %v5314_v15, %v2278_v29  ;;  %v2075_v19 = vsel %vm7291_vm10, %v7149_v38, %v2071_v55  ;;  %vm2088_vm7 = vweird.f32 %v7157_v57  ;;  %vm2087_vm12 = vweird.f32 %v7124_v33  ;;  %v7365_v29 = vld [vmem:[#allocation4 + $0x18] sm:$0xff] }
 0x32c   :  { %v2293_v16 = vadd.f32 %v5320_v22, %v2292_v44  ;;  %v2086_v7 = vadd.f32 %v7157_v57, %v2085_v49  ;;  %v2091_v34 = vand.u32 2147483647, %v7124_v33  ;;  %v2287_v38 = vsel %vm7246_vm13, %v7221_v63, %v2282_v24  ;;  %vm7320_vm2 = vmor %vm2087_vm12, %vm2088_vm7  ;;  %v7368_v44 = vld [vmem:[#allocation4 + $0x38] sm:$0xff]  ;;  %v7380_v24 = vld [vmem:[#allocation4 + $0x10] sm:$0xff] }
 0x32d   :  { %v5326_v15 = vpop.eup %5325  ;;  %v2352_v0 = vmul.f32 %v5322_v27, %v2249_v5  ;;  %v2079_v35 = vor.u32 1.1754944e-38, %v2078_v42  ;;  %v2093_v36 = vand.u32 2147483648, %v7124_v33  ;;  %vm2077_vm15 = vcmp.eq.f32.partialorder %v2076_v23, 8.507059e+37  ;;  %v7373_v23 = vld [vmem:[#allocation4 + $0x58] sm:$0xff] }
 0x32e   :  { %v5328_v3 = vpop.eup %5327  ;;  %v2297_v21 = vsel %vm7310_vm3, %v5320_v22, %v2293_v16  ;;  %v7327_v14 = vadd.f32 1.0, %v5326_v15  ;;  %v2090_v60 = vsel %vm7320_vm2, %v7157_v57, %v2086_v7  ;;  %v2350_v33 = vmul.f32 %v2346_v13, %v2287_v38  ;;  %v7376_v42 = vld [vmem:[#allocation4 + $0x78] sm:$0xff]  ;;  %v7388_v16 = vld [vmem:[#allocation4 + $0x50] sm:$0xff] }
 0x32f   :  { %v2302_v63 = vsel %vm7278_vm14, %v2301_v59, %v2297_v21  ;;  %v7334_v27 = vadd.f32 1.0, %v5328_v3  ;;  %v2080_v61 = vsel %vm2077_vm15, %v2079_v35, %v2075_v19  ;;  %v2094_v31 = vor.u32 1.1754944e-38, %v2093_v36  ;;  %v7383_v19 = vld [vmem:[#allocation4 + $0x30] sm:$0xff]  ;;  %v7400_v35 = vld [vmem:[#allocation4 + $0x28] sm:$0xff] }
 0x330   :  { %5329 = vrcp.f32 %v7327_v14  ;;  %vm2092_vm13 = vcmp.eq.f32.partialorder %v2091_v34, 8.507059e+37  ;;  %v2111_v22 = vmul.f32 %v7236_v9, %v2080_v61  ;;  %v2353_v55 = vmul.f32 %v5324_v53, %v2264_v2  ;;  %v7391_v7 = vld [vmem:[#allocation4 + $0x70] sm:$0xff]  ;;  %v7410_v21 = vld [vmem:[#allocation4 + $0x48] sm:$0xff] }
 0x331   :  { %v2095_v26 = vsel %vm2092_vm13, %v2094_v31, %v2090_v60  ;;  %v2351_v57 = vmul.f32 %v2347_v50, %v2302_v63  ;;  %5331 = vrcp.f32 %v7334_v27  ;;  %v7344_v41 = vadd.f32 %v2352_v0, %v2350_v33  ;;  %v7397_v0 = vld [vmem:[#allocation4 + $0x8] sm:$0xff]  ;;  %v7423_v31 = vld [vmem:[#allocation4 + $0x20] sm:$0xff] }
 0x332   :  { %v2112_v59 = vmul.f32 %v7243_v20, %v2095_v26  ;;  %v2362_v58 = vrot.slane %v2111_v22, 3  ;;  %v2325_v46 = vand.u32 2147483648, %v7327_v14  ;;  %v2323_v2 = vand.u32 2147483647, %v7327_v14  ;;  %v7413_v60 = vld [vmem:[#allocation4 + $0x68] sm:$0xff]  ;;  %9292 = vst [vmem:[#allocation17_spill] sm:$0xff] %v7423_v31 }
 0x333   :  { %v7346_v13 = vadd.f32 %v2353_v55, %v2351_v57  ;;  %5333 = vtanh.f32 %v7344_v41  ;;  %vm2319_vm4 = vweird.f32 %v7327_v14  ;;  %v2340_v12 = vand.u32 2147483648, %v7334_v27  ;;  %v7428_v26 = vld [vmem:[#allocation4 + $0x40] sm:$0xff]  ;;  %v7479_v36 = vld [vmem:[#allocation4 + $0xe8] sm:$0xff] }
 0x334   :  { %v2363_v6 = vrot.slane %v2112_v59, 2  ;;  %v2338_v38 = vand.u32 2147483647, %v7334_v27  ;;  %v2326_v3 = vor.u32 1.1754944e-38, %v2325_v46  ;;  %vm2324_vm6 = vcmp.eq.f32.partialorder %v2323_v2, 8.507059e+37  ;;  %9293 = vst [vmem:[#allocation19_spill] sm:$0xff] %v7428_v26 }
 0x335   :  { %5335 = vtanh.f32 %v7346_v13  ;;  %vm2334_vm9 = vweird.f32 %v7334_v27  ;;  %v2341_v55 = vor.u32 1.1754944e-38, %v2340_v12  ;;  %v7431_v57 = vld [vmem:[#allocation4 + $0x60] sm:$0xff]  ;;  %v7452_v46 = vld [vmem:[#allocation4 + $0xd8] sm:$0xff]  ;;  %v7461_v2 = vld [vmem:[#allocation4 + $0xb0] sm:$0xff]  ;;  %9307 = vst [vmem:[#allocation43_spill] sm:$0xff] %v7479_v36 }
 0x336   :  { %v5330_v37 = vpop.eup %5329  ;;  %v7349_v5 = vsel %vm892_vm11, %v2363_v6, %v2362_v58  ;;  %9294 = vst [vmem:[#allocation20_spill] sm:$0xff] %v7431_v57  ;;  %vm2339_vm10 = vcmp.eq.f32.partialorder %v2338_v38, 8.507059e+37  ;;  %v7464_v12 = vld [vmem:[#allocation4 + $0xd0] sm:$0xff]  ;;  %v7473_v38 = vld [vmem:[#allocation4 + $0xa8] sm:$0xff] }
 0x337   :  { %9288 = vst [vmem:[#allocation15_spill] sm:$0xff] %v7349_v5  ;;  %v2315_v9 = vmul.f32 %v5330_v37, %v7327_v14  ;;  %4965 = vmatmul.msk.f32.vlgmr.msra.gmra.mxu0 %vm117_vm0, %v7349_v5  ;;  %4966 = vmatmul.msk.f32.vlgmr.msra.gmra.mxu1 %vm117_vm0, %v7349_v5  ;;  %v7356_v56 = vpop.eup %5331  ;;  %vm2320_vm5 = vweird.f32 %v5330_v37  ;;  %v7420_v14 = vld [vmem:[#allocation4] sm:$0xff] }
 0x338   :  { %4967 = vmatmul.msk.f32.vlgmr.msra.gmra.mxu2 %vm117_vm0, %v7349_v5  ;;  %4968 = vmatmul.msk.f32.vlgmr.msra.gmra.mxu3 %vm117_vm0, %v7349_v5  ;;  %v2330_v20 = vmul.f32 %v7356_v56, %v7334_v27  ;;  %vm2335_vm1 = vweird.f32 %v7356_v56  ;;  %vm7406_vm14 = vmor %vm2319_vm4, %vm2320_vm5  ;;  %9291 = vst [vmem:[#allocation16_spill] sm:$0xff] %v7420_v14 }
 0x339   :  { %v2316_v50 = vsub.f32 1.0, %v2315_v9  ;;  %2873 = vmatpush.msra.mxu0 %v7365_v29  ;;  %2900 = vmatpush.msra.mxu1 %v7368_v44  ;;  %v5334_v43 = vpop.eup %5333  ;;  %vm2336_vm8 = vmor %vm2334_vm9, %vm2335_vm1  ;;  %9298 = vst [vmem:[#allocation31_spill] sm:$0xff] %v7452_v46 }
 0x33a   :  { %2927 = vmatpush.msra.mxu2 %v7373_v23  ;;  %2954 = vmatpush.msra.mxu3 %v7376_v42  ;;  %v2331_v49 = vsub.f32 1.0, %v2330_v20  ;;  %v7449_v20 = vld [vmem:[#allocation4 + $0xb8] sm:$0xff]  ;;  %9301 = vst [vmem:[#allocation35_spill] sm:$0xff] %v7461_v2 }
 0x33b   :  { %v2317_v53 = vmul.f32 %v5330_v37, %v2316_v50  ;;  %2874 = vmatpush.msra.mxu0 %v7380_v24  ;;  %2901 = vmatpush.msra.mxu1 %v7383_v19  ;;  %v5336_v33 = vpop.eup %5335  ;;  %9297 = vst [vmem:[#allocation33_spill] sm:$0xff] %v7449_v20 }
 0x33c   :  { %2928 = vmatpush.msra.mxu2 %v7388_v16  ;;  %2955 = vmatpush.msra.mxu3 %v7391_v7  ;;  %v2332_v15 = vmul.f32 %v7356_v56, %v2331_v49  ;;  %v7455_v49 = vld [vmem:[#allocation4 + $0xf8] sm:$0xff]  ;;  %9302 = vst [vmem:[#allocation36_spill] sm:$0xff] %v7464_v12 }
 0x33d   :  { %v2318_v34 = vadd.f32 %v5330_v37, %v2317_v53  ;;  %2875 = vmatpush.msra.mxu0 %v7397_v0  ;;  %2902 = vmatpush.msra.mxu1 %v7400_v35  ;;  %9299 = vst [vmem:[#allocation32_spill] sm:$0xff] %v7455_v49  ;;  %v7458_v53 = vld [vmem:[#allocation4 + $0x90] sm:$0xff] }
 0x33e   :  { %2929 = vmatpush.msra.mxu2 %v7410_v21  ;;  %2956 = vmatpush.msra.mxu3 %v7413_v60  ;;  %v2333_v61 = vadd.f32 %v7356_v56, %v2332_v15  ;;  %9300 = vst [vmem:[#allocation34_spill] sm:$0xff] %v7458_v53  ;;  %v7470_v15 = vld [vmem:[#allocation4 + $0x88] sm:$0xff] }
 0x33f   :  { %v2322_v63 = vsel %vm7406_vm14, %v5330_v37, %v2318_v34  ;;  %2876 = vmatpush.msra.mxu0 %v7420_v14  ;;  %2903 = vmatpush.msra.mxu1 %v7423_v31  ;;  %v7467_v34 = vld [vmem:[#allocation4 + $0xf0] sm:$0xff]  ;;  %9304 = vst [vmem:[#allocation40_spill] sm:$0xff] %v7470_v15 }
 0x340   :  { %v2327_v22 = vsel %vm2324_vm6, %v2326_v3, %v2322_v63  ;;  %2930 = vmatpush.msra.mxu2 %v7428_v26  ;;  %2957 = vmatpush.msra.mxu3 %v7431_v57  ;;  %v2337_v27 = vsel %vm2336_vm8, %v7356_v56, %v2333_v61  ;;  %v7446_v56 = vld [vmem:[#allocation4 + $0x98] sm:$0xff]  ;;  %9303 = vst [vmem:[#allocation39_spill] sm:$0xff] %v7467_v34  ;;  %v7482_v3 = vld [vmem:[#allocation4 + $0x80] sm:$0xff] }
 0x341   :  { %v2358_v59 = vmul.f32 %v5334_v43, %v2327_v22  ;;  %v2342_v58 = vsel %vm2339_vm10, %v2341_v55, %v2337_v27  ;;  %9296 = vst [vmem:[#allocation22_spill] sm:$0xff] %v7446_v56  ;;  %v7476_v43 = vld [vmem:[#allocation4 + $0xc8] sm:$0xff]  ;;  %v7485_v63 = vld [vmem:[#allocation4 + $0xa0] sm:$0xff] }
 0x342   :  { %v2359_v6 = vmul.f32 %v5336_v33, %v2342_v58  ;;  %9305 = vst [vmem:[#allocation41_spill] sm:$0xff] %v7473_v38  ;;  %v7488_v61 = vld [vmem:[#allocation4 + $0xc0] sm:$0xff] }
 0x343   :  { %v2609_v37 = vrot.slane %v2358_v59, 3  ;;  %9306 = vst [vmem:[#allocation42_spill] sm:$0xff] %v7476_v43  ;;  %v7491_v33 = vld [vmem:[#allocation4 + $0xe0] sm:$0xff] }
 0x344   :  { %v2610_v9 = vrot.slane %v2359_v6, 2  ;;  %9308 = vst [vmem:[#allocation44_spill] sm:$0xff] %v7482_v3 }
 0x345   :  { %9309 = vst [vmem:[#allocation46_spill] sm:$0xff] %v7485_v63 }
 0x346   :  { %v7436_v50 = vsel %vm892_vm11, %v2610_v9, %v2609_v37  ;;  %9310 = vst [vmem:[#allocation47_spill] sm:$0xff] %v7488_v61 }
 0x347   :  { %9295 = vst [vmem:[#allocation21_spill] sm:$0xff] %v7436_v50  ;;  %4975 = vmatmul.msk.f32.vlgmr.msrb.gmra.mxu0 %vm117_vm0, %v7436_v50  ;;  %4976 = vmatmul.msk.f32.vlgmr.msrb.gmra.mxu1 %vm117_vm0, %v7436_v50 }
 0x348   :  { %4977 = vmatmul.msk.f32.vlgmr.msrb.gmra.mxu2 %vm117_vm0, %v7436_v50  ;;  %4978 = vmatmul.msk.f32.vlgmr.msrb.gmra.mxu3 %vm117_vm0, %v7436_v50  ;;  %9311 = vst [vmem:[#allocation48_spill] sm:$0xff] %v7491_v33 }
 0x349   :  { %3120 = vmatpush.msrb.mxu0 %v7446_v56  ;;  %3147 = vmatpush.msrb.mxu1 %v7449_v20 }
 0x34a   :  { %3174 = vmatpush.msrb.mxu2 %v7452_v46  ;;  %3201 = vmatpush.msrb.mxu3 %v7455_v49 }
 0x34b   :  { %3121 = vmatpush.msrb.mxu0 %v7458_v53  ;;  %3148 = vmatpush.msrb.mxu1 %v7461_v2 }
 0x34c   :  { %3175 = vmatpush.msrb.mxu2 %v7464_v12  ;;  %3202 = vmatpush.msrb.mxu3 %v7467_v34 }
 0x34d   :  { %3122 = vmatpush.msrb.mxu0 %v7470_v15  ;;  %3149 = vmatpush.msrb.mxu1 %v7473_v38 }
 0x34e   :  { %3176 = vmatpush.msrb.mxu2 %v7476_v43  ;;  %3203 = vmatpush.msrb.mxu3 %v7479_v36 }
 0x34f   :  { %3123 = vmatpush.msrb.mxu0 %v7482_v3  ;;  %3150 = vmatpush.msrb.mxu1 %v7485_v63 }
 0x350   :  { %3177 = vmatpush.msrb.mxu2 %v7488_v61  ;;  %3204 = vmatpush.msrb.mxu3 %v7491_v33 }
 0x3b4   :  { %v2384_v22 = vpop.f32.mrf.mxu0  ;;  %v2411_v55 = vpop.f32.mrf.mxu1 }
 0x3b5   :  { %v2388_v27 = vrot.slane %v2384_v22, 4  ;;  %v2389_v59 = vrot.slane %v2384_v22, 5  ;;  %v2415_v58 = vrot.slane %v2411_v55, 4  ;;  %v2416_v6 = vrot.slane %v2411_v55, 5 }
 0x3b7   :  { %v2392_v37 = vadd.f32 %v2388_v27, %v9256_v8  ;;  %v2393_v9 = vadd.f32 %v2389_v59, %v9257_v25  ;;  %v2419_v50 = vadd.f32 %v2415_v58, %v9258_v11  ;;  %v2420_v4 = vadd.f32 %v2416_v6, %v9259_v39 }
 0x3b9   :  { %v4969_v5 = vmul.f32 -1.442695, %v2392_v37  ;;  %v4970_v1 = vmul.f32 -1.442695, %v2393_v9  ;;  %v4971_v61 = vmul.f32 -1.442695, %v2419_v50 }
 0x3ba   :  { %v4972_v63 = vmul.f32 -1.442695, %v2420_v4 }
 0x3bb   :  { %5337 = vpow2.f32 %v4969_v5  ;;  %v2438_v33 = vpop.f32.mrf.mxu2  ;;  %v2465_v3 = vpop.f32.mrf.mxu3 }
 0x3bc   :  { %5339 = vpow2.f32 %v4970_v1  ;;  %v2442_v36 = vrot.slane %v2438_v33, 4  ;;  %v2469_v22 = vrot.slane %v2465_v3, 4  ;;  %v2470_v55 = vrot.slane %v2465_v3, 5 }
 0x3bd   :  { %5341 = vpow2.f32 %v4971_v61  ;;  %v2443_v6 = vrot.slane %v2438_v33, 5 }
 0x3be   :  { %5343 = vpow2.f32 %v4972_v63  ;;  %v2446_v27 = vadd.f32 %v2442_v36, %v9260_v48  ;;  %v2473_v59 = vadd.f32 %v2469_v22, %v9261_v10  ;;  %v2474_v58 = vadd.f32 %v2470_v55, %v9262_v28 }
 0x3bf   :  { %v2447_v63 = vadd.f32 %v2443_v6, %v9263_v45 }
 0x3c0   :  { %v4973_v37 = vmul.f32 -1.442695, %v2473_v59  ;;  %5345 = vtanh.f32 %v2446_v27  ;;  %v4974_v4 = vmul.f32 -1.442695, %v2474_v58 }
 0x3c1   :  { %v5338_v9 = vpop.eup %5337 }
 0x3c2   :  { %v5340_v5 = vpop.eup %5339  ;;  %v7501_v50 = vadd.f32 1.0, %v5338_v9  ;;  %5347 = vpow2.f32 %v4973_v37 }
 0x3c3   :  { %v5342_v1 = vpop.eup %5341  ;;  %v7503_v39 = vadd.f32 1.0, %v5340_v5  ;;  %5349 = vpow2.f32 %v4974_v4 }
 0x3c4   :  { %v5344_v3 = vpop.eup %5343  ;;  %5351 = vrcp.f32 %v7501_v50  ;;  %v7506_v36 = vadd.f32 1.0, %v5342_v1  ;;  %v2494_v33 = vand.u32 2147483648, %v7501_v50  ;;  %v2631_v55 = vpop.f32.mrf.mxu0  ;;  %v2492_v58 = vand.u32 2147483647, %v7501_v50 }
 0x3c5   :  { %5353 = vrcp.f32 %v7503_v39  ;;  %v7510_v61 = vadd.f32 1.0, %v5344_v3  ;;  %v2507_v4 = vand.u32 2147483647, %v7503_v39  ;;  %vm2488_vm7 = vweird.f32 %v7501_v50  ;;  %v2658_v43 = vpop.f32.mrf.mxu1 }
 0x3c6   :  { %5355 = vrcp.f32 %v7506_v36  ;;  %v2532_v22 = vand.u32 2147483648, %v7506_v36  ;;  %v7515_v27 = vpop.eup %5345  ;;  %v2495_v1 = vor.u32 1.1754944e-38, %v2494_v33  ;;  %v2635_v45 = vrot.slane %v2631_v55, 4 }
 0x3c7   :  { %5357 = vrcp.f32 %v7510_v61  ;;  %v2547_v59 = vand.u32 2147483648, %v7510_v61  ;;  %vm2503_vm3 = vweird.f32 %v7503_v39  ;;  %v2509_v48 = vand.u32 2147483648, %v7503_v39 }
 0x3c8   :  { %v5348_v6 = vpop.eup %5347  ;;  %5359 = vtanh.f32 %v2447_v63  ;;  %v7526_v10 = vor.u32 1.1754944e-38, %v2532_v22  ;;  %v2530_v37 = vand.u32 2147483647, %v7506_v36  ;;  %vm2526_vm12 = vweird.f32 %v7506_v36 }
 0x3c9   :  { %v5350_v5 = vpop.eup %5349  ;;  %v7524_v3 = vadd.f32 1.0, %v5348_v6  ;;  %v7535_v33 = vor.u32 1.1754944e-38, %v2547_v59  ;;  %vm7537_vm15 = vcmp.eq.f32.partialorder %v2492_v58, 8.507059e+37  ;;  %v2545_v22 = vand.u32 2147483647, %v7510_v61 }
 0x3ca   :  { %v5352_v28 = vpop.eup %5351  ;;  %v7531_v9 = vadd.f32 1.0, %v5350_v5  ;;  %vm2541_vm13 = vweird.f32 %v7510_v61  ;;  %vm7544_vm4 = vcmp.eq.f32.partialorder %v2507_v4, 8.507059e+37  ;;  %v2636_v59 = vrot.slane %v2631_v55, 5 }
 0x3cb   :  { %v5354_v11 = vpop.eup %5353  ;;  %v2484_v63 = vmul.f32 %v5352_v28, %v7501_v50  ;;  %vm2489_vm2 = vweird.f32 %v5352_v28  ;;  %5361 = vrcp.f32 %v7524_v3  ;;  %v2639_v34 = vadd.f32 %v2635_v45, %v9161_v18 }
 0x3cc   :  { %v5356_v25 = vpop.eup %5355  ;;  %v2499_v8 = vmul.f32 %v5354_v11, %v7503_v39  ;;  %vm2504_vm5 = vweird.f32 %v5354_v11  ;;  %5363 = vrcp.f32 %v7531_v9  ;;  %v2640_v53 = vadd.f32 %v2636_v59, %v9160_v51  ;;  %vm2490_vm6 = vmor %vm2488_vm7, %vm2489_vm2 }
 0x3cd   :  { %v5358_v58 = vpop.eup %5357  ;;  %v2485_v38 = vsub.f32 1.0, %v2484_v63  ;;  %v2522_v15 = vmul.f32 %v5356_v25, %v7506_v36  ;;  %vm2527_vm1 = vweird.f32 %v5356_v25  ;;  %v4979_v20 = vmul.f32 -1.442695, %v2639_v34  ;;  %vm2505_vm9 = vmor %vm2503_vm3, %vm2504_vm5 }
 0x3ce   :  { %v5360_v12 = vpop.eup %5359  ;;  %v2500_v2 = vsub.f32 1.0, %v2499_v8  ;;  %v2537_v4 = vmul.f32 %v5358_v58, %v7510_v61  ;;  %v2662_v55 = vrot.slane %v2658_v43, 4  ;;  %v4980_v63 = vmul.f32 -1.442695, %v2640_v53  ;;  %vm2528_vm8 = vmor %vm2526_vm12, %vm2527_vm1 }
 0x3cf   :  { %v2523_v49 = vsub.f32 1.0, %v2522_v15  ;;  %v2486_v46 = vmul.f32 %v5352_v28, %v2485_v38  ;;  %v2663_v26 = vrot.slane %v2658_v43, 5  ;;  %vm2542_vm14 = vweird.f32 %v5358_v58 }
 0x3d0   :  { %v2538_v56 = vsub.f32 1.0, %v2537_v4  ;;  %v2501_v57 = vmul.f32 %v5354_v11, %v2500_v2  ;;  %5365 = vpow2.f32 %v4979_v20  ;;  %v2666_v34 = vadd.f32 %v2662_v55, %v9164_v52  ;;  %vm2543_vm7 = vmor %vm2541_vm13, %vm2542_vm14  ;;  %v2712_v4 = vpop.f32.mrf.mxu3 }
 0x3d1   :  { %v2524_v31 = vmul.f32 %v5356_v25, %v2523_v49  ;;  %v2487_v14 = vadd.f32 %v5352_v28, %v2486_v46  ;;  %v7554_v45 = vpop.eup %5361  ;;  %5367 = vpow2.f32 %v4980_v63  ;;  %v2510_v46 = vor.u32 1.1754944e-38, %v2509_v48 }
 0x3d2   :  { %v2539_v8 = vmul.f32 %v5358_v58, %v2538_v56  ;;  %v2502_v59 = vadd.f32 %v5354_v11, %v2501_v57  ;;  %v7560_v15 = vpop.eup %5363  ;;  %v2667_v49 = vadd.f32 %v2663_v26, %v9169_v32  ;;  %vm2531_vm10 = vcmp.eq.f32.partialorder %v2530_v37, 8.507059e+37 }
 0x3d3   :  { %v2491_v2 = vsel %vm2490_vm6, %v5352_v28, %v2487_v14  ;;  %v2525_v20 = vadd.f32 %v5356_v25, %v2524_v31  ;;  %vm2546_vm3 = vcmp.eq.f32.partialorder %v2545_v22, 8.507059e+37  ;;  %v2562_v28 = vmul.f32 %v7554_v45, %v7524_v3  ;;  %v2685_v14 = vpop.f32.mrf.mxu2 }
 0x3d4   :  { %v2496_v57 = vsel %vm7537_vm15, %v2495_v1, %v2491_v2  ;;  %v2506_v56 = vsel %vm2505_vm9, %v5354_v11, %v2502_v59  ;;  %v2540_v53 = vadd.f32 %v5358_v58, %v2539_v8  ;;  %v4981_v38 = vmul.f32 -1.442695, %v2666_v34 }
 0x3d5   :  { %v2511_v39 = vsel %vm7544_vm4, %v2510_v46, %v2506_v56  ;;  %v2529_v48 = vsel %vm2528_vm8, %v5356_v25, %v2525_v20  ;;  %v2599_v11 = vmul.f32 %v7515_v27, %v2496_v57  ;;  %v9316_v36 = vrot.slane %v7188_v47, 7 }
 0x3d6   :  { %v2534_v31 = vsel %vm2531_vm10, %v7526_v10, %v2529_v48  ;;  %v2544_v26 = vsel %vm2543_vm7, %v5358_v58, %v2540_v53  ;;  %v5366_v43 = vpop.eup %5365  ;;  %v2600_v37 = vmul.f32 %v5360_v12, %v2511_v39  ;;  %v4982_v1 = vmul.f32 -1.442695, %v2667_v49 }
 0x3d7   :  { %v2549_v50 = vsel %vm2546_vm3, %v7535_v33, %v2544_v26  ;;  %v2597_v61 = vmul.f32 %v9316_v36, %v2534_v31  ;;  %v5368_v25 = vpop.eup %5367  ;;  %v9317_v6 = vrot.slane %v7193_v40, 7  ;;  %v7585_v5 = vadd.f32 1.0, %v5366_v43 }
 0x3d8   :  { %5369 = vpow2.f32 %v4981_v38  ;;  %v2689_v10 = vrot.slane %v2685_v14, 4  ;;  %v7589_v27 = vmul.f32 %v7560_v15, %v7531_v9  ;;  %v7591_v58 = vadd.f32 1.0, %v5368_v25 }
 0x3d9   :  { %v2598_v22 = vmul.f32 %v9317_v6, %v2549_v50  ;;  %5371 = vpow2.f32 %v4982_v1  ;;  %v2690_v33 = vrot.slane %v2685_v14, 5  ;;  %v7593_v47 = vadd.f32 %v2599_v11, %v2597_v61 }
 0x3da   :  { %5373 = vrcp.f32 %v7585_v5  ;;  %v2563_v63 = vsub.f32 1.0, %v2562_v28  ;;  %v2693_v8 = vadd.f32 %v2689_v10, %v6049_v30  ;;  %v2741_v59 = vand.u32 2147483648, %v7585_v5 }
 0x3db   :  { %v7597_v40 = vadd.f32 %v2600_v37, %v2598_v22  ;;  %v2578_v34 = vsub.f32 1.0, %v7589_v27  ;;  %5375 = vrcp.f32 %v7591_v58  ;;  %v2694_v2 = vadd.f32 %v2690_v33, %v9170_v54 }
 0x3dc   :  { %v2739_v46 = vand.u32 2147483647, %v7585_v5  ;;  %5377 = vtanh.f32 %v7593_v47  ;;  %v2756_v49 = vand.u32 2147483648, %v7591_v58  ;;  %v2716_v57 = vrot.slane %v2712_v4, 4 }
 0x3dd   :  { %v2717_v56 = vrot.slane %v2712_v4, 5  ;;  %5379 = vtanh.f32 %v7597_v40  ;;  %vm2735_vm12 = vweird.f32 %v7585_v5  ;;  %v2754_v48 = vand.u32 2147483647, %v7591_v58 }
 0x3de   :  { %v5370_v20 = vpop.eup %5369  ;;  %v2742_v31 = vor.u32 1.1754944e-38, %v2741_v59  ;;  %5381 = vtanh.f32 %v2693_v8  ;;  %v2720_v26 = vadd.f32 %v2716_v57, %v9171_v17  ;;  %vm7619_vm2 = vcmp.eq.f32.partialorder %v2739_v46, 8.507059e+37 }
 0x3df   :  { %v5372_v53 = vpop.eup %5371  ;;  %v7609_v39 = vadd.f32 1.0, %v5370_v20  ;;  %v2721_v50 = vadd.f32 %v2717_v56, %v6172_v62  ;;  %vm2750_vm15 = vweird.f32 %v7591_v58  ;;  %v7627_v61 = vor.u32 1.1754944e-38, %v2756_v49 }
 0x3e0   :  { %v5374_v28 = vpop.eup %5373  ;;  %v7613_v14 = vadd.f32 1.0, %v5372_v53  ;;  %v2564_v37 = vmul.f32 %v7554_v45, %v2563_v63  ;;  %vm2566_vm5 = vweird.f32 %v7524_v3  ;;  %v4983_v4 = vmul.f32 -1.442695, %v2720_v26 }
 0x3e1   :  { %v2731_v11 = vmul.f32 %v5374_v28, %v7585_v5  ;;  %5383 = vrcp.f32 %v7609_v39  ;;  %v2779_v38 = vand.u32 2147483648, %v7609_v39  ;;  %v7630_v1 = vpop.eup %5375  ;;  %vm2736_vm13 = vweird.f32 %v5374_v28 }
 0x3e2   :  { %5385 = vrcp.f32 %v7613_v14  ;;  %v2794_v36 = vand.u32 2147483648, %v7613_v14  ;;  %v7633_v6 = vpop.eup %5377  ;;  %v2746_v22 = vmul.f32 %v7630_v1, %v7591_v58  ;;  %v2777_v33 = vand.u32 2147483647, %v7609_v39  ;;  %vm7656_vm9 = vmor %vm2735_vm12, %vm2736_vm13 }
 0x3e3   :  { %v2732_v25 = vsub.f32 1.0, %v2731_v11  ;;  %5387 = vtanh.f32 %v2694_v2  ;;  %v7637_v10 = vor.u32 1.1754944e-38, %v2779_v38  ;;  %v7640_v8 = vpop.eup %5379  ;;  %vm2773_vm4 = vweird.f32 %v7609_v39 }
 0x3e4   :  { %v7643_v63 = vor.u32 1.1754944e-38, %v2794_v36  ;;  %vm7645_vm1 = vcmp.eq.f32.partialorder %v2754_v48, 8.507059e+37  ;;  %v2792_v46 = vand.u32 2147483647, %v7613_v14  ;;  %v4984_v20 = vmul.f32 -1.442695, %v2721_v50  ;;  %v5382_v49 = vpop.eup %5381 }
 0x3e5   :  { %v2733_v59 = vmul.f32 %v5374_v28, %v2732_v25  ;;  %v2747_v57 = vsub.f32 1.0, %v2746_v22  ;;  %5389 = vpow2.f32 %v4983_v4  ;;  %v2565_v56 = vadd.f32 %v7554_v45, %v2564_v37 }
 0x3e6   :  { %vm2567_vm14 = vweird.f32 %v7554_v45  ;;  %vm2788_vm6 = vweird.f32 %v7613_v14  ;;  %5391 = vpow2.f32 %v4984_v20  ;;  %v2570_v11 = vand.u32 2147483647, %v7524_v3 }
 0x3e7   :  { %v5384_v53 = vpop.eup %5383  ;;  %v2734_v26 = vadd.f32 %v5374_v28, %v2733_v59  ;;  %v2572_v38 = vand.u32 2147483648, %v7524_v3  ;;  %v2748_v37 = vmul.f32 %v7630_v1, %v2747_v57  ;;  %vm2751_vm8 = vweird.f32 %v7630_v1  ;;  %vm7671_vm7 = vmor %vm2566_vm5, %vm2567_vm14 }
 0x3e8   :  { %v5386_v50 = vpop.eup %5385  ;;  %v2769_v36 = vmul.f32 %v5384_v53, %v7609_v39  ;;  %vm7665_vm10 = vcmp.eq.f32.partialorder %v2777_v33, 8.507059e+37  ;;  %vm2774_vm3 = vweird.f32 %v5384_v53  ;;  %vm7678_vm12 = vcmp.eq.f32.partialorder %v2792_v46, 8.507059e+37  ;;  %vm7690_vm5 = vmor %vm2750_vm15, %vm2751_vm8 }
 0x3e9   :  { %v5388_v22 = vpop.eup %5387  ;;  %v2784_v4 = vmul.f32 %v5386_v50, %v7613_v14  ;;  %v2738_v59 = vsel %vm7656_vm9, %v5374_v28, %v2734_v26  ;;  %v2569_v33 = vsel %vm7671_vm7, %v7554_v45, %v2565_v56  ;;  %vm2789_vm13 = vweird.f32 %v5386_v50  ;;  %vm7712_vm9 = vmor %vm2773_vm4, %vm2774_vm3 }
 0x3ea   :  { %v2770_v3 = vsub.f32 1.0, %v2769_v36  ;;  %v2743_v57 = vsel %vm7619_vm2, %v2742_v31, %v2738_v59  ;;  %v2749_v55 = vadd.f32 %v7630_v1, %v2748_v37  ;;  %vm7694_vm14 = vcmp.eq.f32.partialorder %v2570_v11, 8.507059e+37  ;;  %vm2790_vm4 = vmor %vm2788_vm6, %vm2789_vm13 }
 0x3eb   :  { %v2785_v12 = vsub.f32 1.0, %v2784_v4  ;;  %v2573_v26 = vor.u32 1.1754944e-38, %v2572_v38  ;;  %v2579_v45 = vmul.f32 %v7560_v15, %v2578_v34  ;;  %v5390_v43 = vpop.eup %5389  ;;  %v2846_v58 = vmul.f32 %v5382_v49, %v2743_v57 }
 0x3ec   :  { %v2771_v31 = vmul.f32 %v5384_v53, %v2770_v3  ;;  %v2753_v56 = vsel %vm7690_vm5, %v7630_v1, %v2749_v55  ;;  %vm2582_vm2 = vweird.f32 %v7560_v15  ;;  %v5392_v48 = vpop.eup %5391  ;;  %v7705_v11 = vadd.f32 1.0, %v5390_v43 }
 0x3ed   :  { %v2786_v36 = vmul.f32 %v5386_v50, %v2785_v12  ;;  %v2580_v37 = vadd.f32 %v7560_v15, %v2579_v45  ;;  %vm2581_vm15 = vweird.f32 %v7531_v9  ;;  %v2758_v55 = vsel %vm7645_vm1, %v7627_v61, %v2753_v56 }
 0x3ee   :  { %v2772_v34 = vadd.f32 %v5384_v53, %v2771_v31  ;;  %v7719_v1 = vadd.f32 1.0, %v5392_v48  ;;  %v2585_v12 = vand.u32 2147483647, %v7531_v9  ;;  %5393 = vrcp.f32 %v7705_v11  ;;  %vm7725_vm8 = vmor %vm2581_vm15, %vm2582_vm2 }
 0x3ef   :  { %v2787_v49 = vadd.f32 %v5386_v50, %v2786_v36  ;;  %v2574_v38 = vsel %vm7694_vm14, %v2573_v26, %v2569_v33  ;;  %v2587_v5 = vand.u32 2147483648, %v7531_v9  ;;  %v2584_v2 = vsel %vm7725_vm8, %v7560_v15, %v2580_v37 }
 0x3f0   :  { %v2776_v61 = vsel %vm7712_vm9, %v5384_v53, %v2772_v34  ;;  %5395 = vrcp.f32 %v7719_v1  ;;  %v2605_v4 = vmul.f32 %v7633_v6, %v2574_v38  ;;  %v2847_v33 = vmul.f32 %v5388_v22, %v2758_v55  ;;  %v9343_v38 = vld [vmem:[#allocation20_spill] sm:$0xff] }
 0x3f1   :  { %v2781_v59 = vsel %vm7665_vm10, %v7637_v10, %v2776_v61  ;;  %v2791_v9 = vsel %vm2790_vm4, %v5386_v50, %v2787_v49  ;;  %v2588_v3 = vor.u32 1.1754944e-38, %v2587_v5  ;;  %v9338_v53 = vrot.slane %v7344_v41, 7  ;;  %v9341_v49 = vld [vmem:[#allocation17_spill] sm:$0xff]  ;;  %v9347_v5 = vld [vmem:[#allocation32_spill] sm:$0xff]  ;;  %v9348_v61 = vld [vmem:[#allocation34_spill] sm:$0xff] }
 0x3f2   :  { %v2796_v14 = vsel %vm7678_vm12, %v7643_v63, %v2791_v9  ;;  %vm2586_vm1 = vcmp.eq.f32.partialorder %v2585_v12, 8.507059e+37  ;;  %v9339_v28 = vrot.slane %v7346_v13, 7  ;;  %v2856_v10 = vrot.slane %v2605_v4, 4  ;;  %v9350_v4 = vld [vmem:[#allocation36_spill] sm:$0xff] }
 0x3f3   :  { %v2844_v57 = vmul.f32 %v9338_v53, %v2781_v59  ;;  %v2589_v46 = vsel %vm2586_vm1, %v2588_v3, %v2584_v2  ;;  %v2817_v56 = vand.u32 2147483647, %v7705_v11  ;;  %v2832_v36 = vand.u32 2147483647, %v7719_v1  ;;  %v9349_v2 = vld [vmem:[#allocation35_spill] sm:$0xff]  ;;  %v9352_v9 = vld [vmem:[#allocation40_spill] sm:$0xff] }
 0x3f4   :  { %v2845_v15 = vmul.f32 %v9339_v28, %v2796_v14  ;;  %v2606_v25 = vmul.f32 %v7640_v8, %v2589_v46  ;;  %v5394_v50 = vpop.eup %5393  ;;  %v2819_v8 = vand.u32 2147483648, %v7705_v11  ;;  %vm2813_vm7 = vweird.f32 %v7705_v11  ;;  %v9351_v59 = vld [vmem:[#allocation39_spill] sm:$0xff]  ;;  %v9354_v3 = vld [vmem:[#allocation42_spill] sm:$0xff]  ;;  %v9356_v53 = vld [vmem:[#allocation44_spill] sm:$0xff] }
 0x3f5   :  { %v7750_v6 = vadd.f32 %v2846_v58, %v2844_v57  ;;  %v2809_v20 = vmul.f32 %v5394_v50, %v7705_v11  ;;  %vm2814_vm6 = vweird.f32 %v5394_v50  ;;  %v2834_v58 = vand.u32 2147483648, %v7719_v1  ;;  %v9355_v14 = vld [vmem:[#allocation43_spill] sm:$0xff]  ;;  %v9357_v57 = vld [vmem:[#allocation46_spill] sm:$0xff] }
 0x3f6   :  { %v7753_v22 = vadd.f32 %v2847_v33, %v2845_v15  ;;  %v5396_v26 = vpop.eup %5395  ;;  %v2857_v63 = vrot.slane %v2606_v25, 3  ;;  %vm2815_vm3 = vmor %vm2813_vm7, %vm2814_vm6  ;;  %v2820_v55 = vor.u32 1.1754944e-38, %v2819_v8  ;;  %vm2828_vm12 = vweird.f32 %v7719_v1  ;;  %v9353_v33 = vld [vmem:[#allocation41_spill] sm:$0xff]  ;;  %v9358_v28 = vld [vmem:[#allocation47_spill] sm:$0xff] }
 0x3f7   :  { %5397 = vtanh.f32 %v7750_v6  ;;  %v2824_v41 = vmul.f32 %v5396_v26, %v7719_v1  ;;  %v2810_v13 = vsub.f32 1.0, %v2809_v20  ;;  %vm2829_vm10 = vweird.f32 %v5396_v26  ;;  %v9340_v1 = vld [vmem:[#allocation16_spill] sm:$0xff] }
 0x3f8   :  { %5399 = vtanh.f32 %v7753_v22  ;;  %v7760_v45 = vsel %vm892_vm11, %v2857_v63, %v2856_v10  ;;  %vm2818_vm13 = vcmp.eq.f32.partialorder %v2817_v56, 8.507059e+37  ;;  %vm2830_vm5 = vmor %vm2828_vm12, %vm2829_vm10  ;;  %vm2833_vm14 = vcmp.eq.f32.partialorder %v2832_v36, 8.507059e+37  ;;  %v9359_v15 = vld [vmem:[#allocation48_spill] sm:$0xff]  ;;  %v9360_v63 = vld [vmem:[#allocation23_spill] sm:$0xff] }
 0x3f9   :  { %v2825_v43 = vsub.f32 1.0, %v2824_v41  ;;  %4985 = vmatmul.msk.f32.vlgmr.msra.gmra.mxu0 %vm117_vm0, %v7760_v45  ;;  %4986 = vmatmul.msk.f32.vlgmr.msra.gmra.mxu1 %vm117_vm0, %v7760_v45  ;;  %v2811_v31 = vmul.f32 %v5394_v50, %v2810_v13  ;;  %v9361_v13 = vld [vmem:[#allocation25_spill] sm:$0xff]  ;;  %v9362_v8 = vld [vmem:[#allocation24_spill] sm:$0xff]  ;;  %v9363_v56 = vld [vmem:[#allocation26_spill] sm:$0xff] }
 0x3fa   :  { %4987 = vmatmul.msk.f32.vlgmr.msra.gmra.mxu2 %vm117_vm0, %v7760_v45  ;;  %4988 = vmatmul.msk.f32.vlgmr.msra.gmra.mxu3 %vm117_vm0, %v7760_v45 }
 0x3fb   :  { %v2826_v48 = vmul.f32 %v5396_v26, %v2825_v43  ;;  %3367 = vmatpush.msra.mxu0 %v7365_v29  ;;  %3394 = vmatpush.msra.mxu1 %v7368_v44  ;;  %v2812_v37 = vadd.f32 %v5394_v50, %v2811_v31  ;;  %v2835_v44 = vor.u32 1.1754944e-38, %v2834_v58 }
 0x3fc   :  { %3421 = vmatpush.msra.mxu2 %v7373_v23  ;;  %3448 = vmatpush.msra.mxu3 %v7376_v42 }
 0x3fd   :  { %v5398_v27 = vpop.eup %5397  ;;  %v2827_v34 = vadd.f32 %v5396_v26, %v2826_v48  ;;  %3368 = vmatpush.msra.mxu0 %v7380_v24  ;;  %3395 = vmatpush.msra.mxu1 %v7383_v19  ;;  %v2816_v12 = vsel %vm2815_vm3, %v5394_v50, %v2812_v37 }
 0x3fe   :  { %v5400_v29 = vpop.eup %5399  ;;  %3422 = vmatpush.msra.mxu2 %v7388_v16  ;;  %3449 = vmatpush.msra.mxu3 %v7391_v7  ;;  %v2821_v23 = vsel %vm2818_vm13, %v2820_v55, %v2816_v12  ;;  %v9342_v7 = vld [vmem:[#allocation19_spill] sm:$0xff] }
 0x3ff   :  { %v2831_v42 = vsel %vm2830_vm5, %v5396_v26, %v2827_v34  ;;  %3369 = vmatpush.msra.mxu0 %v7397_v0  ;;  %3396 = vmatpush.msra.mxu1 %v7400_v35  ;;  %v2852_v11 = vmul.f32 %v5398_v27, %v2821_v23  ;;  %v9344_v35 = vld [vmem:[#allocation22_spill] sm:$0xff]  ;;  %v9364_v23 = vld [vmem:[#allocation27_spill] sm:$0xff] }
 0x400   :  { %v2836_v24 = vsel %vm2833_vm14, %v2835_v44, %v2831_v42  ;;  %3423 = vmatpush.msra.mxu2 %v7410_v21  ;;  %3450 = vmatpush.msra.mxu3 %v7413_v60  ;;  %v9345_v21 = vld [vmem:[#allocation33_spill] sm:$0xff]  ;;  %v9346_v60 = vld [vmem:[#allocation31_spill] sm:$0xff] }
 0x401   :  { %v2853_v19 = vmul.f32 %v5400_v29, %v2836_v24  ;;  %3370 = vmatpush.msra.mxu0 %v9340_v1  ;;  %3397 = vmatpush.msra.mxu1 %v9341_v49  ;;  %v3103_v16 = vrot.slane %v2852_v11, 4  ;;  %v9365_v24 = vld [vmem:[#allocation28_spill] sm:$0xff] }
 0x402   :  { %3424 = vmatpush.msra.mxu2 %v9342_v7  ;;  %3451 = vmatpush.msra.mxu3 %v9343_v38 }
 0x403   :  { %v3104_v39 = vrot.slane %v2853_v19, 3  ;;  %v9366_v19 = vld [vmem:[#allocation30_spill] sm:$0xff] }
 0x405   :  { %v7794_v0 = vsel %vm892_vm11, %v3104_v39, %v3103_v16 }
 0x406   :  { %4995 = vmatmul.msk.f32.vlgmr.msrb.gmra.mxu0 %vm117_vm0, %v7794_v0  ;;  %4996 = vmatmul.msk.f32.vlgmr.msrb.gmra.mxu1 %vm117_vm0, %v7794_v0 }
 0x407   :  { %4997 = vmatmul.msk.f32.vlgmr.msrb.gmra.mxu2 %vm117_vm0, %v7794_v0  ;;  %4998 = vmatmul.msk.f32.vlgmr.msrb.gmra.mxu3 %vm117_vm0, %v7794_v0 }
 0x408   :  { %3614 = vmatpush.msrb.mxu0 %v9344_v35  ;;  %3641 = vmatpush.msrb.mxu1 %v9345_v21 }
 0x409   :  { %3668 = vmatpush.msrb.mxu2 %v9346_v60  ;;  %3695 = vmatpush.msrb.mxu3 %v9347_v5 }
 0x40a   :  { %3615 = vmatpush.msrb.mxu0 %v9348_v61  ;;  %3642 = vmatpush.msrb.mxu1 %v9349_v2 }
 0x40b   :  { %3669 = vmatpush.msrb.mxu2 %v9350_v4  ;;  %3696 = vmatpush.msrb.mxu3 %v9351_v59  ;;  %v9367_v4 = vld [vmem:[#allocation29_spill] sm:$0xff] }
 0x40c   :  { %3616 = vmatpush.msrb.mxu0 %v9352_v9  ;;  %3643 = vmatpush.msrb.mxu1 %v9353_v33 }
 0x40d   :  { %3670 = vmatpush.msrb.mxu2 %v9354_v3  ;;  %3697 = vmatpush.msrb.mxu3 %v9355_v14  ;;  %v3087_v14 = vrot.slane %v7593_v47, 7 }
 0x40e   :  { %3617 = vmatpush.msrb.mxu0 %v9356_v53  ;;  %3644 = vmatpush.msrb.mxu1 %v9357_v57 }
 0x40f   :  { %3671 = vmatpush.msrb.mxu2 %v9358_v28  ;;  %3698 = vmatpush.msrb.mxu3 %v9359_v15  ;;  %v3088_v15 = vrot.slane %v7597_v40, 7  ;;  %v3334_v40 = vrot.slane %v7750_v6, 7 }
 0x476   :  { %v2878_v46 = vpop.f32.mrf.mxu0  ;;  %v2905_v25 = vpop.f32.mrf.mxu1 }
 0x477   :  { %v2882_v10 = vrot.slane %v2878_v46, 3  ;;  %v2883_v50 = vrot.slane %v2878_v46, 4  ;;  %v2909_v26 = vrot.slane %v2905_v25, 3  ;;  %v2910_v20 = vrot.slane %v2905_v25, 4 }
 0x479   :  { %v2886_v41 = vadd.f32 %v2882_v10, %v9360_v63  ;;  %v2887_v43 = vadd.f32 %v2883_v50, %v9361_v13  ;;  %v2913_v31 = vadd.f32 %v2909_v26, %v9362_v8  ;;  %v2914_v58 = vadd.f32 %v2910_v20, %v9363_v56 }
 0x47b   :  { %v4989_v48 = vmul.f32 -1.442695, %v2886_v41  ;;  %v4990_v36 = vmul.f32 -1.442695, %v2887_v43  ;;  %v4991_v37 = vmul.f32 -1.442695, %v2913_v31 }
 0x47c   :  { %v4992_v27 = vmul.f32 -1.442695, %v2914_v58 }
 0x47d   :  { %5401 = vpow2.f32 %v4989_v48  ;;  %v2932_v55 = vpop.f32.mrf.mxu2  ;;  %v2959_v34 = vpop.f32.mrf.mxu3 }
 0x47e   :  { %5403 = vpow2.f32 %v4990_v36  ;;  %v2936_v29 = vrot.slane %v2932_v55, 3  ;;  %v2963_v12 = vrot.slane %v2959_v34, 3  ;;  %v2964_v44 = vrot.slane %v2959_v34, 4 }
 0x47f   :  { %5405 = vpow2.f32 %v4991_v37  ;;  %v2937_v49 = vrot.slane %v2932_v55, 4 }
 0x480   :  { %5407 = vpow2.f32 %v4992_v27  ;;  %v2940_v42 = vadd.f32 %v2936_v29, %v9364_v23  ;;  %v2967_v11 = vadd.f32 %v2963_v12, %v9365_v24  ;;  %v2968_v1 = vadd.f32 %v2964_v44, %v9366_v19 }
 0x481   :  { %v2941_v59 = vadd.f32 %v2937_v49, %v9367_v4 }
 0x482   :  { %v4993_v16 = vmul.f32 -1.442695, %v2967_v11  ;;  %5409 = vtanh.f32 %v2940_v42  ;;  %v4994_v38 = vmul.f32 -1.442695, %v2968_v1 }
 0x483   :  { %v5402_v7 = vpop.eup %5401  ;;  %v3125_v21 = vpop.f32.mrf.mxu0 }
 0x484   :  { %v5404_v39 = vpop.eup %5403  ;;  %v7827_v35 = vadd.f32 1.0, %v5402_v7  ;;  %5411 = vpow2.f32 %v4993_v16  ;;  %v3129_v33 = vrot.slane %v3125_v21, 3  ;;  %v3152_v3 = vpop.f32.mrf.mxu1  ;;  %v3130_v26 = vrot.slane %v3125_v21, 4 }
 0x485   :  { %v5406_v60 = vpop.eup %5405  ;;  %v7829_v5 = vadd.f32 1.0, %v5404_v39  ;;  %5413 = vpow2.f32 %v4994_v38  ;;  %v3156_v20 = vrot.slane %v3152_v3, 3  ;;  %v3157_v58 = vrot.slane %v3152_v3, 4 }
 0x486   :  { %v5408_v61 = vpop.eup %5407  ;;  %5415 = vrcp.f32 %v7827_v35  ;;  %v7832_v2 = vadd.f32 1.0, %v5406_v60  ;;  %v2988_v57 = vand.u32 2147483648, %v7827_v35  ;;  %v2986_v25 = vand.u32 2147483647, %v7827_v35 }
 0x487   :  { %5417 = vrcp.f32 %v7829_v5  ;;  %v7836_v9 = vadd.f32 1.0, %v5408_v61  ;;  %v3001_v50 = vand.u32 2147483647, %v7829_v5  ;;  %vm2982_vm2 = vweird.f32 %v7827_v35 }
 0x488   :  { %5419 = vrcp.f32 %v7832_v2  ;;  %v3026_v53 = vand.u32 2147483648, %v7832_v2  ;;  %v7842_v28 = vpop.eup %5409  ;;  %v3133_v31 = vadd.f32 %v3129_v33, %v9161_v18  ;;  %v2989_v37 = vor.u32 1.1754944e-38, %v2988_v57 }
 0x489   :  { %5421 = vrcp.f32 %v7836_v9  ;;  %v3041_v46 = vand.u32 2147483648, %v7836_v9  ;;  %vm2997_vm15 = vweird.f32 %v7829_v5  ;;  %v3003_v27 = vand.u32 2147483648, %v7829_v5 }
 0x48a   :  { %v5412_v10 = vpop.eup %5411  ;;  %5423 = vtanh.f32 %v2941_v59  ;;  %v7853_v36 = vor.u32 1.1754944e-38, %v3026_v53  ;;  %vm3020_vm9 = vweird.f32 %v7832_v2  ;;  %vm7863_vm8 = vcmp.eq.f32.partialorder %v2986_v25, 8.507059e+37 }
 0x48b   :  { %v5414_v41 = vpop.eup %5413  ;;  %v7850_v43 = vadd.f32 1.0, %v5412_v10  ;;  %v7861_v12 = vor.u32 1.1754944e-38, %v3041_v46  ;;  %v3024_v42 = vand.u32 2147483647, %v7832_v2  ;;  %v3039_v11 = vand.u32 2147483647, %v7836_v9 }
 0x48c   :  { %v5416_v48 = vpop.eup %5415  ;;  %v7857_v55 = vadd.f32 1.0, %v5414_v41  ;;  %vm3035_vm4 = vweird.f32 %v7836_v9  ;;  %vm7871_vm6 = vcmp.eq.f32.partialorder %v3001_v50, 8.507059e+37  ;;  %v3134_v7 = vadd.f32 %v3130_v26, %v9160_v51 }
 0x48d   :  { %v5418_v34 = vpop.eup %5417  ;;  %v2978_v29 = vmul.f32 %v5416_v48, %v7827_v35  ;;  %vm2983_vm1 = vweird.f32 %v5416_v48  ;;  %5425 = vrcp.f32 %v7850_v43  ;;  %v4999_v60 = vmul.f32 -1.442695, %v3133_v31 }
 0x48e   :  { %v5420_v1 = vpop.eup %5419  ;;  %v2993_v49 = vmul.f32 %v5418_v34, %v7829_v5  ;;  %vm2998_vm10 = vweird.f32 %v5418_v34  ;;  %5427 = vrcp.f32 %v7857_v55  ;;  %v5000_v3 = vmul.f32 -1.442695, %v3134_v7  ;;  %vm2984_vm12 = vmor %vm2982_vm2, %vm2983_vm1 }
 0x48f   :  { %v5422_v38 = vpop.eup %5421  ;;  %v2979_v39 = vsub.f32 1.0, %v2978_v29  ;;  %v3016_v21 = vmul.f32 %v5420_v1, %v7832_v2  ;;  %5429 = vpow2.f32 %v4999_v60  ;;  %v3160_v46 = vadd.f32 %v3156_v20, %v9164_v52  ;;  %vm2999_vm13 = vmor %vm2997_vm15, %vm2998_vm10 }
 0x490   :  { %v5424_v61 = vpop.eup %5423  ;;  %v2994_v59 = vsub.f32 1.0, %v2993_v49  ;;  %v3031_v33 = vmul.f32 %v5422_v38, %v7836_v9  ;;  %5431 = vpow2.f32 %v5000_v3  ;;  %v3161_v50 = vadd.f32 %v3157_v58, %v9169_v32 }
 0x491   :  { %v3017_v53 = vsub.f32 1.0, %v3016_v21  ;;  %v2980_v57 = vmul.f32 %v5416_v48, %v2979_v39  ;;  %vm3021_vm7 = vweird.f32 %v5420_v1  ;;  %v5001_v31 = vmul.f32 -1.442695, %v3160_v46 }
 0x492   :  { %v3032_v25 = vsub.f32 1.0, %v3031_v33  ;;  %v2995_v10 = vmul.f32 %v5418_v34, %v2994_v59  ;;  %vm3036_vm3 = vweird.f32 %v5422_v38  ;;  %v3004_v39 = vor.u32 1.1754944e-38, %v3003_v27  ;;  %vm3022_vm5 = vmor %vm3020_vm9, %vm3021_vm7 }
 0x493   :  { %v3018_v26 = vmul.f32 %v5420_v1, %v3017_v53  ;;  %v2981_v41 = vadd.f32 %v5416_v48, %v2980_v57  ;;  %v7882_v29 = vpop.eup %5425  ;;  %5433 = vpow2.f32 %v5001_v31  ;;  %v5002_v21 = vmul.f32 -1.442695, %v3161_v50  ;;  %vm3037_vm2 = vmor %vm3035_vm4, %vm3036_vm3 }
 0x494   :  { %v3033_v49 = vmul.f32 %v5422_v38, %v3032_v25  ;;  %v2996_v7 = vadd.f32 %v5418_v34, %v2995_v10  ;;  %v7890_v60 = vpop.eup %5427  ;;  %vm3025_vm14 = vcmp.eq.f32.partialorder %v3024_v42, 8.507059e+37  ;;  %vm3040_vm15 = vcmp.eq.f32.partialorder %v3039_v11, 8.507059e+37  ;;  %v3179_v42 = vpop.f32.mrf.mxu2 }
 0x495   :  { %v2985_v20 = vsel %vm2984_vm12, %v5416_v48, %v2981_v41  ;;  %v3019_v58 = vadd.f32 %v5420_v1, %v3018_v26  ;;  %v5430_v48 = vpop.eup %5429  ;;  %5435 = vpow2.f32 %v5002_v21  ;;  %v3183_v47 = vrot.slane %v3179_v42, 3 }
 0x496   :  { %v2990_v35 = vsel %vm7863_vm8, %v2989_v37, %v2985_v20  ;;  %v3000_v59 = vsel %vm2999_vm13, %v5418_v34, %v2996_v7  ;;  %v3034_v27 = vadd.f32 %v5422_v38, %v3033_v49  ;;  %v5432_v2 = vpop.eup %5431  ;;  %v7904_v34 = vadd.f32 1.0, %v5430_v48 }
 0x497   :  { %v3005_v5 = vsel %vm7871_vm6, %v3004_v39, %v3000_v59  ;;  %v3023_v33 = vsel %vm3022_vm5, %v5420_v1, %v3019_v58  ;;  %v3093_v3 = vmul.f32 %v7842_v28, %v2990_v35  ;;  %v7909_v46 = vadd.f32 1.0, %v5432_v2  ;;  %v3206_v59 = vpop.f32.mrf.mxu3 }
 0x498   :  { %v3028_v53 = vsel %vm3025_vm14, %v7853_v36, %v3023_v33  ;;  %v3038_v44 = vsel %vm3037_vm2, %v5422_v38, %v3034_v27  ;;  %v3094_v37 = vmul.f32 %v5424_v61, %v3005_v5  ;;  %v3056_v28 = vmul.f32 %v7882_v29, %v7850_v43 }
 0x499   :  { %v3043_v57 = vsel %vm3040_vm15, %v7861_v12, %v3038_v44  ;;  %v3091_v9 = vmul.f32 %v3087_v14, %v3028_v53  ;;  %v7917_v36 = vmul.f32 %v7890_v60, %v7857_v55  ;;  %5437 = vrcp.f32 %v7904_v34  ;;  %v5434_v1 = vpop.eup %5433 }
 0x49a   :  { %v3092_v11 = vmul.f32 %v3088_v15, %v3043_v57  ;;  %5439 = vrcp.f32 %v7909_v46  ;;  %v7923_v12 = vadd.f32 1.0, %v5434_v1  ;;  %v3184_v16 = vrot.slane %v3179_v42, 4 }
 0x49b   :  { %v7921_v14 = vadd.f32 %v3093_v3, %v3091_v9  ;;  %v3335_v38 = vrot.slane %v7753_v22, 7  ;;  %v3057_v61 = vsub.f32 1.0, %v3056_v28  ;;  %v3072_v25 = vsub.f32 1.0, %v7917_v36  ;;  %v5436_v50 = vpop.eup %5435 }
 0x49c   :  { %v7926_v15 = vadd.f32 %v3094_v37, %v3092_v11  ;;  %v3235_v10 = vand.u32 2147483648, %v7904_v34  ;;  %5441 = vrcp.f32 %v7923_v12  ;;  %v3273_v26 = vand.u32 2147483648, %v7923_v12 }
 0x49d   :  { %v3187_v41 = vadd.f32 %v3183_v47, %v6049_v30  ;;  %v3233_v31 = vand.u32 2147483647, %v7904_v34  ;;  %5443 = vtanh.f32 %v7921_v14  ;;  %v7938_v7 = vadd.f32 1.0, %v5436_v50 }
 0x49e   :  { %v3188_v39 = vadd.f32 %v3184_v16, %v9170_v54  ;;  %vm3229_vm9 = vweird.f32 %v7904_v34  ;;  %5445 = vtanh.f32 %v7926_v15  ;;  %v3248_v21 = vand.u32 2147483647, %v7909_v46 }
 0x49f   :  { %v7935_v49 = vpop.eup %5437  ;;  %v3250_v35 = vand.u32 2147483648, %v7909_v46  ;;  %5447 = vrcp.f32 %v7938_v7  ;;  %v3236_v48 = vor.u32 1.1754944e-38, %v3235_v10  ;;  %vm3244_vm8 = vweird.f32 %v7909_v46 }
 0x4a0   :  { %v7942_v20 = vpop.eup %5439  ;;  %v3225_v58 = vmul.f32 %v7935_v49, %v7904_v34  ;;  %vm3267_vm4 = vweird.f32 %v7923_v12  ;;  %v7954_v33 = vor.u32 1.1754944e-38, %v3273_v26  ;;  %v3288_v3 = vand.u32 2147483648, %v7938_v7 }
 0x4a1   :  { %v3240_v27 = vmul.f32 %v7942_v20, %v7909_v46  ;;  %vm7957_vm1 = vcmp.eq.f32.partialorder %v3233_v31, 8.507059e+37  ;;  %v3271_v53 = vand.u32 2147483647, %v7923_v12  ;;  %vm3230_vm6 = vweird.f32 %v7935_v49 }
 0x4a2   :  { %v3226_v5 = vsub.f32 1.0, %v3225_v58  ;;  %5449 = vtanh.f32 %v3187_v41  ;;  %v3210_v37 = vrot.slane %v3206_v59, 3  ;;  %v5442_v42 = vpop.eup %5441  ;;  %vm3245_vm10 = vweird.f32 %v7942_v20  ;;  %vm7989_vm13 = vmor %vm3229_vm9, %vm3230_vm6 }
 0x4a3   :  { %v3241_v44 = vsub.f32 1.0, %v3240_v27  ;;  %vm7965_vm7 = vcmp.eq.f32.partialorder %v3248_v21, 8.507059e+37  ;;  %v3251_v11 = vor.u32 1.1754944e-38, %v3250_v35  ;;  %v3211_v28 = vrot.slane %v3206_v59, 4  ;;  %v7969_v1 = vpop.eup %5443  ;;  %vm8002_vm14 = vmor %vm3244_vm8, %vm3245_vm10 }
 0x4a4   :  { %v3227_v57 = vmul.f32 %v7935_v49, %v3226_v5  ;;  %v3263_v47 = vmul.f32 %v5442_v42, %v7923_v12  ;;  %vm3282_vm3 = vweird.f32 %v7938_v7  ;;  %v3214_v10 = vadd.f32 %v3210_v37, %v9171_v17  ;;  %v7976_v26 = vpop.eup %5445 }
 0x4a5   :  { %v3242_v16 = vmul.f32 %v7942_v20, %v3241_v44  ;;  %v3058_v50 = vmul.f32 %v7882_v29, %v3057_v61  ;;  %v3289_v41 = vor.u32 1.1754944e-38, %v3288_v3  ;;  %vm7979_vm12 = vcmp.eq.f32.partialorder %v3271_v53, 8.507059e+37  ;;  %v5448_v59 = vpop.eup %5447 }
 0x4a6   :  { %v3228_v31 = vadd.f32 %v7935_v49, %v3227_v57  ;;  %v3286_v21 = vand.u32 2147483647, %v7938_v7  ;;  %v3215_v35 = vadd.f32 %v3211_v28, %v6172_v62  ;;  %v3264_v27 = vsub.f32 1.0, %v3263_v47 }
 0x4a7   :  { %v3243_v5 = vadd.f32 %v7942_v20, %v3242_v16  ;;  %5451 = vtanh.f32 %v3188_v39  ;;  %v5003_v3 = vmul.f32 -1.442695, %v3214_v10  ;;  %vm3268_vm5 = vweird.f32 %v5442_v42 }
 0x4a8   :  { %v3278_v53 = vmul.f32 %v5448_v59, %v7938_v7  ;;  %v3232_v44 = vsel %vm7989_vm13, %v7935_v49, %v3228_v31  ;;  %v5004_v37 = vmul.f32 -1.442695, %v3215_v35  ;;  %v5450_v57 = vpop.eup %5449  ;;  %v3265_v28 = vmul.f32 %v5442_v42, %v3264_v27  ;;  %vm8017_vm9 = vmor %vm3267_vm4, %vm3268_vm5 }
 0x4a9   :  { %5453 = vpow2.f32 %v5003_v3  ;;  %v3059_v39 = vadd.f32 %v7882_v29, %v3058_v50  ;;  %vm3061_vm2 = vweird.f32 %v7882_v29  ;;  %v3247_v49 = vsel %vm8002_vm14, %v7942_v20, %v3243_v5 }
 0x4aa   :  { %v3279_v47 = vsub.f32 1.0, %v3278_v53  ;;  %vm8011_vm15 = vcmp.eq.f32.partialorder %v3286_v21, 8.507059e+37  ;;  %5455 = vpow2.f32 %v5004_v37  ;;  %vm3283_vm8 = vweird.f32 %v5448_v59 }
 0x4ab   :  { %v3237_v10 = vsel %vm7957_vm1, %v3236_v48, %v3232_v44  ;;  %v3266_v50 = vadd.f32 %v5442_v42, %v3265_v28  ;;  %vm3060_vm6 = vweird.f32 %v7850_v43  ;;  %v3064_v21 = vand.u32 2147483647, %v7850_v43  ;;  %vm8043_vm1 = vmor %vm3282_vm3, %vm3283_vm8 }
 0x4ac   :  { %v3280_v31 = vmul.f32 %v5448_v59, %v3279_v47  ;;  %vm8024_vm10 = vmor %vm3060_vm6, %vm3061_vm2  ;;  %v3066_v12 = vand.u32 2147483648, %v7850_v43  ;;  %v3073_v35 = vmul.f32 %v7890_v60, %v3072_v25  ;;  %v3252_v48 = vsel %vm7965_vm7, %v3251_v11, %v3247_v49 }
 0x4ad   :  { %v5452_v27 = vpop.eup %5451  ;;  %v3270_v2 = vsel %vm8017_vm9, %v5442_v42, %v3266_v50  ;;  %v3063_v61 = vsel %vm8024_vm10, %v7882_v29, %v3059_v39  ;;  %vm3076_vm4 = vweird.f32 %v7890_v60  ;;  %vm3075_vm7 = vweird.f32 %v7857_v55 }
 0x4ae   :  { %v3281_v36 = vadd.f32 %v5448_v59, %v3280_v31  ;;  %v3074_v25 = vadd.f32 %v7890_v60, %v3073_v35  ;;  %v3079_v9 = vand.u32 2147483647, %v7857_v55  ;;  %v3275_v29 = vsel %vm7979_vm12, %v7954_v33, %v3270_v2  ;;  %vm8053_vm13 = vmor %vm3075_vm7, %vm3076_vm4  ;;  %v3842_v2 = vld [vmem:[%s8981_s4] sm:$0xff] }
 0x4af   :  { %v5454_v42 = vpop.eup %5453  ;;  %v3340_v11 = vmul.f32 %v5450_v57, %v3237_v10  ;;  %v3067_v5 = vor.u32 1.1754944e-38, %v3066_v12  ;;  %v3081_v3 = vand.u32 2147483648, %v7857_v55  ;;  %vm3065_vm3 = vcmp.eq.f32.partialorder %v3064_v21, 8.507059e+37  ;;  %v3843_v21 = vld [vmem:[%s8981_s4 + $0x8] sm:$0xff] }
 0x4b0   :  { %v5456_v53 = vpop.eup %5455  ;;  %v3285_v44 = vsel %vm8043_vm1, %v5448_v59, %v3281_v36  ;;  %v8060_v37 = vadd.f32 1.0, %v5454_v42  ;;  %v3078_v58 = vsel %vm8053_vm13, %v7890_v60, %v3074_v25  ;;  %v3338_v55 = vmul.f32 %v3334_v40, %v3275_v29 }
 0x4b1   :  { %v3290_v33 = vsel %vm8011_vm15, %v3289_v41, %v3285_v44  ;;  %v8067_v57 = vadd.f32 1.0, %v5456_v53  ;;  %v3068_v28 = vsel %vm3065_vm3, %v3067_v5, %v3063_v61  ;;  %v3082_v34 = vor.u32 1.1754944e-38, %v3081_v3 }
 0x4b2   :  { %5457 = vrcp.f32 %v8060_v37  ;;  %vm3080_vm12 = vcmp.eq.f32.partialorder %v3079_v9, 8.507059e+37  ;;  %v3099_v59 = vmul.f32 %v7969_v1, %v3068_v28  ;;  %v3341_v39 = vmul.f32 %v5452_v27, %v3252_v48  ;;  %v8087_v1 = vld [vmem:[%s8981_s4 + $0x18] sm:$0xff] }
 0x4b3   :  { %v3083_v47 = vsel %vm3080_vm12, %v3082_v34, %v3078_v58  ;;  %v3339_v60 = vmul.f32 %v3335_v38, %v3290_v33  ;;  %5459 = vrcp.f32 %v8067_v57  ;;  %v8077_v16 = vadd.f32 %v3340_v11, %v3338_v55  ;;  %v5034_v34 = vld [vmem:[%s8981_s4 + $0x30] sm:$0xff]  ;;  %v5033_v55 = vld [vmem:[%s8981_s4 + $0x28] sm:$0xff] }
 0x4b4   :  { %v3100_v41 = vmul.f32 %v7976_v26, %v3083_v47  ;;  %v3350_v49 = vrot.slane %v3099_v59, 5  ;;  %v8102_v26 = vld [vmem:[%s8981_s4 + $0x10] sm:$0xff]  ;;  %v3313_v20 = vand.u32 2147483648, %v8060_v37  ;;  %v3311_v27 = vand.u32 2147483647, %v8060_v37  ;;  %v5032_v47 = vld [vmem:[%s8981_s4 + $0x20] sm:$0xff] }
 0x4b5   :  { %v8079_v40 = vadd.f32 %v3341_v39, %v3339_v60  ;;  %5461 = vtanh.f32 %v8077_v16  ;;  %vm3307_vm14 = vweird.f32 %v8060_v37  ;;  %v3328_v48 = vand.u32 2147483648, %v8067_v57  ;;  %v9392_v59 = vld [vmem:[#allocation37_spill] sm:$0xff] }
 0x4b6   :  { %v3351_v46 = vrot.slane %v3100_v41, 4  ;;  %v3326_v36 = vand.u32 2147483647, %v8067_v57  ;;  %v3314_v9 = vor.u32 1.1754944e-38, %v3313_v20  ;;  %vm3312_vm9 = vcmp.eq.f32.partialorder %v3311_v27, 8.507059e+37  ;;  %v9393_v39 = vld [vmem:[#allocation13_spill] sm:$0xff] }
 0x4b7   :  { %5463 = vtanh.f32 %v8079_v40  ;;  %vm3322_vm8 = vweird.f32 %v8067_v57  ;;  %v3329_v7 = vor.u32 1.1754944e-38, %v3328_v48  ;;  %v9394_v60 = vld [vmem:[#allocation45_spill] sm:$0xff]  ;;  %v9395_v41 = vld [vmem:[#allocation15_spill] sm:$0xff] }
 0x4b8   :  { %v5458_v6 = vpop.eup %5457  ;;  %v8082_v10 = vsel %vm892_vm11, %v3351_v46, %v3350_v49  ;;  %vm3327_vm10 = vcmp.eq.f32.partialorder %v3326_v36, 8.507059e+37  ;;  %v9396_v49 = vld [vmem:[#allocation38_spill] sm:$0xff] }
 0x4b9   :  { %v3303_v22 = vmul.f32 %v5458_v6, %v8060_v37  ;;  %5005 = vmatmul.msk.f32.vlgmr.msra.gmra.mxu0 %vm117_vm0, %v8082_v10  ;;  %5006 = vmatmul.msk.f32.vlgmr.msra.gmra.mxu1 %vm117_vm0, %v8082_v10  ;;  %v5460_v38 = vpop.eup %5459  ;;  %vm3308_vm5 = vweird.f32 %v5458_v6  ;;  %v9397_v46 = vld [vmem:[#allocation18_spill] sm:$0xff] }
 0x4ba   :  { %5007 = vmatmul.msk.f32.vlgmr.msra.gmra.mxu2 %vm117_vm0, %v8082_v10  ;;  %5008 = vmatmul.msk.f32.vlgmr.msra.gmra.mxu3 %vm117_vm0, %v8082_v10  ;;  %v3318_v31 = vmul.f32 %v5460_v38, %v8067_v57  ;;  %vm3323_vm2 = vweird.f32 %v5460_v38  ;;  %vm3309_vm15 = vmor %vm3307_vm14, %vm3308_vm5  ;;  %v5035_v57 = vld [vmem:[%s8981_s4 + $0x38] sm:$0xff] }
 0x4bb   :  { %v3304_v50 = vsub.f32 1.0, %v3303_v22  ;;  %3866 = vmatpush.msra.mxu0 %v8087_v1  ;;  %3948 = vmatpush.msra.mxu1 %v8087_v1  ;;  %v5462_v25 = vpop.eup %5461  ;;  %vm3324_vm6 = vmor %vm3322_vm8, %vm3323_vm2 }
 0x4bc   :  { %4012 = vmatpush.msra.mxu2 %v8087_v1  ;;  %4083 = vmatpush.msra.mxu3 %v8087_v1  ;;  %v3319_v12 = vsub.f32 1.0, %v3318_v31 }
 0x4bd   :  { %v3305_v35 = vmul.f32 %v5458_v6, %v3304_v50  ;;  %3867 = vmatpush.msra.mxu0 %v8102_v26  ;;  %3949 = vmatpush.msra.mxu1 %v8102_v26  ;;  %v5464_v11 = vpop.eup %5463 }
 0x4be   :  { %4013 = vmatpush.msra.mxu2 %v8102_v26  ;;  %4084 = vmatpush.msra.mxu3 %v8102_v26  ;;  %v3320_v43 = vmul.f32 %v5460_v38, %v3319_v12 }
 0x4bf   :  { %v3306_v61 = vadd.f32 %v5458_v6, %v3305_v35  ;;  %3868 = vmatpush.msra.mxu0 %v3843_v21  ;;  %3950 = vmatpush.msra.mxu1 %v3843_v21 }
 0x4c0   :  { %4014 = vmatpush.msra.mxu2 %v3843_v21  ;;  %4085 = vmatpush.msra.mxu3 %v3843_v21  ;;  %v3321_v29 = vadd.f32 %v5460_v38, %v3320_v43 }
 0x4c1   :  { %v3310_v42 = vsel %vm3309_vm15, %v5458_v6, %v3306_v61  ;;  %3869 = vmatpush.msra.mxu0 %v3842_v2  ;;  %3951 = vmatpush.msra.mxu1 %v3842_v2 }
 0x4c2   :  { %v3315_v5 = vsel %vm3312_vm9, %v3314_v9, %v3310_v42  ;;  %4015 = vmatpush.msra.mxu2 %v3842_v2  ;;  %4086 = vmatpush.msra.mxu3 %v3842_v2  ;;  %v3325_v3 = vsel %vm3324_vm6, %v5460_v38, %v3321_v29 }
 0x4c3   :  { %v3346_v53 = vmul.f32 %v5462_v25, %v3315_v5  ;;  %v3330_v44 = vsel %vm3327_vm10, %v3329_v7, %v3325_v3 }
 0x4c4   :  { %v3347_v37 = vmul.f32 %v5464_v11, %v3330_v44 }
 0x4c5   :  { %v3597_v58 = vrot.slane %v3346_v53, 5 }
 0x4c6   :  { %v3598_v33 = vrot.slane %v3347_v37, 4 }
 0x4c8   :  { %v3599_v28 = vsel %vm892_vm11, %v3598_v33, %v3597_v58 }
 0x4c9   :  { %5015 = vmatmul.msk.f32.vlgmr.msrb.gmra.mxu0 %vm117_vm0, %v3599_v28  ;;  %5016 = vmatmul.msk.f32.vlgmr.msrb.gmra.mxu1 %vm117_vm0, %v3599_v28 }
 0x4ca   :  { %5017 = vmatmul.msk.f32.vlgmr.msrb.gmra.mxu2 %vm117_vm0, %v3599_v28  ;;  %5018 = vmatmul.msk.f32.vlgmr.msrb.gmra.mxu3 %vm117_vm0, %v3599_v28 }
 0x4cb   :  { %4151 = vmatpush.msrb.mxu0 %v8087_v1  ;;  %4221 = vmatpush.msrb.mxu1 %v8087_v1 }
 0x4cc   :  { %4386 = vmatpush.msrb.mxu3 %v5035_v57  ;;  %4298 = vmatpush.msrb.mxu2 %v8087_v1 }
 0x4cd   :  { %4152 = vmatpush.msrb.mxu0 %v8102_v26  ;;  %4222 = vmatpush.msrb.mxu1 %v8102_v26 }
 0x4ce   :  { %4387 = vmatpush.msrb.mxu3 %v5034_v34  ;;  %4299 = vmatpush.msrb.mxu2 %v8102_v26 }
 0x4cf   :  { %4153 = vmatpush.msrb.mxu0 %v3843_v21  ;;  %4223 = vmatpush.msrb.mxu1 %v3843_v21 }
 0x4d0   :  { %4388 = vmatpush.msrb.mxu3 %v5033_v55  ;;  %4300 = vmatpush.msrb.mxu2 %v3843_v21 }
 0x4d1   :  { %5025 = vmatmul.msk.f32.vlgmr.msra.gmra.mxu0 %vm117_vm0, %v9392_v59  ;;  %5026 = vmatmul.msk.f32.vlgmr.msra.gmra.mxu1 %vm117_vm0, %v9393_v39 }
 0x4d2   :  { %5027 = vmatmul.msk.f32.vlgmr.msra.gmra.mxu2 %vm117_vm0, %v9394_v60  ;;  %5028 = vmatmul.msk.f32.vlgmr.msra.gmra.mxu3 %vm117_vm0, %v9395_v41 }
 0x4d3   :  { %4154 = vmatpush.msrb.mxu0 %v3842_v2  ;;  %4224 = vmatpush.msrb.mxu1 %v3842_v2 }
 0x4d4   :  { %4389 = vmatpush.msrb.mxu3 %v5032_v47  ;;  %4301 = vmatpush.msrb.mxu2 %v3842_v2 }
 0x4d5   :  { %4455 = vmatpush.msra.mxu0 %v5035_v57  ;;  %4518 = vmatpush.msra.mxu1 %v5035_v57 }
 0x4d6   :  { %4656 = vmatpush.msra.mxu3 %v5035_v57  ;;  %4588 = vmatpush.msra.mxu2 %v5035_v57 }
 0x4d7   :  { %4456 = vmatpush.msra.mxu0 %v5034_v34  ;;  %4519 = vmatpush.msra.mxu1 %v5034_v34 }
 0x4d8   :  { %4657 = vmatpush.msra.mxu3 %v5034_v34  ;;  %4589 = vmatpush.msra.mxu2 %v5034_v34 }
 0x4d9   :  { %4457 = vmatpush.msra.mxu0 %v5033_v55  ;;  %5030 = vmatmul.msk.f32.vlgmr.msrb.gmra.mxu1 %vm117_vm0, %v8082_v10 }
 0x4da   :  { %5029 = vmatmul.msk.f32.vlgmr.msrb.gmra.mxu0 %vm117_vm0, %v7760_v45  ;;  %5039 = vmatmul.msk.f32.vlgmr.msrb.gmra.mxu3 %vm117_vm0, %v9396_v49  ;;  %v9398_v45 = vld [vmem:[#allocation14_spill] sm:$0xff] }
 0x4db   :  { %4520 = vmatpush.msra.mxu1 %v5033_v55  ;;  %4658 = vmatpush.msra.mxu3 %v5033_v55 }
 0x4dc   :  { %4458 = vmatpush.msra.mxu0 %v5032_v47  ;;  %4590 = vmatpush.msra.mxu2 %v5033_v55 }
 0x4dd   :  { %4521 = vmatpush.msra.mxu1 %v5032_v47  ;;  %4659 = vmatpush.msra.mxu3 %v5032_v47 }
 0x4de   :  { %4726 = vmatpush.msrb.mxu0 %v5035_v57  ;;  %4591 = vmatpush.msra.mxu2 %v5032_v47 }
 0x4df   :  { %4803 = vmatpush.msrb.mxu1 %v5035_v57  ;;  %v3581_v57 = vrot.slane %v7921_v14, 7 }
 0x4e0   :  { %4727 = vmatpush.msrb.mxu0 %v5034_v34 }
 0x4e1   :  { %4804 = vmatpush.msrb.mxu1 %v5034_v34  ;;  %v3582_v34 = vrot.slane %v7926_v15, 7  ;;  %v3828_v15 = vrot.slane %v8077_v16, 7 }
 0x4e2   :  { %4728 = vmatpush.msrb.mxu0 %v5033_v55  ;;  %5043 = vmatmul.msk.f32.vlgmr.msra.gmra.mxu1 %vm117_vm0, %v9398_v45 }
 0x4e3   :  { %5041 = vmatmul.msk.f32.vlgmr.msra.gmra.mxu0 %vm117_vm0, %v9397_v46  ;;  %5047 = vmatmul.msk.f32.vlgmr.msra.gmra.mxu3 %vm117_vm0, %v7794_v0 }
 0x4e4   :  { %4729 = vmatpush.msrb.mxu0 %v5032_v47  ;;  %4805 = vmatpush.msrb.mxu1 %v5033_v55 }
 0x4e6   :  { %4806 = vmatpush.msrb.mxu1 %v5032_v47 }
 0x4eb   :  { %5049 = vmatmul.msk.f32.vlgmr.msrb.gmra.mxu0 %vm117_vm0, %v3599_v28 }
 0x536   :  { %v3372_v6 = vpop.f32.mrf.mxu0  ;;  %v3399_v10 = vpop.f32.mrf.mxu1 }
 0x537   :  { %v3376_v1 = vrot.slane %v3372_v6, 2  ;;  %v3377_v22 = vrot.slane %v3372_v6, 3  ;;  %v3403_v38 = vrot.slane %v3399_v10, 2  ;;  %v3404_v26 = vrot.slane %v3399_v10, 3 }
 0x539   :  { %v3380_v50 = vadd.f32 %v3376_v1, %v9360_v63  ;;  %v3381_v31 = vadd.f32 %v3377_v22, %v9361_v13  ;;  %v3407_v20 = vadd.f32 %v3403_v38, %v9362_v8  ;;  %v3408_v0 = vadd.f32 %v3404_v26, %v9363_v56 }
 0x53b   :  { %v5009_v21 = vmul.f32 -1.442695, %v3380_v50  ;;  %v5010_v12 = vmul.f32 -1.442695, %v3381_v31  ;;  %v5011_v35 = vmul.f32 -1.442695, %v3407_v20 }
 0x53c   :  { %v5012_v27 = vmul.f32 -1.442695, %v3408_v0 }
 0x53d   :  { %5465 = vpow2.f32 %v5009_v21  ;;  %v3426_v48 = vpop.f32.mrf.mxu2  ;;  %v3453_v2 = vpop.f32.mrf.mxu3 }
 0x53e   :  { %5467 = vpow2.f32 %v5010_v12  ;;  %v3430_v61 = vrot.slane %v3426_v48, 2  ;;  %v3457_v43 = vrot.slane %v3453_v2, 2  ;;  %v3458_v36 = vrot.slane %v3453_v2, 3 }
 0x53f   :  { %5469 = vpow2.f32 %v5011_v35  ;;  %v3431_v56 = vrot.slane %v3426_v48, 3 }
 0x540   :  { %5471 = vpow2.f32 %v5012_v27  ;;  %v3434_v63 = vadd.f32 %v3430_v61, %v9364_v23  ;;  %v3461_v13 = vadd.f32 %v3457_v43, %v9365_v24  ;;  %v3462_v8 = vadd.f32 %v3458_v36, %v9366_v19 }
 0x541   :  { %v3435_v24 = vadd.f32 %v3431_v56, %v9367_v4 }
 0x542   :  { %v5013_v25 = vmul.f32 -1.442695, %v3461_v13  ;;  %5473 = vtanh.f32 %v3434_v63  ;;  %v5014_v42 = vmul.f32 -1.442695, %v3462_v8 }
 0x543   :  { %v5466_v9 = vpop.eup %5465 }
 0x544   :  { %v5468_v29 = vpop.eup %5467  ;;  %v8179_v11 = vadd.f32 1.0, %v5466_v9  ;;  %5475 = vpow2.f32 %v5013_v25 }
 0x545   :  { %v5470_v5 = vpop.eup %5469  ;;  %v8181_v7 = vadd.f32 1.0, %v5468_v29  ;;  %5477 = vpow2.f32 %v5014_v42 }
 0x546   :  { %v5472_v3 = vpop.eup %5471  ;;  %5479 = vrcp.f32 %v8179_v11  ;;  %v8184_v23 = vadd.f32 1.0, %v5470_v5  ;;  %v3482_v53 = vand.u32 2147483648, %v8179_v11  ;;  %v3619_v37 = vpop.f32.mrf.mxu0  ;;  %v3480_v28 = vand.u32 2147483647, %v8179_v11 }
 0x547   :  { %5481 = vrcp.f32 %v8181_v7  ;;  %v8188_v19 = vadd.f32 1.0, %v5472_v3  ;;  %v3495_v55 = vand.u32 2147483647, %v8181_v7  ;;  %vm3476_vm4 = vweird.f32 %v8179_v11  ;;  %v3646_v21 = vpop.f32.mrf.mxu1 }
 0x548   :  { %5483 = vrcp.f32 %v8184_v23  ;;  %v3520_v44 = vand.u32 2147483648, %v8184_v23  ;;  %v8193_v58 = vpop.eup %5473  ;;  %v3483_v39 = vor.u32 1.1754944e-38, %v3482_v53  ;;  %v3623_v60 = vrot.slane %v3619_v37, 2 }
 0x549   :  { %5485 = vrcp.f32 %v8188_v19  ;;  %v3535_v33 = vand.u32 2147483648, %v8188_v19  ;;  %vm3491_vm1 = vweird.f32 %v8181_v7  ;;  %v3497_v46 = vand.u32 2147483648, %v8181_v7 }
 0x54a   :  { %v5476_v4 = vpop.eup %5475  ;;  %5487 = vtanh.f32 %v3435_v24  ;;  %v8204_v49 = vor.u32 1.1754944e-38, %v3520_v44  ;;  %v3518_v45 = vand.u32 2147483647, %v8184_v23  ;;  %vm3514_vm7 = vweird.f32 %v8184_v23 }
 0x54b   :  { %v5478_v59 = vpop.eup %5477  ;;  %v8202_v47 = vadd.f32 1.0, %v5476_v4  ;;  %v8213_v22 = vor.u32 1.1754944e-38, %v3535_v33  ;;  %vm8215_vm3 = vcmp.eq.f32.partialorder %v3480_v28, 8.507059e+37  ;;  %v3533_v26 = vand.u32 2147483647, %v8188_v19 }
 0x54c   :  { %v5480_v41 = vpop.eup %5479  ;;  %v8209_v6 = vadd.f32 1.0, %v5478_v59  ;;  %vm3529_vm12 = vweird.f32 %v8188_v19  ;;  %vm8222_vm14 = vcmp.eq.f32.partialorder %v3495_v55, 8.507059e+37  ;;  %v3624_v0 = vrot.slane %v3619_v37, 3 }
 0x54d   :  { %v5482_v10 = vpop.eup %5481  ;;  %v3472_v1 = vmul.f32 %v5480_v41, %v8179_v11  ;;  %vm3477_vm13 = vweird.f32 %v5480_v41  ;;  %5489 = vrcp.f32 %v8202_v47  ;;  %v3627_v48 = vadd.f32 %v3623_v60, %v9161_v18  ;;  %v8232_v25 = vpop.f32.mrf.mxu3 }
 0x54e   :  { %v5484_v50 = vpop.eup %5483  ;;  %v3487_v31 = vmul.f32 %v5482_v10, %v8181_v7  ;;  %vm3492_vm5 = vweird.f32 %v5482_v10  ;;  %5491 = vrcp.f32 %v8209_v6  ;;  %v3628_v36 = vadd.f32 %v3624_v0, %v9160_v51  ;;  %vm3478_vm9 = vmor %vm3476_vm4, %vm3477_vm13  ;;  %v3871_v0 = vpop.f32.mrf.mxu0 }
 0x54f   :  { %v5486_v12 = vpop.eup %5485  ;;  %v3473_v35 = vsub.f32 1.0, %v3472_v1  ;;  %v3510_v27 = vmul.f32 %v5484_v50, %v8184_v23  ;;  %vm3515_vm2 = vweird.f32 %v5484_v50  ;;  %v5019_v8 = vmul.f32 -1.442695, %v3627_v48  ;;  %vm3493_vm8 = vmor %vm3491_vm1, %vm3492_vm5  ;;  %v3673_v23 = vpop.f32.mrf.mxu2 }
 0x550   :  { %v5488_v2 = vpop.eup %5487  ;;  %v3488_v61 = vsub.f32 1.0, %v3487_v31  ;;  %v3525_v43 = vmul.f32 %v5486_v12, %v8188_v19  ;;  %v3650_v56 = vrot.slane %v3646_v21, 2  ;;  %v5020_v29 = vmul.f32 -1.442695, %v3628_v36  ;;  %vm3516_vm6 = vmor %vm3514_vm7, %vm3515_vm2 }
 0x551   :  { %v3511_v63 = vsub.f32 1.0, %v3510_v27  ;;  %v3474_v13 = vmul.f32 %v5480_v41, %v3473_v35  ;;  %v3651_v5 = vrot.slane %v3646_v21, 3  ;;  %vm3530_vm15 = vweird.f32 %v5486_v12  ;;  %v3953_v21 = vpop.f32.mrf.mxu1 }
 0x552   :  { %v3526_v9 = vsub.f32 1.0, %v3525_v43  ;;  %v3489_v42 = vmul.f32 %v5482_v10, %v3488_v61  ;;  %5493 = vpow2.f32 %v5019_v8  ;;  %v3654_v44 = vadd.f32 %v3650_v56, %v9164_v52  ;;  %vm3531_vm4 = vmor %vm3529_vm12, %vm3530_vm15 }
 0x553   :  { %v3512_v3 = vmul.f32 %v5484_v50, %v3511_v63  ;;  %v3475_v18 = vadd.f32 %v5480_v41, %v3474_v13  ;;  %v8234_v24 = vpop.eup %5489  ;;  %5495 = vpow2.f32 %v5020_v29  ;;  %v3498_v28 = vor.u32 1.1754944e-38, %v3497_v46 }
 0x554   :  { %v3527_v53 = vmul.f32 %v5486_v12, %v3526_v9  ;;  %v3490_v51 = vadd.f32 %v5482_v10, %v3489_v42  ;;  %v8240_v37 = vpop.eup %5491  ;;  %v3655_v55 = vadd.f32 %v3651_v5, %v9169_v32  ;;  %vm3519_vm10 = vcmp.eq.f32.partialorder %v3518_v45, 8.507059e+37  ;;  %v8290_v9 = vld [vmem:[#allocation6] ss:$0 sm:$0xff] }
 0x555   :  { %v3479_v33 = vsel %vm3478_vm9, %v5480_v41, %v3475_v18  ;;  %v3513_v4 = vadd.f32 %v5484_v50, %v3512_v3  ;;  %vm3534_vm1 = vcmp.eq.f32.partialorder %v3533_v26, 8.507059e+37  ;;  %v8258_v32 = vmul.f32 %v8234_v24, %v8202_v47 }
 0x556   :  { %v3484_v11 = vsel %vm8215_vm3, %v3483_v39, %v3479_v33  ;;  %v3494_v59 = vsel %vm3493_vm8, %v5482_v10, %v3490_v51  ;;  %v3528_v52 = vadd.f32 %v5486_v12, %v3527_v53  ;;  %v5021_v45 = vmul.f32 -1.442695, %v3654_v44 }
 0x557   :  { %v3499_v7 = vsel %vm8222_vm14, %v3498_v28, %v3494_v59  ;;  %v3517_v60 = vsel %vm3516_vm6, %v5484_v50, %v3513_v4  ;;  %v3587_v46 = vmul.f32 %v8193_v58, %v3484_v11  ;;  %v5022_v50 = vmul.f32 -1.442695, %v3655_v55  ;;  %v4156_v4 = vpop.f32.mrf.mxu0 }
 0x558   :  { %v3522_v41 = vsel %vm3519_vm10, %v8204_v49, %v3517_v60  ;;  %v3532_v39 = vsel %vm3531_vm4, %v5486_v12, %v3528_v52  ;;  %v5494_v10 = vpop.eup %5493  ;;  %v3588_v38 = vmul.f32 %v5488_v2, %v3499_v7  ;;  %5497 = vpow2.f32 %v5021_v45 }
 0x559   :  { %v3537_v19 = vsel %vm3534_vm1, %v8213_v22, %v3532_v39  ;;  %v3585_v1 = vmul.f32 %v3581_v57, %v3522_v41  ;;  %v5496_v26 = vpop.eup %5495  ;;  %v8267_v20 = vadd.f32 1.0, %v5494_v10  ;;  %v3677_v49 = vrot.slane %v3673_v23, 2  ;;  %v8275_v57 = vpop.f32.mrf.mxu3 }
 0x55a   :  { %v3586_v31 = vmul.f32 %v3582_v34, %v3537_v19  ;;  %v8271_v58 = vmul.f32 %v8240_v37, %v8209_v6  ;;  %v8273_v22 = vadd.f32 1.0, %v5496_v26  ;;  %5499 = vpow2.f32 %v5022_v50  ;;  %v4226_v55 = vpop.f32.mrf.mxu1 }
 0x55b   :  { %v3678_v14 = vrot.slane %v3673_v23, 3  ;;  %v3589_v12 = vadd.f32 %v3587_v46, %v3585_v1  ;;  %5501 = vrcp.f32 %v8267_v20  ;;  %v3829_v35 = vrot.slane %v8079_v40, 7 }
 0x55c   :  { %v3590_v34 = vadd.f32 %v3588_v38, %v3586_v31  ;;  %v3551_v27 = vsub.f32 1.0, %v8258_v32  ;;  %v3681_v48 = vadd.f32 %v3677_v49, %v6049_v30  ;;  %v3704_v2 = vrot.slane %v8232_v25, 2 }
 0x55d   :  { %v3566_v61 = vsub.f32 1.0, %v8271_v58  ;;  %5503 = vrcp.f32 %v8273_v22  ;;  %v3682_v43 = vadd.f32 %v3678_v14, %v9170_v54  ;;  %v3705_v36 = vrot.slane %v8232_v25, 3 }
 0x55e   :  { %v5498_v63 = vpop.eup %5497  ;;  %5505 = vtanh.f32 %v3589_v12  ;;  %v3727_v13 = vand.u32 2147483647, %v8267_v20  ;;  %v3729_v8 = vand.u32 2147483648, %v8267_v20  ;;  %v3708_v56 = vadd.f32 %v3704_v2, %v9171_v17  ;;  %v4017_v12 = vpop.f32.mrf.mxu2 }
 0x55f   :  { %5507 = vtanh.f32 %v3590_v34  ;;  %v8292_v42 = vadd.f32 1.0, %v5498_v63  ;;  %vm3723_vm7 = vweird.f32 %v8267_v20  ;;  %v3742_v54 = vand.u32 2147483647, %v8273_v22 }
 0x560   :  { %v5500_v30 = vpop.eup %5499  ;;  %v3744_v25 = vand.u32 2147483648, %v8273_v22  ;;  %5509 = vtanh.f32 %v3681_v48  ;;  %v5023_v3 = vmul.f32 -1.442695, %v3708_v56  ;;  %vm3849_vm13 = vcmask 254976   ;;  %v4460_v33 = vpop.f32.mrf.mxu0 }
 0x561   :  { %v8297_v29 = vpop.eup %5501  ;;  %v8299_v5 = vadd.f32 1.0, %v5500_v30  ;;  %5511 = vrcp.f32 %v8292_v42  ;;  %v3767_v18 = vand.u32 2147483648, %v8292_v42  ;;  %v3709_v53 = vadd.f32 %v3705_v36, %v6172_v62  ;;  %v4391_v60 = vpop.f32.mrf.mxu3 }
 0x562   :  { %v3719_v17 = vmul.f32 %v8297_v29, %v8267_v20  ;;  %v9403_v51 = vmov 0.0   ;;  %vm8313_vm3 = vcmp.eq.f32.partialorder %v3727_v13, 8.507059e+37  ;;  %vm3738_vm12 = vweird.f32 %v8273_v22  ;;  %v8378_v13 = vld [vmem:[#allocation6 + $0x1] ss:$0 sm:$0xff] }
 0x563   :  { %3850 = vst.msk [vmem:[%s8985_s8] sm:$0x3] %vm3849_vm13, %v9403_v51  ;;  %5513 = vrcp.f32 %v8299_v5  ;;  %v3782_v44 = vand.u32 2147483648, %v8299_v5  ;;  %v8319_v28 = vadd.f32 %v8290_v9, %v3871_v0  ;;  %v8322_v62 = vadd.f32 %v8290_v9, %v3953_v21  ;;  %v8329_v11 = vpop.eup %5503 }
 0x564   :  { %5038 = vst.msk [vmem:[%s8985_s8 + $0x4] sm:$0x3] %vm3849_vm13, %v9403_v51  ;;  %v3720_v59 = vsub.f32 1.0, %v3719_v17  ;;  %v3730_v52 = vor.u32 1.1754944e-38, %v3729_v8  ;;  %v3745_v7 = vor.u32 1.1754944e-38, %v3744_v25  ;;  %5515 = vtanh.f32 %v3682_v43  ;;  %v8331_v23 = vpop.eup %5505 }
 0x565   :  { %v3734_v41 = vmul.f32 %v8329_v11, %v8273_v22  ;;  %vm3724_vm5 = vweird.f32 %v8297_v29  ;;  %vm8336_vm14 = vcmp.eq.f32.partialorder %v3742_v54, 8.507059e+37  ;;  %v3765_v46 = vand.u32 2147483647, %v8292_v42  ;;  %v8341_v45 = vpop.eup %5507 }
 0x566   :  { %5517 = vpow2.f32 %v5023_v3  ;;  %v8343_v10 = vor.u32 1.1754944e-38, %v3767_v18  ;;  %v3721_v19 = vmul.f32 %v8297_v29, %v3720_v59  ;;  %v3780_v1 = vand.u32 2147483647, %v8299_v5  ;;  %v5510_v50 = vpop.eup %5509  ;;  %vm8366_vm8 = vmor %vm3723_vm7, %vm3724_vm5 }
 0x567   :  { %v5024_v38 = vmul.f32 -1.442695, %v3709_v53  ;;  %v3735_v26 = vsub.f32 1.0, %v3734_v41  ;;  %vm3761_vm2 = vweird.f32 %v8292_v42  ;;  %v8348_v31 = vor.u32 1.1754944e-38, %v3782_v44  ;;  %v5512_v21 = vpop.eup %5511 }
 0x568   :  { %v3956_v49 = vsel %vm3849_vm13, %v8322_v62, 0.0  ;;  %v3874_v0 = vsel %vm3849_vm13, %v8319_v28, 0.0  ;;  %vm3776_vm15 = vweird.f32 %v8299_v5  ;;  %v3722_v14 = vadd.f32 %v8297_v29, %v3721_v19 }
 0x569   :  { %vm3739_vm9 = vweird.f32 %v8329_v11  ;;  %5519 = vpow2.f32 %v5024_v38  ;;  %3957 = vadd.xlane.f32.xlu1 %v3956_v49  ;;  %3875 = vadd.xlane.f32.xlu0 %v3874_v0  ;;  %v8359_v34 = vadd.f32 %v8290_v9, %v8275_v57  ;;  %v5514_v48 = vpop.eup %5513  ;;  %v3757_v2 = vmul.f32 %v5512_v21, %v8292_v42 }
 0x56a   :  { %v3736_v36 = vmul.f32 %v8329_v11, %v3735_v26  ;;  %vm8371_vm6 = vcmp.eq.f32.partialorder %v3765_v46, 8.507059e+37  ;;  %v8376_v57 = vadd.f32 %v8290_v9, %v4156_v4  ;;  %v5516_v8 = vpop.eup %5515  ;;  %v3772_v56 = vmul.f32 %v5514_v48, %v8299_v5  ;;  %vm3740_vm1 = vmor %vm3738_vm12, %vm3739_vm9 }
 0x56b   :  { %v3726_v20 = vsel %vm8366_vm8, %v8297_v29, %v3722_v14  ;;  %vm8384_vm10 = vcmp.eq.f32.partialorder %v3780_v1, 8.507059e+37  ;;  %v4091_v54 = vsel %vm3849_vm13, %v8359_v34, 0.0  ;;  %v3758_v3 = vsub.f32 1.0, %v3757_v2 }
 0x56c   :  { %v5518_v25 = vpop.eup %5517  ;;  %vm3762_vm4 = vweird.f32 %v5512_v21  ;;  %v3737_v17 = vadd.f32 %v8329_v11, %v3736_v36  ;;  %v8392_v18 = vadd.f32 %v8290_v9, %v4017_v12  ;;  %4092 = vadd.xlane.f32.xlu2 %v4091_v54  ;;  %v3773_v53 = vsub.f32 1.0, %v3772_v56 }
 0x56d   :  { %v3731_v29 = vsel %vm8313_vm3, %v3730_v52, %v3726_v20  ;;  %v8400_v51 = vadd.f32 1.0, %v5518_v25  ;;  %v8403_v44 = vadd.f32 %v8290_v9, %v4226_v55  ;;  %v3759_v4 = vmul.f32 %v5512_v21, %v3758_v3  ;;  %v4523_v52 = vpop.f32.mrf.mxu1  ;;  %v4661_v55 = vpop.f32.mrf.mxu3  ;;  %vm3763_vm3 = vmor %vm3761_vm2, %vm3762_vm4 }
 0x56e   :  { %v3741_v59 = vsel %vm3740_vm1, %v8329_v11, %v3737_v17  ;;  %v4159_v41 = vsel %vm3849_vm13, %v8376_v57, 0.0  ;;  %v8409_v46 = vadd.f32 %v8378_v13, %v4391_v60  ;;  %v3774_v1 = vmul.f32 %v5514_v48, %v3773_v53 }
 0x56f   :  { %v5520_v19 = vpop.eup %5519  ;;  %vm3777_vm7 = vweird.f32 %v5514_v48  ;;  %v3746_v22 = vsel %vm8336_vm14, %v3745_v7, %v3741_v59  ;;  %5521 = vrcp.f32 %v8400_v51  ;;  %v3760_v38 = vadd.f32 %v5512_v21, %v3759_v4 }
 0x570   :  { %v3834_v26 = vmul.f32 %v5510_v50, %v3731_v29  ;;  %v8414_v11 = vadd.f32 1.0, %v5520_v19  ;;  %v4020_v49 = vsel %vm3849_vm13, %v8392_v18, 0.0  ;;  %v3775_v60 = vadd.f32 %v5514_v48, %v3774_v1  ;;  %vm3778_vm12 = vmor %vm3776_vm15, %vm3777_vm7 }
 0x571   :  { %4160 = vadd.xlane.f32.xlu1 %v4159_v41  ;;  %4021 = vadd.xlane.f32.xlu0 %v4020_v49  ;;  %v8422_v39 = vadd.f32 %v8378_v13, %v4460_v33  ;;  %v8425_v7 = vadd.f32 %v8378_v13, %v4523_v52  ;;  %v4394_v50 = vsel %vm3849_vm13, %v8409_v46, 0.0  ;;  %v3764_v0 = vsel %vm3763_vm3, %v5512_v21, %v3760_v38 }
 0x572   :  { %v3835_v14 = vmul.f32 %v5516_v8, %v3746_v22  ;;  %5523 = vrcp.f32 %v8414_v11  ;;  %v8434_v42 = vadd.f32 %v8378_v13, %v4661_v55  ;;  %v3769_v12 = vsel %vm8371_vm6, %v8343_v10, %v3764_v0 }
 0x573   :  { %v3779_v2 = vsel %vm3778_vm12, %v5514_v48, %v3775_v60  ;;  %v4229_v43 = vsel %vm3849_vm13, %v8403_v44, 0.0  ;;  %v3552_v5 = vmul.f32 %v8234_v24, %v3551_v27  ;;  %v3832_v36 = vmul.f32 %v3828_v15, %v3769_v12 }
 0x574   :  { %v3784_v21 = vsel %vm8384_vm10, %v8348_v31, %v3779_v2  ;;  %4395 = vadd.xlane.f32.xlu2 %v4394_v50  ;;  %vm3554_vm5 = vweird.f32 %v8202_v47  ;;  %vm3555_vm14 = vweird.f32 %v8234_v24  ;;  %v3558_v27 = vand.u32 2147483647, %v8202_v47 }
 0x575   :  { %v8451_v10 = vpop.eup %5521  ;;  %v3833_v48 = vmul.f32 %v3829_v35, %v3784_v21  ;;  %v3553_v32 = vadd.f32 %v8234_v24, %v3552_v5  ;;  %v3560_v63 = vand.u32 2147483648, %v8202_v47  ;;  %v3836_v31 = vadd.f32 %v3834_v26, %v3832_v36  ;;  %vm8462_vm2 = vmor %vm3554_vm5, %vm3555_vm14 }
 0x576   :  { %v3797_v16 = vmul.f32 %v8451_v10, %v8400_v51  ;;  %v4664_v15 = vsel %vm3849_vm13, %v8434_v42, 0.0  ;;  %v3567_v40 = vmul.f32 %v8240_v37, %v3566_v61  ;;  %vm3569_vm15 = vweird.f32 %v8209_v6 }
 0x577   :  { %v3837_v35 = vadd.f32 %v3835_v14, %v3833_v48  ;;  %v3557_v47 = vsel %vm8462_vm2, %v8234_v24, %v3553_v32  ;;  %v3561_v56 = vor.u32 1.1754944e-38, %v3560_v63  ;;  %vm3559_vm9 = vcmp.eq.f32.partialorder %v3558_v27, 8.507059e+37  ;;  %v4731_v14 = vpop.f32.mrf.mxu0 }
 0x578   :  { %v5524_v20 = vpop.eup %5523  ;;  %v3798_v30 = vsub.f32 1.0, %v3797_v16  ;;  %v3568_v54 = vadd.f32 %v8240_v37, %v3567_v40  ;;  %vm3570_vm8 = vweird.f32 %v8240_v37  ;;  %5525 = vtanh.f32 %v3836_v31  ;;  %v9420_v31 = vld [vmem:[#allocation21_spill] sm:$0xff] }
 0x579   :  { %v3812_v58 = vmul.f32 %v5524_v20, %v8414_v11  ;;  %4230 = vadd.xlane.f32.xlu0 %v4229_v43  ;;  %4665 = vadd.xlane.f32.xlu1 %v4664_v15  ;;  %v3562_v61 = vsel %vm3559_vm9, %v3561_v56, %v3557_v47  ;;  %v3573_v25 = vand.u32 2147483647, %v8209_v6  ;;  %5527 = vtanh.f32 %v3837_v35  ;;  %vm8479_vm6 = vmor %vm3569_vm15, %vm3570_vm8 }
 0x57a   :  { %v4526_v24 = vsel %vm3849_vm13, %v8425_v7, 0.0  ;;  %v3575_v17 = vand.u32 2147483648, %v8209_v6  ;;  %v3593_v53 = vmul.f32 %v8331_v23, %v3562_v61  ;;  %v3572_v4 = vsel %vm8479_vm6, %v8240_v37, %v3568_v54 }
 0x57b   :  { %v3813_v29 = vsub.f32 1.0, %v3812_v58  ;;  %vm3574_vm10 = vcmp.eq.f32.partialorder %v3573_v25, 8.507059e+37  ;;  %v3799_v59 = vmul.f32 %v8451_v10, %v3798_v30  ;;  %vm3801_vm4 = vweird.f32 %v8400_v51 }
 0x57c   :  { %4527 = vadd.xlane.f32.xlu2 %v4526_v24  ;;  %v3576_v41 = vor.u32 1.1754944e-38, %v3575_v17  ;;  %vm3802_vm1 = vweird.f32 %v8451_v10  ;;  %v3805_v33 = vand.u32 2147483647, %v8400_v51  ;;  %v4281_v52 = vrot.slane %v3593_v53, 6 }
 0x57d   :  { %v3800_v6 = vadd.f32 %v8451_v10, %v3799_v59  ;;  %v3807_v23 = vand.u32 2147483648, %v8400_v51  ;;  %v3814_v19 = vmul.f32 %v5524_v20, %v3813_v29  ;;  %vm8494_vm7 = vmor %vm3801_vm4, %vm3802_vm1  ;;  %vm3816_vm3 = vweird.f32 %v8414_v11 }
 0x57e   :  { %v3577_v1 = vsel %vm3574_vm10, %v3576_v41, %v3572_v4  ;;  %vm3817_vm12 = vweird.f32 %v5524_v20  ;;  %v3820_v22 = vand.u32 2147483647, %v8414_v11  ;;  %v5526_v55 = vpop.eup %5525  ;;  %v4463_v50 = vsel %vm3849_vm13, %v8422_v39, 0.0 }
 0x57f   :  { %v3594_v38 = vmul.f32 %v8341_v45, %v3577_v1  ;;  %v3804_v26 = vsel %vm8494_vm7, %v8451_v10, %v3800_v6  ;;  %v3808_v49 = vor.u32 1.1754944e-38, %v3807_v23  ;;  %v3815_v51 = vadd.f32 %v5524_v20, %v3814_v19  ;;  %v5528_v60 = vpop.eup %5527  ;;  %vm3818_vm14 = vmor %vm3816_vm3, %vm3817_vm12 }
 0x580   :  { %vm3806_vm5 = vcmp.eq.f32.partialorder %v3805_v33, 8.507059e+37  ;;  %v3822_v0 = vand.u32 2147483648, %v8414_v11  ;;  %vm3821_vm2 = vcmp.eq.f32.partialorder %v3820_v22, 8.507059e+37  ;;  %v8509_v36 = vadd.f32 %v8378_v13, %v4731_v14 }
 0x581   :  { %4464 = vadd.xlane.f32.xlu0 %v4463_v50  ;;  %v4282_v12 = vrot.slane %v3594_v38, 5  ;;  %v3809_v2 = vsel %vm3806_vm5, %v3808_v49, %v3804_v26  ;;  %v3819_v43 = vsel %vm3818_vm14, %v5524_v20, %v3815_v51  ;;  %v5761_v16 = vmov 32.0  }
 0x582   :  { %v3823_v45 = vor.u32 1.1754944e-38, %v3822_v0  ;;  %v3840_v5 = vmul.f32 %v5526_v55, %v3809_v2  ;;  %v4734_v11 = vsel %vm3849_vm13, %v8509_v36, 0.0  ;;  %5529 = vrcp.f32 %v5761_v16 }
 0x583   :  { %v4283_v21 = vsel %vm892_vm11, %v4282_v12, %v4281_v52 }
 0x584   :  { %5031 = vmatmul.msk.f32.vlgmr.msrb.gmra.mxu2 %vm117_vm0, %v4283_v21  ;;  %v3824_v10 = vsel %vm3821_vm2, %v3823_v45, %v3819_v43  ;;  %v4786_v32 = vrot.slane %v3840_v5, 6  ;;  %vm3925_vm2 = vcmask 1043459  }
 0x585   :  { %v3841_v48 = vmul.f32 %v5528_v60, %v3824_v10 }
 0x587   :  { %v4787_v27 = vrot.slane %v3841_v48, 5 }
 0x588   :  { %v5530_v15 = vpop.eup %5529 }
 0x589   :  { %4735 = vadd.xlane.f32.xlu0 %v4734_v11  ;;  %v4788_v63 = vsel %vm892_vm11, %v4787_v27, %v4786_v32  ;;  %v3878_v8 = vmul.f32 32.0, %v5530_v15  ;;  %vm3882_vm15 = vweird.f32 %v5530_v15 }
 0x58a   :  { %5051 = vmatmul.msk.f32.vlgmr.msrb.gmra.mxu1 %vm117_vm0, %v4788_v63 }
 0x58b   :  { %v3879_v40 = vsub.f32 1.0, %v3878_v8 }
 0x58c   :  { %5045 = vmatmul.msk.f32.vlgmr.msra.gmra.mxu2 %vm117_vm0, %v9420_v31 }
 0x58d   :  { %v3880_v35 = vmul.f32 %v5530_v15, %v3879_v40 }
 0x58f   :  { %v3881_v47 = vadd.f32 %v5530_v15, %v3880_v35 }
 0x591   :  { %v8518_v56 = vsel %vm3882_vm15, %v5530_v15, %v3881_v47  ;;  %vm3927_vm15 = vcmask 1045509  }
 0x5dc   :  { %v3958_v20 = vpop.xlane.xlu1 %3957  ;;  %v3876_v30 = vpop.xlane.xlu0 %3875 }
 0x5dd   :  { %v3959_v54 = vmul.f32 %v3958_v20, %v8518_v56  ;;  %v3884_v58 = vmul.f32 %v8518_v56, %v3876_v30 }
 0x5df   :  { %v8523_v61 = vsub.f32 %v8322_v62, %v3959_v54  ;;  %v8526_v25 = vsub.f32 %v8319_v28, %v3884_v58  ;;  %v4093_v24 = vpop.xlane.xlu2 %4092 }
 0x5e0   :  { %v4094_v3 = vmul.f32 %v4093_v24, %v8518_v56 }
 0x5e1   :  { %v3961_v17 = vmul.f32 %v8523_v61, %v8523_v61  ;;  %v3886_v53 = vmul.f32 %v8526_v25, %v8526_v25 }
 0x5e2   :  { %v8534_v29 = vsub.f32 %v8359_v34, %v4094_v3 }
 0x5e3   :  { %v3962_v4 = vsel %vm3849_vm13, %v3961_v17, 0.0  ;;  %v3887_v62 = vsel %vm3849_vm13, %v3886_v53, 0.0 }
 0x5e4   :  { %3963 = vadd.xlane.f32.xlu2 %v3962_v4  ;;  %v4161_v59 = vpop.xlane.xlu1 %4160  ;;  %3888 = vadd.xlane.f32.xlu0 %v3887_v62  ;;  %v4022_v28 = vpop.xlane.xlu0 %4021  ;;  %v4096_v41 = vmul.f32 %v8534_v29, %v8534_v29 }
 0x5e5   :  { %v4162_v33 = vmul.f32 %v4161_v59, %v8518_v56  ;;  %v4023_v52 = vmul.f32 %v4022_v28, %v8518_v56  ;;  %v8598_v59 = vld [vmem:[#allocation7] ss:$0 sm:$0xff] }
 0x5e6   :  { %v4097_v6 = vsel %vm3849_vm13, %v4096_v41, 0.0 }
 0x5e7   :  { %v8544_v34 = vsub.f32 %v8376_v57, %v4162_v33  ;;  %v8547_v23 = vsub.f32 %v8392_v18, %v4023_v52  ;;  %4098 = vadd.xlane.f32.xlu1 %v4097_v6 }
 0x5e9   :  { %v4025_v19 = vmul.f32 %v8547_v23, %v8547_v23  ;;  %v4164_v1 = vmul.f32 %v8544_v34, %v8544_v34 }
 0x5eb   :  { %v4026_v37 = vsel %vm3849_vm13, %v4025_v19, 0.0  ;;  %v4165_v38 = vsel %vm3849_vm13, %v4164_v1, 0.0 }
 0x5ec   :  { %4027 = vadd.xlane.f32.xlu0 %v4026_v37  ;;  %v4231_v22 = vpop.xlane.xlu0 %4230  ;;  %v8585_v21 = vpop.xlane.xlu1 %4665 }
 0x5ed   :  { %v4232_v55 = vmul.f32 %v4231_v22, %v8518_v56 }
 0x5ef   :  { %v8557_v57 = vsub.f32 %v8403_v44, %v4232_v55  ;;  %4166 = vadd.xlane.f32.xlu1 %v4165_v38  ;;  %v3966_v38 = vmul.f32 %v8598_v59, %v8523_v61 }
 0x5f1   :  { %v4234_v18 = vmul.f32 %v8557_v57, %v8557_v57 }
 0x5f3   :  { %v4235_v26 = vsel %vm3849_vm13, %v4234_v18, 0.0  ;;  %v3894_v18 = vmul.f32 %v8598_v59, %v8526_v25 }
 0x5f4   :  { %v8579_v43 = vpop.xlane.xlu0 %4464 }
 0x5f7   :  { %4236 = vadd.xlane.f32.xlu1 %v4235_v26  ;;  %v8606_v26 = vld [vmem:[#allocation9] ss:$0 sm:$0xff] }
 0x5fc   :  { %v8583_v5 = vpop.xlane.xlu0 %4735 }
 0x607   :  { %v4303_v49 = vpop.f32.mrf.mxu2  ;;  %v4808_v51 = vpop.f32.mrf.mxu1 }
 0x608   :  { %v8563_v60 = vadd.f32 %v8290_v9, %v4303_v49  ;;  %v8566_v50 = vadd.f32 %v8378_v13, %v4808_v51  ;;  %v8577_v9 = vpop.xlane.xlu2 %4395 }
 0x60a   :  { %v4306_v0 = vsel %vm3849_vm13, %v8563_v60, 0.0  ;;  %v4811_v44 = vsel %vm3849_vm13, %v8566_v50, 0.0 }
 0x60b   :  { %4307 = vadd.xlane.f32.xlu1 %v4306_v0  ;;  %4812 = vadd.xlane.f32.xlu0 %v4811_v44 }
 0x60f   :  { %v4593_v14 = vpop.f32.mrf.mxu2 }
 0x610   :  { %v8573_v12 = vadd.f32 %v8378_v13, %v4593_v14  ;;  %v8581_v45 = vpop.xlane.xlu2 %4527 }
 0x612   :  { %v4596_v2 = vsel %vm3849_vm13, %v8573_v12, 0.0 }
 0x613   :  { %4597 = vadd.xlane.f32.xlu1 %v4596_v2 }
 0x657   :  { %v3964_v10 = vpop.xlane.xlu2 %3963  ;;  %v3889_v48 = vpop.xlane.xlu0 %3888 }
 0x658   :  { %v3965_v32 = vmul.f32 %v3964_v10, %v8518_v56  ;;  %v3890_v13 = vmul.f32 %v3889_v48, %v8518_v56 }
 0x65a   :  { %v3967_v27 = vadd.f32 1.1920929e-07, %v3965_v32  ;;  %v3895_v11 = vadd.f32 1.1920929e-07, %v3890_v13  ;;  %v4099_v63 = vpop.xlane.xlu1 %4098 }
 0x65b   :  { %v4100_v31 = vmul.f32 %v4099_v63, %v8518_v56 }
 0x65c   :  { %5531 = vrsqrt.f32 %v3967_v27  ;;  %vm3974_vm8 = vweird.f32 %v3967_v27  ;;  %vm3902_vm10 = vweird.f32 %v3895_v11 }
 0x65d   :  { %5533 = vrsqrt.f32 %v3895_v11  ;;  %v4102_v16 = vadd.f32 1.1920929e-07, %v4100_v31 }
 0x65f   :  { %5535 = vrsqrt.f32 %v4102_v16  ;;  %v4028_v15 = vpop.xlane.xlu0 %4027  ;;  %vm4109_vm3 = vweird.f32 %v4102_v16 }
 0x660   :  { %v4029_v8 = vmul.f32 %v4028_v15, %v8518_v56 }
 0x662   :  { %v5532_v40 = vpop.eup %5531  ;;  %v4031_v35 = vadd.f32 1.1920929e-07, %v4029_v8  ;;  %v4167_v47 = vpop.xlane.xlu1 %4166 }
 0x663   :  { %v5534_v20 = vpop.eup %5533  ;;  %v3969_v30 = vmul.f32 %v5532_v40, %v3967_v27  ;;  %v4168_v54 = vmul.f32 %v4167_v47, %v8518_v56  ;;  %vm3975_vm0 = vweird.f32 %v5532_v40 }
 0x664   :  { %v3897_v58 = vmul.f32 %v5534_v20, %v3895_v11  ;;  %5537 = vrsqrt.f32 %v4031_v35  ;;  %vm3903_vm9 = vweird.f32 %v5534_v20  ;;  %vm3976_vm6 = vmor %vm3974_vm8, %vm3975_vm0  ;;  %vm4038_vm5 = vweird.f32 %v4031_v35 }
 0x665   :  { %v8592_v24 = vpop.eup %5535  ;;  %v3970_v3 = vmul.f32 %v5532_v40, %v3969_v30  ;;  %v8594_v17 = vadd.f32 1.1920929e-07, %v4168_v54  ;;  %vm3904_vm4 = vmor %vm3902_vm10, %vm3903_vm9  ;;  %v4101_v30 = vmul.f32 %v8598_v59, %v8534_v29  ;;  %v4030_v54 = vmul.f32 %v8598_v59, %v8547_v23  ;;  %v8643_v29 = vld [vmem:[%s8977_s0 + $0x8] sm:$0xff] }
 0x666   :  { %v3898_v53 = vmul.f32 %v5534_v20, %v3897_v58  ;;  %v4104_v4 = vmul.f32 %v8592_v24, %v4102_v16  ;;  %vm4110_vm1 = vweird.f32 %v8592_v24  ;;  %v8632_v16 = vld [vmem:[%s8977_s0] sm:$0xff]  ;;  %vm3929_vm0 = vcmask 1047559  }
 0x667   :  { %v3971_v62 = vmul.f32 0.5, %v3970_v3  ;;  %5539 = vrsqrt.f32 %v8594_v17  ;;  %vm8621_vm12 = vmor %vm4109_vm3, %vm4110_vm1  ;;  %vm4177_vm8 = vweird.f32 %v8594_v17  ;;  %vm3998_vm3 = vcmask 779776  }
 0x668   :  { %v3899_v28 = vmul.f32 0.5, %v3898_v53  ;;  %v4105_v41 = vmul.f32 %v8592_v24, %v4104_v4 }
 0x669   :  { %v3972_v33 = vsub.f32 1.5, %v3971_v62 }
 0x66a   :  { %v5538_v52 = vpop.eup %5537  ;;  %v3900_v6 = vsub.f32 1.5, %v3899_v28  ;;  %v4106_v19 = vmul.f32 0.5, %v4105_v41  ;;  %v4237_v1 = vpop.xlane.xlu1 %4236 }
 0x66b   :  { %v3973_v37 = vmul.f32 %v5532_v40, %v3972_v33  ;;  %v4033_v22 = vmul.f32 %v5538_v52, %v4031_v35  ;;  %v4238_v55 = vmul.f32 %v4237_v1, %v8518_v56  ;;  %vm4039_vm7 = vweird.f32 %v5538_v52 }
 0x66c   :  { %v3901_v49 = vmul.f32 %v5534_v20, %v3900_v6  ;;  %v4107_v44 = vsub.f32 1.5, %v4106_v19  ;;  %vm4040_vm14 = vmor %vm4038_vm5, %vm4039_vm7  ;;  %vm3934_vm7 = vcmask 517376  }
 0x66d   :  { %v8608_v51 = vpop.eup %5539  ;;  %v3977_v0 = vsel %vm3976_vm6, %v5532_v40, %v3973_v37  ;;  %v4034_v14 = vmul.f32 %v5538_v52, %v4033_v22  ;;  %v8611_v2 = vadd.f32 1.1920929e-07, %v4238_v55 }
 0x66e   :  { %v3978_v10 = vmul.f32 %v3977_v0, %v3966_v38  ;;  %v3905_v48 = vsel %vm3904_vm4, %v5534_v20, %v3901_v49  ;;  %v4172_v61 = vmul.f32 %v8608_v51, %v8594_v17  ;;  %v4108_v63 = vmul.f32 %v8592_v24, %v4107_v44 }
 0x66f   :  { %v3906_v25 = vmul.f32 %v3905_v48, %v3894_v18  ;;  %v4035_v32 = vmul.f32 0.5, %v4034_v14  ;;  %5541 = vrsqrt.f32 %v8611_v2  ;;  %vm4178_vm9 = vweird.f32 %v8608_v51 }
 0x670   :  { %v4173_v13 = vmul.f32 %v8608_v51, %v4172_v61  ;;  %v3979_v27 = vadd.f32 %v8606_v26, %v3978_v10  ;;  %v4112_v35 = vsel %vm8621_vm12, %v8592_v24, %v4108_v63  ;;  %vm4179_vm6 = vmor %vm4177_vm8, %vm4178_vm9  ;;  %vm4247_vm4 = vweird.f32 %v8611_v2 }
 0x671   :  { %v3910_v11 = vadd.f32 %v8606_v26, %v3906_v25  ;;  %v4036_v31 = vsub.f32 1.5, %v4035_v32  ;;  %v4113_v6 = vmul.f32 %v4112_v35, %v4101_v30  ;;  %v4239_v30 = vmul.f32 %v8598_v59, %v8557_v57 }
 0x672   :  { %v4174_v15 = vmul.f32 0.5, %v4173_v13  ;;  %v3981_v8 = vrot.slane %v3979_v27, 7  ;;  %v3985_v41 = vadd.f32 %v8643_v29, %v3979_v27  ;;  %v4169_v27 = vmul.f32 %v8598_v59, %v8544_v34 }
 0x673   :  { %v4037_v47 = vmul.f32 %v5538_v52, %v4036_v31  ;;  %v3912_v20 = vrot.slane %v3910_v11, 1  ;;  %v3915_v24 = vadd.f32 %v8632_v16, %v3910_v11  ;;  %v4114_v10 = vadd.f32 %v8606_v26, %v4113_v6 }
 0x674   :  { %v3984_v58 = vadd.f32 %v8632_v16, %v3981_v8  ;;  %v4175_v4 = vsub.f32 1.5, %v4174_v15  ;;  %vm4069_vm12 = vcmask 1042176  }
 0x675   :  { %v8635_v3 = vpop.eup %5541  ;;  %v4041_v53 = vsel %vm4040_vm14, %v5538_v52, %v4037_v47  ;;  %v3916_v23 = vadd.f32 %v8643_v29, %v3912_v20  ;;  %v4116_v63 = vrot.slane %v4114_v10, 5  ;;  %v4117_v15 = vrot.slane %v4114_v10, 6 }
 0x676   :  { %v4042_v62 = vmul.f32 %v4041_v53, %v4030_v54  ;;  %v4242_v28 = vmul.f32 %v8635_v3, %v8611_v2  ;;  %v3988_v33 = vrot.slane %v3984_v58, 1  ;;  %v4176_v37 = vmul.f32 %v8608_v51, %v4175_v4 }
 0x677   :  { %v3923_v52 = vrot.slane %v3916_v23, 7  ;;  %vm4248_vm10 = vweird.f32 %v8635_v3  ;;  %v4120_v8 = vadd.f32 %v8632_v16, %v4116_v63  ;;  %v4121_v40 = vadd.f32 %v8643_v29, %v4117_v15 }
 0x678   :  { %v4043_v19 = vadd.f32 %v8606_v26, %v4042_v62  ;;  %v4243_v1 = vmul.f32 %v8635_v3, %v4242_v28  ;;  %v3991_v22 = vsel %vm892_vm11, %v3985_v41, %v3988_v33  ;;  %v4180_v32 = vsel %vm4179_vm6, %v8608_v51, %v4176_v37  ;;  %vm4249_vm1 = vmor %vm4247_vm4, %vm4248_vm10 }
 0x679   :  { %v3924_v55 = vsel %vm892_vm11, %v3923_v52, %v3915_v24  ;;  %v3992_v0 = vsel %vm3925_vm2, %v3985_v41, %v3991_v22  ;;  %v4181_v31 = vmul.f32 %v4180_v32, %v4169_v27  ;;  %v4397_v32 = vmul.f32 %v8577_v9, %v8518_v56 }
 0x67a   :  { %v4045_v38 = vrot.slane %v4043_v19, 6  ;;  %v4046_v18 = vrot.slane %v4043_v19, 7  ;;  %v4244_v49 = vmul.f32 0.5, %v4243_v1  ;;  %v3993_v44 = vsel %vm3927_vm15, %v3985_v41, %v3992_v0 }
 0x67b   :  { %v3926_v14 = vsel %vm3925_vm2, %v3923_v52, %v3924_v55  ;;  %v3994_v25 = vsel %vm3929_vm0, %v3985_v41, %v3993_v44  ;;  %v4182_v34 = vadd.f32 %v8606_v26, %v4181_v31  ;;  %v4466_v63 = vmul.f32 %v8579_v43, %v8518_v56 }
 0x67c   :  { %v4049_v48 = vadd.f32 %v8632_v16, %v4045_v38  ;;  %v4050_v61 = vadd.f32 %v8643_v29, %v4046_v18  ;;  %v4245_v13 = vsub.f32 1.5, %v4244_v49  ;;  %3995 = vrot.lane.b32.xlu2 %v3994_v25, %s5762_s25  ;;  %v3928_v17 = vsel %vm3927_vm15, %v3923_v52, %v3926_v14 }
 0x67d   :  { %v3930_v11 = vsel %vm3929_vm0, %v3923_v52, %v3928_v17  ;;  %v4184_v35 = vrot.slane %v4182_v34, 4  ;;  %v4185_v2 = vrot.slane %v4182_v34, 5  ;;  %v4529_v17 = vmul.f32 %v8581_v45, %v8518_v56 }
 0x67e   :  { %4053 = vst.sshfl [vmem:[#allocation1] sm:$0xff pattern:$0x73625140] %v4049_v48  ;;  %3931 = vrot.lane.b32.xlu1 %v3930_v11, %s5763_s6  ;;  %v4246_v51 = vmul.f32 %v8635_v3, %v4245_v13  ;;  %v4813_v44 = vpop.xlane.xlu0 %4812  ;;  %v4308_v14 = vpop.xlane.xlu1 %4307  ;;  %v8715_v11 = vsub.f32 %v8409_v46, %v4397_v32  ;;  %v4737_v46 = vmul.f32 %v8583_v5, %v8518_v56 }
 0x67f   :  { %4056 = vst.sshfl [vmem:[#allocation1 + $0x20] sm:$0xff pattern:$0x73625140] %v4050_v61  ;;  %v4188_v28 = vadd.f32 %v8632_v16, %v4184_v35  ;;  %v4189_v33 = vadd.f32 %v8643_v29, %v4185_v2  ;;  %v4814_v10 = vmul.f32 %v4813_v44, %v8518_v56  ;;  %v4309_v48 = vmul.f32 %v4308_v14, %v8518_v56 }
 0x680   :  { %v4250_v20 = vsel %vm4249_vm1, %v8635_v3, %v4246_v51  ;;  %v4399_v45 = vmul.f32 %v8715_v11, %v8715_v11  ;;  %v8736_v43 = vsub.f32 %v8509_v36, %v4737_v46 }
 0x681   :  { %v4251_v53 = vmul.f32 %v4250_v20, %v4239_v30  ;;  %v8701_v61 = vsub.f32 %v8566_v50, %v4814_v10  ;;  %v8704_v25 = vsub.f32 %v8563_v60, %v4309_v48  ;;  %v8719_v60 = vsub.f32 %v8425_v7, %v4529_v17 }
 0x682   :  { %v8732_v7 = vsub.f32 %v8422_v39, %v4466_v63  ;;  %v4667_v39 = vmul.f32 %v8585_v21, %v8518_v56 }
 0x683   :  { %v4252_v3 = vadd.f32 %v8606_v26, %v4251_v53  ;;  %v4816_v13 = vmul.f32 %v8701_v61, %v8701_v61  ;;  %v4311_v27 = vmul.f32 %v8704_v25, %v8704_v25  ;;  %v4531_v51 = vmul.f32 %v8719_v60, %v8719_v60 }
 0x684   :  { %v4468_v5 = vmul.f32 %v8732_v7, %v8732_v7  ;;  %v8753_v30 = vsub.f32 %v8434_v42, %v4667_v39 }
 0x685   :  { %v4055_v47 = vld [vmem:[#allocation1 + $0x1] ss:$4 sm:$0xff]  ;;  %v4254_v6 = vrot.slane %v4252_v3, 3  ;;  %v4255_v1 = vrot.slane %v4252_v3, 4  ;;  %v4817_v50 = vsel %vm3849_vm13, %v4816_v13, 0.0  ;;  %v4312_v9 = vsel %vm3849_vm13, %v4311_v27, 0.0 }
 0x686   :  { %v4058_v54 = vld [vmem:[#allocation1 + $0x21] ss:$4 sm:$0xff]  ;;  %4124 = vst.sshfl [vmem:[#allocation1] sm:$0xff pattern:$0x73625140] %v4120_v8  ;;  %v4598_v31 = vpop.xlane.xlu1 %4597  ;;  %v4400_v8 = vsel %vm3849_vm13, %v4399_v45, 0.0  ;;  %v4669_v35 = vmul.f32 %v8753_v30, %v8753_v30 }
 0x687   :  { %4127 = vst.sshfl [vmem:[#allocation1 + $0x20] sm:$0xff pattern:$0x73625140] %v4121_v40  ;;  %v4061_v58 = vrot.slane %v4058_v54, 7  ;;  %v4258_v38 = vadd.f32 %v8632_v16, %v4254_v6  ;;  %v4259_v49 = vadd.f32 %v8643_v29, %v4255_v1  ;;  %v4599_v15 = vmul.f32 %v4598_v31, %v8518_v56 }
 0x688   :  { %v4532_v40 = vsel %vm3849_vm13, %v4531_v51, 0.0  ;;  %v4469_v20 = vsel %vm3849_vm13, %v4468_v5, 0.0  ;;  %v4670_v53 = vsel %vm3849_vm13, %v4669_v35, 0.0  ;;  %v8804_v35 = vld [vmem:[#allocation7 + $0x1] ss:$0 sm:$0xff] }
 0x689   :  { %v4062_v4 = vsel %vm892_vm11, %v4061_v58, %v4055_v47  ;;  %v8739_v34 = vsub.f32 %v8573_v12, %v4599_v15  ;;  %v4739_v47 = vmul.f32 %v8736_v43, %v8736_v43 }
 0x68a   :  { %v4063_v23 = vsel %vm3925_vm2, %v4061_v58, %v4062_v4 }
 0x68b   :  { %v4064_v62 = vsel %vm3927_vm15, %v4061_v58, %v4063_v23  ;;  %v4601_v36 = vmul.f32 %v8739_v34, %v8739_v34  ;;  %v4740_v12 = vsel %vm3849_vm13, %v4739_v47, 0.0 }
 0x68c   :  { %v4065_v41 = vsel %vm3929_vm0, %v4061_v58, %v4064_v62 }
 0x68d   :  { %v4126_v57 = vld [vmem:[#allocation1 + $0x1] ss:$4 sm:$0xff]  ;;  %4066 = vrot.lane.b32.xlu0 %v4065_v41, %s5764_s26  ;;  %v4602_v54 = vsel %vm3849_vm13, %v4601_v36, 0.0 }
 0x68e   :  { %v4129_v24 = vld [vmem:[#allocation1 + $0x21] ss:$4 sm:$0xff]  ;;  %4192 = vst.sshfl [vmem:[#allocation1] sm:$0xff pattern:$0x73625140] %v4188_v28  ;;  %v4130_v52 = vrot.slane %v4126_v57, 1 }
 0x68f   :  { %4195 = vst.sshfl [vmem:[#allocation1 + $0x20] sm:$0xff pattern:$0x73625140] %v4189_v33 }
 0x690   :  { %v4133_v19 = vsel %vm892_vm11, %v4129_v24, %v4130_v52 }
 0x691   :  { %v4134_v37 = vsel %vm3925_vm2, %v4129_v24, %v4133_v19 }
 0x692   :  { %v4135_v22 = vsel %vm3927_vm15, %v4129_v24, %v4134_v37 }
 0x693   :  { %v4136_v55 = vsel %vm3929_vm0, %v4129_v24, %v4135_v22 }
 0x694   :  { %4138 = vst.msk [vmem:[%s8985_s8 + $0x2] sm:$0x3] %vm3849_vm13, %v4136_v55 }
 0x695   :  { %v4194_v18 = vld [vmem:[#allocation1 + $0x2] ss:$4 sm:$0xff] }
 0x696   :  { %v4197_v0 = vld [vmem:[#allocation1 + $0x22] ss:$4 sm:$0xff]  ;;  %4262 = vst.sshfl [vmem:[#allocation1] sm:$0xff pattern:$0x73625140] %v4258_v38 }
 0x697   :  { %4265 = vst.sshfl [vmem:[#allocation1 + $0x20] sm:$0xff pattern:$0x73625140] %v4259_v49  ;;  %v4200_v4 = vrot.slane %v4197_v0, 7 }
 0x699   :  { %v4201_v42 = vsel %vm892_vm11, %v4200_v4, %v4194_v18 }
 0x69a   :  { %v4202_v3 = vsel %vm3925_vm2, %v4200_v4, %v4201_v42 }
 0x69b   :  { %v4203_v57 = vsel %vm3927_vm15, %v4200_v4, %v4202_v3  ;;  %v4407_v3 = vmul.f32 %v8804_v35, %v8715_v11 }
 0x69c   :  { %v4204_v33 = vsel %vm3929_vm0, %v4200_v4, %v4203_v57 }
 0x69d   :  { %v4264_v58 = vld [vmem:[#allocation1 + $0x2] ss:$4 sm:$0xff] }
 0x69e   :  { %v4268_v21 = vrot.slane %v4264_v58, 1  ;;  %v4267_v2 = vld [vmem:[#allocation1 + $0x22] ss:$4 sm:$0xff] }
 0x6a0   :  { %v4271_v23 = vsel %vm892_vm11, %v4267_v2, %v4268_v21 }
 0x6a1   :  { %v4272_v62 = vsel %vm3925_vm2, %v4267_v2, %v4271_v23 }
 0x6a2   :  { %v4273_v28 = vsel %vm3927_vm15, %v4267_v2, %v4272_v62 }
 0x6a3   :  { %v4274_v41 = vsel %vm3929_vm0, %v4267_v2, %v4273_v28 }
 0x6a5   :  { %4818 = vadd.xlane.f32.xlu2 %v4817_v50 }
 0x6a8   :  { %4313 = vadd.xlane.f32.xlu1 %v4312_v9 }
 0x6ad   :  { %4401 = vadd.xlane.f32.xlu2 %v4400_v8 }
 0x6b0   :  { %4533 = vadd.xlane.f32.xlu1 %v4532_v40 }
 0x6b5   :  { %4470 = vadd.xlane.f32.xlu2 %v4469_v20  ;;  %v4316_v20 = vmul.f32 %v8598_v59, %v8704_v25 }
 0x6b7   :  { %4741 = vadd.xlane.f32.xlu0 %v4740_v12 }
 0x6b8   :  { %4603 = vadd.xlane.f32.xlu1 %v4602_v54 }
 0x6c0   :  { %4671 = vadd.xlane.f32.xlu1 %v4670_v53 }
 0x6cb   :  { %4275 = vrot.lane.b32.xlu0 %v4274_v41, %s5762_s25 }
 0x6cd   :  { %4205 = vrot.lane.b32.xlu2 %v4204_v33, %s5763_s6 }
 0x6d6   :  { %v3996_v52 = vpop.permute.xlu2 %3995 }
 0x6f0   :  { %v3932_v24 = vpop.permute.xlu1 %3931 }
 0x6f1   :  { %3935 = vst.msk [vmem:[%s8985_s8] sm:$0x3] %vm3934_vm7, %v3932_v24 }
 0x6f2   :  { %3999 = vst.msk [vmem:[%s8985_s8] sm:$0x3] %vm3998_vm3, %v3996_v52 }
 0x6ff   :  { %v4067_v6 = vpop.permute.xlu0 %4066 }
 0x700   :  { %4070 = vst.msk [vmem:[%s8985_s8] sm:$0x3] %vm4069_vm12, %v4067_v6 }
 0x718   :  { %v4819_v19 = vpop.xlane.xlu2 %4818 }
 0x719   :  { %v4820_v9 = vmul.f32 %v4819_v19, %v8518_v56 }
 0x71b   :  { %v4314_v1 = vpop.xlane.xlu1 %4313  ;;  %v8797_v47 = vadd.f32 1.1920929e-07, %v4820_v9 }
 0x71c   :  { %v4315_v37 = vmul.f32 %v4314_v1, %v8518_v56  ;;  %v8822_v1 = vld [vmem:[#allocation9 + $0x1] ss:$0 sm:$0xff] }
 0x71e   :  { %v4317_v22 = vadd.f32 1.1920929e-07, %v4315_v37 }
 0x720   :  { %5543 = vrsqrt.f32 %v4317_v22  ;;  %v4402_v55 = vpop.xlane.xlu2 %4401  ;;  %vm4324_vm14 = vweird.f32 %v4317_v22 }
 0x721   :  { %v4403_v38 = vmul.f32 %v4402_v55, %v8518_v56 }
 0x723   :  { %v4408_v18 = vadd.f32 1.1920929e-07, %v4403_v38  ;;  %v4534_v49 = vpop.xlane.xlu1 %4533 }
 0x724   :  { %v4535_v0 = vmul.f32 %v4534_v49, %v8518_v56 }
 0x725   :  { %5545 = vrsqrt.f32 %v4408_v18  ;;  %vm4415_vm6 = vweird.f32 %v4408_v18 }
 0x726   :  { %v5544_v44 = vpop.eup %5543  ;;  %v8784_v14 = vadd.f32 1.1920929e-07, %v4535_v0 }
 0x727   :  { %v4319_v10 = vmul.f32 %v5544_v44, %v4317_v22  ;;  %vm4325_vm5 = vweird.f32 %v5544_v44 }
 0x728   :  { %5547 = vrsqrt.f32 %v8784_v14  ;;  %v4471_v48 = vpop.xlane.xlu2 %4470  ;;  %vm4326_vm9 = vmor %vm4324_vm14, %vm4325_vm5  ;;  %vm4544_vm1 = vweird.f32 %v8784_v14 }
 0x729   :  { %v4320_v32 = vmul.f32 %v5544_v44, %v4319_v10  ;;  %v4472_v13 = vmul.f32 %v4471_v48, %v8518_v56 }
 0x72a   :  { %v4742_v17 = vpop.xlane.xlu0 %4741 }
 0x72b   :  { %v4743_v27 = vmul.f32 %v4742_v17, %v8518_v56  ;;  %v5546_v50 = vpop.eup %5545  ;;  %v4321_v63 = vmul.f32 0.5, %v4320_v32  ;;  %v8790_v31 = vadd.f32 1.1920929e-07, %v4472_v13  ;;  %v4604_v45 = vpop.xlane.xlu1 %4603  ;;  %v8841_v17 = vld [vmem:[%s8977_s0 + $0x18] sm:$0xff] }
 0x72c   :  { %v4410_v46 = vmul.f32 %v5546_v50, %v4408_v18  ;;  %v4605_v8 = vmul.f32 %v4604_v45, %v8518_v56  ;;  %vm4416_vm8 = vweird.f32 %v5546_v50 }
 0x72d   :  { %v8792_v15 = vadd.f32 1.1920929e-07, %v4743_v27  ;;  %v4322_v51 = vsub.f32 1.5, %v4321_v63  ;;  %5549 = vrsqrt.f32 %v8790_v31  ;;  %vm4417_vm10 = vmor %vm4415_vm6, %vm4416_vm8 }
 0x72e   :  { %v5548_v40 = vpop.eup %5547  ;;  %v4411_v5 = vmul.f32 %v5546_v50, %v4410_v46  ;;  %v8802_v54 = vadd.f32 1.1920929e-07, %v4605_v8 }
 0x72f   :  { %5551 = vrsqrt.f32 %v8792_v15  ;;  %v4323_v39 = vmul.f32 %v5544_v44, %v4322_v51  ;;  %v4539_v36 = vmul.f32 %v5548_v40, %v8784_v14  ;;  %vm4545_vm4 = vweird.f32 %v5548_v40 }
 0x730   :  { %v4412_v12 = vmul.f32 0.5, %v4411_v5  ;;  %v4206_v58 = vpop.permute.xlu2 %4205  ;;  %5553 = vrsqrt.f32 %v8802_v54  ;;  %vm4546_vm5 = vmor %vm4544_vm1, %vm4545_vm4 }
 0x731   :  { %v4327_v21 = vsel %vm4326_vm9, %v5544_v44, %v4323_v39  ;;  %v4540_v53 = vmul.f32 %v5548_v40, %v4539_v36  ;;  %4208 = vst.msk [vmem:[%s8985_s8 + $0x2] sm:$0x3] %vm3934_vm7, %v4206_v58  ;;  %5555 = vrsqrt.f32 %v8797_v47  ;;  %vm4481_vm9 = vweird.f32 %v8790_v31 }
 0x732   :  { %v4328_v2 = vmul.f32 %v4327_v21, %v4316_v20  ;;  %v4413_v4 = vsub.f32 1.5, %v4412_v12 }
 0x733   :  { %v5550_v59 = vpop.eup %5549  ;;  %v4541_v25 = vmul.f32 0.5, %v4540_v53  ;;  %v4672_v33 = vpop.xlane.xlu1 %4671 }
 0x734   :  { %v4329_v62 = vadd.f32 %v8606_v26, %v4328_v2  ;;  %v4414_v42 = vmul.f32 %v5546_v50, %v4413_v4  ;;  %v4476_v28 = vmul.f32 %v5550_v59, %v8790_v31  ;;  %v4536_v26 = vmul.f32 %v8804_v35, %v8719_v60  ;;  %v8856_v31 = vld [vmem:[%s8977_s0 + $0x10] sm:$0xff] }
 0x735   :  { %v8812_v23 = vpop.eup %5551  ;;  %v4542_v41 = vsub.f32 1.5, %v4541_v25  ;;  %v4673_v49 = vmul.f32 %v4672_v33, %v8518_v56  ;;  %vm4482_vm14 = vweird.f32 %v5550_v59 }
 0x736   :  { %v4747_v57 = vmul.f32 %v8812_v23, %v8792_v15  ;;  %v4331_v24 = vrot.slane %v4329_v62, 2  ;;  %v4332_v52 = vrot.slane %v4329_v62, 3  ;;  %v4418_v6 = vsel %vm4417_vm10, %v5546_v50, %v4414_v42  ;;  %v5554_v11 = vpop.eup %5553  ;;  %vm4483_vm8 = vmor %vm4481_vm9, %vm4482_vm14 }
 0x737   :  { %v4477_v19 = vmul.f32 %v5550_v59, %v4476_v28  ;;  %v4419_v37 = vmul.f32 %v4418_v6, %v4407_v3  ;;  %v4543_v22 = vmul.f32 %v5548_v40, %v4542_v41  ;;  %v8829_v0 = vpop.eup %5555  ;;  %v4609_v48 = vmul.f32 %v5554_v11, %v8802_v54 }
 0x738   :  { %v4335_v55 = vadd.f32 %v8632_v16, %v4331_v24  ;;  %v4336_v38 = vadd.f32 %v8643_v29, %v4332_v52  ;;  %v4748_v10 = vmul.f32 %v8812_v23, %v4747_v57  ;;  %v8834_v16 = vadd.f32 1.1920929e-07, %v4673_v49 }
 0x739   :  { %v4478_v18 = vmul.f32 0.5, %v4477_v19  ;;  %v4423_v60 = vadd.f32 %v8822_v1, %v4419_v37  ;;  %v4547_v44 = vsel %vm4546_vm5, %v5548_v40, %v4543_v22  ;;  %v4473_v29 = vmul.f32 %v8804_v35, %v8732_v7 }
 0x73a   :  { %4339 = vst.sshfl [vmem:[#allocation1] sm:$0xff pattern:$0x73625140] %v4335_v55  ;;  %v4548_v14 = vmul.f32 %v4547_v44, %v4536_v26  ;;  %v4610_v56 = vmul.f32 %v5554_v11, %v4609_v48  ;;  %5557 = vrsqrt.f32 %v8834_v16  ;;  %v4824_v63 = vmul.f32 %v8829_v0, %v8797_v47 }
 0x73b   :  { %v4479_v32 = vsub.f32 1.5, %v4478_v18  ;;  %4342 = vst.sshfl [vmem:[#allocation1 + $0x20] sm:$0xff pattern:$0x73625140] %v4336_v38  ;;  %v4425_v13 = vrot.slane %v4423_v60, 1  ;;  %v4749_v7 = vmul.f32 0.5, %v4748_v10  ;;  %vm4615_vm6 = vweird.f32 %v5554_v11 }
 0x73c   :  { %v4549_v27 = vadd.f32 %v8822_v1, %v4548_v14  ;;  %v4611_v45 = vmul.f32 0.5, %v4610_v56  ;;  %v4428_v36 = vadd.f32 %v8856_v31, %v4423_v60  ;;  %vm4614_vm10 = vweird.f32 %v8802_v54 }
 0x73d   :  { %v4480_v50 = vmul.f32 %v5550_v59, %v4479_v32  ;;  %v4276_v9 = vpop.permute.xlu0 %4275  ;;  %v4429_v46 = vadd.f32 %v8841_v17, %v4425_v13  ;;  %v4825_v62 = vmul.f32 %v8829_v0, %v4824_v63  ;;  %vm4616_vm4 = vmor %vm4614_vm10, %vm4615_vm6  ;;  %v4750_v3 = vsub.f32 1.5, %v4749_v7 }
 0x73e   :  { %4278 = vst.msk [vmem:[%s8985_s8 + $0x2] sm:$0x3] %vm3998_vm3, %v4276_v9  ;;  %v4551_v51 = vrot.slane %v4549_v27, 6  ;;  %v4552_v8 = vrot.slane %v4549_v27, 7  ;;  %v4612_v39 = vsub.f32 1.5, %v4611_v45  ;;  %vm4753_vm1 = vweird.f32 %v8812_v23 }
 0x73f   :  { %v4484_v40 = vsel %vm4483_vm8, %v5550_v59, %v4480_v50  ;;  %v4434_v20 = vrot.slane %v4429_v46, 7  ;;  %v4606_v59 = vmul.f32 %v8804_v35, %v8739_v34  ;;  %v4826_v19 = vmul.f32 0.5, %v4825_v62 }
 0x740   :  { %v4485_v5 = vmul.f32 %v4484_v40, %v4473_v29  ;;  %v4555_v12 = vadd.f32 %v8856_v31, %v4551_v51  ;;  %v4556_v58 = vadd.f32 %v8841_v17, %v4552_v8  ;;  %v4613_v21 = vmul.f32 %v5554_v11, %v4612_v39  ;;  %v5558_v25 = vpop.eup %5557 }
 0x741   :  { %v4435_v53 = vsel %vm892_vm11, %v4434_v20, %v4428_v36  ;;  %v4341_v4 = vld [vmem:[#allocation1 + $0x3] ss:$4 sm:$0xff]  ;;  %v4677_v54 = vmul.f32 %v5558_v25, %v8834_v16  ;;  %v4751_v37 = vmul.f32 %v8812_v23, %v4750_v3  ;;  %vm4683_vm5 = vweird.f32 %v5558_v25 }
 0x742   :  { %v4486_v2 = vadd.f32 %v8822_v1, %v4485_v5  ;;  %v4436_v42 = vsel %vm3925_vm2, %v4434_v20, %v4435_v53  ;;  %v4344_v28 = vld [vmem:[#allocation1 + $0x23] ss:$4 sm:$0xff]  ;;  %4559 = vst.sshfl [vmem:[#allocation1] sm:$0xff pattern:$0x73625140] %v4555_v12  ;;  %v4617_v41 = vsel %vm4616_vm4, %v5554_v11, %v4613_v21  ;;  %v4674_v32 = vmul.f32 %v8804_v35, %v8753_v30 }
 0x743   :  { %v4437_v57 = vsel %vm3927_vm15, %v4434_v20, %v4436_v42  ;;  %4562 = vst.sshfl [vmem:[#allocation1 + $0x20] sm:$0xff pattern:$0x73625140] %v4556_v58  ;;  %v4618_v33 = vmul.f32 %v4617_v41, %v4606_v59  ;;  %v4678_v52 = vmul.f32 %v5558_v25, %v4677_v54  ;;  %v4347_v6 = vrot.slane %v4344_v28, 7 }
 0x744   :  { %v4438_v24 = vsel %vm3929_vm0, %v4434_v20, %v4437_v57  ;;  %v4488_v34 = vrot.slane %v4486_v2, 7  ;;  %v4492_v44 = vadd.f32 %v8841_v17, %v4486_v2  ;;  %vm4752_vm14 = vweird.f32 %v8792_v15 }
 0x745   :  { %4439 = vrot.lane.b32.xlu1 %v4438_v24, %s5763_s6  ;;  %v4619_v26 = vadd.f32 %v8822_v1, %v4618_v33  ;;  %v4679_v22 = vmul.f32 0.5, %v4678_v52  ;;  %v4348_v55 = vsel %vm892_vm11, %v4347_v6, %v4341_v4  ;;  %vm8888_vm9 = vmor %vm4752_vm14, %vm4753_vm1  ;;  %vm4682_vm8 = vweird.f32 %v8834_v16 }
 0x746   :  { %v4491_v11 = vadd.f32 %v8856_v31, %v4488_v34  ;;  %v4349_v49 = vsel %vm3925_vm2, %v4347_v6, %v4348_v55  ;;  %v4744_v30 = vmul.f32 %v8804_v35, %v8736_v43  ;;  %v4755_v15 = vsel %vm8888_vm9, %v8812_v23, %v4751_v37  ;;  %vm4684_vm6 = vmor %vm4682_vm8, %vm4683_vm5 }
 0x747   :  { %v4621_v38 = vrot.slane %v4619_v26, 5  ;;  %v4622_v18 = vrot.slane %v4619_v26, 6  ;;  %v4680_v60 = vsub.f32 1.5, %v4679_v22  ;;  %v4350_v48 = vsel %vm3927_vm15, %v4347_v6, %v4349_v49 }
 0x748   :  { %v4495_v10 = vrot.slane %v4491_v11, 1  ;;  %v4351_v45 = vsel %vm3929_vm0, %v4347_v6, %v4350_v48  ;;  %v4827_v46 = vsub.f32 1.5, %v4826_v19  ;;  %v4756_v5 = vmul.f32 %v4755_v15, %v4744_v30 }
 0x749   :  { %v4561_v14 = vld [vmem:[#allocation1 + $0x1] ss:$4 sm:$0xff]  ;;  %v4625_v29 = vadd.f32 %v8856_v31, %v4621_v38  ;;  %v4626_v56 = vadd.f32 %v8841_v17, %v4622_v18  ;;  %v4681_v50 = vmul.f32 %v5558_v25, %v4680_v60  ;;  %vm4830_vm10 = vweird.f32 %v8829_v0 }
 0x74a   :  { %v4564_v13 = vld [vmem:[#allocation1 + $0x21] ss:$4 sm:$0xff]  ;;  %v4498_v9 = vsel %vm892_vm11, %v4492_v44, %v4495_v10  ;;  %v4828_v36 = vmul.f32 %v8829_v0, %v4827_v46  ;;  %vm4829_vm4 = vweird.f32 %v8797_v47  ;;  %v4757_v21 = vadd.f32 %v8822_v1, %v4756_v5 }
 0x74b   :  { %v4567_v63 = vrot.slane %v4564_v13, 7  ;;  %v4499_v7 = vsel %vm3925_vm2, %v4492_v44, %v4498_v9  ;;  %4629 = vst.sshfl [vmem:[#allocation1] sm:$0xff pattern:$0x73625140] %v4625_v29  ;;  %v4685_v51 = vsel %vm4684_vm6, %v5558_v25, %v4681_v50  ;;  %vm4831_vm1 = vmor %vm4829_vm4, %vm4830_vm10  ;;  %v4821_v28 = vmul.f32 %v8804_v35, %v8701_v61 }
 0x74c   :  { %v4500_v16 = vsel %vm3927_vm15, %v4492_v44, %v4499_v7  ;;  %4632 = vst.sshfl [vmem:[#allocation1 + $0x20] sm:$0xff pattern:$0x73625140] %v4626_v56  ;;  %v4686_v43 = vmul.f32 %v4685_v51, %v4674_v32  ;;  %v4832_v42 = vsel %vm4831_vm1, %v8829_v0, %v4828_v36  ;;  %v4759_v54 = vrot.slane %v4757_v21, 3 }
 0x74d   :  { %4352 = vrot.lane.b32.xlu1 %v4351_v45, %s5764_s26  ;;  %v4568_v8 = vsel %vm892_vm11, %v4567_v63, %v4561_v14  ;;  %v4501_v40 = vsel %vm3929_vm0, %v4492_v44, %v4500_v16  ;;  %v4833_v41 = vmul.f32 %v4832_v42, %v4821_v28  ;;  %v4760_v33 = vrot.slane %v4757_v21, 4 }
 0x74e   :  { %v4569_v23 = vsel %vm3925_vm2, %v4567_v63, %v4568_v8  ;;  %4502 = vrot.lane.b32.xlu2 %v4501_v40, %s5762_s25  ;;  %v4687_v39 = vadd.f32 %v8822_v1, %v4686_v43  ;;  %v4763_v35 = vadd.f32 %v8856_v31, %v4759_v54 }
 0x74f   :  { %v4570_v20 = vsel %vm3927_vm15, %v4567_v63, %v4569_v23  ;;  %v4834_v61 = vadd.f32 %v8822_v1, %v4833_v41  ;;  %v4764_v0 = vadd.f32 %v8841_v17, %v4760_v33 }
 0x750   :  { %v4689_v12 = vrot.slane %v4687_v39, 4  ;;  %v4690_v58 = vrot.slane %v4687_v39, 5  ;;  %v4571_v25 = vsel %vm3929_vm0, %v4567_v63, %v4570_v20 }
 0x751   :  { %v4836_v19 = vrot.slane %v4834_v61, 2  ;;  %v4837_v26 = vrot.slane %v4834_v61, 3 }
 0x752   :  { %v4631_v53 = vld [vmem:[#allocation1 + $0x1] ss:$4 sm:$0xff]  ;;  %v4693_v2 = vadd.f32 %v8856_v31, %v4689_v12  ;;  %v4694_v4 = vadd.f32 %v8841_v17, %v4690_v58 }
 0x753   :  { %v4634_v59 = vld [vmem:[#allocation1 + $0x21] ss:$4 sm:$0xff]  ;;  %v4635_v62 = vrot.slane %v4631_v53, 1  ;;  %v4840_v55 = vadd.f32 %v8856_v31, %v4836_v19  ;;  %v4841_v38 = vadd.f32 %v8841_v17, %v4837_v26 }
 0x754   :  { %4697 = vst.sshfl [vmem:[#allocation1] sm:$0xff pattern:$0x73625140] %v4693_v2 }
 0x755   :  { %4572 = vrot.lane.b32.xlu1 %v4571_v25, %s5764_s26  ;;  %v4638_v47 = vsel %vm892_vm11, %v4634_v59, %v4635_v62  ;;  %4700 = vst.sshfl [vmem:[#allocation1 + $0x20] sm:$0xff pattern:$0x73625140] %v4694_v4 }
 0x756   :  { %v4639_v3 = vsel %vm3925_vm2, %v4634_v59, %v4638_v47 }
 0x757   :  { %v4640_v57 = vsel %vm3927_vm15, %v4634_v59, %v4639_v3 }
 0x758   :  { %v4641_v24 = vsel %vm3929_vm0, %v4634_v59, %v4640_v57 }
 0x759   :  { %5046 = vst.msk [vmem:[%s8985_s8 + $0x6] sm:$0x3] %vm3849_vm13, %v4641_v24 }
 0x75b   :  { %v4699_v52 = vld [vmem:[#allocation1 + $0x2] ss:$4 sm:$0xff] }
 0x75c   :  { %v4702_v34 = vld [vmem:[#allocation1 + $0x22] ss:$4 sm:$0xff]  ;;  %4767 = vst.sshfl [vmem:[#allocation1] sm:$0xff pattern:$0x73625140] %v4763_v35 }
 0x75d   :  { %v4705_v6 = vrot.slane %v4702_v34, 7  ;;  %4770 = vst.sshfl [vmem:[#allocation1 + $0x20] sm:$0xff pattern:$0x73625140] %v4764_v0 }
 0x75f   :  { %v4706_v37 = vsel %vm892_vm11, %v4705_v6, %v4699_v52 }
 0x760   :  { %v4707_v22 = vsel %vm3925_vm2, %v4705_v6, %v4706_v37 }
 0x761   :  { %v4708_v11 = vsel %vm3927_vm15, %v4705_v6, %v4707_v22 }
 0x762   :  { %v4709_v1 = vsel %vm3929_vm0, %v4705_v6, %v4708_v11 }
 0x763   :  { %4710 = vrot.lane.b32.xlu1 %v4709_v1, %s5763_s6  ;;  %v4769_v18 = vld [vmem:[#allocation1 + $0x2] ss:$4 sm:$0xff] }
 0x764   :  { %v4772_v49 = vld [vmem:[#allocation1 + $0x22] ss:$4 sm:$0xff]  ;;  %v4773_v60 = vrot.slane %v4769_v18, 1  ;;  %4844 = vst.sshfl [vmem:[#allocation1] sm:$0xff pattern:$0x73625140] %v4840_v55 }
 0x765   :  { %4847 = vst.sshfl [vmem:[#allocation1 + $0x20] sm:$0xff pattern:$0x73625140] %v4841_v38 }
 0x766   :  { %v4776_v44 = vsel %vm892_vm11, %v4772_v49, %v4773_v60 }
 0x767   :  { %v4777_v10 = vsel %vm3925_vm2, %v4772_v49, %v4776_v44 }
 0x768   :  { %v4778_v48 = vsel %vm3927_vm15, %v4772_v49, %v4777_v10 }
 0x769   :  { %v4779_v14 = vsel %vm3929_vm0, %v4772_v49, %v4778_v48 }
 0x76a   :  { %4780 = vrot.lane.b32.xlu0 %v4779_v14, %s5762_s25 }
 0x76b   :  { %v4846_v17 = vld [vmem:[#allocation1 + $0x3] ss:$4 sm:$0xff] }
 0x76c   :  { %v4849_v31 = vld [vmem:[#allocation1 + $0x23] ss:$4 sm:$0xff] }
 0x76d   :  { %v4852_v32 = vrot.slane %v4849_v31, 7 }
 0x76f   :  { %v4853_v29 = vsel %vm892_vm11, %v4852_v32, %v4846_v17 }
 0x770   :  { %v4854_v56 = vsel %vm3925_vm2, %v4852_v32, %v4853_v29 }
 0x771   :  { %v4855_v13 = vsel %vm3927_vm15, %v4852_v32, %v4854_v56 }
 0x772   :  { %v4856_v27 = vsel %vm3929_vm0, %v4852_v32, %v4855_v13 }
 0x773   :  { %4857 = vrot.lane.b32.xlu1 %v4856_v27, %s5764_s26 }
 0x7a8   :  { %v4503_v9 = vpop.permute.xlu2 %4502 }
 0x7b7   :  { %v4440_v50 = vpop.permute.xlu1 %4439 }
 0x7b8   :  { %5040 = vst.msk [vmem:[%s8985_s8 + $0x4] sm:$0x3] %vm3934_vm7, %v4440_v50 }
 0x7b9   :  { %5042 = vst.msk [vmem:[%s8985_s8 + $0x4] sm:$0x3] %vm3998_vm3, %v4503_v9 }
 0x7bf   :  { %v4353_v63 = vpop.permute.xlu1 %4352 }
 0x7c0   :  { %4355 = vst.msk [vmem:[%s8985_s8 + $0x2] sm:$0x3] %vm4069_vm12, %v4353_v63 }
 0x7c7   :  { %v4573_v30 = vpop.permute.xlu1 %4572 }
 0x7c8   :  { %5044 = vst.msk [vmem:[%s8985_s8 + $0x4] sm:$0x3] %vm4069_vm12, %v4573_v30 }
 0x7d5   :  { %v4711_v15 = vpop.permute.xlu1 %4710 }
 0x7d6   :  { %5048 = vst.msk [vmem:[%s8985_s8 + $0x6] sm:$0x3] %vm3934_vm7, %v4711_v15 }
 0x7dc   :  { %v4781_v7 = vpop.permute.xlu0 %4780 }
 0x7dd   :  { %5050 = vst.msk [vmem:[%s8985_s8 + $0x6] sm:$0x3] %vm3998_vm3, %v4781_v7 }
 0x7e5   :  { %v4858_v45 = vpop.permute.xlu1 %4857 }
 0x7e6   :  { %5052 = vst.msk [vmem:[%s8985_s8 + $0x6] sm:$0x3] %vm4069_vm12, %v4858_v45 }
 0x7e7   :  { %4865 = vsyncpa [#allocation3], 1 }
 0x7e8   :  { %4866 = vsyncpa [#allocation5], 1 }
 0x7e9   :  { %4867 = vsyncpa [#allocation8], 1 }

</bundles_post_ra>
